<compile_context>
chip_gen: v7x
topology: tpu7x:2x2x1
jax: 0.10.0
libtpu: 0.0.40
codegen_flags: <defaults>
</compile_context>

<pallas_src>
import math

import jax
import jax.numpy as jnp
from jax.experimental import pallas as pl
from jax.experimental.pallas import tpu as pltpu

# ---- constants from the PyTorch script ----
PATCH_SIZE = 8
IMAGE_SIZE = 64
NUM_PATCHES = (IMAGE_SIZE // PATCH_SIZE) ** 2      # 64
PATCH_DIM = 3 * PATCH_SIZE * PATCH_SIZE            # 192 (Linear(192, .) fixes C=3)
PATCH_DIM_PAD = 256                                # zero-pad K so matmul dims align
EMBED_DIM = 256
NUM_BLOCKS = 4
NUM_CLASSES = 100
NUM_CLASSES_PAD = 128                              # lane-dense head output
BN_EPS = 1e-6


# ---------------- in-kernel math helpers ----------------
def _erf(x):
    # Abramowitz & Stegun 7.1.26, |err| < 1.5e-7 (~f32 eps).  Uses only
    # exp/mul/add so it is guaranteed to lower on the VPU/EUP.
    a1, a2, a3, a4, a5 = (0.254829592, -0.284496736, 1.421413741,
                          -1.453152027, 1.061405429)
    p = 0.3275911
    s = jnp.where(x >= 0.0, 1.0, -1.0)
    ax = jnp.abs(x)
    t = 1.0 / (1.0 + p * ax)
    poly = ((((a5 * t + a4) * t + a3) * t + a2) * t + a1) * t
    return s * (1.0 - poly * jnp.exp(-ax * ax))


def _gelu_exact(x):
    # PyTorch nn.GELU() default (erf-based).
    return 0.5 * x * (1.0 + _erf(x * (1.0 / math.sqrt(2.0))))


# ---------------- the single fused Pallas kernel ----------------
def _fused_kernel(patches_ref, ew_ref, eb_ref, csp_ref, cd_ref, sd_ref,
                  s1_ref, t1_ref, w1_ref, b1_ref, w2_ref, b2_ref,
                  s2_ref, t2_ref, hw_ref, hb_ref, out_ref):
    bt, p, _ = patches_ref.shape
    d = ew_ref.shape[1]

    # ---- patch embedding: (bt*P, 256pad) @ (256pad, 256) + b ----
    xp = patches_ref[...].reshape(bt * p, -1)
    x = jnp.dot(xp, ew_ref[...], preferred_element_type=jnp.float32) + eb_ref[...]
    x = x.reshape(bt, p, d)

    csp = csp_ref[...]                       # (2P, P)  stacked [C_P ; S_P]
    cd, sd = cd_ref[...], sd_ref[...]        # (D, D) cos / sin DFT (symmetric)
    s1, t1 = s1_ref[...], t1_ref[...]        # (P, 1) eval-mode BN1 affine
    s2, t2 = s2_ref[...], t2_ref[...]        # (P, 1) eval-mode BN2 affine
    w1, b1 = w1_ref[...], b1_ref[...]
    w2, b2 = w2_ref[...], b2_ref[...]

    # ---- 4 FNet blocks; ModuleList([block] * 4) means shared weights ----
    for _ in range(NUM_BLOCKS):
        # P-side DFT: one (2P,P)@(P,D) matmul per sample -> [C_P x ; S_P x]
        ys = [jnp.dot(csp, x[b], preferred_element_type=jnp.float32)
              for b in range(bt)]
        cx = jnp.concatenate([y[:p] for y in ys], axis=0)       # (bt*P, D)
        sx = jnp.concatenate([y[p:] for y in ys], axis=0)       # (bt*P, D)
        # D-side DFT: Re(fft2(x)) = (C_P x) C_D - (S_P x) S_D
        fre = jnp.dot(cx, cd, preferred_element_type=jnp.float32)
        fre = fre - jnp.dot(sx, sd, preferred_element_type=jnp.float32)
        x = x + fre.reshape(bt, p, d)
        x = x * s1 + t1                                         # BatchNorm1d #1 (eval)
        # ffn: Linear(256,256) -> GELU -> Dropout(identity, eval) -> Linear(256,256)
        h = x.reshape(bt * p, d)
        h = jnp.dot(h, w1, preferred_element_type=jnp.float32) + b1
        h = _gelu_exact(h)
        h = jnp.dot(h, w2, preferred_element_type=jnp.float32) + b2
        x = x + h.reshape(bt, p, d)
        x = x * s2 + t2                                         # BatchNorm1d #2 (eval)
    # TODO(synk): Dropout(p=0.2) is treated as identity (eval-mode semantics).

    # ---- mean over patches + classification head (lane-dense 128 columns) ----
    pooled = jnp.mean(x, axis=1)                                # (bt, D)
    logits = (jnp.dot(pooled, hw_ref[...], preferred_element_type=jnp.float32)
              + hb_ref[...])                                    # (bt, 128)
    out_ref[...] = logits.reshape(bt, 1, NUM_CLASSES_PAD)


# ---------------- wrapper / pallas_call plumbing ----------------
def _const_spec(shape):
    zeros = (0,) * len(shape)
    return pl.BlockSpec(shape, lambda i, _z=zeros: _z)


def _pick_block_batch(batch):
    # Prefer big batch tiles (M = bt*64 rows per matmul) but keep >= 2 grid
    # steps so both TensorCores (megacore / v7x) get work when batch allows.
    for bt in (8, 4, 2, 1):
        if batch % bt == 0 and batch // bt >= 2:
            return bt
    return batch


def extract_patches(x_nchw, patch=PATCH_SIZE):
    # TODO(synk): `image_extract_pathches` is undefined in the reference script;
    # we use F.unfold-style ordering: patches row-major over the 8x8 grid, each
    # patch's 192 values flattened channel-major (C, ph, pw).
    b, c, h, w = x_nchw.shape
    gh, gw = h // patch, w // patch
    x = x_nchw.reshape(b, c, gh, patch, gw, patch)
    x = x.transpose(0, 2, 4, 1, 3, 5)                # (B, gh, gw, C, ph, pw)
    return x.reshape(b, gh * gw, c * patch * patch)  # (B, 64, 192)


def dft_cos_sin(n):
    k = jnp.arange(n, dtype=jnp.float32)
    # Reduce k*k mod n before the 2*pi multiply for better f32 accuracy.
    kk = jnp.mod(jnp.outer(k, k), float(n))
    ang = 2.0 * jnp.pi * kk / float(n)
    return jnp.cos(ang), jnp.sin(ang)


def init_params(key):
    def linear(k, fan_in, fan_out):
        kw, kb = jax.random.split(k)
        bound = 1.0 / math.sqrt(fan_in)
        w = jax.random.uniform(kw, (fan_in, fan_out), jnp.float32, -bound, bound)
        b = jax.random.uniform(kb, (fan_out,), jnp.float32, -bound, bound)
        return w, b

    keys = jax.random.split(key, 4)
    p = {}
    p["embed_w"], p["embed_b"] = linear(keys[0], PATCH_DIM, EMBED_DIM)
    p["ffn_w1"], p["ffn_b1"] = linear(keys[1], EMBED_DIM, EMBED_DIM)
    p["ffn_w2"], p["ffn_b2"] = linear(keys[2], EMBED_DIM, EMBED_DIM)
    p["cat_w"], p["cat_b"] = linear(keys[3], EMBED_DIM, NUM_CLASSES)
    # LazyBatchNorm1d(eps=1e-6) infers 64 features; PyTorch init + eval fold.
    for name in ("bn1", "bn2"):
        gamma = jnp.ones((NUM_PATCHES,), jnp.float32)
        beta = jnp.zeros((NUM_PATCHES,), jnp.float32)
        rmean = jnp.zeros((NUM_PATCHES,), jnp.float32)
        rvar = jnp.ones((NUM_PATCHES,), jnp.float32)
        scale = gamma / jnp.sqrt(rvar + BN_EPS)
        p[name + "_scale"] = scale
        p[name + "_shift"] = beta - rmean * scale
    return p


def build_classifier_forward(x_nchw, params, block_batch=None):
    b = x_nchw.shape[0]
    bt = _pick_block_batch(b) if block_batch is None else block_batch
    assert b % bt == 0, (b, bt)

    p, d, c = NUM_PATCHES, EMBED_DIM, NUM_CLASSES_PAD

    patches = extract_patches(x_nchw)                                 # (B, 64, 192)
    patches = jnp.pad(patches, ((0, 0), (0, 0), (0, PATCH_DIM_PAD - PATCH_DIM)))

    cp, sp = dft_cos_sin(p)
    cd, sd = dft_cos_sin(d)
    csp = jnp.concatenate([cp, sp], axis=0)                           # (128, 64)

    ew = jnp.pad(params["embed_w"], ((0, PATCH_DIM_PAD - PATCH_DIM), (0, 0)))
    eb = params["embed_b"].reshape(1, d)
    hw = jnp.pad(params["cat_w"], ((0, 0), (0, c - NUM_CLASSES)))
    hb = jnp.pad(params["cat_b"], (0, c - NUM_CLASSES)).reshape(1, c)

    args = (patches, ew, eb, csp, cd, sd,
            params["bn1_scale"].reshape(p, 1), params["bn1_shift"].reshape(p, 1),
            params["ffn_w1"], params["ffn_b1"].reshape(1, d),
            params["ffn_w2"], params["ffn_b2"].reshape(1, d),
            params["bn2_scale"].reshape(p, 1), params["bn2_shift"].reshape(p, 1),
            hw, hb)

    in_specs = [pl.BlockSpec((bt, p, PATCH_DIM_PAD), lambda i: (i, 0, 0))]
    in_specs += [_const_spec(a.shape) for a in args[1:]]

    out = pl.pallas_call(
        _fused_kernel,
        out_shape=jax.ShapeDtypeStruct((b, 1, c), jnp.float32),
        grid=(b // bt,),
        in_specs=in_specs,
        out_specs=pl.BlockSpec((bt, 1, c), lambda i: (i, 0, 0)),
        compiler_params=pltpu.CompilerParams(
            dimension_semantics=("parallel",)),
    )(*args)
    return out.reshape(b, c)[:, :NUM_CLASSES]


if __name__ == "__main__":
    key = jax.random.PRNGKey(0)
    k_img, k_par = jax.random.split(key)
    x = jax.random.normal(k_img, (2, 3, IMAGE_SIZE, IMAGE_SIZE), jnp.float32)
    params = init_params(k_par)

    forward = jax.jit(build_classifier_forward)
    logits = forward(x, params)
    logits = jax.block_until_ready(logits)
    assert logits.shape == (2, NUM_CLASSES), logits.shape
    assert bool(jnp.all(jnp.isfinite(logits)))
    print("KERNEL_OK")
</pallas_src>

<mosaic_0001>
module attributes {stable_mosaic.version = 11 : i64} {
  func.func @_fused_kernel(%arg0: i32, %arg1: memref<1x64x256xf32, #tpu.memory_space<vmem>>, %arg2: memref<256x256xf32, #tpu.memory_space<vmem>>, %arg3: memref<1x256xf32, #tpu.memory_space<vmem>>, %arg4: memref<128x64xf32, #tpu.memory_space<vmem>>, %arg5: memref<256x256xf32, #tpu.memory_space<vmem>>, %arg6: memref<256x256xf32, #tpu.memory_space<vmem>>, %arg7: memref<64x1xf32, #tpu.memory_space<vmem>>, %arg8: memref<64x1xf32, #tpu.memory_space<vmem>>, %arg9: memref<256x256xf32, #tpu.memory_space<vmem>>, %arg10: memref<1x256xf32, #tpu.memory_space<vmem>>, %arg11: memref<256x256xf32, #tpu.memory_space<vmem>>, %arg12: memref<1x256xf32, #tpu.memory_space<vmem>>, %arg13: memref<64x1xf32, #tpu.memory_space<vmem>>, %arg14: memref<64x1xf32, #tpu.memory_space<vmem>>, %arg15: memref<256x128xf32, #tpu.memory_space<vmem>>, %arg16: memref<1x128xf32, #tpu.memory_space<vmem>>, %arg17: memref<1x1x128xf32, #tpu.memory_space<vmem>>) attributes {dimension_semantics = [#tpu.dimension_semantics<parallel>], iteration_bounds = array<i64: 2>, scalar_prefetch = 0 : i64, scratch_operands = 0 : i64, tpu.core_type = #tpu.core_type<tc>, window_params = [{transform_indices = @transform_0, window_bounds = array<i64: 1, 64, 256>}, {pipeline_mode = #tpu.pipeline_mode<synchronous>, transform_indices = @transform_1, window_bounds = array<i64: 256, 256>}, {pipeline_mode = #tpu.pipeline_mode<synchronous>, transform_indices = @transform_2, window_bounds = array<i64: 1, 256>}, {pipeline_mode = #tpu.pipeline_mode<synchronous>, transform_indices = @transform_3, window_bounds = array<i64: 128, 64>}, {pipeline_mode = #tpu.pipeline_mode<synchronous>, transform_indices = @transform_4, window_bounds = array<i64: 256, 256>}, {pipeline_mode = #tpu.pipeline_mode<synchronous>, transform_indices = @transform_5, window_bounds = array<i64: 256, 256>}, {pipeline_mode = #tpu.pipeline_mode<synchronous>, transform_indices = @transform_6, window_bounds = array<i64: 64, 1>}, {pipeline_mode = #tpu.pipeline_mode<synchronous>, transform_indices = @transform_7, window_bounds = array<i64: 64, 1>}, {pipeline_mode = #tpu.pipeline_mode<synchronous>, transform_indices = @transform_8, window_bounds = array<i64: 256, 256>}, {pipeline_mode = #tpu.pipeline_mode<synchronous>, transform_indices = @transform_9, window_bounds = array<i64: 1, 256>}, {pipeline_mode = #tpu.pipeline_mode<synchronous>, transform_indices = @transform_10, window_bounds = array<i64: 256, 256>}, {pipeline_mode = #tpu.pipeline_mode<synchronous>, transform_indices = @transform_11, window_bounds = array<i64: 1, 256>}, {pipeline_mode = #tpu.pipeline_mode<synchronous>, transform_indices = @transform_12, window_bounds = array<i64: 64, 1>}, {pipeline_mode = #tpu.pipeline_mode<synchronous>, transform_indices = @transform_13, window_bounds = array<i64: 64, 1>}, {pipeline_mode = #tpu.pipeline_mode<synchronous>, transform_indices = @transform_14, window_bounds = array<i64: 256, 128>}, {pipeline_mode = #tpu.pipeline_mode<synchronous>, transform_indices = @transform_15, window_bounds = array<i64: 1, 128>}, {transform_indices = @transform_16, window_bounds = array<i64: 1, 1, 128>}]} {
    %c0 = arith.constant 0 : index
    %c0_0 = arith.constant 0 : index
    %c0_1 = arith.constant 0 : index
    %0 = vector.load %arg1[%c0, %c0_0, %c0_1] : memref<1x64x256xf32, #tpu.memory_space<vmem>>, vector<1x64x256xf32>
    %1 = vector.shape_cast %0 : vector<1x64x256xf32> to vector<64x256xf32>
    %c0_2 = arith.constant 0 : index
    %c0_3 = arith.constant 0 : index
    %2 = vector.load %arg2[%c0_2, %c0_3] : memref<256x256xf32, #tpu.memory_space<vmem>>, vector<256x256xf32>
    %cst = arith.constant dense<0.000000e+00> : vector<64x256xf32>
    %3 = tpu.matmul %1, %2, %cst {dimension_numbers = #tpu.dot_dimension_numbers<[1], [0], [0], [1], [0, 0, 1, 1], [], []>} : vector<64x256xf32>, vector<256x256xf32>, vector<64x256xf32> -> vector<64x256xf32>
    %c0_4 = arith.constant 0 : index
    %c0_5 = arith.constant 0 : index
    %4 = vector.load %arg3[%c0_4, %c0_5] : memref<1x256xf32, #tpu.memory_space<vmem>>, vector<1x256xf32>
    %5 = vector.broadcast %4 : vector<1x256xf32> to vector<64x256xf32>
    %6 = arith.addf %3, %5 : vector<64x256xf32>
    %7 = vector.shape_cast %6 : vector<64x256xf32> to vector<1x64x256xf32>
    %c0_6 = arith.constant 0 : index
    %c0_7 = arith.constant 0 : index
    %8 = vector.load %arg4[%c0_6, %c0_7] : memref<128x64xf32, #tpu.memory_space<vmem>>, vector<128x64xf32>
    %c0_8 = arith.constant 0 : index
    %c0_9 = arith.constant 0 : index
    %9 = vector.load %arg5[%c0_8, %c0_9] : memref<256x256xf32, #tpu.memory_space<vmem>>, vector<256x256xf32>
    %c0_10 = arith.constant 0 : index
    %c0_11 = arith.constant 0 : index
    %10 = vector.load %arg6[%c0_10, %c0_11] : memref<256x256xf32, #tpu.memory_space<vmem>>, vector<256x256xf32>
    %c0_12 = arith.constant 0 : index
    %c0_13 = arith.constant 0 : index
    %11 = vector.load %arg7[%c0_12, %c0_13] : memref<64x1xf32, #tpu.memory_space<vmem>>, vector<64x1xf32>
    %c0_14 = arith.constant 0 : index
    %c0_15 = arith.constant 0 : index
    %12 = vector.load %arg8[%c0_14, %c0_15] : memref<64x1xf32, #tpu.memory_space<vmem>>, vector<64x1xf32>
    %c0_16 = arith.constant 0 : index
    %c0_17 = arith.constant 0 : index
    %13 = vector.load %arg13[%c0_16, %c0_17] : memref<64x1xf32, #tpu.memory_space<vmem>>, vector<64x1xf32>
    %c0_18 = arith.constant 0 : index
    %c0_19 = arith.constant 0 : index
    %14 = vector.load %arg14[%c0_18, %c0_19] : memref<64x1xf32, #tpu.memory_space<vmem>>, vector<64x1xf32>
    %c0_20 = arith.constant 0 : index
    %c0_21 = arith.constant 0 : index
    %15 = vector.load %arg9[%c0_20, %c0_21] : memref<256x256xf32, #tpu.memory_space<vmem>>, vector<256x256xf32>
    %c0_22 = arith.constant 0 : index
    %c0_23 = arith.constant 0 : index
    %16 = vector.load %arg10[%c0_22, %c0_23] : memref<1x256xf32, #tpu.memory_space<vmem>>, vector<1x256xf32>
    %c0_24 = arith.constant 0 : index
    %c0_25 = arith.constant 0 : index
    %17 = vector.load %arg11[%c0_24, %c0_25] : memref<256x256xf32, #tpu.memory_space<vmem>>, vector<256x256xf32>
    %c0_26 = arith.constant 0 : index
    %c0_27 = arith.constant 0 : index
    %18 = vector.load %arg12[%c0_26, %c0_27] : memref<1x256xf32, #tpu.memory_space<vmem>>, vector<1x256xf32>
    %19 = vector.shape_cast %7 : vector<1x64x256xf32> to vector<64x256xf32>
    %cst_28 = arith.constant dense<0.000000e+00> : vector<128x256xf32>
    %20 = tpu.matmul %8, %19, %cst_28 {dimension_numbers = #tpu.dot_dimension_numbers<[1], [0], [0], [1], [0, 0, 1, 1], [], []>} : vector<128x64xf32>, vector<64x256xf32>, vector<128x256xf32> -> vector<128x256xf32>
    %21 = vector.extract_strided_slice %20 {offsets = [0, 0], sizes = [64, 256], strides = [1, 1]} : vector<128x256xf32> to vector<64x256xf32>
    %22 = vector.extract_strided_slice %20 {offsets = [64, 0], sizes = [64, 256], strides = [1, 1]} : vector<128x256xf32> to vector<64x256xf32>
    %cst_29 = arith.constant dense<0.000000e+00> : vector<64x256xf32>
    %23 = tpu.matmul %21, %9, %cst_29 {dimension_numbers = #tpu.dot_dimension_numbers<[1], [0], [0], [1], [0, 0, 1, 1], [], []>} : vector<64x256xf32>, vector<256x256xf32>, vector<64x256xf32> -> vector<64x256xf32>
    %cst_30 = arith.constant dense<0.000000e+00> : vector<64x256xf32>
    %24 = tpu.matmul %22, %10, %cst_30 {dimension_numbers = #tpu.dot_dimension_numbers<[1], [0], [0], [1], [0, 0, 1, 1], [], []>} : vector<64x256xf32>, vector<256x256xf32>, vector<64x256xf32> -> vector<64x256xf32>
    %25 = arith.subf %23, %24 : vector<64x256xf32>
    %26 = vector.shape_cast %25 : vector<64x256xf32> to vector<1x64x256xf32>
    %27 = arith.addf %7, %26 : vector<1x64x256xf32>
    %28 = vector.shape_cast %11 : vector<64x1xf32> to vector<1x64x1xf32>
    %29 = vector.broadcast %28 : vector<1x64x1xf32> to vector<1x64x256xf32>
    %30 = arith.mulf %27, %29 : vector<1x64x256xf32>
    %31 = vector.shape_cast %12 : vector<64x1xf32> to vector<1x64x1xf32>
    %32 = vector.broadcast %31 : vector<1x64x1xf32> to vector<1x64x256xf32>
    %33 = arith.addf %30, %32 : vector<1x64x256xf32>
    %34 = vector.shape_cast %33 : vector<1x64x256xf32> to vector<64x256xf32>
    %cst_31 = arith.constant dense<0.000000e+00> : vector<64x256xf32>
    %35 = tpu.matmul %34, %15, %cst_31 {dimension_numbers = #tpu.dot_dimension_numbers<[1], [0], [0], [1], [0, 0, 1, 1], [], []>} : vector<64x256xf32>, vector<256x256xf32>, vector<64x256xf32> -> vector<64x256xf32>
    %36 = vector.broadcast %16 : vector<1x256xf32> to vector<64x256xf32>
    %37 = arith.addf %35, %36 : vector<64x256xf32>
    %cst_32 = arith.constant 5.000000e-01 : f32
    %38 = vector.broadcast %cst_32 : f32 to vector<64x256xf32>
    %39 = arith.mulf %38, %37 : vector<64x256xf32>
    %cst_33 = arith.constant 0.707106769 : f32
    %40 = vector.broadcast %cst_33 : f32 to vector<64x256xf32>
    %41 = arith.mulf %37, %40 : vector<64x256xf32>
    %cst_34 = arith.constant 0.000000e+00 : f32
    %42 = vector.broadcast %cst_34 : f32 to vector<64x256xf32>
    %43 = arith.cmpf oge, %41, %42 : vector<64x256xf32>
    %cst_35 = arith.constant 1.000000e+00 : f32
    %cst_36 = arith.constant -1.000000e+00 : f32
    %44 = vector.broadcast %cst_35 : f32 to vector<64x256xf32>
    %45 = vector.broadcast %cst_36 : f32 to vector<64x256xf32>
    %46 = arith.select %43, %44, %45 : vector<64x256xi1>, vector<64x256xf32>
    %47 = math.absf %41 : vector<64x256xf32>
    %cst_37 = arith.constant 0.327591091 : f32
    %48 = vector.broadcast %cst_37 : f32 to vector<64x256xf32>
    %49 = arith.mulf %48, %47 : vector<64x256xf32>
    %cst_38 = arith.constant 1.000000e+00 : f32
    %50 = vector.broadcast %cst_38 : f32 to vector<64x256xf32>
    %51 = arith.addf %50, %49 : vector<64x256xf32>
    %cst_39 = arith.constant 1.000000e+00 : f32
    %52 = vector.broadcast %cst_39 : f32 to vector<64x256xf32>
    %53 = arith.divf %52, %51 : vector<64x256xf32>
    %cst_40 = arith.constant 1.06140542 : f32
    %54 = vector.broadcast %cst_40 : f32 to vector<64x256xf32>
    %55 = arith.mulf %54, %53 : vector<64x256xf32>
    %cst_41 = arith.constant -1.45315206 : f32
    %56 = vector.broadcast %cst_41 : f32 to vector<64x256xf32>
    %57 = arith.addf %55, %56 : vector<64x256xf32>
    %58 = arith.mulf %57, %53 : vector<64x256xf32>
    %cst_42 = arith.constant 1.42141378 : f32
    %59 = vector.broadcast %cst_42 : f32 to vector<64x256xf32>
    %60 = arith.addf %58, %59 : vector<64x256xf32>
    %61 = arith.mulf %60, %53 : vector<64x256xf32>
    %cst_43 = arith.constant -0.284496725 : f32
    %62 = vector.broadcast %cst_43 : f32 to vector<64x256xf32>
    %63 = arith.addf %61, %62 : vector<64x256xf32>
    %64 = arith.mulf %63, %53 : vector<64x256xf32>
    %cst_44 = arith.constant 0.254829586 : f32
    %65 = vector.broadcast %cst_44 : f32 to vector<64x256xf32>
    %66 = arith.addf %64, %65 : vector<64x256xf32>
    %67 = arith.mulf %66, %53 : vector<64x256xf32>
    %cst_45 = arith.constant 0.000000e+00 : f32
    %68 = vector.broadcast %cst_45 : f32 to vector<64x256xf32>
    %69 = arith.subf %68, %47 : vector<64x256xf32>
    %70 = arith.mulf %69, %47 : vector<64x256xf32>
    %71 = math.exp %70 : vector<64x256xf32>
    %72 = arith.mulf %67, %71 : vector<64x256xf32>
    %cst_46 = arith.constant 1.000000e+00 : f32
    %73 = vector.broadcast %cst_46 : f32 to vector<64x256xf32>
    %74 = arith.subf %73, %72 : vector<64x256xf32>
    %75 = arith.mulf %46, %74 : vector<64x256xf32>
    %cst_47 = arith.constant 1.000000e+00 : f32
    %76 = vector.broadcast %cst_47 : f32 to vector<64x256xf32>
    %77 = arith.addf %76, %75 : vector<64x256xf32>
    %78 = arith.mulf %39, %77 : vector<64x256xf32>
    %cst_48 = arith.constant dense<0.000000e+00> : vector<64x256xf32>
    %79 = tpu.matmul %78, %17, %cst_48 {dimension_numbers = #tpu.dot_dimension_numbers<[1], [0], [0], [1], [0, 0, 1, 1], [], []>} : vector<64x256xf32>, vector<256x256xf32>, vector<64x256xf32> -> vector<64x256xf32>
    %80 = vector.broadcast %18 : vector<1x256xf32> to vector<64x256xf32>
    %81 = arith.addf %79, %80 : vector<64x256xf32>
    %82 = vector.shape_cast %81 : vector<64x256xf32> to vector<1x64x256xf32>
    %83 = arith.addf %33, %82 : vector<1x64x256xf32>
    %84 = vector.shape_cast %13 : vector<64x1xf32> to vector<1x64x1xf32>
    %85 = vector.broadcast %84 : vector<1x64x1xf32> to vector<1x64x256xf32>
    %86 = arith.mulf %83, %85 : vector<1x64x256xf32>
    %87 = vector.shape_cast %14 : vector<64x1xf32> to vector<1x64x1xf32>
    %88 = vector.broadcast %87 : vector<1x64x1xf32> to vector<1x64x256xf32>
    %89 = arith.addf %86, %88 : vector<1x64x256xf32>
    %90 = vector.shape_cast %89 : vector<1x64x256xf32> to vector<64x256xf32>
    %cst_49 = arith.constant dense<0.000000e+00> : vector<128x256xf32>
    %91 = tpu.matmul %8, %90, %cst_49 {dimension_numbers = #tpu.dot_dimension_numbers<[1], [0], [0], [1], [0, 0, 1, 1], [], []>} : vector<128x64xf32>, vector<64x256xf32>, vector<128x256xf32> -> vector<128x256xf32>
    %92 = vector.extract_strided_slice %91 {offsets = [0, 0], sizes = [64, 256], strides = [1, 1]} : vector<128x256xf32> to vector<64x256xf32>
    %93 = vector.extract_strided_slice %91 {offsets = [64, 0], sizes = [64, 256], strides = [1, 1]} : vector<128x256xf32> to vector<64x256xf32>
    %cst_50 = arith.constant dense<0.000000e+00> : vector<64x256xf32>
    %94 = tpu.matmul %92, %9, %cst_50 {dimension_numbers = #tpu.dot_dimension_numbers<[1], [0], [0], [1], [0, 0, 1, 1], [], []>} : vector<64x256xf32>, vector<256x256xf32>, vector<64x256xf32> -> vector<64x256xf32>
    %cst_51 = arith.constant dense<0.000000e+00> : vector<64x256xf32>
    %95 = tpu.matmul %93, %10, %cst_51 {dimension_numbers = #tpu.dot_dimension_numbers<[1], [0], [0], [1], [0, 0, 1, 1], [], []>} : vector<64x256xf32>, vector<256x256xf32>, vector<64x256xf32> -> vector<64x256xf32>
    %96 = arith.subf %94, %95 : vector<64x256xf32>
    %97 = vector.shape_cast %96 : vector<64x256xf32> to vector<1x64x256xf32>
    %98 = arith.addf %89, %97 : vector<1x64x256xf32>
    %99 = vector.shape_cast %11 : vector<64x1xf32> to vector<1x64x1xf32>
    %100 = vector.broadcast %99 : vector<1x64x1xf32> to vector<1x64x256xf32>
    %101 = arith.mulf %98, %100 : vector<1x64x256xf32>
    %102 = vector.shape_cast %12 : vector<64x1xf32> to vector<1x64x1xf32>
    %103 = vector.broadcast %102 : vector<1x64x1xf32> to vector<1x64x256xf32>
    %104 = arith.addf %101, %103 : vector<1x64x256xf32>
    %105 = vector.shape_cast %104 : vector<1x64x256xf32> to vector<64x256xf32>
    %cst_52 = arith.constant dense<0.000000e+00> : vector<64x256xf32>
    %106 = tpu.matmul %105, %15, %cst_52 {dimension_numbers = #tpu.dot_dimension_numbers<[1], [0], [0], [1], [0, 0, 1, 1], [], []>} : vector<64x256xf32>, vector<256x256xf32>, vector<64x256xf32> -> vector<64x256xf32>
    %107 = vector.broadcast %16 : vector<1x256xf32> to vector<64x256xf32>
    %108 = arith.addf %106, %107 : vector<64x256xf32>
    %cst_53 = arith.constant 5.000000e-01 : f32
    %109 = vector.broadcast %cst_53 : f32 to vector<64x256xf32>
    %110 = arith.mulf %109, %108 : vector<64x256xf32>
    %cst_54 = arith.constant 0.707106769 : f32
    %111 = vector.broadcast %cst_54 : f32 to vector<64x256xf32>
    %112 = arith.mulf %108, %111 : vector<64x256xf32>
    %cst_55 = arith.constant 0.000000e+00 : f32
    %113 = vector.broadcast %cst_55 : f32 to vector<64x256xf32>
    %114 = arith.cmpf oge, %112, %113 : vector<64x256xf32>
    %cst_56 = arith.constant 1.000000e+00 : f32
    %cst_57 = arith.constant -1.000000e+00 : f32
    %115 = vector.broadcast %cst_56 : f32 to vector<64x256xf32>
    %116 = vector.broadcast %cst_57 : f32 to vector<64x256xf32>
    %117 = arith.select %114, %115, %116 : vector<64x256xi1>, vector<64x256xf32>
    %118 = math.absf %112 : vector<64x256xf32>
    %cst_58 = arith.constant 0.327591091 : f32
    %119 = vector.broadcast %cst_58 : f32 to vector<64x256xf32>
    %120 = arith.mulf %119, %118 : vector<64x256xf32>
    %cst_59 = arith.constant 1.000000e+00 : f32
    %121 = vector.broadcast %cst_59 : f32 to vector<64x256xf32>
    %122 = arith.addf %121, %120 : vector<64x256xf32>
    %cst_60 = arith.constant 1.000000e+00 : f32
    %123 = vector.broadcast %cst_60 : f32 to vector<64x256xf32>
    %124 = arith.divf %123, %122 : vector<64x256xf32>
    %cst_61 = arith.constant 1.06140542 : f32
    %125 = vector.broadcast %cst_61 : f32 to vector<64x256xf32>
    %126 = arith.mulf %125, %124 : vector<64x256xf32>
    %cst_62 = arith.constant -1.45315206 : f32
    %127 = vector.broadcast %cst_62 : f32 to vector<64x256xf32>
    %128 = arith.addf %126, %127 : vector<64x256xf32>
    %129 = arith.mulf %128, %124 : vector<64x256xf32>
    %cst_63 = arith.constant 1.42141378 : f32
    %130 = vector.broadcast %cst_63 : f32 to vector<64x256xf32>
    %131 = arith.addf %129, %130 : vector<64x256xf32>
    %132 = arith.mulf %131, %124 : vector<64x256xf32>
    %cst_64 = arith.constant -0.284496725 : f32
    %133 = vector.broadcast %cst_64 : f32 to vector<64x256xf32>
    %134 = arith.addf %132, %133 : vector<64x256xf32>
    %135 = arith.mulf %134, %124 : vector<64x256xf32>
    %cst_65 = arith.constant 0.254829586 : f32
    %136 = vector.broadcast %cst_65 : f32 to vector<64x256xf32>
    %137 = arith.addf %135, %136 : vector<64x256xf32>
    %138 = arith.mulf %137, %124 : vector<64x256xf32>
    %cst_66 = arith.constant 0.000000e+00 : f32
    %139 = vector.broadcast %cst_66 : f32 to vector<64x256xf32>
    %140 = arith.subf %139, %118 : vector<64x256xf32>
    %141 = arith.mulf %140, %118 : vector<64x256xf32>
    %142 = math.exp %141 : vector<64x256xf32>
    %143 = arith.mulf %138, %142 : vector<64x256xf32>
    %cst_67 = arith.constant 1.000000e+00 : f32
    %144 = vector.broadcast %cst_67 : f32 to vector<64x256xf32>
    %145 = arith.subf %144, %143 : vector<64x256xf32>
    %146 = arith.mulf %117, %145 : vector<64x256xf32>
    %cst_68 = arith.constant 1.000000e+00 : f32
    %147 = vector.broadcast %cst_68 : f32 to vector<64x256xf32>
    %148 = arith.addf %147, %146 : vector<64x256xf32>
    %149 = arith.mulf %110, %148 : vector<64x256xf32>
    %cst_69 = arith.constant dense<0.000000e+00> : vector<64x256xf32>
    %150 = tpu.matmul %149, %17, %cst_69 {dimension_numbers = #tpu.dot_dimension_numbers<[1], [0], [0], [1], [0, 0, 1, 1], [], []>} : vector<64x256xf32>, vector<256x256xf32>, vector<64x256xf32> -> vector<64x256xf32>
    %151 = vector.broadcast %18 : vector<1x256xf32> to vector<64x256xf32>
    %152 = arith.addf %150, %151 : vector<64x256xf32>
    %153 = vector.shape_cast %152 : vector<64x256xf32> to vector<1x64x256xf32>
    %154 = arith.addf %104, %153 : vector<1x64x256xf32>
    %155 = vector.shape_cast %13 : vector<64x1xf32> to vector<1x64x1xf32>
    %156 = vector.broadcast %155 : vector<1x64x1xf32> to vector<1x64x256xf32>
    %157 = arith.mulf %154, %156 : vector<1x64x256xf32>
    %158 = vector.shape_cast %14 : vector<64x1xf32> to vector<1x64x1xf32>
    %159 = vector.broadcast %158 : vector<1x64x1xf32> to vector<1x64x256xf32>
    %160 = arith.addf %157, %159 : vector<1x64x256xf32>
    %161 = vector.shape_cast %160 : vector<1x64x256xf32> to vector<64x256xf32>
    %cst_70 = arith.constant dense<0.000000e+00> : vector<128x256xf32>
    %162 = tpu.matmul %8, %161, %cst_70 {dimension_numbers = #tpu.dot_dimension_numbers<[1], [0], [0], [1], [0, 0, 1, 1], [], []>} : vector<128x64xf32>, vector<64x256xf32>, vector<128x256xf32> -> vector<128x256xf32>
    %163 = vector.extract_strided_slice %162 {offsets = [0, 0], sizes = [64, 256], strides = [1, 1]} : vector<128x256xf32> to vector<64x256xf32>
    %164 = vector.extract_strided_slice %162 {offsets = [64, 0], sizes = [64, 256], strides = [1, 1]} : vector<128x256xf32> to vector<64x256xf32>
    %cst_71 = arith.constant dense<0.000000e+00> : vector<64x256xf32>
    %165 = tpu.matmul %163, %9, %cst_71 {dimension_numbers = #tpu.dot_dimension_numbers<[1], [0], [0], [1], [0, 0, 1, 1], [], []>} : vector<64x256xf32>, vector<256x256xf32>, vector<64x256xf32> -> vector<64x256xf32>
    %cst_72 = arith.constant dense<0.000000e+00> : vector<64x256xf32>
    %166 = tpu.matmul %164, %10, %cst_72 {dimension_numbers = #tpu.dot_dimension_numbers<[1], [0], [0], [1], [0, 0, 1, 1], [], []>} : vector<64x256xf32>, vector<256x256xf32>, vector<64x256xf32> -> vector<64x256xf32>
    %167 = arith.subf %165, %166 : vector<64x256xf32>
    %168 = vector.shape_cast %167 : vector<64x256xf32> to vector<1x64x256xf32>
    %169 = arith.addf %160, %168 : vector<1x64x256xf32>
    %170 = vector.shape_cast %11 : vector<64x1xf32> to vector<1x64x1xf32>
    %171 = vector.broadcast %170 : vector<1x64x1xf32> to vector<1x64x256xf32>
    %172 = arith.mulf %169, %171 : vector<1x64x256xf32>
    %173 = vector.shape_cast %12 : vector<64x1xf32> to vector<1x64x1xf32>
    %174 = vector.broadcast %173 : vector<1x64x1xf32> to vector<1x64x256xf32>
    %175 = arith.addf %172, %174 : vector<1x64x256xf32>
    %176 = vector.shape_cast %175 : vector<1x64x256xf32> to vector<64x256xf32>
    %cst_73 = arith.constant dense<0.000000e+00> : vector<64x256xf32>
    %177 = tpu.matmul %176, %15, %cst_73 {dimension_numbers = #tpu.dot_dimension_numbers<[1], [0], [0], [1], [0, 0, 1, 1], [], []>} : vector<64x256xf32>, vector<256x256xf32>, vector<64x256xf32> -> vector<64x256xf32>
    %178 = vector.broadcast %16 : vector<1x256xf32> to vector<64x256xf32>
    %179 = arith.addf %177, %178 : vector<64x256xf32>
    %cst_74 = arith.constant 5.000000e-01 : f32
    %180 = vector.broadcast %cst_74 : f32 to vector<64x256xf32>
    %181 = arith.mulf %180, %179 : vector<64x256xf32>
    %cst_75 = arith.constant 0.707106769 : f32
    %182 = vector.broadcast %cst_75 : f32 to vector<64x256xf32>
    %183 = arith.mulf %179, %182 : vector<64x256xf32>
    %cst_76 = arith.constant 0.000000e+00 : f32
    %184 = vector.broadcast %cst_76 : f32 to vector<64x256xf32>
    %185 = arith.cmpf oge, %183, %184 : vector<64x256xf32>
    %cst_77 = arith.constant 1.000000e+00 : f32
    %cst_78 = arith.constant -1.000000e+00 : f32
    %186 = vector.broadcast %cst_77 : f32 to vector<64x256xf32>
    %187 = vector.broadcast %cst_78 : f32 to vector<64x256xf32>
    %188 = arith.select %185, %186, %187 : vector<64x256xi1>, vector<64x256xf32>
    %189 = math.absf %183 : vector<64x256xf32>
    %cst_79 = arith.constant 0.327591091 : f32
    %190 = vector.broadcast %cst_79 : f32 to vector<64x256xf32>
    %191 = arith.mulf %190, %189 : vector<64x256xf32>
    %cst_80 = arith.constant 1.000000e+00 : f32
    %192 = vector.broadcast %cst_80 : f32 to vector<64x256xf32>
    %193 = arith.addf %192, %191 : vector<64x256xf32>
    %cst_81 = arith.constant 1.000000e+00 : f32
    %194 = vector.broadcast %cst_81 : f32 to vector<64x256xf32>
    %195 = arith.divf %194, %193 : vector<64x256xf32>
    %cst_82 = arith.constant 1.06140542 : f32
    %196 = vector.broadcast %cst_82 : f32 to vector<64x256xf32>
    %197 = arith.mulf %196, %195 : vector<64x256xf32>
    %cst_83 = arith.constant -1.45315206 : f32
    %198 = vector.broadcast %cst_83 : f32 to vector<64x256xf32>
    %199 = arith.addf %197, %198 : vector<64x256xf32>
    %200 = arith.mulf %199, %195 : vector<64x256xf32>
    %cst_84 = arith.constant 1.42141378 : f32
    %201 = vector.broadcast %cst_84 : f32 to vector<64x256xf32>
    %202 = arith.addf %200, %201 : vector<64x256xf32>
    %203 = arith.mulf %202, %195 : vector<64x256xf32>
    %cst_85 = arith.constant -0.284496725 : f32
    %204 = vector.broadcast %cst_85 : f32 to vector<64x256xf32>
    %205 = arith.addf %203, %204 : vector<64x256xf32>
    %206 = arith.mulf %205, %195 : vector<64x256xf32>
    %cst_86 = arith.constant 0.254829586 : f32
    %207 = vector.broadcast %cst_86 : f32 to vector<64x256xf32>
    %208 = arith.addf %206, %207 : vector<64x256xf32>
    %209 = arith.mulf %208, %195 : vector<64x256xf32>
    %cst_87 = arith.constant 0.000000e+00 : f32
    %210 = vector.broadcast %cst_87 : f32 to vector<64x256xf32>
    %211 = arith.subf %210, %189 : vector<64x256xf32>
    %212 = arith.mulf %211, %189 : vector<64x256xf32>
    %213 = math.exp %212 : vector<64x256xf32>
    %214 = arith.mulf %209, %213 : vector<64x256xf32>
    %cst_88 = arith.constant 1.000000e+00 : f32
    %215 = vector.broadcast %cst_88 : f32 to vector<64x256xf32>
    %216 = arith.subf %215, %214 : vector<64x256xf32>
    %217 = arith.mulf %188, %216 : vector<64x256xf32>
    %cst_89 = arith.constant 1.000000e+00 : f32
    %218 = vector.broadcast %cst_89 : f32 to vector<64x256xf32>
    %219 = arith.addf %218, %217 : vector<64x256xf32>
    %220 = arith.mulf %181, %219 : vector<64x256xf32>
    %cst_90 = arith.constant dense<0.000000e+00> : vector<64x256xf32>
    %221 = tpu.matmul %220, %17, %cst_90 {dimension_numbers = #tpu.dot_dimension_numbers<[1], [0], [0], [1], [0, 0, 1, 1], [], []>} : vector<64x256xf32>, vector<256x256xf32>, vector<64x256xf32> -> vector<64x256xf32>
    %222 = vector.broadcast %18 : vector<1x256xf32> to vector<64x256xf32>
    %223 = arith.addf %221, %222 : vector<64x256xf32>
    %224 = vector.shape_cast %223 : vector<64x256xf32> to vector<1x64x256xf32>
    %225 = arith.addf %175, %224 : vector<1x64x256xf32>
    %226 = vector.shape_cast %13 : vector<64x1xf32> to vector<1x64x1xf32>
    %227 = vector.broadcast %226 : vector<1x64x1xf32> to vector<1x64x256xf32>
    %228 = arith.mulf %225, %227 : vector<1x64x256xf32>
    %229 = vector.shape_cast %14 : vector<64x1xf32> to vector<1x64x1xf32>
    %230 = vector.broadcast %229 : vector<1x64x1xf32> to vector<1x64x256xf32>
    %231 = arith.addf %228, %230 : vector<1x64x256xf32>
    %232 = vector.shape_cast %231 : vector<1x64x256xf32> to vector<64x256xf32>
    %cst_91 = arith.constant dense<0.000000e+00> : vector<128x256xf32>
    %233 = tpu.matmul %8, %232, %cst_91 {dimension_numbers = #tpu.dot_dimension_numbers<[1], [0], [0], [1], [0, 0, 1, 1], [], []>} : vector<128x64xf32>, vector<64x256xf32>, vector<128x256xf32> -> vector<128x256xf32>
    %234 = vector.extract_strided_slice %233 {offsets = [0, 0], sizes = [64, 256], strides = [1, 1]} : vector<128x256xf32> to vector<64x256xf32>
    %235 = vector.extract_strided_slice %233 {offsets = [64, 0], sizes = [64, 256], strides = [1, 1]} : vector<128x256xf32> to vector<64x256xf32>
    %cst_92 = arith.constant dense<0.000000e+00> : vector<64x256xf32>
    %236 = tpu.matmul %234, %9, %cst_92 {dimension_numbers = #tpu.dot_dimension_numbers<[1], [0], [0], [1], [0, 0, 1, 1], [], []>} : vector<64x256xf32>, vector<256x256xf32>, vector<64x256xf32> -> vector<64x256xf32>
    %cst_93 = arith.constant dense<0.000000e+00> : vector<64x256xf32>
    %237 = tpu.matmul %235, %10, %cst_93 {dimension_numbers = #tpu.dot_dimension_numbers<[1], [0], [0], [1], [0, 0, 1, 1], [], []>} : vector<64x256xf32>, vector<256x256xf32>, vector<64x256xf32> -> vector<64x256xf32>
    %238 = arith.subf %236, %237 : vector<64x256xf32>
    %239 = vector.shape_cast %238 : vector<64x256xf32> to vector<1x64x256xf32>
    %240 = arith.addf %231, %239 : vector<1x64x256xf32>
    %241 = vector.shape_cast %11 : vector<64x1xf32> to vector<1x64x1xf32>
    %242 = vector.broadcast %241 : vector<1x64x1xf32> to vector<1x64x256xf32>
    %243 = arith.mulf %240, %242 : vector<1x64x256xf32>
    %244 = vector.shape_cast %12 : vector<64x1xf32> to vector<1x64x1xf32>
    %245 = vector.broadcast %244 : vector<1x64x1xf32> to vector<1x64x256xf32>
    %246 = arith.addf %243, %245 : vector<1x64x256xf32>
    %247 = vector.shape_cast %246 : vector<1x64x256xf32> to vector<64x256xf32>
    %cst_94 = arith.constant dense<0.000000e+00> : vector<64x256xf32>
    %248 = tpu.matmul %247, %15, %cst_94 {dimension_numbers = #tpu.dot_dimension_numbers<[1], [0], [0], [1], [0, 0, 1, 1], [], []>} : vector<64x256xf32>, vector<256x256xf32>, vector<64x256xf32> -> vector<64x256xf32>
    %249 = vector.broadcast %16 : vector<1x256xf32> to vector<64x256xf32>
    %250 = arith.addf %248, %249 : vector<64x256xf32>
    %cst_95 = arith.constant 5.000000e-01 : f32
    %251 = vector.broadcast %cst_95 : f32 to vector<64x256xf32>
    %252 = arith.mulf %251, %250 : vector<64x256xf32>
    %cst_96 = arith.constant 0.707106769 : f32
    %253 = vector.broadcast %cst_96 : f32 to vector<64x256xf32>
    %254 = arith.mulf %250, %253 : vector<64x256xf32>
    %cst_97 = arith.constant 0.000000e+00 : f32
    %255 = vector.broadcast %cst_97 : f32 to vector<64x256xf32>
    %256 = arith.cmpf oge, %254, %255 : vector<64x256xf32>
    %cst_98 = arith.constant 1.000000e+00 : f32
    %cst_99 = arith.constant -1.000000e+00 : f32
    %257 = vector.broadcast %cst_98 : f32 to vector<64x256xf32>
    %258 = vector.broadcast %cst_99 : f32 to vector<64x256xf32>
    %259 = arith.select %256, %257, %258 : vector<64x256xi1>, vector<64x256xf32>
    %260 = math.absf %254 : vector<64x256xf32>
    %cst_100 = arith.constant 0.327591091 : f32
    %261 = vector.broadcast %cst_100 : f32 to vector<64x256xf32>
    %262 = arith.mulf %261, %260 : vector<64x256xf32>
    %cst_101 = arith.constant 1.000000e+00 : f32
    %263 = vector.broadcast %cst_101 : f32 to vector<64x256xf32>
    %264 = arith.addf %263, %262 : vector<64x256xf32>
    %cst_102 = arith.constant 1.000000e+00 : f32
    %265 = vector.broadcast %cst_102 : f32 to vector<64x256xf32>
    %266 = arith.divf %265, %264 : vector<64x256xf32>
    %cst_103 = arith.constant 1.06140542 : f32
    %267 = vector.broadcast %cst_103 : f32 to vector<64x256xf32>
    %268 = arith.mulf %267, %266 : vector<64x256xf32>
    %cst_104 = arith.constant -1.45315206 : f32
    %269 = vector.broadcast %cst_104 : f32 to vector<64x256xf32>
    %270 = arith.addf %268, %269 : vector<64x256xf32>
    %271 = arith.mulf %270, %266 : vector<64x256xf32>
    %cst_105 = arith.constant 1.42141378 : f32
    %272 = vector.broadcast %cst_105 : f32 to vector<64x256xf32>
    %273 = arith.addf %271, %272 : vector<64x256xf32>
    %274 = arith.mulf %273, %266 : vector<64x256xf32>
    %cst_106 = arith.constant -0.284496725 : f32
    %275 = vector.broadcast %cst_106 : f32 to vector<64x256xf32>
    %276 = arith.addf %274, %275 : vector<64x256xf32>
    %277 = arith.mulf %276, %266 : vector<64x256xf32>
    %cst_107 = arith.constant 0.254829586 : f32
    %278 = vector.broadcast %cst_107 : f32 to vector<64x256xf32>
    %279 = arith.addf %277, %278 : vector<64x256xf32>
    %280 = arith.mulf %279, %266 : vector<64x256xf32>
    %cst_108 = arith.constant 0.000000e+00 : f32
    %281 = vector.broadcast %cst_108 : f32 to vector<64x256xf32>
    %282 = arith.subf %281, %260 : vector<64x256xf32>
    %283 = arith.mulf %282, %260 : vector<64x256xf32>
    %284 = math.exp %283 : vector<64x256xf32>
    %285 = arith.mulf %280, %284 : vector<64x256xf32>
    %cst_109 = arith.constant 1.000000e+00 : f32
    %286 = vector.broadcast %cst_109 : f32 to vector<64x256xf32>
    %287 = arith.subf %286, %285 : vector<64x256xf32>
    %288 = arith.mulf %259, %287 : vector<64x256xf32>
    %cst_110 = arith.constant 1.000000e+00 : f32
    %289 = vector.broadcast %cst_110 : f32 to vector<64x256xf32>
    %290 = arith.addf %289, %288 : vector<64x256xf32>
    %291 = arith.mulf %252, %290 : vector<64x256xf32>
    %cst_111 = arith.constant dense<0.000000e+00> : vector<64x256xf32>
    %292 = tpu.matmul %291, %17, %cst_111 {dimension_numbers = #tpu.dot_dimension_numbers<[1], [0], [0], [1], [0, 0, 1, 1], [], []>} : vector<64x256xf32>, vector<256x256xf32>, vector<64x256xf32> -> vector<64x256xf32>
    %293 = vector.broadcast %18 : vector<1x256xf32> to vector<64x256xf32>
    %294 = arith.addf %292, %293 : vector<64x256xf32>
    %295 = vector.shape_cast %294 : vector<64x256xf32> to vector<1x64x256xf32>
    %296 = arith.addf %246, %295 : vector<1x64x256xf32>
    %297 = vector.shape_cast %13 : vector<64x1xf32> to vector<1x64x1xf32>
    %298 = vector.broadcast %297 : vector<1x64x1xf32> to vector<1x64x256xf32>
    %299 = arith.mulf %296, %298 : vector<1x64x256xf32>
    %300 = vector.shape_cast %14 : vector<64x1xf32> to vector<1x64x1xf32>
    %301 = vector.broadcast %300 : vector<1x64x1xf32> to vector<1x64x256xf32>
    %302 = arith.addf %299, %301 : vector<1x64x256xf32>
    %cst_112 = arith.constant dense<0.000000e+00> : vector<1x256xf32>
    %303 = vector.multi_reduction <add>, %302, %cst_112 [1] : vector<1x64x256xf32> to vector<1x256xf32>
    %cst_113 = arith.constant 6.400000e+01 : f32
    %304 = vector.broadcast %cst_113 : f32 to vector<1x256xf32>
    %305 = arith.divf %303, %304 : vector<1x256xf32>
    %c0_114 = arith.constant 0 : index
    %c0_115 = arith.constant 0 : index
    %306 = vector.load %arg15[%c0_114, %c0_115] : memref<256x128xf32, #tpu.memory_space<vmem>>, vector<256x128xf32>
    %cst_116 = arith.constant dense<0.000000e+00> : vector<1x128xf32>
    %307 = tpu.matmul %305, %306, %cst_116 {dimension_numbers = #tpu.dot_dimension_numbers<[1], [0], [0], [1], [0, 0, 1, 1], [], []>} : vector<1x256xf32>, vector<256x128xf32>, vector<1x128xf32> -> vector<1x128xf32>
    %c0_117 = arith.constant 0 : index
    %c0_118 = arith.constant 0 : index
    %308 = vector.load %arg16[%c0_117, %c0_118] : memref<1x128xf32, #tpu.memory_space<vmem>>, vector<1x128xf32>
    %309 = arith.addf %307, %308 : vector<1x128xf32>
    %310 = vector.shape_cast %309 : vector<1x128xf32> to vector<1x1x128xf32>
    %c0_119 = arith.constant 0 : index
    %c0_120 = arith.constant 0 : index
    %c0_121 = arith.constant 0 : index
    %311 = vector.load %arg17[%c0_119, %c0_120, %c0_121] : memref<1x1x128xf32, #tpu.memory_space<vmem>>, vector<1x1x128xf32>
    tpu.vector_store %arg17[%c0_119, %c0_120, %c0_121], %310 {strides = array<i32>} : memref<1x1x128xf32, #tpu.memory_space<vmem>>, vector<1x1x128xf32>,
    return
  }
  func.func @transform_0(%arg0: i32) -> (i32, i32, i32) {
    %c0_i32 = arith.constant 0 : i32
    %c0_i32_0 = arith.constant 0 : i32
    %c0_i32_1 = arith.constant 0 : i32
    return %arg0, %c0_i32, %c0_i32_0 : i32, i32, i32
  }
  func.func @transform_1(%arg0: i32) -> (i32, i32) {
    %c0_i32 = arith.constant 0 : i32
    %c0_i32_0 = arith.constant 0 : i32
    %c0_i32_1 = arith.constant 0 : i32
    return %c0_i32, %c0_i32_0 : i32, i32
  }
  func.func @transform_2(%arg0: i32) -> (i32, i32) {
    %c0_i32 = arith.constant 0 : i32
    %c0_i32_0 = arith.constant 0 : i32
    %c0_i32_1 = arith.constant 0 : i32
    return %c0_i32, %c0_i32_0 : i32, i32
  }
  func.func @transform_3(%arg0: i32) -> (i32, i32) {
    %c0_i32 = arith.constant 0 : i32
    %c0_i32_0 = arith.constant 0 : i32
    %c0_i32_1 = arith.constant 0 : i32
    return %c0_i32, %c0_i32_0 : i32, i32
  }
  func.func @transform_4(%arg0: i32) -> (i32, i32) {
    %c0_i32 = arith.constant 0 : i32
    %c0_i32_0 = arith.constant 0 : i32
    %c0_i32_1 = arith.constant 0 : i32
    return %c0_i32, %c0_i32_0 : i32, i32
  }
  func.func @transform_5(%arg0: i32) -> (i32, i32) {
    %c0_i32 = arith.constant 0 : i32
    %c0_i32_0 = arith.constant 0 : i32
    %c0_i32_1 = arith.constant 0 : i32
    return %c0_i32, %c0_i32_0 : i32, i32
  }
  func.func @transform_6(%arg0: i32) -> (i32, i32) {
    %c0_i32 = arith.constant 0 : i32
    %c0_i32_0 = arith.constant 0 : i32
    %c0_i32_1 = arith.constant 0 : i32
    return %c0_i32, %c0_i32_0 : i32, i32
  }
  func.func @transform_7(%arg0: i32) -> (i32, i32) {
    %c0_i32 = arith.constant 0 : i32
    %c0_i32_0 = arith.constant 0 : i32
    %c0_i32_1 = arith.constant 0 : i32
    return %c0_i32, %c0_i32_0 : i32, i32
  }
  func.func @transform_8(%arg0: i32) -> (i32, i32) {
    %c0_i32 = arith.constant 0 : i32
    %c0_i32_0 = arith.constant 0 : i32
    %c0_i32_1 = arith.constant 0 : i32
    return %c0_i32, %c0_i32_0 : i32, i32
  }
  func.func @transform_9(%arg0: i32) -> (i32, i32) {
    %c0_i32 = arith.constant 0 : i32
    %c0_i32_0 = arith.constant 0 : i32
    %c0_i32_1 = arith.constant 0 : i32
    return %c0_i32, %c0_i32_0 : i32, i32
  }
  func.func @transform_10(%arg0: i32) -> (i32, i32) {
    %c0_i32 = arith.constant 0 : i32
    %c0_i32_0 = arith.constant 0 : i32
    %c0_i32_1 = arith.constant 0 : i32
    return %c0_i32, %c0_i32_0 : i32, i32
  }
  func.func @transform_11(%arg0: i32) -> (i32, i32) {
    %c0_i32 = arith.constant 0 : i32
    %c0_i32_0 = arith.constant 0 : i32
    %c0_i32_1 = arith.constant 0 : i32
    return %c0_i32, %c0_i32_0 : i32, i32
  }
  func.func @transform_12(%arg0: i32) -> (i32, i32) {
    %c0_i32 = arith.constant 0 : i32
    %c0_i32_0 = arith.constant 0 : i32
    %c0_i32_1 = arith.constant 0 : i32
    return %c0_i32, %c0_i32_0 : i32, i32
  }
  func.func @transform_13(%arg0: i32) -> (i32, i32) {
    %c0_i32 = arith.constant 0 : i32
    %c0_i32_0 = arith.constant 0 : i32
    %c0_i32_1 = arith.constant 0 : i32
    return %c0_i32, %c0_i32_0 : i32, i32
  }
  func.func @transform_14(%arg0: i32) -> (i32, i32) {
    %c0_i32 = arith.constant 0 : i32
    %c0_i32_0 = arith.constant 0 : i32
    %c0_i32_1 = arith.constant 0 : i32
    return %c0_i32, %c0_i32_0 : i32, i32
  }
  func.func @transform_15(%arg0: i32) -> (i32, i32) {
    %c0_i32 = arith.constant 0 : i32
    %c0_i32_0 = arith.constant 0 : i32
    %c0_i32_1 = arith.constant 0 : i32
    return %c0_i32, %c0_i32_0 : i32, i32
  }
  func.func @transform_16(%arg0: i32) -> (i32, i32, i32) {
    %c0_i32 = arith.constant 0 : i32
    %c0_i32_0 = arith.constant 0 : i32
    %c0_i32_1 = arith.constant 0 : i32
    return %arg0, %c0_i32, %c0_i32_0 : i32, i32, i32
  }
}

</mosaic_0001>

<bundles_post_ra>
// kernel: build_classifier_forward.1
= control target key start
LH: loop header
LB: loop body
LE: loop exit
PB: predicated region body
PF: predicated region fallthrough
CT: control target
= control target key end

     0   :  { %s12652_s0 = inlined_call_operand.vmem [shape: f32[2,64,256], index: 0, kind: input, shape index: {}]   ;;  %s12653_s1 = inlined_call_operand.vmem [shape: f32[256,256], index: 1, kind: input, shape index: {}]   ;;  %s12654_s2 = inlined_call_operand.vmem [shape: f32[1,256], index: 2, kind: input, shape index: {}]   ;;  %s12655_s3 = inlined_call_operand.vmem [shape: f32[128,64], index: 3, kind: input, shape index: {}]   ;;  %s12656_s4 = inlined_call_operand.vmem [shape: f32[256,256], index: 4, kind: input, shape index: {}]   ;;  %s12657_s5 = inlined_call_operand.vmem [shape: f32[256,256], index: 5, kind: input, shape index: {}]   ;;  %s12658_s6 = inlined_call_operand.vmem [shape: f32[64,1], index: 6, kind: input, shape index: {}]   ;;  %s12659_s7 = inlined_call_operand.vmem [shape: f32[64,1], index: 7, kind: input, shape index: {}]   ;;  %s12660_s8 = inlined_call_operand.vmem [shape: f32[256,256], index: 8, kind: input, shape index: {}]   ;;  %s12661_s9 = inlined_call_operand.vmem [shape: f32[1,256], index: 9, kind: input, shape index: {}]   ;;  %s12662_s10 = inlined_call_operand.vmem [shape: f32[256,256], index: 10, kind: input, shape index: {}]   ;;  %s12663_s11 = inlined_call_operand.vmem [shape: f32[1,256], index: 11, kind: input, shape index: {}]   ;;  %s12664_s12 = inlined_call_operand.vmem [shape: f32[64,1], index: 12, kind: input, shape index: {}]   ;;  %s12665_s13 = inlined_call_operand.vmem [shape: f32[64,1], index: 13, kind: input, shape index: {}]   ;;  %s12666_s14 = inlined_call_operand.vmem [shape: f32[256,128], index: 14, kind: input, shape index: {}]   ;;  %s12667_s15 = inlined_call_operand.vmem [shape: f32[1,128], index: 15, kind: input, shape index: {}]   ;;  %s12668_s16 = inlined_call_operand.hbm [shape: f32[2,1,128], index: 16, kind: output, shape index: {}]  }
   0x1   :  { %13196 = sst [smem:[#allocation208_spill]] %s12652_s0 }
   0x2   :  { %13197 = sst [smem:[#allocation209_spill]] %s12668_s16 }
   0x3   :  { %21 = vsyncpa [#allocation3], 0 }
   0x4   :  { %23 = vsyncpa [#allocation3 + $0x1], 0  ;;  %s7884_s21 = smov 0   ;;  %s7886_s22 = smov 0  }
   0x5   :  { %s7888_s23 = smov 0   ;;  %s7890_s24 = smov 0  }
   0x6 LB: > { %13198 = sst [smem:[#allocation5_spill]] %s7781_s21  ;;  %s7905_s25 = sadd.s32 4294967295, %s7793_s24   ;;  %s7793_s24 = sphi %s7890_s24, %s14155_s24   ;;  %s7789_s23 = sphi %s7888_s23, %s14157_s23   ;;  %s7785_s22 = sphi %s7886_s22, %s14159_s22   ;;  %s7781_s21 = sphi %s7884_s21, %s14158_s21  }
   0x7   : > { %13199 = sst [smem:[#allocation6_spill]] %s7789_s23  ;;  %s6090_s26 = sadd.s32 4294967294, %s7793_s24  }
   0x8   : > { %13200 = sst [smem:[#allocation7_spill]] %s7793_s24  ;;  %s7909_s27 = sadd.s32 1, %s7793_s24  }
   0x9   : > { %13201 = sst [smem:[#allocation8_spill]] %s7909_s27  ;;  %s377_s28 = sadd.s32 1, %s7789_s23 }
   0xa   : > { %s374_s29 = ssub.s32 %s7793_s24, %s7909_s27  ;;  %p387_p0 = scmp.ne.s32.totalorder %s7789_s23, %s7785_s22 }
   0xb   : > { %p375_p1 = scmp.eq.s32.totalorder %s374_s29, 0  ;;  %p388_p2 = scmp.eq.s32.totalorder %s7905_s25, 1 }
   0xc   : > { %p393_p3 = scmp.ne.s32.totalorder %s7785_s22, %s7781_s21  ;;  %p394_p4 = scmp.eq.s32.totalorder %s6090_s26, 1 }
   0xd   : > { %s7920_s30 = scalar_select %p375_p1, %s7789_s23, %s377_s28  }
   0xe   : > { %p7922_p5 = por %p388_p2, %p387_p0  ;;  %p7926_p6 = por %p394_p4, %p393_p3 }
   0xf   : > { %13202 = sst [smem:[#allocation9_spill]] %s7920_s30  ;;  %p6093_p7 = scmp.ge.s32.totalorder %s7793_s24, 1 }
  0x10   : > { %s13204_s17 = scalar_select %p7926_p6, 1, 0 }
  0x11   : > { %p465_p8 = scmp.lt.s32.totalorder %s7793_s24, 3 }
  0x12   : > { %13205 = sst [smem:[#allocation10_spill]] %s13204_s17 }
  0x13   : > { %p466_p9 = pnand %p6093_p7, %p465_p8 }
  0x15   : > { %469 = sbr.rel (%p466_p9) target bundleno = 4689 (0x1251), region = 84 }
  0x1c   : > { %v536_v0 = vld [vmem:[%s12653_s1 + $0x8] sm:$0xff]  ;;  %v538_v1 = vld [vmem:[%s12653_s1 + $0x18] sm:$0xff]  ;;  %v535_v2 = vld [vmem:[%s12653_s1] sm:$0xff]  ;;  %p514_p10 = scmp.lt.s32.totalorder %s7905_s25, 1  ;;  %s13206_s24 = sld [smem:[#allocation208_spill]]  ;;  %vm1030_vm0 = vcmask 523264  }
  0x1d   : > { %v6199_v3 = vpack.c.bf16 %v538_v1, %v536_v0  ;;  %v537_v4 = vld [vmem:[%s12653_s1 + $0x10] sm:$0xff]  ;;  %v540_v5 = vld [vmem:[%s12653_s1 + $0x28] sm:$0xff]  ;;  %v542_v6 = vld [vmem:[%s12653_s1 + $0x38] sm:$0xff]  ;;  %s6160_s28 = sshll.u32 %s7905_s25, 4 }
  0x1e   : > { %v6201_v7 = vpack.c.bf16 %v537_v4, %v535_v2  ;;  %v6203_v8 = vpack.c.bf16 %v542_v6, %v540_v5  ;;  %v539_v9 = vld [vmem:[%s12653_s1 + $0x20] sm:$0xff]  ;;  %v541_v10 = vld [vmem:[%s12653_s1 + $0x30] sm:$0xff]  ;;  %v544_v11 = vld [vmem:[%s12653_s1 + $0x48] sm:$0xff]  ;;  %s515_s26 = scalar_select %p514_p10, %s7905_s25, 1 }
  0x1f   : > { %6200 = vmatprep.subr.bf16.mxu0 %v6199_v3  ;;  %v546_v12 = vld [vmem:[%s12653_s1 + $0x58] sm:$0xff]  ;;  %v6205_v13 = vpack.c.bf16 %v541_v10, %v539_v9  ;;  %v543_v15 = vld [vmem:[%s12653_s1 + $0x40] sm:$0xff]  ;;  %v545_v16 = vld [vmem:[%s12653_s1 + $0x50] sm:$0xff]  ;;  %s7798_s25 = smov [#allocation2]  }
  0x20   : > { %6202 = vmatpush1.bf16.msra.mxu0 %v6201_v7  ;;  %v6207_v14 = vpack.c.bf16 %v546_v12, %v544_v11  ;;  %v548_v17 = vld [vmem:[%s12653_s1 + $0x68] sm:$0xff]  ;;  %v550_v18 = vld [vmem:[%s12653_s1 + $0x78] sm:$0xff]  ;;  %v6209_v19 = vpack.c.bf16 %v545_v16, %v543_v15  ;;  %v547_v21 = vld [vmem:[%s12653_s1 + $0x60] sm:$0xff]  ;;  %s6163_s19 = sshll.u32 %s515_s26, 7  ;;  %s7735_s18 = sshll.u32 %s7798_s25, 4  ;;  %s7736_s18 = int_to_ptr.vmem [resolvable:$false] %s7735_s18 }
  0x21   : > { %6204 = vmatprep.subr.bf16.mxu0 %v6203_v8  ;;  %v6211_v20 = vpack.c.bf16 %v550_v18, %v548_v17  ;;  %v549_v22 = vld [vmem:[%s12653_s1 + $0x70] sm:$0xff]  ;;  %v552_v23 = vld [vmem:[%s12653_s1 + $0x88] sm:$0xff]  ;;  %v554_v24 = vld [vmem:[%s12653_s1 + $0x98] sm:$0xff]  ;;  %s7737_s20 = scalar_lea.vmem %s7736_s18, 32 }
  0x22   : > { %v6213_v25 = vpack.c.bf16 %v549_v22, %v547_v21  ;;  %v6215_v26 = vpack.c.bf16 %v554_v24, %v552_v23  ;;  %v551_v27 = vld [vmem:[%s12653_s1 + $0x80] sm:$0xff]  ;;  %v553_v28 = vld [vmem:[%s12653_s1 + $0x90] sm:$0xff]  ;;  %v556_v29 = vld [vmem:[%s12653_s1 + $0xa8] sm:$0xff]  ;;  %s8015_s16 = scalar_lea.vmem %s13206_s24, %s6163_s19  ;;  %s14150_s24 = sld [smem:[#allocation209_spill]] }
  0x23   : > { %v558_v30 = vld [vmem:[%s12653_s1 + $0xb8] sm:$0xff]  ;;  %v6217_v31 = vpack.c.bf16 %v553_v28, %v551_v27  ;;  %v555_v33 = vld [vmem:[%s12653_s1 + $0xa0] sm:$0xff]  ;;  %v557_v34 = vld [vmem:[%s12653_s1 + $0xb0] sm:$0xff] }
  0x24   : > { %6206 = vmatpush1.bf16.msra.mxu0 %v6205_v13  ;;  %v6219_v32 = vpack.c.bf16 %v558_v30, %v556_v29  ;;  %v560_v35 = vld [vmem:[%s12653_s1 + $0xc8] sm:$0xff]  ;;  %v562_v36 = vld [vmem:[%s12653_s1 + $0xd8] sm:$0xff]  ;;  %v6221_v37 = vpack.c.bf16 %v557_v34, %v555_v33  ;;  %v559_v39 = vld [vmem:[%s12653_s1 + $0xc0] sm:$0xff] }
  0x25   : > { %6208 = vmatprep.subr.bf16.mxu0 %v6207_v14  ;;  %v6223_v38 = vpack.c.bf16 %v562_v36, %v560_v35  ;;  %v561_v40 = vld [vmem:[%s12653_s1 + $0xd0] sm:$0xff]  ;;  %v520_v41 = vld [vmem:[%s8015_s16 + $0x8] sm:$0xff]  ;;  %v566_v43 = vld [vmem:[%s12653_s1 + $0xf8] sm:$0xff] }
  0x26   : > { %v564_v42 = vld [vmem:[%s12653_s1 + $0xe8] sm:$0xff]  ;;  %675 = vmatprep.mubr.f32.mxu0 %v520_v41  ;;  %v6225_v44 = vpack.c.bf16 %v561_v40, %v559_v39  ;;  %v563_v46 = vld [vmem:[%s12653_s1 + $0xe0] sm:$0xff]  ;;  %v565_v47 = vld [vmem:[%s12653_s1 + $0xf0] sm:$0xff] }
  0x27   : > { %v6227_v45 = vpack.c.bf16 %v566_v43, %v564_v42  ;;  %v568_v48 = vld [vmem:[%s12653_s1 + $0x108] sm:$0xff]  ;;  %v570_v49 = vld [vmem:[%s12653_s1 + $0x118] sm:$0xff]  ;;  %v6229_v50 = vpack.c.bf16 %v565_v47, %v563_v46  ;;  %v567_v52 = vld [vmem:[%s12653_s1 + $0x100] sm:$0xff] }
  0x28   : > { %6210 = vmatpush1.bf16.msra.mxu0 %v6209_v19  ;;  %v6231_v51 = vpack.c.bf16 %v570_v49, %v568_v48  ;;  %v569_v53 = vld [vmem:[%s12653_s1 + $0x110] sm:$0xff]  ;;  %v572_v54 = vld [vmem:[%s12653_s1 + $0x128] sm:$0xff]  ;;  %v574_v55 = vld [vmem:[%s12653_s1 + $0x138] sm:$0xff]  ;;  %v12676_v48 = vmov 0.0   ;;  %s14151_s19 = smov %s14150_s24  ;;  %s12610_s21 = scalar_lea.hbm %s14150_s24, %s6160_s28 }
  0x29   : > { %6212 = vmatprep.subr.bf16.mxu0 %v6211_v20  ;;  %v6233_v56 = vpack.c.bf16 %v569_v53, %v567_v52  ;;  %v6235_v57 = vpack.c.bf16 %v574_v55, %v572_v54  ;;  %v571_v58 = vld [vmem:[%s12653_s1 + $0x120] sm:$0xff]  ;;  %v573_v59 = vld [vmem:[%s12653_s1 + $0x130] sm:$0xff]  ;;  %v576_v60 = vld [vmem:[%s12653_s1 + $0x148] sm:$0xff]  ;;  %1143 = vmatprep.mubr.f32.mxu1 %v12676_v48 }
  0x2a   : > { %v578_v61 = vld [vmem:[%s12653_s1 + $0x158] sm:$0xff]  ;;  %v6237_v62 = vpack.c.bf16 %v573_v59, %v571_v58  ;;  %v575_v0 = vld [vmem:[%s12653_s1 + $0x140] sm:$0xff]  ;;  %v577_v1 = vld [vmem:[%s12653_s1 + $0x150] sm:$0xff] }
  0x2b   : > { %v6239_v63 = vpack.c.bf16 %v578_v61, %v576_v60  ;;  %v580_v2 = vld [vmem:[%s12653_s1 + $0x168] sm:$0xff]  ;;  %v582_v3 = vld [vmem:[%s12653_s1 + $0x178] sm:$0xff]  ;;  %v6241_v4 = vpack.c.bf16 %v577_v1, %v575_v0  ;;  %v579_v6 = vld [vmem:[%s12653_s1 + $0x160] sm:$0xff] }
  0x2c   : > { %6214 = vmatpush1.bf16.msra.mxu0 %v6213_v25  ;;  %v6243_v5 = vpack.c.bf16 %v582_v3, %v580_v2  ;;  %v581_v7 = vld [vmem:[%s12653_s1 + $0x170] sm:$0xff]  ;;  %v584_v8 = vld [vmem:[%s12653_s1 + $0x188] sm:$0xff]  ;;  %v586_v9 = vld [vmem:[%s12653_s1 + $0x198] sm:$0xff] }
  0x2d   : > { %6216 = vmatprep.subr.bf16.mxu0 %v6215_v26  ;;  %v6245_v10 = vpack.c.bf16 %v581_v7, %v579_v6  ;;  %v6247_v11 = vpack.c.bf16 %v586_v9, %v584_v8  ;;  %v583_v12 = vld [vmem:[%s12653_s1 + $0x180] sm:$0xff]  ;;  %v585_v13 = vld [vmem:[%s12653_s1 + $0x190] sm:$0xff]  ;;  %v588_v14 = vld [vmem:[%s12653_s1 + $0x1a8] sm:$0xff] }
  0x2e   : > { %v590_v15 = vld [vmem:[%s12653_s1 + $0x1b8] sm:$0xff]  ;;  %v6249_v16 = vpack.c.bf16 %v585_v13, %v583_v12  ;;  %v587_v18 = vld [vmem:[%s12653_s1 + $0x1a0] sm:$0xff]  ;;  %v589_v19 = vld [vmem:[%s12653_s1 + $0x1b0] sm:$0xff] }
  0x2f   : > { %v6251_v17 = vpack.c.bf16 %v590_v15, %v588_v14  ;;  %v592_v20 = vld [vmem:[%s12653_s1 + $0x1c8] sm:$0xff]  ;;  %v594_v21 = vld [vmem:[%s12653_s1 + $0x1d8] sm:$0xff]  ;;  %v6253_v22 = vpack.c.bf16 %v589_v19, %v587_v18  ;;  %v591_v24 = vld [vmem:[%s12653_s1 + $0x1c0] sm:$0xff] }
  0x30   : > { %6218 = vmatpush1.bf16.msra.mxu0 %v6217_v31  ;;  %v6255_v23 = vpack.c.bf16 %v594_v21, %v592_v20  ;;  %v593_v25 = vld [vmem:[%s12653_s1 + $0x1d0] sm:$0xff]  ;;  %v596_v26 = vld [vmem:[%s12653_s1 + $0x1e8] sm:$0xff]  ;;  %v598_v27 = vld [vmem:[%s12653_s1 + $0x1f8] sm:$0xff] }
  0x31   : > { %6220 = vmatprep.subr.bf16.mxu0 %v6219_v32  ;;  %v6257_v28 = vpack.c.bf16 %v593_v25, %v591_v24  ;;  %v6259_v29 = vpack.c.bf16 %v598_v27, %v596_v26  ;;  %v595_v30 = vld [vmem:[%s12653_s1 + $0x1e0] sm:$0xff]  ;;  %v597_v31 = vld [vmem:[%s12653_s1 + $0x1f0] sm:$0xff]  ;;  %v522_v34 = vld [vmem:[%s8015_s16 + $0x18] sm:$0xff] }
  0x32   : > { %v6261_v32 = vpack.c.bf16 %v597_v31, %v595_v30  ;;  %v519_v33 = vld [vmem:[%s8015_s16] sm:$0xff]  ;;  %v521_v35 = vld [vmem:[%s8015_s16 + $0x10] sm:$0xff]  ;;  %v524_v36 = vld [vmem:[%s8015_s16 + $0x28] sm:$0xff] }
  0x33   : > { %v525_v39 = vld [vmem:[%s8015_s16 + $0x30] sm:$0xff]  ;;  %v528_v40 = vld [vmem:[%s8015_s16 + $0x48] sm:$0xff]  ;;  %v527_v41 = vld [vmem:[%s8015_s16 + $0x40] sm:$0xff] }
  0x34   : > { %6222 = vmatpush1.bf16.msra.mxu0 %v6221_v37  ;;  %v523_v37 = vld [vmem:[%s8015_s16 + $0x20] sm:$0xff]  ;;  %v530_v42 = vld [vmem:[%s8015_s16 + $0x58] sm:$0xff]  ;;  %v529_v43 = vld [vmem:[%s8015_s16 + $0x50] sm:$0xff] }
  0x35   : > { %6224 = vmatprep.subr.bf16.mxu0 %v6223_v38  ;;  %v526_v38 = vld [vmem:[%s8015_s16 + $0x38] sm:$0xff]  ;;  %v533_v47 = vld [vmem:[%s8015_s16 + $0x70] sm:$0xff]  ;;  %v805_v49 = vld [vmem:[%s12657_s5 + $0x8] sm:$0xff] }
  0x36   : > { %v534_v46 = vld [vmem:[%s8015_s16 + $0x78] sm:$0xff]  ;;  %v804_v52 = vld [vmem:[%s12657_s5] sm:$0xff]  ;;  %v806_v53 = vld [vmem:[%s12657_s5 + $0x10] sm:$0xff] }
  0x37   : > { %v8163_v54 = vpack.c.bf16 %v806_v53, %v804_v52  ;;  %v809_v55 = vld [vmem:[%s12657_s5 + $0x28] sm:$0xff]  ;;  %v808_v58 = vld [vmem:[%s12657_s5 + $0x20] sm:$0xff]  ;;  %v810_v59 = vld [vmem:[%s12657_s5 + $0x30] sm:$0xff] }
  0x38   : > { %6226 = vmatpush1.bf16.msra.mxu0 %v6225_v44  ;;  %v532_v44 = vld [vmem:[%s8015_s16 + $0x68] sm:$0xff]  ;;  %v8180_v60 = vpack.c.bf16 %v810_v59, %v808_v58  ;;  %v812_v0 = vld [vmem:[%s12657_s5 + $0x40] sm:$0xff]  ;;  %v814_v1 = vld [vmem:[%s12657_s5 + $0x50] sm:$0xff] }
  0x39   : > { %6228 = vmatprep.subr.bf16.mxu0 %v6227_v45  ;;  %v531_v45 = vld [vmem:[%s8015_s16 + $0x60] sm:$0xff]  ;;  %13208 = vst [vmem:[#allocation12_spill] sm:$0xff] %v8163_v54  ;;  %v813_v61 = vld [vmem:[%s12657_s5 + $0x48] sm:$0xff]  ;;  %v819_v3 = vld [vmem:[%s12657_s5 + $0x78] sm:$0xff]  ;;  %s512_s16 = sand.u32 1, %s7785_s22  }
  0x3a   : > { %13210 = vst [vmem:[#allocation14_spill] sm:$0xff] %v8180_v60  ;;  %v817_v2 = vld [vmem:[%s12657_s5 + $0x68] sm:$0xff]  ;;  %v816_v7 = vld [vmem:[%s12657_s5 + $0x60] sm:$0xff]  ;;  %v818_v8 = vld [vmem:[%s12657_s5 + $0x70] sm:$0xff]  ;;  %s513_s23 = scalar_lea.vmem [#allocation2], %s512_s16  ;;  %s6023_s29 = scalar_lea.sflag [#allocation3], %s512_s16 }
  0x3b   : > { %v8207_v6 = vpack.c.bf16 %v819_v3, %v817_v2  ;;  %v821_v9 = vld [vmem:[%s12657_s5 + $0x88] sm:$0xff]  ;;  %v8222_v12 = vpack.c.bf16 %v818_v8, %v816_v7  ;;  %v820_v14 = vld [vmem:[%s12657_s5 + $0x80] sm:$0xff]  ;;  %v822_v15 = vld [vmem:[%s12657_s5 + $0x90] sm:$0xff]  ;;  %s6035_s30 = sshll.u32 %s513_s23, 4  ;;  %s12612_s30 = int_to_ptr.vmem [resolvable:$true] %s6035_s30 }
  0x3c   : > { %6230 = vmatpush1.bf16.msra.mxu0 %v6229_v50  ;;  %v807_v50 = vld [vmem:[%s12657_s5 + $0x18] sm:$0xff]  ;;  %v8242_v19 = vpack.c.bf16 %v822_v15, %v820_v14  ;;  %v599_v20 = vld [vmem:[%s12654_s2] sm:$0x3]  ;;  %v826_v24 = vld [vmem:[%s12657_s5 + $0xb0] sm:$0xff]  ;;  %s7731_s26 = scalar_lea.vmem %s12612_s30, 16  ;;  %p7738_p0 = scmp.lt.s32.totalorder %s12612_s30, %s7736_s18 }
  0x3d   : > { %6232 = vmatprep.subr.bf16.mxu0 %v6231_v51  ;;  %v8154_v51 = vpack.c.bf16 %v807_v50, %v805_v49  ;;  %13213 = vst [vmem:[#allocation17_spill] sm:$0xff] %v8207_v6  ;;  %13214 = vst [vmem:[#allocation18_spill] sm:$0xff] %v8222_v12  ;;  %v829_v26 = vld [vmem:[%s12657_s5 + $0xc8] sm:$0xff]  ;;  %v831_v27 = vld [vmem:[%s12657_s5 + $0xd8] sm:$0xff]  ;;  %p7732_p11 = scmp.ne.s32.totalorder %s12612_s30, %s7731_s26  ;;  %p7739_p1 = scmp.lt.s32.totalorder %s7737_s20, %s7731_s26 }
  0x3e   : > { %13217 = vst [vmem:[#allocation21_spill] sm:$0xff] %v8242_v19 }
  0x3f   : > { %13207 = vst [vmem:[#allocation11_spill] sm:$0xff] %v8154_v51  ;;  %p7733_p12 = pnand %p7732_p11, %p7922_p5  ;;  %p7740_p2 = por %p7739_p1, %p7738_p0 }
  0x40   : > { %6234 = vmatpush1.bf16.msra.mxu0 %v6233_v56  ;;  %v811_v56 = vld [vmem:[%s12657_s5 + $0x38] sm:$0xff] }
  0x41   : > { %6236 = vmatprep.subr.bf16.mxu0 %v6235_v57  ;;  %v8171_v57 = vpack.c.bf16 %v811_v56, %v809_v55  ;;  %p7734_p13 = pneg %p7733_p12 }
  0x43   : > { %13209 = vst [vmem:[#allocation13_spill] sm:$0xff] %v8171_v57  ;;  %p7741_p3 = pnand %p7740_p2, %p7734_p13 }
  0x44   : > { %6238 = vmatpush1.bf16.msra.mxu0 %v6237_v62  ;;  %v815_v62 = vld [vmem:[%s12657_s5 + $0x58] sm:$0xff] }
  0x45   : > { %6240 = vmatprep.subr.bf16.mxu0 %v6239_v63  ;;  %v8189_v63 = vpack.c.bf16 %v815_v62, %v813_v61 }
  0x47   : > { %13211 = vst [vmem:[#allocation15_spill] sm:$0xff] %v8189_v63 }
  0x48   : > { %6242 = vmatpush1.bf16.msra.mxu0 %v6241_v4  ;;  %v601_v4 = vlaneseq }
  0x49   : > { %6244 = vmatprep.subr.bf16.mxu0 %v6243_v5  ;;  %v8204_v5 = vpack.c.bf16 %v814_v1, %v812_v0 }
  0x4b   : > { %13212 = vst [vmem:[#allocation16_spill] sm:$0xff] %v8204_v5 }
  0x4c   : > { %6246 = vmatpush1.bf16.msra.mxu0 %v6245_v10  ;;  %v823_v10 = vld [vmem:[%s12657_s5 + $0x98] sm:$0xff] }
  0x4d   : > { %6248 = vmatprep.subr.bf16.mxu0 %v6247_v11  ;;  %v602_v11 = vshrl.u32 %v601_v4, 7  ;;  %v8225_v13 = vpack.c.bf16 %v823_v10, %v821_v9 }
  0x4f   : > { %13215 = vst [vmem:[#allocation19_spill] sm:$0xff] %v8225_v13  ;;  %v8239_v18 = vsub.s32 1, %v602_v11  ;;  %v8247_v21 = vsub.s32 0, %v602_v11 }
  0x50   : > { %6250 = vmatpush1.bf16.msra.mxu0 %v6249_v16  ;;  %v825_v16 = vld [vmem:[%s12657_s5 + $0xa8] sm:$0xff] }
  0x51   : > { %6252 = vmatprep.subr.bf16.mxu0 %v6251_v17  ;;  %v827_v17 = vld [vmem:[%s12657_s5 + $0xb8] sm:$0xff]  ;;  %13216 = vst [vmem:[#allocation20_spill] sm:$0xff] %v8239_v18  ;;  %13218 = vst [vmem:[#allocation22_spill] sm:$0xff] %v8247_v21  ;;  %v604_v31 = vrot.slane %v599_v20, %v8247_v21 }
  0x54   : > { %6254 = vmatpush1.bf16.msra.mxu0 %v6253_v22  ;;  %v8250_v22 = vpack.c.bf16 %v827_v17, %v825_v16 }
  0x55   : > { %6256 = vmatprep.subr.bf16.mxu0 %v6255_v23  ;;  %v824_v23 = vld [vmem:[%s12657_s5 + $0xa0] sm:$0xff] }
  0x56   : > { %13219 = vst [vmem:[#allocation23_spill] sm:$0xff] %v8250_v22  ;;  %v8266_v30 = vpack.c.bf16 %v826_v24, %v824_v23  ;;  %v743_v23 = vld [vmem:[%s12656_s4 + $0x18] sm:$0xff] }
  0x58   : > { %6258 = vmatpush1.bf16.msra.mxu0 %v6257_v28  ;;  %13220 = vst [vmem:[#allocation24_spill] sm:$0xff] %v8266_v30 }
  0x59   : > { %6260 = vmatprep.subr.bf16.mxu0 %v6259_v29  ;;  %v608_v29 = vrot.slane %v599_v20, %v8239_v18  ;;  %v741_v20 = vld [vmem:[%s12656_s4 + $0x8] sm:$0xff] }
  0x5c   : > { %6262 = vmatpush1.bf16.msra.mxu0 %v6261_v32  ;;  %v8270_v32 = vpack.c.bf16 %v831_v27, %v829_v26 }
  0x5d   : > { %6344 = vmatprep.subr.bf16.mxu0 %v8154_v51 }
  0x5e   : > { %13221 = vst [vmem:[#allocation25_spill] sm:$0xff] %v8270_v32 }
  0x5f   : > { %676 = vmatmul.mubr.f32.vlgmr.msra.gmra.mrb[0].mxu0 %v519_v33  ;;  %v828_v33 = vld [vmem:[%s12657_s5 + $0xc0] sm:$0xff] }
  0x60   : > { %681 = vmatprep.mubr.f32.mxu0 %v522_v34  ;;  %6346 = vmatpush1.bf16.msra.mxu0 %v8163_v54  ;;  %v830_v34 = vld [vmem:[%s12657_s5 + $0xd0] sm:$0xff] }
  0x61   : > { %6348 = vmatprep.subr.bf16.mxu0 %v8171_v57 }
  0x63   : > { %682 = vmatmul.mubr.f32.gmra.mrb[2].mxu0 %v521_v35 }
  0x64   : > { %687 = vmatprep.mubr.f32.mxu0 %v524_v36  ;;  %6350 = vmatpush1.bf16.msra.mxu0 %v8180_v60  ;;  %v833_v36 = vld [vmem:[%s12657_s5 + $0xe8] sm:$0xff] }
  0x65   : > { %6352 = vmatprep.subr.bf16.mxu0 %v8189_v63 }
  0x67   : > { %688 = vmatmul.mubr.f32.gmra.mrb[4].mxu0 %v523_v37  ;;  %v835_v37 = vld [vmem:[%s12657_s5 + $0xf8] sm:$0xff] }
  0x68   : > { %693 = vmatprep.mubr.f32.mxu0 %v526_v38  ;;  %6354 = vmatpush1.bf16.msra.mxu0 %v8204_v5 }
  0x69   : > { %6356 = vmatprep.subr.bf16.mxu0 %v8207_v6 }
  0x6b   : > { %694 = vmatmul.mubr.f32.gmra.mrb[6].mxu0 %v525_v39 }
  0x6c   : > { %699 = vmatprep.mubr.f32.mxu0 %v528_v40  ;;  %6358 = vmatpush1.bf16.msra.mxu0 %v8222_v12 }
  0x6d   : > { %6360 = vmatprep.subr.bf16.mxu0 %v8225_v13 }
  0x6f   : > { %700 = vmatmul.mubr.f32.gmra.mrb[8].mxu0 %v527_v41 }
  0x70   : > { %705 = vmatprep.mubr.f32.mxu0 %v530_v42  ;;  %6362 = vmatpush1.bf16.msra.mxu0 %v8242_v19  ;;  %v8291_v42 = vpack.c.bf16 %v830_v34, %v828_v33  ;;  %v740_v33 = vld [vmem:[%s12656_s4] sm:$0xff]  ;;  %v742_v34 = vld [vmem:[%s12656_s4 + $0x10] sm:$0xff] }
  0x71   : > { %6364 = vmatprep.subr.bf16.mxu0 %v8250_v22 }
  0x72   : > { %13222 = vst [vmem:[#allocation26_spill] sm:$0xff] %v8291_v42 }
  0x73   : > { %706 = vmatmul.mubr.f32.gmra.mrb[10].mxu0 %v529_v43 }
  0x74   : > { %711 = vmatprep.mubr.f32.mxu0 %v532_v44  ;;  %6366 = vmatpush1.bf16.msra.mxu0 %v8266_v30  ;;  %v8296_v44 = vpack.c.bf16 %v835_v37, %v833_v36  ;;  %v724_v36 = vld [vmem:[%s12655_s3] sm:$0xff]  ;;  %v8363_v37 = vpack.c.bf16 %v742_v34, %v740_v33  ;;  %v758_v34 = vld [vmem:[%s12656_s4 + $0x90] sm:$0xff] }
  0x75   : > { %6368 = vmatprep.subr.bf16.mxu0 %v8270_v32  ;;  %v756_v33 = vld [vmem:[%s12656_s4 + $0x80] sm:$0xff] }
  0x76   : > { %13223 = vst [vmem:[#allocation27_spill] sm:$0xff] %v8296_v44  ;;  %13225 = vst [vmem:[#allocation29_spill] sm:$0xff] %v8363_v37 }
  0x77   : > { %712 = vmatmul.mubr.f32.gmra.mrb[12].mxu0 %v531_v45 }
  0x78   : > { %717 = vmatprep.mubr.f32.mxu0 %v534_v46  ;;  %6370 = vmatpush1.bf16.msra.mxu0 %v8291_v42 }
  0x79   : > { %6372 = vmatprep.subr.bf16.mxu0 %v8296_v44 }
  0x7b   : > { %718 = vmatmul.mubr.f32.gmra.mrb[14].mxu0 %v533_v47 }
 0x132   : > { %v677_v25 = vpop.f32.mrb[0].mxu0 }
 0x133   : > { %v679_v28 = vpop.f32.mrb[1].mxu0  ;;  %v8293_v43 = vadd.f32 %v677_v25, %v604_v31 }
 0x134   : > { %v8286_v40 = vadd.f32 %v679_v28, %v608_v29  ;;  %v8344_v28 = vpack.c.bf16 %v743_v23, %v741_v20  ;;  %v727_v20 = vld [vmem:[%s12655_s3 + $0x18] sm:$0xff] }
 0x136   : > { %v683_v35 = vpop.f32.mrb[2].mxu0  ;;  %13224 = vst [vmem:[#allocation28_spill] sm:$0xff] %v8344_v28 }
 0x137   : > { %v8284_v38 = vadd.f32 %v683_v35, %v604_v31  ;;  %v685_v39 = vpop.f32.mrb[3].mxu0 }
 0x138   : > { %v8288_v41 = vadd.f32 %v685_v39, %v608_v29 }
 0x139   : > { %v6265_v49 = vpack.c.bf16 %v8284_v38, %v8293_v43 }
 0x13a   : > { %v689_v45 = vpop.f32.mrb[4].mxu0  ;;  %v6263_v46 = vpack.c.bf16 %v8288_v41, %v8286_v40 }
 0x13b   : > { %v691_v47 = vpop.f32.mrb[5].mxu0  ;;  %v8310_v58 = vadd.f32 %v689_v45, %v604_v31  ;;  %v744_v45 = vld [vmem:[%s12656_s4 + $0x20] sm:$0xff] }
 0x13c   : > { %6264 = vmatprep.subr.bf16.mxu1 %v6263_v46  ;;  %v8306_v55 = vadd.f32 %v691_v47, %v608_v29  ;;  %v746_v46 = vld [vmem:[%s12656_s4 + $0x30] sm:$0xff]  ;;  %v749_v47 = vld [vmem:[%s12656_s4 + $0x48] sm:$0xff] }
 0x13d   : > { %6266 = vmatpush1.bf16.msra.mxu1 %v6265_v49  ;;  %v751_v49 = vld [vmem:[%s12656_s4 + $0x58] sm:$0xff] }
 0x13e   : > { %v695_v50 = vpop.f32.mrb[6].mxu0 }
 0x13f   : > { %v8304_v52 = vadd.f32 %v695_v50, %v604_v31  ;;  %v697_v53 = vpop.f32.mrb[7].mxu0  ;;  %v725_v50 = vld [vmem:[%s12655_s3 + $0x8] sm:$0xff] }
 0x140   : > { %v8308_v56 = vadd.f32 %v697_v53, %v608_v29  ;;  %v8386_v53 = vpack.c.bf16 %v746_v46, %v744_v45  ;;  %v760_v46 = vld [vmem:[%s12656_s4 + $0xa0] sm:$0xff] }
 0x141   : > { %v6269_v62 = vpack.c.bf16 %v8304_v52, %v8310_v58 }
 0x142   : > { %v6267_v59 = vpack.c.bf16 %v8308_v56, %v8306_v55  ;;  %v701_v61 = vpop.f32.mrb[8].mxu0  ;;  %13227 = vst [vmem:[#allocation31_spill] sm:$0xff] %v8386_v53 }
 0x143   : > { %v703_v0 = vpop.f32.mrb[9].mxu0  ;;  %v8322_v8 = vadd.f32 %v701_v61, %v604_v31  ;;  %v748_v61 = vld [vmem:[%s12656_s4 + $0x40] sm:$0xff] }
 0x144   : > { %6268 = vmatprep.subr.bf16.mxu1 %v6267_v59  ;;  %v8318_v4 = vadd.f32 %v703_v0, %v608_v29  ;;  %v8389_v59 = vpack.c.bf16 %v751_v49, %v749_v47  ;;  %v753_v0 = vld [vmem:[%s12656_s4 + $0x68] sm:$0xff]  ;;  %v762_v47 = vld [vmem:[%s12656_s4 + $0xb0] sm:$0xff] }
 0x145   : > { %6270 = vmatpush1.bf16.msra.mxu1 %v6269_v62  ;;  %v750_v62 = vld [vmem:[%s12656_s4 + $0x50] sm:$0xff]  ;;  %v765_v49 = vld [vmem:[%s12656_s4 + $0xc8] sm:$0xff] }
 0x146   : > { %v707_v1 = vpop.f32.mrb[10].mxu0  ;;  %13228 = vst [vmem:[#allocation32_spill] sm:$0xff] %v8389_v59 }
 0x147   : > { %v8316_v2 = vadd.f32 %v707_v1, %v604_v31  ;;  %v709_v3 = vpop.f32.mrb[11].mxu0  ;;  %v755_v1 = vld [vmem:[%s12656_s4 + $0x78] sm:$0xff] }
 0x148   : > { %v8320_v7 = vadd.f32 %v709_v3, %v608_v29  ;;  %v726_v3 = vld [vmem:[%s12655_s3 + $0x10] sm:$0xff] }
 0x149   : > { %v6273_v11 = vpack.c.bf16 %v8316_v2, %v8322_v8 }
 0x14a   : > { %v6271_v9 = vpack.c.bf16 %v8320_v7, %v8318_v4  ;;  %v713_v10 = vpop.f32.mrb[12].mxu0 }
 0x14b   : > { %v715_v14 = vpop.f32.mrb[13].mxu0  ;;  %v8340_v26 = vadd.f32 %v713_v10, %v604_v31  ;;  %v8412_v10 = vpack.c.bf16 %v755_v1, %v753_v0  ;;  %v764_v1 = vld [vmem:[%s12656_s4 + $0xc0] sm:$0xff] }
 0x14c   : > { %6272 = vmatprep.subr.bf16.mxu1 %v6271_v9  ;;  %v8336_v24 = vadd.f32 %v715_v14, %v608_v29  ;;  %v8409_v9 = vpack.c.bf16 %v750_v62, %v748_v61  ;;  %v754_v14 = vld [vmem:[%s12656_s4 + $0x70] sm:$0xff]  ;;  %v729_v61 = vld [vmem:[%s12655_s3 + $0x28] sm:$0xff]  ;;  %v8478_v62 = vpack.c.bf16 %v762_v47, %v760_v46 }
 0x14d   : > { %6274 = vmatpush1.bf16.msra.mxu1 %v6273_v11  ;;  %13230 = vst [vmem:[#allocation34_spill] sm:$0xff] %v8412_v10  ;;  %v752_v11 = vld [vmem:[%s12656_s4 + $0x60] sm:$0xff] }
 0x14e   : > { %v719_v15 = vpop.f32.mrb[14].mxu0  ;;  %13229 = vst [vmem:[#allocation33_spill] sm:$0xff] %v8409_v9  ;;  %v8432_v23 = vpack.c.bf16 %v754_v14, %v752_v11  ;;  %13235 = vst [vmem:[#allocation39_spill] sm:$0xff] %v8478_v62  ;;  %v769_v11 = vld [vmem:[%s12656_s4 + $0xe8] sm:$0xff]  ;;  %v771_v14 = vld [vmem:[%s12656_s4 + $0xf8] sm:$0xff] }
 0x14f   : > { %v8328_v16 = vadd.f32 %v719_v15, %v604_v31  ;;  %v721_v17 = vpop.f32.mrb[15].mxu0  ;;  %v747_v31 = vld [vmem:[%s12656_s4 + $0x38] sm:$0xff]  ;;  %v757_v15 = vld [vmem:[%s12656_s4 + $0x88] sm:$0xff] }
 0x150   : > { %v8338_v25 = vadd.f32 %v721_v17, %v608_v29  ;;  %v745_v29 = vld [vmem:[%s12656_s4 + $0x28] sm:$0xff]  ;;  %v759_v17 = vld [vmem:[%s12656_s4 + $0x98] sm:$0xff]  ;;  %13231 = vst [vmem:[#allocation35_spill] sm:$0xff] %v8432_v23 }
 0x151   : > { %v6277_v35 = vpack.c.bf16 %v8328_v16, %v8340_v26  ;;  %v8366_v39 = vpack.c.bf16 %v747_v31, %v745_v29  ;;  %v763_v29 = vld [vmem:[%s12656_s4 + $0xb8] sm:$0xff]  ;;  %v728_v31 = vld [vmem:[%s12655_s3 + $0x20] sm:$0xff] }
 0x152   : > { %v6275_v27 = vpack.c.bf16 %v8338_v25, %v8336_v24 }
 0x153   : > { %13226 = vst [vmem:[#allocation30_spill] sm:$0xff] %v8366_v39 }
 0x154   : > { %6276 = vmatprep.subr.bf16.mxu1 %v6275_v27  ;;  %v8435_v27 = vpack.c.bf16 %v759_v17, %v757_v15  ;;  %v730_v15 = vld [vmem:[%s12655_s3 + $0x30] sm:$0xff] }
 0x155   : > { %6278 = vmatpush1.bf16.msra.mxu1 %v6277_v35  ;;  %v761_v35 = vld [vmem:[%s12656_s4 + $0xa8] sm:$0xff] }
 0x156   : > { %6280 = vmatprep.subr.bf16.mxu1 %v8344_v28  ;;  %13232 = vst [vmem:[#allocation36_spill] sm:$0xff] %v8435_v27  ;;  %v8458_v45 = vpack.c.bf16 %v763_v29, %v761_v35  ;;  %v773_v35 = vld [vmem:[%s12656_s4 + $0x108] sm:$0xff]  ;;  %v775_v29 = vld [vmem:[%s12656_s4 + $0x118] sm:$0xff]  ;;  %v910_v28 = vld [vmem:[%s12660_s8 + $0x50] sm:$0xff] }
 0x157   : > { %v8527_v47 = vpack.c.bf16 %v775_v29, %v773_v35  ;;  %v783_v35 = vld [vmem:[%s12656_s4 + $0x158] sm:$0xff]  ;;  %v733_v29 = vld [vmem:[%s12655_s3 + $0x48] sm:$0xff] }
 0x158   : > { %6096 = vmatmul.mubr.msk.f32.vlgmr.msra.gmra.mrb[0].mxu1 %vm1030_vm0, %v724_v36  ;;  %v8455_v36 = vpack.c.bf16 %v758_v34, %v756_v33  ;;  %13234 = vst [vmem:[#allocation38_spill] sm:$0xff] %v8458_v45  ;;  %v768_v33 = vld [vmem:[%s12656_s4 + $0xe0] sm:$0xff]  ;;  %v770_v34 = vld [vmem:[%s12656_s4 + $0xf0] sm:$0xff] }
 0x159   : > { %1149 = vmatprep.mubr.f32.mxu1 %v12676_v48  ;;  %6282 = vmatpush1.bf16.msra.mxu1 %v8363_v37  ;;  %v8524_v46 = vpack.c.bf16 %v770_v34, %v768_v33  ;;  %13240 = vst [vmem:[#allocation44_spill] sm:$0xff] %v8527_v47  ;;  %v778_v33 = vld [vmem:[%s12656_s4 + $0x130] sm:$0xff]  ;;  %v781_v34 = vld [vmem:[%s12656_s4 + $0x148] sm:$0xff] }
 0x15a   : > { %6284 = vmatprep.subr.bf16.mxu1 %v8366_v39  ;;  %13233 = vst [vmem:[#allocation37_spill] sm:$0xff] %v8455_v36  ;;  %v909_v39 = vld [vmem:[%s12660_s8 + $0x48] sm:$0xff] }
 0x15b   : > { %13239 = vst [vmem:[#allocation43_spill] sm:$0xff] %v8524_v46 }
 0x15c   : > { %6097 = vmatmul.mubr.msk.f32.gmra.mrb[2].mxu1 %vm1030_vm0, %v725_v50  ;;  %v767_v50 = vld [vmem:[%s12656_s4 + $0xd8] sm:$0xff] }
 0x15d   : > { %1155 = vmatprep.mubr.f32.mxu1 %v12676_v48  ;;  %6286 = vmatpush1.bf16.msra.mxu1 %v8386_v53  ;;  %v8481_v0 = vpack.c.bf16 %v767_v50, %v765_v49  ;;  %v772_v49 = vld [vmem:[%s12656_s4 + $0x100] sm:$0xff]  ;;  %v774_v50 = vld [vmem:[%s12656_s4 + $0x110] sm:$0xff] }
 0x15e   : > { %6288 = vmatprep.subr.bf16.mxu1 %v8389_v59  ;;  %v904_v59 = vld [vmem:[%s12660_s8 + $0x20] sm:$0xff]  ;;  %v906_v53 = vld [vmem:[%s12660_s8 + $0x30] sm:$0xff] }
 0x15f   : > { %13236 = vst [vmem:[#allocation40_spill] sm:$0xff] %v8481_v0 }
 0x160   : > { %6098 = vmatmul.mubr.msk.f32.gmra.mrb[4].mxu1 %vm1030_vm0, %v726_v3  ;;  %v766_v3 = vld [vmem:[%s12656_s4 + $0xd0] sm:$0xff] }
 0x161   : > { %1161 = vmatprep.mubr.f32.mxu1 %v12676_v48  ;;  %6290 = vmatpush1.bf16.msra.mxu1 %v8409_v9  ;;  %v8501_v17 = vpack.c.bf16 %v766_v3, %v764_v1  ;;  %v779_v1 = vld [vmem:[%s12656_s4 + $0x138] sm:$0xff]  ;;  %v732_v3 = vld [vmem:[%s12655_s3 + $0x40] sm:$0xff]  ;;  %v873_v9 = vld [vmem:[%s12658_s6 + $0x28] sm:$0xff] }
 0x162   : > { %6292 = vmatprep.subr.bf16.mxu1 %v8412_v10 }
 0x163   : > { %13237 = vst [vmem:[#allocation41_spill] sm:$0xff] %v8501_v17 }
 0x164   : > { %6099 = vmatmul.mubr.msk.f32.gmra.mrb[6].mxu1 %vm1030_vm0, %v727_v20  ;;  %v8504_v20 = vpack.c.bf16 %v771_v14, %v769_v11  ;;  %v8547_v11 = vpack.c.bf16 %v774_v50, %v772_v49  ;;  %v8573_v49 = vpack.c.bf16 %v783_v35, %v781_v34  ;;  %v780_v50 = vld [vmem:[%s12656_s4 + $0x140] sm:$0xff] }
 0x165   : > { %1167 = vmatprep.mubr.f32.mxu1 %v12676_v48  ;;  %6294 = vmatpush1.bf16.msra.mxu1 %v8432_v23  ;;  %v784_v35 = vld [vmem:[%s12656_s4 + $0x160] sm:$0xff]  ;;  %v870_v23 = vld [vmem:[%s12658_s6 + $0x10] sm:$0xff] }
 0x166   : > { %6296 = vmatprep.subr.bf16.mxu1 %v8435_v27  ;;  %13238 = vst [vmem:[#allocation42_spill] sm:$0xff] %v8504_v20  ;;  %13241 = vst [vmem:[#allocation45_spill] sm:$0xff] %v8547_v11  ;;  %v7796_v27 = vmov 0  }
 0x167   : > { %13244 = vst [vmem:[#allocation48_spill] sm:$0xff] %v8573_v49  ;;  %7425 = vset.pattern.permute.xlu0 %v7796_v27  ;;  %7426 = vset.pattern.permute.xlu1 %v7796_v27  ;;  %v878_v27 = vld [vmem:[%s12659_s7 + $0x10] sm:$0xff] }
 0x168   : > { %6100 = vmatmul.mubr.msk.f32.gmra.mrb[8].mxu1 %vm1030_vm0, %v728_v31  ;;  %v731_v31 = vld [vmem:[%s12655_s3 + $0x38] sm:$0xff] }
 0x169   : > { %1173 = vmatprep.mubr.f32.mxu1 %v12676_v48  ;;  %6298 = vmatpush1.bf16.msra.mxu1 %v8455_v36  ;;  %v864_v36 = vld [vmem:[%s12657_s5 + $0x1e0] sm:$0xff] }
 0x16a   : > { %6300 = vmatprep.subr.bf16.mxu1 %v8458_v45  ;;  %v865_v45 = vld [vmem:[%s12657_s5 + $0x1e8] sm:$0xff] }
 0x16c   : > { %6101 = vmatmul.mubr.msk.f32.gmra.mrb[10].mxu1 %vm1030_vm0, %v729_v61  ;;  %v777_v61 = vld [vmem:[%s12656_s4 + $0x128] sm:$0xff] }
 0x16d   : > { %1179 = vmatprep.mubr.f32.mxu1 %v12676_v48  ;;  %6302 = vmatpush1.bf16.msra.mxu1 %v8478_v62  ;;  %v8550_v14 = vpack.c.bf16 %v779_v1, %v777_v61  ;;  %v782_v61 = vld [vmem:[%s12656_s4 + $0x150] sm:$0xff]  ;;  %v785_v1 = vld [vmem:[%s12656_s4 + $0x168] sm:$0xff]  ;;  %v860_v62 = vld [vmem:[%s12657_s5 + $0x1c0] sm:$0xff] }
 0x16e   : > { %6304 = vmatprep.subr.bf16.mxu1 %v8481_v0  ;;  %v861_v0 = vld [vmem:[%s12657_s5 + $0x1c8] sm:$0xff] }
 0x16f   : > { %13242 = vst [vmem:[#allocation46_spill] sm:$0xff] %v8550_v14 }
 0x170   : > { %6102 = vmatmul.mubr.msk.f32.gmra.mrb[12].mxu1 %vm1030_vm0, %v730_v15  ;;  %v776_v15 = vld [vmem:[%s12656_s4 + $0x120] sm:$0xff] }
 0x171   : > { %1185 = vmatprep.mubr.f32.mxu1 %v12676_v48  ;;  %6306 = vmatpush1.bf16.msra.mxu1 %v8501_v17  ;;  %v856_v17 = vld [vmem:[%s12657_s5 + $0x1a0] sm:$0xff] }
 0x172   : > { %6308 = vmatprep.subr.bf16.mxu1 %v8504_v20  ;;  %v857_v20 = vld [vmem:[%s12657_s5 + $0x1a8] sm:$0xff] }
 0x174   : > { %6103 = vmatmul.mubr.msk.f32.gmra.mrb[14].mxu1 %vm1030_vm0, %v731_v31  ;;  %v8570_v31 = vpack.c.bf16 %v778_v33, %v776_v15  ;;  %v734_v15 = vld [vmem:[%s12655_s3 + $0x50] sm:$0xff]  ;;  %v8593_v33 = vpack.c.bf16 %v782_v61, %v780_v50  ;;  %v791_v50 = vld [vmem:[%s12656_s4 + $0x198] sm:$0xff]  ;;  %v13247_v61 = vmov 0.0  }
 0x175   : > { %1191 = vmatprep.mubr.f32.mxu1 %v12676_v48  ;;  %6310 = vmatpush1.bf16.msra.mxu1 %v8524_v46  ;;  %v852_v46 = vld [vmem:[%s12657_s5 + $0x180] sm:$0xff] }
 0x176   : > { %6312 = vmatprep.subr.bf16.mxu1 %v8527_v47  ;;  %13243 = vst [vmem:[#allocation47_spill] sm:$0xff] %v8570_v31  ;;  %13245 = vst [vmem:[#allocation49_spill] sm:$0xff] %v8593_v33  ;;  %v853_v47 = vld [vmem:[%s12657_s5 + $0x188] sm:$0xff] }
 0x178   : > { %6104 = vmatmul.mubr.msk.f32.gmra.mrb[16].mxu1 %vm1030_vm0, %v732_v3  ;;  %v787_v3 = vld [vmem:[%s12656_s4 + $0x178] sm:$0xff] }
 0x179   : > { %1197 = vmatprep.mubr.f32.mxu1 %v12676_v48  ;;  %6314 = vmatpush1.bf16.msra.mxu1 %v8547_v11  ;;  %v8596_v34 = vpack.c.bf16 %v787_v3, %v785_v1  ;;  %v735_v1 = vld [vmem:[%s12655_s3 + $0x58] sm:$0xff]  ;;  %v848_v11 = vld [vmem:[%s12657_s5 + $0x160] sm:$0xff] }
 0x17a   : > { %6316 = vmatprep.subr.bf16.mxu1 %v8550_v14  ;;  %v793_v14 = vld [vmem:[%s12656_s4 + $0x1a8] sm:$0xff] }
 0x17b   : > { %13246 = vst [vmem:[#allocation50_spill] sm:$0xff] %v8596_v34 }
 0x17c   : > { %6105 = vmatmul.mubr.msk.f32.gmra.mrb[18].mxu1 %vm1030_vm0, %v733_v29  ;;  %v786_v29 = vld [vmem:[%s12656_s4 + $0x170] sm:$0xff] }
 0x17d   : > { %1203 = vmatprep.mubr.f32.mxu1 %v12676_v48  ;;  %6318 = vmatpush1.bf16.msra.mxu1 %v8570_v31  ;;  %v789_v48 = vld [vmem:[%s12656_s4 + $0x188] sm:$0xff]  ;;  %v8616_v3 = vpack.c.bf16 %v786_v29, %v784_v35  ;;  %v788_v31 = vld [vmem:[%s12656_s4 + $0x180] sm:$0xff]  ;;  %v795_v35 = vld [vmem:[%s12656_s4 + $0x1b8] sm:$0xff] }
 0x17e   : > { %6320 = vmatprep.subr.bf16.mxu1 %v8573_v49  ;;  %v8619_v49 = vpack.c.bf16 %v791_v50, %v789_v48  ;;  %v736_v48 = vld [vmem:[%s12655_s3 + $0x60] sm:$0xff]  ;;  %v8642_v50 = vpack.c.bf16 %v795_v35, %v793_v14  ;;  %v737_v14 = vld [vmem:[%s12655_s3 + $0x68] sm:$0xff] }
 0x17f   : > { %13248 = vst [vmem:[#allocation51_spill] sm:$0xff] %v8616_v3 }
 0x180   : > { %6106 = vmatmul.mubr.msk.f32.gmra.mrb[20].mxu1 %vm1030_vm0, %v734_v15  ;;  %13249 = vst [vmem:[#allocation52_spill] sm:$0xff] %v8619_v49  ;;  %v790_v15 = vld [vmem:[%s12656_s4 + $0x190] sm:$0xff]  ;;  %13251 = vst [vmem:[#allocation54_spill] sm:$0xff] %v8642_v50 }
 0x181   : > { %1209 = vmatprep.mubr.f32.mxu1 %v13247_v61  ;;  %6322 = vmatpush1.bf16.msra.mxu1 %v8593_v33  ;;  %v8639_v29 = vpack.c.bf16 %v790_v15, %v788_v31  ;;  %v797_v33 = vld [vmem:[%s12656_s4 + $0x1c8] sm:$0xff]  ;;  %v799_v31 = vld [vmem:[%s12656_s4 + $0x1d8] sm:$0xff] }
 0x182   : > { %6324 = vmatprep.subr.bf16.mxu1 %v8596_v34  ;;  %v792_v34 = vld [vmem:[%s12656_s4 + $0x1a0] sm:$0xff]  ;;  %v8665_v35 = vpack.c.bf16 %v799_v31, %v797_v33  ;;  %v738_v33 = vld [vmem:[%s12655_s3 + $0x70] sm:$0xff] }
 0x183   : > { %13250 = vst [vmem:[#allocation53_spill] sm:$0xff] %v8639_v29 }
 0x184   : > { %6107 = vmatmul.mubr.msk.f32.gmra.mrb[22].mxu1 %vm1030_vm0, %v735_v1  ;;  %v794_v1 = vld [vmem:[%s12656_s4 + $0x1b0] sm:$0xff]  ;;  %13253 = vst [vmem:[#allocation56_spill] sm:$0xff] %v8665_v35 }
 0x185   : > { %1215 = vmatprep.mubr.f32.mxu1 %v13247_v61  ;;  %6326 = vmatpush1.bf16.msra.mxu1 %v8616_v3  ;;  %v8662_v15 = vpack.c.bf16 %v794_v1, %v792_v34  ;;  %v801_v3 = vld [vmem:[%s12656_s4 + $0x1e8] sm:$0xff]  ;;  %v803_v34 = vld [vmem:[%s12656_s4 + $0x1f8] sm:$0xff] }
 0x186   : > { %6328 = vmatprep.subr.bf16.mxu1 %v8619_v49  ;;  %v796_v49 = vld [vmem:[%s12656_s4 + $0x1c0] sm:$0xff]  ;;  %v8688_v31 = vpack.c.bf16 %v803_v34, %v801_v3  ;;  %v802_v3 = vld [vmem:[%s12656_s4 + $0x1f0] sm:$0xff] }
 0x187   : > { %13252 = vst [vmem:[#allocation55_spill] sm:$0xff] %v8662_v15 }
 0x188   : > { %6108 = vmatmul.mubr.msk.f32.gmra.mrb[24].mxu1 %vm1030_vm0, %v736_v48  ;;  %v798_v48 = vld [vmem:[%s12656_s4 + $0x1d0] sm:$0xff]  ;;  %13255 = vst [vmem:[#allocation58_spill] sm:$0xff] %v8688_v31 }
 0x189   : > { %1221 = vmatprep.mubr.f32.mxu1 %v13247_v61  ;;  %6330 = vmatpush1.bf16.msra.mxu1 %v8639_v29  ;;  %v8685_v1 = vpack.c.bf16 %v798_v48, %v796_v49  ;;  %v800_v49 = vld [vmem:[%s12656_s4 + $0x1e0] sm:$0xff]  ;;  %v849_v29 = vld [vmem:[%s12657_s5 + $0x168] sm:$0xff] }
 0x18a   : > { %6332 = vmatprep.subr.bf16.mxu1 %v8642_v50  ;;  %v832_v48 = vld [vmem:[%s12657_s5 + $0xe0] sm:$0xff]  ;;  %v8707_v34 = vpack.c.bf16 %v802_v3, %v800_v49 }
 0x18b   : > { %13254 = vst [vmem:[#allocation57_spill] sm:$0xff] %v8685_v1  ;;  %v836_v3 = vld [vmem:[%s12657_s5 + $0x100] sm:$0xff] }
 0x18c   : > { %6109 = vmatmul.mubr.msk.f32.gmra.mrb[26].mxu1 %vm1030_vm0, %v737_v14  ;;  %v739_v14 = vld [vmem:[%s12655_s3 + $0x78] sm:$0xff]  ;;  %13256 = vst [vmem:[#allocation59_spill] sm:$0xff] %v8707_v34  ;;  %v844_v50 = vld [vmem:[%s12657_s5 + $0x140] sm:$0xff] }
 0x18d   : > { %1227 = vmatprep.mubr.f32.mxu1 %v13247_v61  ;;  %6334 = vmatpush1.bf16.msra.mxu1 %v8662_v15  ;;  %v845_v15 = vld [vmem:[%s12657_s5 + $0x148] sm:$0xff] }
 0x18e   : > { %6336 = vmatprep.subr.bf16.mxu1 %v8665_v35  ;;  %v840_v35 = vld [vmem:[%s12657_s5 + $0x120] sm:$0xff] }
 0x190   : > { %6110 = vmatmul.mubr.msk.f32.gmra.mrb[28].mxu1 %vm1030_vm0, %v738_v33  ;;  %v834_v33 = vld [vmem:[%s12657_s5 + $0xf0] sm:$0xff] }
 0x191   : > { %1233 = vmatprep.mubr.f32.mxu1 %v13247_v61  ;;  %6338 = vmatpush1.bf16.msra.mxu1 %v8685_v1  ;;  %v839_v1 = vld [vmem:[%s12657_s5 + $0x118] sm:$0xff] }
 0x192   : > { %6340 = vmatprep.subr.bf16.mxu1 %v8688_v31  ;;  %v8712_v31 = vpack.c.bf16 %v834_v33, %v832_v48  ;;  %v838_v48 = vld [vmem:[%s12657_s5 + $0x110] sm:$0xff] }
 0x193   : > { %v8730_v33 = vpack.c.bf16 %v838_v48, %v836_v3  ;;  %v842_v3 = vld [vmem:[%s12657_s5 + $0x130] sm:$0xff] }
 0x194   : > { %6111 = vmatmul.mubr.msk.f32.gmra.mrb[30].mxu1 %vm1030_vm0, %v739_v14  ;;  %13257 = vst [vmem:[#allocation60_spill] sm:$0xff] %v8712_v31  ;;  %v837_v14 = vld [vmem:[%s12657_s5 + $0x108] sm:$0xff]  ;;  %6374 = vmatpush1.bf16.msra.mxu0 %v8712_v31  ;;  %v8748_v48 = vpack.c.bf16 %v842_v3, %v840_v35  ;;  %v846_v35 = vld [vmem:[%s12657_s5 + $0x150] sm:$0xff] }
 0x195   : > { %6342 = vmatpush1.bf16.msra.mxu1 %v8707_v34  ;;  %v8722_v49 = vpack.c.bf16 %v839_v1, %v837_v14  ;;  %13259 = vst [vmem:[#allocation62_spill] sm:$0xff] %v8730_v33  ;;  %v841_v34 = vld [vmem:[%s12657_s5 + $0x128] sm:$0xff]  ;;  %v843_v1 = vld [vmem:[%s12657_s5 + $0x138] sm:$0xff]  ;;  %v8766_v3 = vpack.c.bf16 %v846_v35, %v844_v50  ;;  %v850_v50 = vld [vmem:[%s12657_s5 + $0x170] sm:$0xff] }
 0x196   : > { %v8740_v14 = vpack.c.bf16 %v843_v1, %v841_v34  ;;  %13261 = vst [vmem:[#allocation64_spill] sm:$0xff] %v8748_v48  ;;  %v847_v34 = vld [vmem:[%s12657_s5 + $0x158] sm:$0xff]  ;;  %v8784_v35 = vpack.c.bf16 %v850_v50, %v848_v11  ;;  %v854_v11 = vld [vmem:[%s12657_s5 + $0x190] sm:$0xff] }
 0x197   : > { %13258 = vst [vmem:[#allocation61_spill] sm:$0xff] %v8722_v49  ;;  %6376 = vmatprep.subr.bf16.mxu0 %v8722_v49  ;;  %v8758_v1 = vpack.c.bf16 %v847_v34, %v845_v15  ;;  %13263 = vst [vmem:[#allocation66_spill] sm:$0xff] %v8766_v3  ;;  %v851_v15 = vld [vmem:[%s12657_s5 + $0x178] sm:$0xff]  ;;  %v8802_v50 = vpack.c.bf16 %v854_v11, %v852_v46  ;;  %v858_v46 = vld [vmem:[%s12657_s5 + $0x1b0] sm:$0xff] }
 0x198   : > { %6378 = vmatpush1.bf16.msra.mxu0 %v8730_v33  ;;  %13260 = vst [vmem:[#allocation63_spill] sm:$0xff] %v8740_v14  ;;  %v8776_v34 = vpack.c.bf16 %v851_v15, %v849_v29  ;;  %13265 = vst [vmem:[#allocation68_spill] sm:$0xff] %v8784_v35  ;;  %v855_v29 = vld [vmem:[%s12657_s5 + $0x198] sm:$0xff]  ;;  %v8820_v11 = vpack.c.bf16 %v858_v46, %v856_v17  ;;  %v862_v17 = vld [vmem:[%s12657_s5 + $0x1d0] sm:$0xff] }
 0x199   : > { %6380 = vmatprep.subr.bf16.mxu0 %v8740_v14  ;;  %13262 = vst [vmem:[#allocation65_spill] sm:$0xff] %v8758_v1  ;;  %v8794_v15 = vpack.c.bf16 %v855_v29, %v853_v47  ;;  %13267 = vst [vmem:[#allocation70_spill] sm:$0xff] %v8802_v50  ;;  %v859_v47 = vld [vmem:[%s12657_s5 + $0x1b8] sm:$0xff]  ;;  %v8838_v46 = vpack.c.bf16 %v862_v17, %v860_v62  ;;  %v866_v62 = vld [vmem:[%s12657_s5 + $0x1f0] sm:$0xff] }
 0x19a   : > { %13264 = vst [vmem:[#allocation67_spill] sm:$0xff] %v8776_v34  ;;  %v8812_v29 = vpack.c.bf16 %v859_v47, %v857_v20  ;;  %13269 = vst [vmem:[#allocation72_spill] sm:$0xff] %v8820_v11  ;;  %v863_v20 = vld [vmem:[%s12657_s5 + $0x1d8] sm:$0xff]  ;;  %v8856_v17 = vpack.c.bf16 %v866_v62, %v864_v36  ;;  %v876_v36 = vld [vmem:[%s12659_s7] sm:$0xff] }
 0x19b   : > { %13266 = vst [vmem:[#allocation69_spill] sm:$0xff] %v8794_v15  ;;  %v8830_v47 = vpack.c.bf16 %v863_v20, %v861_v0  ;;  %13271 = vst [vmem:[#allocation74_spill] sm:$0xff] %v8838_v46  ;;  %v867_v0 = vld [vmem:[%s12657_s5 + $0x1f8] sm:$0xff]  ;;  %v877_v62 = vld [vmem:[%s12659_s7 + $0x8] sm:$0xff] }
 0x19c   : > { %6382 = vmatpush1.bf16.msra.mxu0 %v8748_v48  ;;  %13268 = vst [vmem:[#allocation71_spill] sm:$0xff] %v8812_v29  ;;  %v8848_v20 = vpack.c.bf16 %v867_v0, %v865_v45  ;;  %13273 = vst [vmem:[#allocation76_spill] sm:$0xff] %v8856_v17  ;;  %v868_v45 = vld [vmem:[%s12658_s6] sm:$0xff]  ;;  %v869_v0 = vld [vmem:[%s12658_s6 + $0x8] sm:$0xff] }
 0x19d   : > { %6384 = vmatprep.subr.bf16.mxu0 %v8758_v1  ;;  %13270 = vst [vmem:[#allocation73_spill] sm:$0xff] %v8830_v47  ;;  %1500 = vperm.xlu0 %7425, %v868_v45   ;;  %v871_v45 = vld [vmem:[%s12658_s6 + $0x18] sm:$0xff] }
 0x19e   : > { %13272 = vst [vmem:[#allocation75_spill] sm:$0xff] %v8848_v20  ;;  %1505 = vperm.xlu1 %7426, %v869_v0   ;;  %v879_v0 = vld [vmem:[%s12659_s7 + $0x18] sm:$0xff] }
 0x1a0   : > { %6386 = vmatpush1.bf16.msra.mxu0 %v8766_v3 }
 0x1a1   : > { %6388 = vmatprep.subr.bf16.mxu0 %v8776_v34  ;;  %1556 = vperm.xlu0 %7425, %v876_v36   ;;  %v901_v36 = vld [vmem:[%s12660_s8 + $0x8] sm:$0xff] }
 0x1a2   : > { %1561 = vperm.xlu1 %7426, %v877_v62   ;;  %v903_v62 = vld [vmem:[%s12660_s8 + $0x18] sm:$0xff] }
 0x1a3   : > { %v8890_v10 = vpack.c.bf16 %v903_v62, %v901_v36  ;;  %v882_v36 = vld [vmem:[%s12659_s7 + $0x30] sm:$0xff]  ;;  %v875_v62 = vld [vmem:[%s12658_s6 + $0x38] sm:$0xff] }
 0x1a4   : > { %6390 = vmatpush1.bf16.msra.mxu0 %v8784_v35 }
 0x1a5   : > { %6392 = vmatprep.subr.bf16.mxu0 %v8794_v15  ;;  %1510 = vperm.xlu0 %7425, %v870_v23   ;;  %13274 = vst [vmem:[#allocation77_spill] sm:$0xff] %v8890_v10  ;;  %v872_v23 = vld [vmem:[%s12658_s6 + $0x20] sm:$0xff] }
 0x1a6   : > { %1566 = vperm.xlu1 %7426, %v878_v27   ;;  %6408 = vmatprep.subr.bf16.mxu1 %v8890_v10  ;;  %v880_v27 = vld [vmem:[%s12659_s7 + $0x20] sm:$0xff] }
 0x1a8   : > { %6394 = vmatpush1.bf16.msra.mxu0 %v8802_v50 }
 0x1a9   : > { %6396 = vmatprep.subr.bf16.mxu0 %v8812_v29  ;;  %1515 = vperm.xlu0 %7425, %v871_v45   ;;  %v881_v45 = vld [vmem:[%s12659_s7 + $0x28] sm:$0xff] }
 0x1aa   : > { %1571 = vperm.xlu1 %7426, %v879_v0   ;;  %v874_v0 = vld [vmem:[%s12658_s6 + $0x30] sm:$0xff] }
 0x1ac   : > { %6398 = vmatpush1.bf16.msra.mxu0 %v8820_v11 }
 0x1ad   : > { %6400 = vmatprep.subr.bf16.mxu0 %v8830_v47  ;;  %1520 = vperm.xlu0 %7425, %v872_v23   ;;  %v883_v23 = vld [vmem:[%s12659_s7 + $0x38] sm:$0xff] }
 0x1ae   : > { %1576 = vperm.xlu1 %7426, %v880_v27   ;;  %v885_v27 = vld [vmem:[%s12664_s12 + $0x8] sm:$0xff] }
 0x1b0   : > { %6402 = vmatpush1.bf16.msra.mxu0 %v8838_v46 }
 0x1b1   : > { %6404 = vmatprep.subr.bf16.mxu0 %v8848_v20  ;;  %1525 = vperm.xlu0 %7425, %v873_v9   ;;  %v884_v9 = vld [vmem:[%s12664_s12] sm:$0xff] }
 0x1b2   : > { %1581 = vperm.xlu1 %7426, %v881_v45   ;;  %v892_v45 = vld [vmem:[%s12665_s13] sm:$0xff] }
 0x1b4   : > { %6406 = vmatpush1.bf16.msra.mxu0 %v8856_v17 }
 0x1b5   : > { %1530 = vperm.xlu0 %7425, %v874_v0   ;;  %v893_v0 = vld [vmem:[%s12665_s13 + $0x8] sm:$0xff] }
 0x1b6   : > { %1586 = vperm.xlu1 %7426, %v882_v36   ;;  %v886_v36 = vld [vmem:[%s12664_s12 + $0x10] sm:$0xff] }
 0x1b9   : > { %1535 = vperm.xlu0 %7425, %v875_v62   ;;  %v887_v62 = vld [vmem:[%s12664_s12 + $0x18] sm:$0xff] }
 0x1ba   : > { %1591 = vperm.xlu1 %7426, %v883_v23   ;;  %v894_v23 = vld [vmem:[%s12665_s13 + $0x10] sm:$0xff] }
 0x1bd   : > { %2308 = vperm.xlu0 %7425, %v884_v9   ;;  %v895_v9 = vld [vmem:[%s12665_s13 + $0x18] sm:$0xff] }
 0x1be   : > { %2313 = vperm.xlu1 %7426, %v885_v27   ;;  %v888_v27 = vld [vmem:[%s12664_s12 + $0x20] sm:$0xff] }
 0x1c1   : > { %2364 = vperm.xlu0 %7425, %v892_v45   ;;  %v889_v45 = vld [vmem:[%s12664_s12 + $0x28] sm:$0xff] }
 0x1c2   : > { %2369 = vperm.xlu1 %7426, %v893_v0   ;;  %v896_v0 = vld [vmem:[%s12665_s13 + $0x20] sm:$0xff] }
 0x1c5   : > { %2318 = vperm.xlu0 %7425, %v886_v36   ;;  %v897_v36 = vld [vmem:[%s12665_s13 + $0x28] sm:$0xff] }
 0x1c6   : > { %2323 = vperm.xlu1 %7426, %v887_v62   ;;  %v890_v62 = vld [vmem:[%s12664_s12 + $0x30] sm:$0xff] }
 0x1c9   : > { %2374 = vperm.xlu0 %7425, %v894_v23   ;;  %v891_v23 = vld [vmem:[%s12664_s12 + $0x38] sm:$0xff] }
 0x1ca   : > { %2379 = vperm.xlu1 %7426, %v895_v9   ;;  %v898_v9 = vld [vmem:[%s12665_s13 + $0x30] sm:$0xff] }
 0x1cd   : > { %2328 = vperm.xlu0 %7425, %v888_v27   ;;  %v899_v27 = vld [vmem:[%s12665_s13 + $0x38] sm:$0xff] }
 0x1ce   : > { %2333 = vperm.xlu1 %7426, %v889_v45   ;;  %v900_v45 = vld [vmem:[%s12660_s8] sm:$0xff] }
 0x1d1   : > { %2384 = vperm.xlu0 %7425, %v896_v0   ;;  %v902_v0 = vld [vmem:[%s12660_s8 + $0x10] sm:$0xff] }
 0x1d2   : > { %2389 = vperm.xlu1 %7426, %v897_v36   ;;  %v905_v36 = vld [vmem:[%s12660_s8 + $0x28] sm:$0xff]  ;;  %v8977_v10 = vpack.c.bf16 %v902_v0, %v900_v45  ;;  %v911_v45 = vld [vmem:[%s12660_s8 + $0x58] sm:$0xff] }
 0x1d3   : > { %v8997_v37 = vpack.c.bf16 %v911_v45, %v909_v39 }
 0x1d4   : > { %13275 = vst [vmem:[#allocation78_spill] sm:$0xff] %v8977_v10 }
 0x1d5   : > { %2338 = vperm.xlu0 %7425, %v890_v62   ;;  %v907_v62 = vld [vmem:[%s12660_s8 + $0x38] sm:$0xff]  ;;  %13278 = vst [vmem:[#allocation81_spill] sm:$0xff] %v8997_v37 }
 0x1d6   : > { %2343 = vperm.xlu1 %7426, %v891_v23  }
 0x1d9   : > { %2394 = vperm.xlu0 %7425, %v898_v9  }
 0x1da   : > { %2399 = vperm.xlu1 %7426, %v899_v27   ;;  %v8979_v27 = vpack.c.bf16 %v907_v62, %v905_v36  ;;  %v8994_v36 = vpack.c.bf16 %v906_v53, %v904_v59  ;;  %v915_v53 = vld [vmem:[%s12660_s8 + $0x78] sm:$0xff] }
 0x1dc   : > { %13276 = vst [vmem:[#allocation79_spill] sm:$0xff] %v8979_v27  ;;  %13277 = vst [vmem:[#allocation80_spill] sm:$0xff] %v8994_v36 }
 0x22b   : > { %v1145_v23 = vpop.f32.mrb[0].mxu1 }
 0x22c   : > { %v1147_v9 = vpop.f32.mrb[1].mxu1 }
 0x22d   : > { %1304 = vmatprep.mubr.f32.mxu1 %v1147_v9  ;;  %v908_v9 = vld [vmem:[%s12660_s8 + $0x40] sm:$0xff] }
 0x22e   : > { %1305 = vmatmul.mubr.f32.vlgmr.msra.gmra.mrb[32].mxu1 %v1145_v23  ;;  %v913_v23 = vld [vmem:[%s12660_s8 + $0x68] sm:$0xff]  ;;  %v9012_v59 = vpack.c.bf16 %v910_v28, %v908_v9  ;;  %v919_v28 = vld [vmem:[%s12660_s8 + $0x98] sm:$0xff] }
 0x22f   : > { %v1151_v0 = vpop.f32.mrb[2].mxu1  ;;  %6410 = vmatpush1.bf16.msra.mxu1 %v8977_v10  ;;  %v914_v10 = vld [vmem:[%s12660_s8 + $0x70] sm:$0xff] }
 0x230   : > { %v1153_v62 = vpop.f32.mrb[3].mxu1  ;;  %6412 = vmatprep.subr.bf16.mxu1 %v8979_v27  ;;  %13279 = vst [vmem:[#allocation82_spill] sm:$0xff] %v9012_v59  ;;  %v9015_v27 = vpack.c.bf16 %v915_v53, %v913_v23 }
 0x231   : > { %1310 = vmatprep.mubr.f32.mxu1 %v1153_v62  ;;  %v912_v62 = vld [vmem:[%s12660_s8 + $0x60] sm:$0xff] }
 0x232   : > { %1311 = vmatmul.mubr.f32.gmra.mrb[34].mxu1 %v1151_v0  ;;  %13280 = vst [vmem:[#allocation83_spill] sm:$0xff] %v9015_v27  ;;  %v917_v0 = vld [vmem:[%s12660_s8 + $0x88] sm:$0xff]  ;;  %v9030_v23 = vpack.c.bf16 %v914_v10, %v912_v62  ;;  %v923_v10 = vld [vmem:[%s12660_s8 + $0xb8] sm:$0xff] }
 0x233   : > { %v1157_v39 = vpop.f32.mrb[4].mxu1  ;;  %6414 = vmatpush1.bf16.msra.mxu1 %v8994_v36  ;;  %v918_v36 = vld [vmem:[%s12660_s8 + $0x90] sm:$0xff] }
 0x234   : > { %v1159_v45 = vpop.f32.mrb[5].mxu1  ;;  %6416 = vmatprep.subr.bf16.mxu1 %v8997_v37  ;;  %13281 = vst [vmem:[#allocation84_spill] sm:$0xff] %v9030_v23  ;;  %v9033_v37 = vpack.c.bf16 %v919_v28, %v917_v0 }
 0x235   : > { %1316 = vmatprep.mubr.f32.mxu1 %v1159_v45  ;;  %v916_v45 = vld [vmem:[%s12660_s8 + $0x80] sm:$0xff] }
 0x236   : > { %1317 = vmatmul.mubr.f32.gmra.mrb[36].mxu1 %v1157_v39  ;;  %13282 = vst [vmem:[#allocation85_spill] sm:$0xff] %v9033_v37  ;;  %v921_v39 = vld [vmem:[%s12660_s8 + $0xa8] sm:$0xff]  ;;  %v9048_v0 = vpack.c.bf16 %v918_v36, %v916_v45 }
 0x237   : > { %v1163_v9 = vpop.f32.mrb[6].mxu1  ;;  %6418 = vmatpush1.bf16.msra.mxu1 %v9012_v59 }
 0x238   : > { %v1165_v53 = vpop.f32.mrb[7].mxu1  ;;  %6420 = vmatprep.subr.bf16.mxu1 %v9015_v27  ;;  %13283 = vst [vmem:[#allocation86_spill] sm:$0xff] %v9048_v0  ;;  %v9051_v27 = vpack.c.bf16 %v923_v10, %v921_v39 }
 0x239   : > { %1322 = vmatprep.mubr.f32.mxu1 %v1165_v53 }
 0x23a   : > { %1323 = vmatmul.mubr.f32.gmra.mrb[38].mxu1 %v1163_v9  ;;  %13284 = vst [vmem:[#allocation87_spill] sm:$0xff] %v9051_v27 }
 0x23b   : > { %v1169_v62 = vpop.f32.mrb[8].mxu1  ;;  %6422 = vmatpush1.bf16.msra.mxu1 %v9030_v23 }
 0x23c   : > { %v1171_v28 = vpop.f32.mrb[9].mxu1  ;;  %6424 = vmatprep.subr.bf16.mxu1 %v9033_v37 }
 0x23d   : > { %1328 = vmatprep.mubr.f32.mxu1 %v1171_v28 }
 0x23e   : > { %1329 = vmatmul.mubr.f32.gmra.mrb[40].mxu1 %v1169_v62 }
 0x23f   : > { %v1175_v53 = vpop.f32.mrb[10].mxu1  ;;  %6426 = vmatpush1.bf16.msra.mxu1 %v9048_v0 }
 0x240   : > { %v1177_v59 = vpop.f32.mrb[11].mxu1  ;;  %6428 = vmatprep.subr.bf16.mxu1 %v9051_v27 }
 0x241   : > { %1334 = vmatprep.mubr.f32.mxu1 %v1177_v59 }
 0x242   : > { %1335 = vmatmul.mubr.f32.gmra.mrb[42].mxu1 %v1175_v53 }
 0x243   : > { %v1181_v9 = vpop.f32.mrb[12].mxu1 }
 0x244   : > { %v1183_v17 = vpop.f32.mrb[13].mxu1 }
 0x245   : > { %1340 = vmatprep.mubr.f32.mxu1 %v1183_v17 }
 0x246   : > { %1341 = vmatmul.mubr.f32.gmra.mrb[44].mxu1 %v1181_v9 }
 0x247   : > { %v1187_v36 = vpop.f32.mrb[14].mxu1 }
 0x248   : > { %v1189_v45 = vpop.f32.mrb[15].mxu1 }
 0x249   : > { %1346 = vmatprep.mubr.f32.mxu1 %v1189_v45 }
 0x24a   : > { %1347 = vmatmul.mubr.f32.gmra.mrb[46].mxu1 %v1187_v36 }
 0x24b   : > { %v1193_v39 = vpop.f32.mrb[16].mxu1 }
 0x24c   : > { %v1195_v10 = vpop.f32.mrb[17].mxu1 }
 0x24d   : > { %1417 = vmatprep.mubr.f32.mxu0 %v1195_v10 }
 0x24e   : > { %1418 = vmatmul.mubr.f32.vlgmr.msra.gmra.mrb[16].mxu0 %v1193_v39 }
 0x24f   : > { %v1199_v62 = vpop.f32.mrb[18].mxu1 }
 0x250   : > { %v1201_v28 = vpop.f32.mrb[19].mxu1 }
 0x251   : > { %1423 = vmatprep.mubr.f32.mxu0 %v1201_v28 }
 0x252   : > { %1424 = vmatmul.mubr.f32.gmra.mrb[18].mxu0 %v1199_v62 }
 0x253   : > { %v1205_v0 = vpop.f32.mrb[20].mxu1 }
 0x254   : > { %v1207_v27 = vpop.f32.mrb[21].mxu1 }
 0x255   : > { %1429 = vmatprep.mubr.f32.mxu0 %v1207_v27  ;;  %v920_v27 = vld [vmem:[%s12660_s8 + $0xa0] sm:$0xff] }
 0x256   : > { %1430 = vmatmul.mubr.f32.gmra.mrb[20].mxu0 %v1205_v0  ;;  %v922_v0 = vld [vmem:[%s12660_s8 + $0xb0] sm:$0xff] }
 0x257   : > { %v1211_v59 = vpop.f32.mrb[22].mxu1 }
 0x258   : > { %v1213_v53 = vpop.f32.mrb[23].mxu1 }
 0x259   : > { %1435 = vmatprep.mubr.f32.mxu0 %v1213_v53  ;;  %v925_v53 = vld [vmem:[%s12660_s8 + $0xc8] sm:$0xff] }
 0x25a   : > { %1436 = vmatmul.mubr.f32.gmra.mrb[22].mxu0 %v1211_v59  ;;  %v9061_v59 = vpack.c.bf16 %v922_v0, %v920_v27  ;;  %v928_v27 = vld [vmem:[%s12660_s8 + $0xe0] sm:$0xff]  ;;  %v930_v0 = vld [vmem:[%s12660_s8 + $0xf0] sm:$0xff] }
 0x25b   : > { %v1217_v17 = vpop.f32.mrb[24].mxu1 }
 0x25c   : > { %v1219_v9 = vpop.f32.mrb[25].mxu1  ;;  %13285 = vst [vmem:[#allocation88_spill] sm:$0xff] %v9061_v59  ;;  %6430 = vmatpush1.bf16.msra.mxu1 %v9061_v59 }
 0x25d   : > { %1441 = vmatprep.mubr.f32.mxu0 %v1219_v9 }
 0x25e   : > { %1442 = vmatmul.mubr.f32.gmra.mrb[24].mxu0 %v1217_v17  ;;  %v927_v17 = vld [vmem:[%s12660_s8 + $0xd8] sm:$0xff] }
 0x25f   : > { %v1223_v36 = vpop.f32.mrb[26].mxu1  ;;  %v9070_v9 = vpack.c.bf16 %v927_v17, %v925_v53  ;;  %v9096_v53 = vpack.c.bf16 %v930_v0, %v928_v27  ;;  %v933_v17 = vld [vmem:[%s12660_s8 + $0x108] sm:$0xff] }
 0x260   : > { %v1225_v45 = vpop.f32.mrb[27].mxu1  ;;  %v937_v0 = vld [vmem:[%s12660_s8 + $0x128] sm:$0xff] }
 0x261   : > { %1447 = vmatprep.mubr.f32.mxu0 %v1225_v45  ;;  %13286 = vst [vmem:[#allocation89_spill] sm:$0xff] %v9070_v9  ;;  %v926_v45 = vld [vmem:[%s12660_s8 + $0xd0] sm:$0xff]  ;;  %6432 = vmatprep.subr.bf16.mxu1 %v9070_v9  ;;  %13289 = vst [vmem:[#allocation92_spill] sm:$0xff] %v9096_v53 }
 0x262   : > { %1448 = vmatmul.mubr.f32.gmra.mrb[26].mxu0 %v1223_v36  ;;  %v924_v36 = vld [vmem:[%s12660_s8 + $0xc0] sm:$0xff]  ;;  %v975_v9 = vld [vmem:[%s12662_s10 + $0x50] sm:$0xff] }
 0x263   : > { %v1229_v39 = vpop.f32.mrb[28].mxu1 }
 0x264   : > { %v1231_v10 = vpop.f32.mrb[29].mxu1 }
 0x265   : > { %1453 = vmatprep.mubr.f32.mxu0 %v1231_v10  ;;  %v929_v10 = vld [vmem:[%s12660_s8 + $0xe8] sm:$0xff] }
 0x266   : > { %1454 = vmatmul.mubr.f32.gmra.mrb[28].mxu0 %v1229_v39  ;;  %v9078_v39 = vpack.c.bf16 %v926_v45, %v924_v36  ;;  %v935_v36 = vld [vmem:[%s12660_s8 + $0x118] sm:$0xff] }
 0x267   : > { %v1235_v62 = vpop.f32.mrb[30].mxu1  ;;  %v9106_v45 = vpack.c.bf16 %v935_v36, %v933_v17  ;;  %v939_v17 = vld [vmem:[%s12660_s8 + $0x138] sm:$0xff] }
 0x268   : > { %v1237_v28 = vpop.f32.mrb[31].mxu1  ;;  %13287 = vst [vmem:[#allocation90_spill] sm:$0xff] %v9078_v39  ;;  %6434 = vmatpush1.bf16.msra.mxu1 %v9078_v39  ;;  %v9124_v36 = vpack.c.bf16 %v939_v17, %v937_v0  ;;  %v943_v0 = vld [vmem:[%s12660_s8 + $0x158] sm:$0xff]  ;;  %v974_v39 = vld [vmem:[%s12662_s10 + $0x48] sm:$0xff] }
 0x269   : > { %1459 = vmatprep.mubr.f32.mxu0 %v1237_v28  ;;  %13290 = vst [vmem:[#allocation93_spill] sm:$0xff] %v9106_v45 }
 0x26a   : > { %1460 = vmatmul.mubr.f32.gmra.mrb[30].mxu0 %v1235_v62  ;;  %v931_v62 = vld [vmem:[%s12660_s8 + $0xf8] sm:$0xff]  ;;  %13292 = vst [vmem:[#allocation95_spill] sm:$0xff] %v9124_v36 }
 0x26b   : > { %v9088_v28 = vpack.c.bf16 %v931_v62, %v929_v10  ;;  %v932_v10 = vld [vmem:[%s12660_s8 + $0x100] sm:$0xff]  ;;  %v934_v62 = vld [vmem:[%s12660_s8 + $0x110] sm:$0xff] }
 0x26c   : > { %v9114_v27 = vpack.c.bf16 %v934_v62, %v932_v10  ;;  %v938_v10 = vld [vmem:[%s12660_s8 + $0x130] sm:$0xff] }
 0x26d   : > { %13288 = vst [vmem:[#allocation91_spill] sm:$0xff] %v9088_v28  ;;  %6436 = vmatprep.subr.bf16.mxu1 %v9088_v28 }
 0x26e   : > { %6438 = vmatpush1.bf16.msra.mxu1 %v9096_v53  ;;  %13291 = vst [vmem:[#allocation94_spill] sm:$0xff] %v9114_v27  ;;  %v936_v53 = vld [vmem:[%s12660_s8 + $0x120] sm:$0xff] }
 0x26f   : > { %6440 = vmatprep.subr.bf16.mxu1 %v9106_v45  ;;  %v9132_v62 = vpack.c.bf16 %v938_v10, %v936_v53  ;;  %v940_v45 = vld [vmem:[%s12660_s8 + $0x140] sm:$0xff]  ;;  %v942_v53 = vld [vmem:[%s12660_s8 + $0x150] sm:$0xff] }
 0x270   : > { %v9150_v10 = vpack.c.bf16 %v942_v53, %v940_v45  ;;  %v946_v45 = vld [vmem:[%s12660_s8 + $0x170] sm:$0xff] }
 0x271   : > { %13293 = vst [vmem:[#allocation96_spill] sm:$0xff] %v9132_v62 }
 0x272   : > { %6442 = vmatpush1.bf16.msra.mxu1 %v9114_v27  ;;  %v941_v27 = vld [vmem:[%s12660_s8 + $0x148] sm:$0xff]  ;;  %13295 = vst [vmem:[#allocation98_spill] sm:$0xff] %v9150_v10 }
 0x273   : > { %6444 = vmatprep.subr.bf16.mxu1 %v9124_v36  ;;  %v9142_v17 = vpack.c.bf16 %v943_v0, %v941_v27  ;;  %v947_v27 = vld [vmem:[%s12660_s8 + $0x178] sm:$0xff]  ;;  %v944_v36 = vld [vmem:[%s12660_s8 + $0x160] sm:$0xff] }
 0x274   : > { %v9168_v53 = vpack.c.bf16 %v946_v45, %v944_v36  ;;  %v950_v36 = vld [vmem:[%s12660_s8 + $0x190] sm:$0xff] }
 0x275   : > { %13294 = vst [vmem:[#allocation97_spill] sm:$0xff] %v9142_v17 }
 0x276   : > { %6446 = vmatpush1.bf16.msra.mxu1 %v9132_v62  ;;  %v945_v62 = vld [vmem:[%s12660_s8 + $0x168] sm:$0xff]  ;;  %13297 = vst [vmem:[#allocation100_spill] sm:$0xff] %v9168_v53 }
 0x277   : > { %6448 = vmatprep.subr.bf16.mxu1 %v9142_v17  ;;  %v9160_v0 = vpack.c.bf16 %v947_v27, %v945_v62  ;;  %v951_v62 = vld [vmem:[%s12660_s8 + $0x198] sm:$0xff]  ;;  %v948_v17 = vld [vmem:[%s12660_s8 + $0x180] sm:$0xff] }
 0x278   : > { %v9186_v45 = vpack.c.bf16 %v950_v36, %v948_v17  ;;  %v954_v17 = vld [vmem:[%s12660_s8 + $0x1b0] sm:$0xff] }
 0x279   : > { %13296 = vst [vmem:[#allocation99_spill] sm:$0xff] %v9160_v0 }
 0x27a   : > { %6450 = vmatpush1.bf16.msra.mxu1 %v9150_v10  ;;  %v949_v10 = vld [vmem:[%s12660_s8 + $0x188] sm:$0xff]  ;;  %13299 = vst [vmem:[#allocation102_spill] sm:$0xff] %v9186_v45 }
 0x27b   : > { %6452 = vmatprep.subr.bf16.mxu1 %v9160_v0  ;;  %v9178_v27 = vpack.c.bf16 %v951_v62, %v949_v10  ;;  %v955_v10 = vld [vmem:[%s12660_s8 + $0x1b8] sm:$0xff]  ;;  %v952_v0 = vld [vmem:[%s12660_s8 + $0x1a0] sm:$0xff] }
 0x27c   : > { %v9204_v36 = vpack.c.bf16 %v954_v17, %v952_v0  ;;  %v958_v0 = vld [vmem:[%s12660_s8 + $0x1d0] sm:$0xff] }
 0x27d   : > { %13298 = vst [vmem:[#allocation101_spill] sm:$0xff] %v9178_v27 }
 0x27e   : > { %6454 = vmatpush1.bf16.msra.mxu1 %v9168_v53  ;;  %v953_v53 = vld [vmem:[%s12660_s8 + $0x1a8] sm:$0xff]  ;;  %13301 = vst [vmem:[#allocation104_spill] sm:$0xff] %v9204_v36 }
 0x27f   : > { %6456 = vmatprep.subr.bf16.mxu1 %v9178_v27  ;;  %v9196_v62 = vpack.c.bf16 %v955_v10, %v953_v53  ;;  %v959_v53 = vld [vmem:[%s12660_s8 + $0x1d8] sm:$0xff]  ;;  %v956_v27 = vld [vmem:[%s12660_s8 + $0x1c0] sm:$0xff] }
 0x280   : > { %v9222_v17 = vpack.c.bf16 %v958_v0, %v956_v27  ;;  %v962_v27 = vld [vmem:[%s12660_s8 + $0x1f0] sm:$0xff] }
 0x281   : > { %13300 = vst [vmem:[#allocation103_spill] sm:$0xff] %v9196_v62 }
 0x282   : > { %6458 = vmatpush1.bf16.msra.mxu1 %v9186_v45  ;;  %v957_v45 = vld [vmem:[%s12660_s8 + $0x1c8] sm:$0xff]  ;;  %13303 = vst [vmem:[#allocation106_spill] sm:$0xff] %v9222_v17 }
 0x283   : > { %6460 = vmatprep.subr.bf16.mxu1 %v9196_v62  ;;  %v9214_v10 = vpack.c.bf16 %v959_v53, %v957_v45  ;;  %v963_v45 = vld [vmem:[%s12660_s8 + $0x1f8] sm:$0xff]  ;;  %v960_v62 = vld [vmem:[%s12660_s8 + $0x1e0] sm:$0xff] }
 0x284   : > { %v9240_v0 = vpack.c.bf16 %v962_v27, %v960_v62  ;;  %v967_v62 = vld [vmem:[%s12662_s10 + $0x10] sm:$0xff]  ;;  %v970_v27 = vld [vmem:[%s12662_s10 + $0x28] sm:$0xff] }
 0x285   : > { %13302 = vst [vmem:[#allocation105_spill] sm:$0xff] %v9214_v10 }
 0x286   : > { %6462 = vmatpush1.bf16.msra.mxu1 %v9204_v36  ;;  %v961_v36 = vld [vmem:[%s12660_s8 + $0x1e8] sm:$0xff]  ;;  %13305 = vst [vmem:[#allocation108_spill] sm:$0xff] %v9240_v0 }
 0x287   : > { %6464 = vmatprep.subr.bf16.mxu1 %v9214_v10  ;;  %v9232_v53 = vpack.c.bf16 %v963_v45, %v961_v36  ;;  %v968_v36 = vld [vmem:[%s12662_s10 + $0x18] sm:$0xff]  ;;  %v965_v45 = vld [vmem:[%s12662_s10] sm:$0xff] }
 0x289   : > { %13304 = vst [vmem:[#allocation107_spill] sm:$0xff] %v9232_v53 }
 0x28a   : > { %6466 = vmatpush1.bf16.msra.mxu1 %v9222_v17  ;;  %v966_v17 = vld [vmem:[%s12662_s10 + $0x8] sm:$0xff] }
 0x28b   : > { %6468 = vmatprep.subr.bf16.mxu1 %v9232_v53  ;;  %v9253_v10 = vpack.c.bf16 %v968_v36, %v966_v17  ;;  %v9264_v53 = vpack.c.bf16 %v967_v62, %v965_v45  ;;  %v969_v17 = vld [vmem:[%s12662_s10 + $0x20] sm:$0xff]  ;;  %v971_v36 = vld [vmem:[%s12662_s10 + $0x30] sm:$0xff]  ;;  %v976_v45 = vld [vmem:[%s12662_s10 + $0x58] sm:$0xff] }
 0x28c   : > { %v9285_v62 = vpack.c.bf16 %v976_v45, %v974_v39 }
 0x28d   : > { %13306 = vst [vmem:[#allocation109_spill] sm:$0xff] %v9253_v10  ;;  %13307 = vst [vmem:[#allocation110_spill] sm:$0xff] %v9264_v53  ;;  %6472 = vmatprep.subr.bf16.mxu0 %v9253_v10 }
 0x28e   : > { %6470 = vmatpush1.bf16.msra.mxu1 %v9240_v0  ;;  %v972_v0 = vld [vmem:[%s12662_s10 + $0x38] sm:$0xff]  ;;  %6474 = vmatpush1.bf16.msra.mxu0 %v9264_v53  ;;  %13310 = vst [vmem:[#allocation113_spill] sm:$0xff] %v9285_v62 }
 0x28f   : > { %v9266_v28 = vpack.c.bf16 %v972_v0, %v970_v27  ;;  %v9282_v0 = vpack.c.bf16 %v971_v36, %v969_v17  ;;  %v973_v27 = vld [vmem:[%s12662_s10 + $0x40] sm:$0xff] }
 0x290   : > { %v9294_v59 = vpack.c.bf16 %v975_v9, %v973_v27  ;;  %v9306_v27 = vpop.permute.xlu0 %1500 }
 0x291   : > { %13308 = vst [vmem:[#allocation111_spill] sm:$0xff] %v9266_v28  ;;  %13309 = vst [vmem:[#allocation112_spill] sm:$0xff] %v9282_v0  ;;  %6476 = vmatprep.subr.bf16.mxu0 %v9266_v28 }
 0x292   : > { %6478 = vmatpush1.bf16.msra.mxu0 %v9282_v0  ;;  %13311 = vst [vmem:[#allocation114_spill] sm:$0xff] %v9294_v59  ;;  %13312 = vst [vmem:[#allocation115_spill] sm:$0xff] %v9306_v27 }
 0x293   : > { %6480 = vmatprep.subr.bf16.mxu0 %v9285_v62 }
 0x294   : > { %v9314_v47 = vpop.permute.xlu0 %1556 }
 0x295   : > { %13314 = vst [vmem:[#allocation117_spill] sm:$0xff] %v9314_v47 }
 0x296   : > { %6482 = vmatpush1.bf16.msra.mxu0 %v9294_v59  ;;  %v9310_v59 = vpop.permute.xlu1 %1505 }
 0x297   : > { %13313 = vst [vmem:[#allocation116_spill] sm:$0xff] %v9310_v59 }
 0x298   : > { %v9322_v3 = vpop.permute.xlu0 %1510 }
 0x299   : > { %13316 = vst [vmem:[#allocation119_spill] sm:$0xff] %v9322_v3 }
 0x29a   : > { %v9320_v50 = vpop.permute.xlu1 %1561 }
 0x29b   : > { %13315 = vst [vmem:[#allocation118_spill] sm:$0xff] %v9320_v50 }
 0x29e   : > { %v9326_v49 = vpop.permute.xlu1 %1566 }
 0x29f   : > { %13317 = vst [vmem:[#allocation120_spill] sm:$0xff] %v9326_v49 }
 0x301   : > { %v1306_v17 = vpop.f32.mrb[32].mxu1 }
 0x302   : > { %v1308_v36 = vpop.f32.mrb[33].mxu1 }
 0x305   : > { %v1312_v39 = vpop.f32.mrb[34].mxu1 }
 0x306   : > { %v1314_v45 = vpop.f32.mrb[35].mxu1 }
 0x309   : > { %v1318_v28 = vpop.f32.mrb[36].mxu1 }
 0x30a   : > { %v1320_v53 = vpop.f32.mrb[37].mxu1 }
 0x30d   : > { %v1324_v37 = vpop.f32.mrb[38].mxu1 }
 0x30e   : > { %v1326_v23 = vpop.f32.mrb[39].mxu1 }
 0x311   : > { %v9298_v10 = vpop.f32.mrb[40].mxu1 }
 0x312   : > { %v9300_v20 = vpop.f32.mrb[41].mxu1 }
 0x315   : > { %v9302_v46 = vpop.f32.mrb[42].mxu1 }
 0x316   : > { %v9304_v9 = vpop.f32.mrb[43].mxu1 }
 0x319   : > { %v9308_v62 = vpop.f32.mrb[44].mxu1 }
 0x31a   : > { %v9312_v0 = vpop.f32.mrb[45].mxu1 }
 0x31d   : > { %v9316_v11 = vpop.f32.mrb[46].mxu1 }
 0x31e   : > { %v9318_v29 = vpop.f32.mrb[47].mxu1 }
 0x321   : > { %v1419_v15 = vpop.f32.mrb[16].mxu0 }
 0x322   : > { %v1466_v35 = vsub.f32 %v1306_v17, %v1419_v15  ;;  %v1421_v34 = vpop.f32.mrb[17].mxu0  ;;  %v9331_v17 = vpop.permute.xlu0 %1515 }
 0x323   : > { %v1467_v1 = vsub.f32 %v1308_v36, %v1421_v34  ;;  %13318 = vst [vmem:[#allocation121_spill] sm:$0xff] %v9331_v17 }
 0x324   : > { %v1482_v48 = vadd.f32 %v1466_v35, %v8293_v43 }
 0x325   : > { %v1483_v14 = vadd.f32 %v1467_v1, %v8286_v40  ;;  %v1425_v33 = vpop.f32.mrb[18].mxu0 }
 0x326   : > { %v1538_v31 = vmul.f32 %v9306_v27, %v1482_v48  ;;  %v1468_v44 = vsub.f32 %v1312_v39, %v1425_v33  ;;  %v1427_v42 = vpop.f32.mrb[19].mxu0  ;;  %v9355_v39 = vpop.permute.xlu0 %1520 }
 0x327   : > { %v1539_v32 = vmul.f32 %v9306_v27, %v1483_v14  ;;  %v1469_v30 = vsub.f32 %v1314_v45, %v1427_v42  ;;  %13324 = vst [vmem:[#allocation127_spill] sm:$0xff] %v9355_v39 }
 0x328   : > { %v1484_v15 = vadd.f32 %v1468_v44, %v8284_v38  ;;  %v9338_v40 = vadd.f32 %v9314_v47, %v1538_v31  ;;  %v9343_v38 = vpop.permute.xlu1 %1571 }
 0x329   : > { %v1485_v34 = vadd.f32 %v1469_v30, %v8288_v41  ;;  %v1431_v36 = vpop.f32.mrb[20].mxu0  ;;  %v9335_v43 = vadd.f32 %v9314_v47, %v1539_v32  ;;  %13321 = vst [vmem:[#allocation124_spill] sm:$0xff] %v9343_v38 }
 0x32a   : > { %13320 = vst [vmem:[#allocation123_spill] sm:$0xff] %v9338_v40  ;;  %v1540_v48 = vmul.f32 %v9310_v59, %v1484_v15  ;;  %v1470_v33 = vsub.f32 %v1318_v28, %v1431_v36  ;;  %v1433_v1 = vpop.f32.mrb[21].mxu0 }
 0x32b   : > { %13319 = vst [vmem:[#allocation122_spill] sm:$0xff] %v9335_v43  ;;  %v1541_v14 = vmul.f32 %v9310_v59, %v1485_v34  ;;  %v1471_v42 = vsub.f32 %v1320_v53, %v1433_v1  ;;  %1685 = vmatprep.mubr.f32.mxu1 %v9335_v43 }
 0x32c   : > { %v1486_v30 = vadd.f32 %v1470_v33, %v8310_v58  ;;  %1686 = vmatmul.mubr.f32.vlgmr.msra.gmra.mrb[48].mxu1 %v9338_v40  ;;  %v9353_v53 = vadd.f32 %v9320_v50, %v1540_v48  ;;  %v9365_v36 = vpop.permute.xlu1 %1576 }
 0x32d   : > { %v1487_v32 = vadd.f32 %v1471_v42, %v8306_v55  ;;  %v1437_v41 = vpop.f32.mrb[22].mxu0  ;;  %v9349_v44 = vadd.f32 %v9320_v50, %v1541_v14  ;;  %13326 = vst [vmem:[#allocation129_spill] sm:$0xff] %v9365_v36  ;;  %v9377_v42 = vpop.permute.xlu0 %1525 }
 0x32e   : > { %v1542_v31 = vmul.f32 %v9322_v3, %v1486_v30  ;;  %v1472_v35 = vsub.f32 %v1324_v37, %v1437_v41  ;;  %v1439_v28 = vpop.f32.mrb[23].mxu0  ;;  %13323 = vst [vmem:[#allocation126_spill] sm:$0xff] %v9353_v53  ;;  %13328 = vst [vmem:[#allocation131_spill] sm:$0xff] %v9377_v42 }
 0x32f   : > { %13322 = vst [vmem:[#allocation125_spill] sm:$0xff] %v9349_v44  ;;  %v1543_v45 = vmul.f32 %v9322_v3, %v1487_v32  ;;  %v1473_v58 = vsub.f32 %v1326_v23, %v1439_v28  ;;  %1691 = vmatprep.mubr.f32.mxu1 %v9349_v44  ;;  %v1028_v3 = vld [vmem:[%s12662_s10 + $0x1f8] sm:$0xff] }
 0x330   : > { %v1488_v55 = vadd.f32 %v1472_v35, %v8304_v52  ;;  %1692 = vmatmul.mubr.f32.gmra.mrb[50].mxu1 %v9353_v53  ;;  %v9370_v23 = vadd.f32 %v9326_v49, %v1542_v31 }
 0x331   : > { %v1489_v15 = vadd.f32 %v1473_v58, %v8308_v56  ;;  %v1443_v34 = vpop.f32.mrb[24].mxu0  ;;  %v9363_v37 = vadd.f32 %v9326_v49, %v1543_v45  ;;  %v9391_v45 = vpop.permute.xlu1 %1581 }
 0x332   : > { %v1544_v48 = vmul.f32 %v9331_v17, %v1488_v55  ;;  %v1474_v33 = vsub.f32 %v9298_v10, %v1443_v34  ;;  %v1445_v1 = vpop.f32.mrb[25].mxu0  ;;  %13327 = vst [vmem:[#allocation130_spill] sm:$0xff] %v9370_v23  ;;  %13331 = vst [vmem:[#allocation134_spill] sm:$0xff] %v9391_v45 }
 0x333   : > { %13325 = vst [vmem:[#allocation128_spill] sm:$0xff] %v9363_v37  ;;  %v1545_v52 = vmul.f32 %v9331_v17, %v1489_v15  ;;  %v1475_v14 = vsub.f32 %v9300_v20, %v1445_v1  ;;  %1697 = vmatprep.mubr.f32.mxu1 %v9363_v37  ;;  %v1021_v17 = vld [vmem:[%s12662_s10 + $0x1c0] sm:$0xff] }
 0x334   : > { %v1490_v56 = vadd.f32 %v1474_v33, %v8322_v8  ;;  %1698 = vmatmul.mubr.f32.gmra.mrb[52].mxu1 %v9370_v23  ;;  %v9386_v20 = vadd.f32 %v9343_v38, %v1544_v48  ;;  %v9404_v33 = vpop.permute.xlu0 %1530 }
 0x335   : > { %v1491_v30 = vadd.f32 %v1475_v14, %v8318_v4  ;;  %v1449_v32 = vpop.f32.mrb[26].mxu0  ;;  %v9381_v10 = vadd.f32 %v9343_v38, %v1545_v52  ;;  %13334 = vst [vmem:[#allocation137_spill] sm:$0xff] %v9404_v33  ;;  %v1022_v38 = vld [vmem:[%s12662_s10 + $0x1c8] sm:$0xff] }
 0x336   : > { %v1546_v41 = vmul.f32 %v9355_v39, %v1490_v56  ;;  %v1476_v31 = vsub.f32 %v9302_v46, %v1449_v32  ;;  %v1451_v35 = vpop.f32.mrb[27].mxu0  ;;  %13330 = vst [vmem:[#allocation133_spill] sm:$0xff] %v9386_v20  ;;  %v9415_v56 = vpop.permute.xlu1 %1586 }
 0x337   : > { %13329 = vst [vmem:[#allocation132_spill] sm:$0xff] %v9381_v10  ;;  %v1547_v8 = vmul.f32 %v9355_v39, %v1491_v30  ;;  %v1477_v28 = vsub.f32 %v9304_v9, %v1451_v35  ;;  %1703 = vmatprep.mubr.f32.mxu1 %v9381_v10  ;;  %13336 = vst [vmem:[#allocation139_spill] sm:$0xff] %v9415_v56  ;;  %v1017_v39 = vld [vmem:[%s12662_s10 + $0x1a0] sm:$0xff] }
 0x338   : > { %v1492_v4 = vadd.f32 %v1476_v31, %v8316_v2  ;;  %1704 = vmatmul.mubr.f32.gmra.mrb[54].mxu1 %v9386_v20  ;;  %v9402_v9 = vadd.f32 %v9365_v36, %v1546_v41  ;;  %v9427_v35 = vpop.permute.xlu0 %1535 }
 0x339   : > { %v1493_v58 = vadd.f32 %v1477_v28, %v8320_v7  ;;  %v1455_v55 = vpop.f32.mrb[28].mxu0  ;;  %v9397_v46 = vadd.f32 %v9365_v36, %v1547_v8  ;;  %13338 = vst [vmem:[#allocation141_spill] sm:$0xff] %v9427_v35  ;;  %v1018_v36 = vld [vmem:[%s12662_s10 + $0x1a8] sm:$0xff] }
 0x33a   : > { %v1548_v15 = vmul.f32 %v9377_v42, %v1492_v4  ;;  %v1478_v34 = vsub.f32 %v9308_v62, %v1455_v55  ;;  %v1457_v48 = vpop.f32.mrb[29].mxu0  ;;  %13333 = vst [vmem:[#allocation136_spill] sm:$0xff] %v9402_v9  ;;  %v978_v55 = vld [vmem:[%s12662_s10 + $0x68] sm:$0xff] }
 0x33b   : > { %13332 = vst [vmem:[#allocation135_spill] sm:$0xff] %v9397_v46  ;;  %v1549_v2 = vmul.f32 %v9377_v42, %v1493_v58  ;;  %v1479_v1 = vsub.f32 %v9312_v0, %v1457_v48  ;;  %1709 = vmatprep.mubr.f32.mxu1 %v9397_v46  ;;  %v9439_v58 = vpop.permute.xlu1 %1591  ;;  %v977_v48 = vld [vmem:[%s12662_s10 + $0x60] sm:$0xff] }
 0x33c   : > { %v1494_v7 = vadd.f32 %v1478_v34, %v8340_v26  ;;  %1710 = vmatmul.mubr.f32.gmra.mrb[56].mxu1 %v9402_v9  ;;  %v9420_v0 = vadd.f32 %v9391_v45, %v1548_v15  ;;  %13341 = vst [vmem:[#allocation144_spill] sm:$0xff] %v9439_v58  ;;  %v980_v15 = vld [vmem:[%s12662_s10 + $0x78] sm:$0xff]  ;;  %v1013_v42 = vld [vmem:[%s12662_s10 + $0x180] sm:$0xff] }
 0x33d   : > { %v1495_v52 = vadd.f32 %v1479_v1, %v8336_v24  ;;  %v1461_v14 = vpop.f32.mrb[30].mxu0  ;;  %v9413_v62 = vadd.f32 %v9391_v45, %v1549_v2  ;;  %v9457_v34 = vpack.c.bf16 %v980_v15, %v978_v55  ;;  %v979_v2 = vld [vmem:[%s12662_s10 + $0x70] sm:$0xff]  ;;  %v990_v55 = vld [vmem:[%s12662_s10 + $0xc8] sm:$0xff]  ;;  %v992_v15 = vld [vmem:[%s12662_s10 + $0xd8] sm:$0xff] }
 0x33e   : > { %v1550_v30 = vmul.f32 %v9404_v33, %v1494_v7  ;;  %v1480_v32 = vsub.f32 %v9316_v11, %v1461_v14  ;;  %v1463_v41 = vpop.f32.mrb[31].mxu0  ;;  %13337 = vst [vmem:[#allocation140_spill] sm:$0xff] %v9420_v0  ;;  %v9465_v1 = vpack.c.bf16 %v979_v2, %v977_v48  ;;  %v982_v7 = vld [vmem:[%s12662_s10 + $0x88] sm:$0xff]  ;;  %v9511_v48 = vpack.c.bf16 %v992_v15, %v990_v55  ;;  %v989_v2 = vld [vmem:[%s12662_s10 + $0xc0] sm:$0xff]  ;;  %v1000_v15 = vld [vmem:[%s12662_s10 + $0x118] sm:$0xff] }
 0x33f   : > { %13335 = vst [vmem:[#allocation138_spill] sm:$0xff] %v9413_v62  ;;  %v1551_v26 = vmul.f32 %v9404_v33, %v1495_v52  ;;  %v1481_v31 = vsub.f32 %v9318_v29, %v1463_v41  ;;  %1715 = vmatprep.mubr.f32.mxu1 %v9413_v62  ;;  %13344 = vst [vmem:[#allocation147_spill] sm:$0xff] %v9457_v34  ;;  %6484 = vmatprep.subr.bf16.mxu0 %v9457_v34  ;;  %v984_v52 = vld [vmem:[%s12662_s10 + $0x98] sm:$0xff]  ;;  %v998_v55 = vld [vmem:[%s12662_s10 + $0x108] sm:$0xff] }
 0x340   : > { %v1496_v24 = vadd.f32 %v1480_v32, %v8328_v16  ;;  %1716 = vmatmul.mubr.f32.gmra.mrb[58].mxu1 %v9420_v0  ;;  %v9435_v4 = vadd.f32 %v9415_v56, %v1550_v30  ;;  %13345 = vst [vmem:[#allocation148_spill] sm:$0xff] %v9465_v1  ;;  %6486 = vmatpush1.bf16.msra.mxu0 %v9465_v1  ;;  %v981_v30 = vld [vmem:[%s12662_s10 + $0x80] sm:$0xff]  ;;  %v983_v32 = vld [vmem:[%s12662_s10 + $0x90] sm:$0xff]  ;;  %13350 = vst [vmem:[#allocation153_spill] sm:$0xff] %v9511_v48 }
 0x341   : > { %v1497_v8 = vadd.f32 %v1481_v31, %v8338_v25  ;;  %v9431_v11 = vadd.f32 %v9415_v56, %v1551_v26  ;;  %v9475_v14 = vpack.c.bf16 %v984_v52, %v982_v7  ;;  %v9484_v41 = vpack.c.bf16 %v983_v32, %v981_v30  ;;  %v986_v26 = vld [vmem:[%s12662_s10 + $0xa8] sm:$0xff]  ;;  %v988_v31 = vld [vmem:[%s12662_s10 + $0xb8] sm:$0xff]  ;;  %v991_v7 = vld [vmem:[%s12662_s10 + $0xd0] sm:$0xff] }
 0x342   : > { %v1552_v28 = vmul.f32 %v9427_v35, %v1496_v24  ;;  %13340 = vst [vmem:[#allocation143_spill] sm:$0xff] %v9435_v4  ;;  %v9493_v24 = vpack.c.bf16 %v988_v31, %v986_v26  ;;  %v9520_v52 = vpack.c.bf16 %v991_v7, %v989_v2  ;;  %v994_v30 = vld [vmem:[%s12662_s10 + $0xe8] sm:$0xff]  ;;  %v996_v32 = vld [vmem:[%s12662_s10 + $0xf8] sm:$0xff]  ;;  %v993_v31 = vld [vmem:[%s12662_s10 + $0xe0] sm:$0xff]  ;;  %v9547_v2 = vpack.c.bf16 %v1000_v15, %v998_v55 }
 0x343   : > { %13339 = vst [vmem:[#allocation142_spill] sm:$0xff] %v9431_v11  ;;  %v1553_v29 = vmul.f32 %v9427_v35, %v1497_v8  ;;  %1721 = vmatprep.mubr.f32.mxu1 %v9431_v11  ;;  %13346 = vst [vmem:[#allocation149_spill] sm:$0xff] %v9475_v14  ;;  %6488 = vmatprep.subr.bf16.mxu0 %v9475_v14  ;;  %v985_v8 = vld [vmem:[%s12662_s10 + $0xa0] sm:$0xff]  ;;  %v9529_v26 = vpack.c.bf16 %v996_v32, %v994_v30  ;;  %v999_v30 = vld [vmem:[%s12662_s10 + $0x110] sm:$0xff] }
 0x344   : > { %1722 = vmatmul.mubr.f32.gmra.mrb[60].mxu1 %v9435_v4  ;;  %v9446_v25 = vadd.f32 %v9439_v58, %v1552_v28  ;;  %13347 = vst [vmem:[#allocation150_spill] sm:$0xff] %v9484_v41  ;;  %6490 = vmatpush1.bf16.msra.mxu0 %v9484_v41  ;;  %13348 = vst [vmem:[#allocation151_spill] sm:$0xff] %v9493_v24  ;;  %v987_v28 = vld [vmem:[%s12662_s10 + $0xb0] sm:$0xff]  ;;  %v997_v7 = vld [vmem:[%s12662_s10 + $0x100] sm:$0xff] }
 0x345   : > { %v9443_v16 = vadd.f32 %v9439_v58, %v1553_v29  ;;  %6492 = vmatprep.subr.bf16.mxu0 %v9493_v24  ;;  %v9502_v29 = vpack.c.bf16 %v987_v28, %v985_v8  ;;  %13351 = vst [vmem:[#allocation154_spill] sm:$0xff] %v9520_v52  ;;  %13352 = vst [vmem:[#allocation155_spill] sm:$0xff] %v9529_v26  ;;  %v995_v8 = vld [vmem:[%s12662_s10 + $0xf0] sm:$0xff]  ;;  %v9556_v32 = vpack.c.bf16 %v999_v30, %v997_v7  ;;  %v1001_v15 = vld [vmem:[%s12662_s10 + $0x120] sm:$0xff] }
 0x346   : > { %13343 = vst [vmem:[#allocation146_spill] sm:$0xff] %v9446_v25  ;;  %v9538_v28 = vpack.c.bf16 %v995_v8, %v993_v31  ;;  %13354 = vst [vmem:[#allocation157_spill] sm:$0xff] %v9547_v2  ;;  %v1002_v31 = vld [vmem:[%s12662_s10 + $0x128] sm:$0xff]  ;;  %v1004_v8 = vld [vmem:[%s12662_s10 + $0x138] sm:$0xff] }
 0x347   : > { %13342 = vst [vmem:[#allocation145_spill] sm:$0xff] %v9443_v16  ;;  %1727 = vmatprep.mubr.f32.mxu1 %v9443_v16  ;;  %13349 = vst [vmem:[#allocation152_spill] sm:$0xff] %v9502_v29  ;;  %v9565_v55 = vpack.c.bf16 %v1004_v8, %v1002_v31  ;;  %v1003_v7 = vld [vmem:[%s12662_s10 + $0x130] sm:$0xff]  ;;  %v1006_v58 = vld [vmem:[%s12662_s10 + $0x148] sm:$0xff] }
 0x348   : > { %1728 = vmatmul.mubr.f32.gmra.mrb[62].mxu1 %v9446_v25  ;;  %6494 = vmatpush1.bf16.msra.mxu0 %v9502_v29  ;;  %13353 = vst [vmem:[#allocation156_spill] sm:$0xff] %v9538_v28  ;;  %13355 = vst [vmem:[#allocation158_spill] sm:$0xff] %v9556_v32  ;;  %v9574_v30 = vpack.c.bf16 %v1003_v7, %v1001_v15  ;;  %v1008_v31 = vld [vmem:[%s12662_s10 + $0x158] sm:$0xff]  ;;  %v1005_v35 = vld [vmem:[%s12662_s10 + $0x140] sm:$0xff] }
 0x349   : > { %2482 = vmatprep.mubr.f32.mxu1 %v13247_v61  ;;  %6496 = vmatprep.subr.bf16.mxu0 %v9511_v48  ;;  %13356 = vst [vmem:[#allocation159_spill] sm:$0xff] %v9565_v55  ;;  %v9583_v8 = vpack.c.bf16 %v1008_v31, %v1006_v58  ;;  %v1007_v15 = vld [vmem:[%s12662_s10 + $0x150] sm:$0xff]  ;;  %v1010_v56 = vld [vmem:[%s12662_s10 + $0x168] sm:$0xff]  ;;  %v1012_v58 = vld [vmem:[%s12662_s10 + $0x178] sm:$0xff] }
 0x34a   : > { %13357 = vst [vmem:[#allocation160_spill] sm:$0xff] %v9574_v30  ;;  %v9591_v7 = vpack.c.bf16 %v1007_v15, %v1005_v35  ;;  %v9601_v31 = vpack.c.bf16 %v1012_v58, %v1010_v56  ;;  %v1009_v33 = vld [vmem:[%s12662_s10 + $0x160] sm:$0xff]  ;;  %v1011_v35 = vld [vmem:[%s12662_s10 + $0x170] sm:$0xff]  ;;  %v1014_v45 = vld [vmem:[%s12662_s10 + $0x188] sm:$0xff] }
 0x34b   : > { %13358 = vst [vmem:[#allocation161_spill] sm:$0xff] %v9583_v8  ;;  %v9609_v15 = vpack.c.bf16 %v1011_v35, %v1009_v33  ;;  %v1016_v56 = vld [vmem:[%s12662_s10 + $0x198] sm:$0xff]  ;;  %v1015_v33 = vld [vmem:[%s12662_s10 + $0x190] sm:$0xff] }
 0x34c   : > { %6498 = vmatpush1.bf16.msra.mxu0 %v9520_v52  ;;  %13359 = vst [vmem:[#allocation162_spill] sm:$0xff] %v9591_v7  ;;  %13360 = vst [vmem:[#allocation163_spill] sm:$0xff] %v9601_v31  ;;  %v9619_v58 = vpack.c.bf16 %v1016_v56, %v1014_v45  ;;  %v9627_v35 = vpack.c.bf16 %v1015_v33, %v1013_v42  ;;  %v1020_v45 = vld [vmem:[%s12662_s10 + $0x1b8] sm:$0xff]  ;;  %v1019_v42 = vld [vmem:[%s12662_s10 + $0x1b0] sm:$0xff]  ;;  %v12949_v52 = vmov -1.0  }
 0x34d   : > { %6500 = vmatprep.subr.bf16.mxu0 %v9529_v26  ;;  %13361 = vst [vmem:[#allocation164_spill] sm:$0xff] %v9609_v15  ;;  %v9637_v56 = vpack.c.bf16 %v1020_v45, %v1018_v36  ;;  %v9645_v33 = vpack.c.bf16 %v1019_v42, %v1017_v39  ;;  %v1024_v36 = vld [vmem:[%s12662_s10 + $0x1d8] sm:$0xff]  ;;  %v1023_v39 = vld [vmem:[%s12662_s10 + $0x1d0] sm:$0xff]  ;;  %v1026_v42 = vld [vmem:[%s12662_s10 + $0x1e8] sm:$0xff] }
 0x34e   : > { %13362 = vst [vmem:[#allocation165_spill] sm:$0xff] %v9619_v58  ;;  %13363 = vst [vmem:[#allocation166_spill] sm:$0xff] %v9627_v35  ;;  %v9655_v45 = vpack.c.bf16 %v1024_v36, %v1022_v38  ;;  %v9666_v49 = vpack.c.bf16 %v1023_v39, %v1021_v17  ;;  %v1025_v38 = vld [vmem:[%s12662_s10 + $0x1e0] sm:$0xff]  ;;  %v1027_v36 = vld [vmem:[%s12662_s10 + $0x1f0] sm:$0xff]  ;;  %v9678_v50 = vpack.c.bf16 %v1028_v3, %v1026_v42 }
 0x34f   : > { %13364 = vst [vmem:[#allocation167_spill] sm:$0xff] %v9637_v56  ;;  %13365 = vst [vmem:[#allocation168_spill] sm:$0xff] %v9645_v33  ;;  %v9681_v17 = vpack.c.bf16 %v1027_v36, %v1025_v38  ;;  %v964_v39 = vld [vmem:[%s12661_s9] sm:$0x3] }
 0x350   : > { %6502 = vmatpush1.bf16.msra.mxu0 %v9538_v28  ;;  %13366 = vst [vmem:[#allocation169_spill] sm:$0xff] %v9655_v45  ;;  %13367 = vst [vmem:[#allocation170_spill] sm:$0xff] %v9666_v49  ;;  %v9690_v59 = vrot.slane %v964_v39, %v8247_v21  ;;  %v9693_v3 = vrot.slane %v964_v39, %v8239_v18 }
 0x351   : > { %6504 = vmatprep.subr.bf16.mxu0 %v9547_v2  ;;  %13368 = vst [vmem:[#allocation171_spill] sm:$0xff] %v9678_v50  ;;  %13369 = vst [vmem:[#allocation172_spill] sm:$0xff] %v9681_v17 }
 0x352   : > { %13370 = vst [vmem:[#allocation173_spill] sm:$0xff] %v9690_v59  ;;  %13371 = vst [vmem:[#allocation174_spill] sm:$0xff] %v9693_v3 }
 0x354   : > { %6506 = vmatpush1.bf16.msra.mxu0 %v9556_v32 }
 0x355   : > { %6508 = vmatprep.subr.bf16.mxu0 %v9565_v55 }
 0x358   : > { %6510 = vmatpush1.bf16.msra.mxu0 %v9574_v30 }
 0x359   : > { %6512 = vmatprep.subr.bf16.mxu0 %v9583_v8 }
 0x35c   : > { %6514 = vmatpush1.bf16.msra.mxu0 %v9591_v7 }
 0x35d   : > { %6516 = vmatprep.subr.bf16.mxu0 %v9601_v31 }
 0x360   : > { %6518 = vmatpush1.bf16.msra.mxu0 %v9609_v15 }
 0x361   : > { %6520 = vmatprep.subr.bf16.mxu0 %v9619_v58 }
 0x364   : > { %6522 = vmatpush1.bf16.msra.mxu0 %v9627_v35 }
 0x365   : > { %6524 = vmatprep.subr.bf16.mxu0 %v9637_v56 }
 0x368   : > { %6526 = vmatpush1.bf16.msra.mxu0 %v9645_v33 }
 0x369   : > { %6528 = vmatprep.subr.bf16.mxu0 %v9655_v45 }
 0x36c   : > { %6530 = vmatpush1.bf16.msra.mxu0 %v9666_v49 }
 0x36d   : > { %6532 = vmatprep.subr.bf16.mxu0 %v9678_v50 }
 0x370   : > { %6534 = vmatpush1.bf16.msra.mxu0 %v9681_v17 }
 0x371   : > { %6616 = vmatprep.subr.bf16.mxu0 %v8154_v51 }
 0x3ff   : > { %v1687_v42 = vpop.f32.mrb[48].mxu1 }
 0x400   : > { %v1688_v38 = vadd.f32 %v1687_v42, %v9690_v59  ;;  %v1689_v36 = vpop.f32.mrb[49].mxu1 }
 0x401   : > { %v1690_v47 = vadd.f32 %v1689_v36, %v9693_v3 }
 0x402   : > { %v1750_v27 = vmul.f32 0.70710677, %v1688_v38  ;;  %v9699_v55 = vmul.f32 0.5, %v1688_v38 }
 0x403   : > { %v1751_v17 = vmul.f32 0.70710677, %v1690_v47  ;;  %v1693_v50 = vpop.f32.mrb[50].mxu1  ;;  %v9705_v48 = vmul.f32 0.5, %v1690_v47 }
 0x404   : > { %v1798_v51 = vand.u32 2147483647, %v1750_v27  ;;  %v1694_v49 = vadd.f32 %v1693_v50, %v9690_v59  ;;  %v1695_v45 = vpop.f32.mrb[51].mxu1  ;;  %vm1766_vm1 = vcmp.ge.f32.partialorder %v1750_v27, 0.0 }
 0x405   : > { %v1696_v33 = vadd.f32 %v1695_v45, %v9693_v3  ;;  %v1799_v35 = vand.u32 2147483647, %v1751_v17  ;;  %vm1767_vm2 = vcmp.ge.f32.partialorder %v1751_v17, 0.0 }
 0x406   : > { %v1814_v56 = vmul.f32 0.3275911, %v1798_v51  ;;  %v1752_v58 = vmul.f32 0.70710677, %v1694_v49  ;;  %v2022_v15 = vsub.f32 0.0, %v1798_v51  ;;  %v9713_v14 = vsel %vm1767_vm2, 1.0, %v12949_v52 }
 0x407   : > { %v1753_v31 = vmul.f32 0.70710677, %v1696_v33  ;;  %v1699_v7 = vpop.f32.mrb[52].mxu1  ;;  %v1815_v36 = vmul.f32 0.3275911, %v1799_v35  ;;  %v2023_v30 = vsub.f32 0.0, %v1799_v35 }
 0x408   : > { %v1830_v39 = vadd.f32 1.0, %v1814_v56  ;;  %v1800_v42 = vand.u32 2147483647, %v1752_v58  ;;  %v1701_v8 = vpop.f32.mrb[53].mxu1  ;;  %v2038_v50 = vmul.f32 %v2022_v15, %v1798_v51  ;;  %v1700_v45 = vadd.f32 %v1699_v7, %v9690_v59 }
 0x409   : > { %v1801_v28 = vand.u32 2147483647, %v1753_v31  ;;  %v9703_v56 = vsel %vm1766_vm1, 1.0, %v12949_v52  ;;  %v1702_v27 = vadd.f32 %v1701_v8, %v9693_v3  ;;  %v2039_v29 = vmul.f32 %v2023_v30, %v1799_v35 }
 0x40a   : > { %7427 = vrcp.f32 %v1830_v39  ;;  %v2024_v2 = vsub.f32 0.0, %v1800_v42  ;;  %v1831_v39 = vadd.f32 1.0, %v1815_v36  ;;  %vm1768_vm3 = vcmp.ge.f32.partialorder %v1752_v58, 0.0 }
 0x40b   : > { %v1705_v32 = vpop.f32.mrb[54].mxu1  ;;  %v9708_v38 = vmul.f32 0.70710677, %v1700_v45  ;;  %v1816_v51 = vmul.f32 0.3275911, %v1800_v42  ;;  %v2025_v15 = vsub.f32 0.0, %v1801_v28 }
 0x40c   : > { %v1707_v26 = vpop.f32.mrb[55].mxu1  ;;  %v9710_v24 = vmul.f32 0.70710677, %v1702_v27  ;;  %v2054_v41 = vmul.f32 1.442695, %v2038_v50  ;;  %v2040_v1 = vmul.f32 %v2024_v2, %v1800_v42  ;;  %v9716_v34 = vmul.f32 0.5, %v1694_v49 }
 0x40d   : > { %v1802_v47 = vand.u32 2147483647, %v9708_v38  ;;  %v9719_v30 = vsel %vm1768_vm3, 1.0, %v12949_v52  ;;  %v9721_v8 = vmul.f32 0.5, %v1696_v33  ;;  %v2056_v35 = vmul.f32 1.442695, %v2039_v29 }
 0x40e   : > { %v1803_v58 = vand.u32 2147483647, %v9710_v24  ;;  %vm1769_vm4 = vcmp.ge.f32.partialorder %v1753_v31, 0.0  ;;  %v1817_v36 = vmul.f32 0.3275911, %v1801_v28  ;;  %7429 = vrcp.f32 %v1831_v39 }
 0x40f   : > { %v1711_v7 = vpop.f32.mrb[56].mxu1  ;;  %v2026_v50 = vsub.f32 0.0, %v1802_v47  ;;  %v1832_v61 = vadd.f32 1.0, %v1816_v51  ;;  %v2041_v16 = vmul.f32 %v2025_v15, %v1801_v28  ;;  %v1706_v2 = vadd.f32 %v1705_v32, %v9690_v59 }
 0x410   : > { %v1713_v17 = vpop.f32.mrb[57].mxu1  ;;  %7431 = vpow2.f32 %v2054_v41  ;;  %v2058_v49 = vmul.f32 1.442695, %v2040_v1  ;;  %v1818_v52 = vmul.f32 0.3275911, %v1802_v47  ;;  %v1708_v33 = vadd.f32 %v1707_v26, %v9693_v3 }
 0x411   : > { %v13372_v31 = vmov -1.0   ;;  %v1819_v39 = vmul.f32 0.3275911, %v1803_v58  ;;  %v2027_v51 = vsub.f32 0.0, %v1803_v58  ;;  %7433 = vpow2.f32 %v2056_v35 }
 0x412   : > { %v9732_v11 = vsel %vm1769_vm4, 1.0, %v13372_v31  ;;  %v1833_v28 = vadd.f32 1.0, %v1817_v36  ;;  %v2042_v32 = vmul.f32 %v2026_v50, %v1802_v47  ;;  %v1756_v15 = vmul.f32 0.70710677, %v1706_v2 }
 0x413   : > { %v1717_v42 = vpop.f32.mrb[58].mxu1  ;;  %7435 = vrcp.f32 %v1832_v61  ;;  %v2060_v41 = vmul.f32 1.442695, %v2041_v16  ;;  %v9734_v1 = vmul.f32 0.5, %v1700_v45  ;;  %v1834_v0 = vadd.f32 1.0, %v1818_v52 }
 0x414   : > { %v9725_v25 = vpop.eup %7427  ;;  %v9728_v4 = vpop.f32.mrb[59].mxu1  ;;  %v1804_v26 = vand.u32 2147483647, %v1756_v15  ;;  %v1757_v9 = vmul.f32 0.70710677, %v1708_v33  ;;  %v1712_v46 = vadd.f32 %v1711_v7, %v9690_v59  ;;  %7437 = vpow2.f32 %v2058_v49 }
 0x415   : > { %v1878_v29 = vmul.f32 1.0614054, %v9725_v25  ;;  %v1835_v23 = vadd.f32 1.0, %v1819_v39  ;;  %v2043_v35 = vmul.f32 %v2027_v51, %v1803_v58  ;;  %7439 = vrcp.f32 %v1833_v28 }
 0x416   : > { %vm1770_vm5 = vcmp.ge.f32.partialorder %v9708_v38, 0.0  ;;  %v2062_v61 = vmul.f32 1.442695, %v2042_v32  ;;  %v9743_v16 = vmul.f32 0.5, %v1702_v27  ;;  %7441 = vpow2.f32 %v2060_v41 }
 0x417   : > { %v1894_v62 = vadd.f32 -1.4531521, %v1878_v29  ;;  %v9737_v10 = vpop.f32.mrb[60].mxu1  ;;  %vm1771_vm6 = vcmp.ge.f32.partialorder %v9710_v24, 0.0  ;;  %v9746_v45 = vmul.f32 0.70710677, %v1712_v46  ;;  %7443 = vrcp.f32 %v1834_v0 }
 0x418   : > { %v9740_v36 = vpop.f32.mrb[61].mxu1  ;;  %v1805_v47 = vand.u32 2147483647, %v1757_v9  ;;  %v1714_v58 = vadd.f32 %v1713_v17, %v9693_v3  ;;  %v9753_v49 = vpop.eup %7429  ;;  %7445 = vrcp.f32 %v1835_v23  ;;  %v2064_v24 = vmul.f32 1.442695, %v2043_v35 }
 0x419   : > { %v1910_v20 = vmul.f32 %v9725_v25, %v1894_v62  ;;  %v2028_v62 = vsub.f32 0.0, %v1804_v26  ;;  %7447 = vpow2.f32 %v2062_v61  ;;  %v9760_v29 = vsel %vm1771_vm6, 1.0, %v13372_v31 }
 0x41a   : > { %v7432_v38 = vpop.eup %7431  ;;  %v9762_v0 = vmul.f32 0.5, %v1706_v2  ;;  %v1806_v17 = vand.u32 2147483647, %v9746_v45  ;;  %vm1772_vm7 = vcmp.ge.f32.partialorder %v1756_v15, 0.0  ;;  %v1820_v51 = vmul.f32 0.3275911, %v1804_v26 }
 0x41b   : > { %v1926_v52 = vadd.f32 1.4214138, %v1910_v20  ;;  %v9748_v7 = vpop.f32.mrb[62].mxu1  ;;  %v9757_v20 = vsel %vm1770_vm5, 1.0, %v13372_v31  ;;  %vm1773_vm8 = vcmp.ge.f32.partialorder %v1757_v9, 0.0  ;;  %v9765_v28 = vpop.eup %7433  ;;  %v2044_v32 = vmul.f32 %v2028_v62, %v1804_v26 }
 0x41c   : > { %v9751_v50 = vpop.f32.mrb[63].mxu1  ;;  %v2029_v41 = vsub.f32 0.0, %v1805_v47  ;;  %v1718_v23 = vadd.f32 %v1717_v42, %v9690_v59  ;;  %7449 = vpow2.f32 %v2064_v24  ;;  %v9771_v2 = vmul.f32 0.5, %v1708_v33 }
 0x41d   : > { %v1942_v27 = vmul.f32 %v9725_v25, %v1926_v52  ;;  %v1759_v52 = vmul.f32 0.70710677, %v1714_v58  ;;  %v9768_v35 = vpop.eup %7435  ;;  %v1821_v37 = vmul.f32 0.3275911, %v1805_v47  ;;  %v9777_v9 = vsel %vm1773_vm8, 1.0, %v13372_v31 }
 0x41e   : > { %v2030_v15 = vsub.f32 0.0, %v1806_v17  ;;  %v9779_v62 = vpop.eup %7437  ;;  %v1836_v42 = vadd.f32 1.0, %v1820_v51  ;;  %v9781_v53 = vmul.f32 0.5, %v1712_v46  ;;  %vm1774_vm9 = vcmp.ge.f32.partialorder %v9746_v45, 0.0 }
 0x41f   : > { %v1958_v39 = vadd.f32 -0.28449672, %v1942_v27  ;;  %v9774_v27 = vsel %vm1772_vm7, 1.0, %v13372_v31  ;;  %v1807_v26 = vand.u32 2147483647, %v1759_v52  ;;  %v9784_v24 = vpop.eup %7439  ;;  %v9790_v43 = vadd.f32 %v9728_v4, %v9693_v3 }
 0x420   : > { %13373 = vst [vmem:[#allocation175_spill] sm:$0xff] %v9781_v53  ;;  %v2066_v33 = vmul.f32 1.442695, %v2044_v32  ;;  %v9786_v40 = vmul.f32 0.70710677, %v1718_v23  ;;  %v9792_v18 = vpop.eup %7441  ;;  %v2046_v22 = vmul.f32 %v2030_v15, %v1806_v17  ;;  %v9797_v19 = vmul.f32 0.5, %v1714_v58 }
 0x421   : > { %v1974_v61 = vmul.f32 %v9725_v25, %v1958_v39  ;;  %v2045_v39 = vmul.f32 %v2029_v41, %v1805_v47  ;;  %v1822_v51 = vmul.f32 0.3275911, %v1806_v17  ;;  %v2031_v46 = vsub.f32 0.0, %v1807_v26  ;;  %v9795_v53 = vpop.eup %7443 }
 0x422   : > { %13374 = vst [vmem:[#allocation176_spill] sm:$0xff] %v9797_v19  ;;  %v1823_v32 = vmul.f32 0.3275911, %v1807_v26  ;;  %v1808_v47 = vand.u32 2147483647, %v9786_v40  ;;  %v9800_v41 = vpop.eup %7445  ;;  %7451 = vrcp.f32 %v1836_v42  ;;  %v9813_v17 = vadd.f32 %v9740_v36, %v9693_v3 }
 0x423   : > { %v1990_v44 = vadd.f32 0.2548296, %v1974_v61  ;;  %v1837_v61 = vadd.f32 1.0, %v1821_v37  ;;  %v9803_v4 = vmul.f32 0.70710677, %v9790_v43  ;;  %v9809_v37 = vpop.eup %7447  ;;  %7453 = vpow2.f32 %v2066_v33 }
 0x424   : > { %v2032_v58 = vsub.f32 0.0, %v1808_v47  ;;  %13376 = vst [vmem:[#allocation178_spill] sm:$0xff] %v9813_v17  ;;  %v1838_v15 = vadd.f32 1.0, %v1822_v51  ;;  %v2070_v42 = vmul.f32 1.442695, %v2046_v22  ;;  %vm1775_vm10 = vcmp.ge.f32.partialorder %v1759_v52, 0.0 }
 0x425   : > { %v2006_v21 = vmul.f32 %v9725_v25, %v1990_v44  ;;  %v9807_v44 = vadd.f32 %v9737_v10, %v9690_v59  ;;  %v2068_v25 = vmul.f32 1.442695, %v2045_v39  ;;  %7455 = vrcp.f32 %v1837_v61 }
 0x426   : > { %v1839_v12 = vadd.f32 1.0, %v1823_v32  ;;  %v1824_v19 = vmul.f32 0.3275911, %v1808_v47  ;;  %v9816_v10 = vpop.eup %7449  ;;  %v2048_v5 = vmul.f32 %v2032_v58, %v1808_v47  ;;  %v9824_v36 = vsel %vm1774_vm9, 1.0, %v13372_v31 }
 0x427   : > { %v2086_v13 = vmul.f32 %v7432_v38, %v2006_v21  ;;  %13375 = vst [vmem:[#allocation177_spill] sm:$0xff] %v9807_v44  ;;  %v2047_v21 = vmul.f32 %v2031_v46, %v1807_v26  ;;  %v1809_v38 = vand.u32 2147483647, %v9803_v4  ;;  %v9819_v39 = vmul.f32 0.70710677, %v9807_v44  ;;  %13378 = vst [vmem:[#allocation180_spill] sm:$0xff] %v9824_v36 }
 0x428   : > { %7457 = vpow2.f32 %v2068_v25  ;;  %v9826_v26 = vmul.f32 0.5, %v1718_v23  ;;  %v9829_v22 = vmul.f32 0.70710677, %v9813_v17  ;;  %v9832_v52 = vsel %vm1775_vm10, 1.0, %v13372_v31 }
 0x429   : > { %v2102_v6 = vsub.f32 1.0, %v2086_v13  ;;  %v2033_v33 = vsub.f32 0.0, %v1809_v38  ;;  %13377 = vst [vmem:[#allocation179_spill] sm:$0xff] %v9819_v39  ;;  %7459 = vrcp.f32 %v1838_v15  ;;  %13381 = vst [vmem:[#allocation183_spill] sm:$0xff] %v9832_v52  ;;  %v2072_v13 = vmul.f32 1.442695, %v2047_v21 }
 0x42a   : > { %13379 = vst [vmem:[#allocation181_spill] sm:$0xff] %v9826_v26  ;;  %13380 = vst [vmem:[#allocation182_spill] sm:$0xff] %v9829_v22  ;;  %v1825_v61 = vmul.f32 0.3275911, %v1809_v38  ;;  %7461 = vpow2.f32 %v2070_v42  ;;  %v1840_v51 = vadd.f32 1.0, %v1824_v19  ;;  %vm1776_vm11 = vcmp.ge.f32.partialorder %v9786_v40, 0.0 }
 0x42b   : > { %v2049_v46 = vmul.f32 %v2033_v33, %v1809_v38  ;;  %v1810_v32 = vand.u32 2147483647, %v9819_v39  ;;  %v2118_v45 = vmul.f32 %v2102_v6, %v9703_v56  ;;  %7463 = vrcp.f32 %v1839_v12 }
 0x42c   : > { %v2074_v23 = vmul.f32 1.442695, %v2048_v5  ;;  %v1811_v58 = vand.u32 2147483647, %v9829_v22  ;;  %v9840_v15 = vadd.f32 %v9748_v7, %v9690_v59  ;;  %v9842_v21 = vpop.eup %7451  ;;  %7465 = vpow2.f32 %v2072_v13 }
 0x42d   : > { %v1826_v47 = vmul.f32 0.3275911, %v1810_v32  ;;  %v2034_v25 = vsub.f32 0.0, %v1810_v32  ;;  %vm1777_vm12 = vcmp.ge.f32.partialorder %v9803_v4, 0.0  ;;  %v1841_v19 = vadd.f32 1.0, %v1825_v61  ;;  %v9849_v12 = vpop.eup %7453 }
 0x42e   : > { %13382 = vst [vmem:[#allocation184_spill] sm:$0xff] %v9840_v15  ;;  %v9847_v6 = vadd.f32 %v9751_v50, %v9693_v3  ;;  %7467 = vrcp.f32 %v1840_v51  ;;  %v2076_v5 = vmul.f32 1.442695, %v2049_v46  ;;  %v1827_v38 = vmul.f32 0.3275911, %v1811_v58 }
 0x42f   : > { %v2050_v56 = vmul.f32 %v2034_v25, %v1810_v32  ;;  %v9851_v42 = vpop.eup %7455  ;;  %v2134_v7 = vadd.f32 1.0, %v2118_v45  ;;  %v2035_v33 = vsub.f32 0.0, %v1811_v58  ;;  %v9854_v59 = vmul.f32 0.70710677, %v9840_v15 }
 0x430   : > { %13383 = vst [vmem:[#allocation185_spill] sm:$0xff] %v9847_v6  ;;  %v9857_v13 = vmul.f32 0.70710677, %v9847_v6  ;;  %7469 = vpow2.f32 %v2074_v23  ;;  %v1842_v61 = vadd.f32 1.0, %v1826_v47  ;;  %v1879_v50 = vmul.f32 1.0614054, %v9753_v49 }
 0x431   : > { %13384 = vst [vmem:[#allocation186_spill] sm:$0xff] %v9854_v59  ;;  %v1881_v3 = vmul.f32 1.0614054, %v9784_v24  ;;  %7471 = vrcp.f32 %v1841_v19  ;;  %v2078_v51 = vmul.f32 1.442695, %v2050_v56  ;;  %v9868_v25 = vsel %vm1776_vm11, 1.0, %v13372_v31 }
 0x432   : > { %13385 = vst [vmem:[#allocation187_spill] sm:$0xff] %v9857_v13  ;;  %v1812_v46 = vand.u32 2147483647, %v9854_v59  ;;  %v1813_v32 = vand.u32 2147483647, %v9857_v13  ;;  %v9863_v45 = vpop.eup %7457  ;;  %13386 = vst [vmem:[#allocation188_spill] sm:$0xff] %v9868_v25  ;;  %7473 = vpow2.f32 %v2076_v5  ;;  %v2051_v15 = vmul.f32 %v2035_v33, %v1811_v58 }
 0x433   : > { %v9871_v23 = vmul.f32 0.5, %v9790_v43  ;;  %v9876_v47 = vsel %vm1777_vm12, 1.0, %v13372_v31  ;;  %v9878_v19 = vpop.eup %7459  ;;  %v1843_v56 = vadd.f32 1.0, %v1827_v38  ;;  %7475 = vrcp.f32 %v1842_v61 }
 0x434   : > { %13388 = vst [vmem:[#allocation190_spill] sm:$0xff] %v9876_v47  ;;  %v1828_v6 = vmul.f32 0.3275911, %v1812_v46  ;;  %v2036_v44 = vsub.f32 0.0, %v1812_v46  ;;  %v9880_v26 = vpop.eup %7461  ;;  %v1829_v40 = vmul.f32 0.3275911, %v1813_v32  ;;  %7477 = vpow2.f32 %v2078_v51 }
 0x435   : > { %13387 = vst [vmem:[#allocation189_spill] sm:$0xff] %v9871_v23  ;;  %13389 = vst [vmem:[#allocation191_spill] sm:$0xff] %v9880_v26  ;;  %v1895_v17 = vadd.f32 -1.4531521, %v1879_v50  ;;  %v1897_v13 = vadd.f32 -1.4531521, %v1881_v3  ;;  %v9882_v43 = vpop.eup %7463  ;;  %v9885_v23 = vmul.f32 %v2134_v7, %v9699_v55  ;;  %7479 = vrcp.f32 %v1843_v56 }
 0x436   : > { %v2037_v4 = vsub.f32 0.0, %v1813_v32  ;;  %v1880_v5 = vmul.f32 1.0614054, %v9768_v35  ;;  %v2052_v25 = vmul.f32 %v2036_v44, %v1812_v46  ;;  %v1883_v33 = vmul.f32 1.0614054, %v9800_v41  ;;  %v9891_v61 = vpop.eup %7465 }
 0x437   : > { %v1911_v58 = vmul.f32 %v9753_v49, %v1895_v17  ;;  %v1913_v38 = vmul.f32 %v9784_v24, %v1897_v13  ;;  %v9893_v3 = vmul.f32 1.442695, %v2051_v15  ;;  %v1882_v55 = vmul.f32 1.0614054, %v9795_v53 }
 0x438   : > { %v1896_v50 = vadd.f32 -1.4531521, %v1880_v5  ;;  %v9896_v7 = vpop.eup %7467  ;;  %v1844_v51 = vadd.f32 1.0, %v1828_v6  ;;  %v1845_v47 = vadd.f32 1.0, %v1829_v40  ;;  %v9898_v46 = vmul.f32 %v2037_v4, %v1813_v32 }
 0x439   : > { %v1927_v59 = vadd.f32 1.4214138, %v1911_v58  ;;  %v1929_v44 = vadd.f32 1.4214138, %v1913_v38  ;;  %v1899_v13 = vadd.f32 -1.4531521, %v1883_v33 }
 0x43a   : > { %v1912_v17 = vmul.f32 %v9768_v35, %v1896_v50  ;;  %v1898_v36 = vadd.f32 -1.4531521, %v1882_v55  ;;  %v9901_v31 = vpop.eup %7469  ;;  %v9903_v56 = vmul.f32 1.442695, %v2052_v25  ;;  %v1885_v39 = vmul.f32 1.0614054, %v9851_v42 }
 0x43b   : > { %13390 = vst [vmem:[#allocation192_spill] sm:$0xff] %v9901_v31  ;;  %v1943_v15 = vmul.f32 %v9753_v49, %v1927_v59  ;;  %v1945_v5 = vmul.f32 %v9784_v24, %v1929_v44  ;;  %v9908_v6 = vpop.eup %7471  ;;  %v1915_v32 = vmul.f32 %v9800_v41, %v1899_v13  ;;  %v1884_v58 = vmul.f32 1.0614054, %v9842_v21 }
 0x43c   : > { %13391 = vst [vmem:[#allocation193_spill] sm:$0xff] %v9903_v56  ;;  %v1928_v40 = vadd.f32 1.4214138, %v1912_v17  ;;  %v1914_v4 = vmul.f32 %v9795_v53, %v1898_v36  ;;  %v9913_v38 = vpop.eup %7473  ;;  %7481 = vrcp.f32 %v1844_v51  ;;  %v1901_v50 = vadd.f32 -1.4531521, %v1885_v39 }
 0x43d   : > { %13392 = vst [vmem:[#allocation194_spill] sm:$0xff] %v9913_v38  ;;  %v1959_v25 = vadd.f32 -0.28449672, %v1943_v15  ;;  %v1961_v33 = vadd.f32 -0.28449672, %v1945_v5  ;;  %v9916_v26 = vpop.eup %7475  ;;  %7483 = vrcp.f32 %v1845_v47 }
 0x43e   : > { %v1944_v59 = vmul.f32 %v9768_v35, %v1928_v40  ;;  %v1931_v55 = vadd.f32 1.4214138, %v1915_v32  ;;  %v1930_v44 = vadd.f32 1.4214138, %v1914_v4  ;;  %v1900_v31 = vadd.f32 -1.4531521, %v1884_v58  ;;  %v9922_v38 = vpop.eup %7477 }
 0x43f   : > { %v1975_v17 = vmul.f32 %v9753_v49, %v1959_v25  ;;  %v1977_v13 = vmul.f32 %v9784_v24, %v1961_v33  ;;  %v1917_v36 = vmul.f32 %v9851_v42, %v1901_v50  ;;  %v1887_v22 = vmul.f32 1.0614054, %v9882_v43  ;;  %13393 = vst [vmem:[#allocation195_spill] sm:$0xff] %v9922_v38  ;;  %v9927_v58 = vpop.eup %7479 }
 0x440   : > { %v1960_v51 = vadd.f32 -0.28449672, %v1944_v59  ;;  %v1947_v39 = vmul.f32 %v9800_v41, %v1931_v55  ;;  %v1946_v15 = vmul.f32 %v9795_v53, %v1930_v44  ;;  %v1916_v5 = vmul.f32 %v9842_v21, %v1900_v31 }
 0x441   : > { %v1991_v40 = vadd.f32 0.2548296, %v1975_v17  ;;  %v1993_v32 = vadd.f32 0.2548296, %v1977_v13  ;;  %v1933_v4 = vadd.f32 1.4214138, %v1917_v36  ;;  %7485 = vpow2.f32 %v9893_v3 }
 0x442   : > { %v1976_v25 = vmul.f32 %v9768_v35, %v1960_v51  ;;  %v1963_v33 = vadd.f32 -0.28449672, %v1947_v39  ;;  %v1962_v50 = vadd.f32 -0.28449672, %v1946_v15  ;;  %v1932_v56 = vadd.f32 1.4214138, %v1916_v5 }
 0x443   : > { %v2007_v38 = vmul.f32 %v9753_v49, %v1991_v40  ;;  %v2009_v59 = vmul.f32 %v9784_v24, %v1993_v32  ;;  %v1949_v55 = vmul.f32 %v9851_v42, %v1933_v4  ;;  %v1903_v44 = vadd.f32 -1.4531521, %v1887_v22 }
 0x444   : > { %v1992_v52 = vadd.f32 0.2548296, %v1976_v25  ;;  %v1979_v31 = vmul.f32 %v9800_v41, %v1963_v33  ;;  %v1978_v47 = vmul.f32 %v9795_v53, %v1962_v50  ;;  %v1948_v17 = vmul.f32 %v9842_v21, %v1932_v56 }
 0x445   : > { %v2087_v13 = vmul.f32 %v9765_v28, %v2007_v38  ;;  %v2089_v36 = vmul.f32 %v9792_v18, %v2009_v59  ;;  %v1965_v51 = vadd.f32 -0.28449672, %v1949_v55  ;;  %v1919_v39 = vmul.f32 %v9882_v43, %v1903_v44 }
 0x446   : > { %v2008_v49 = vmul.f32 %v9768_v35, %v1992_v52  ;;  %v1995_v24 = vadd.f32 0.2548296, %v1979_v31  ;;  %v1994_v15 = vadd.f32 0.2548296, %v1978_v47  ;;  %v1964_v5 = vadd.f32 -0.28449672, %v1948_v17  ;;  %v9940_v22 = vpop.eup %7481 }
 0x447   : > { %v2103_v40 = vsub.f32 1.0, %v2087_v13  ;;  %v2105_v32 = vsub.f32 1.0, %v2089_v36  ;;  %v1981_v4 = vmul.f32 %v9851_v42, %v1965_v51  ;;  %v1935_v25 = vadd.f32 1.4214138, %v1919_v39 }
 0x448   : > { %v2088_v56 = vmul.f32 %v9779_v62, %v2008_v49  ;;  %v2011_v28 = vmul.f32 %v9800_v41, %v1995_v24  ;;  %v2010_v18 = vmul.f32 %v9795_v53, %v1994_v15  ;;  %v1980_v38 = vmul.f32 %v9842_v21, %v1964_v5  ;;  %v9952_v62 = vpop.eup %7483 }
 0x449   : > { %v2119_v35 = vmul.f32 %v2103_v40, %v9713_v14  ;;  %v2121_v52 = vmul.f32 %v2105_v32, %v9732_v11  ;;  %v1997_v33 = vadd.f32 0.2548296, %v1981_v4  ;;  %v1951_v50 = vmul.f32 %v9882_v43, %v1935_v25 }
 0x44a   : > { %v2104_v59 = vsub.f32 1.0, %v2088_v56  ;;  %v2091_v55 = vmul.f32 %v9816_v10, %v2011_v28  ;;  %v2090_v44 = vmul.f32 %v9809_v37, %v2010_v18  ;;  %v1996_v31 = vadd.f32 0.2548296, %v1980_v38 }
 0x44b   : > { %v2135_v41 = vadd.f32 1.0, %v2119_v35  ;;  %v2137_v47 = vadd.f32 1.0, %v2121_v52  ;;  %v2013_v53 = vmul.f32 %v9851_v42, %v1997_v33  ;;  %v1967_v17 = vadd.f32 -0.28449672, %v1951_v50 }
 0x44c   : > { %v2120_v14 = vmul.f32 %v2104_v59, %v9719_v30  ;;  %v2107_v13 = vsub.f32 1.0, %v2091_v55  ;;  %v2106_v11 = vsub.f32 1.0, %v2090_v44  ;;  %v2012_v36 = vmul.f32 %v9842_v21, %v1996_v31  ;;  %v13394_v59 = vld [vmem:[#allocation183_spill] sm:$0xff] }
 0x44d   : > { %v2151_v51 = vmul.f32 %v2135_v41, %v9705_v48  ;;  %v2153_v10 = vmul.f32 %v2137_v47, %v9721_v8  ;;  %v2093_v37 = vmul.f32 %v9863_v45, %v2013_v53  ;;  %v1983_v39 = vmul.f32 %v9882_v43, %v1967_v17  ;;  %v9995_v17 = vpop.eup %7485 }
 0x44e   : > { %v2136_v49 = vadd.f32 1.0, %v2120_v14  ;;  %v2123_v24 = vmul.f32 %v2107_v13, %v9760_v29  ;;  %v2122_v42 = vmul.f32 %v2106_v11, %v9757_v20  ;;  %v2092_v15 = vmul.f32 %v9849_v12, %v2012_v36 }
 0x44f   : > { %2241 = vmatprep.mubr.f32.mxu0 %v2151_v51  ;;  %v2109_v30 = vsub.f32 1.0, %v2093_v37  ;;  %v1999_v21 = vadd.f32 0.2548296, %v1983_v39  ;;  %v1886_v48 = vmul.f32 1.0614054, %v9878_v19  ;;  %v13395_v51 = vld [vmem:[#allocation16_spill] sm:$0xff] }
 0x450   : > { %v9967_v8 = vmul.f32 1.442695, %v9898_v46  ;;  %2242 = vmatmul.mubr.f32.vlgmr.msra.gmra.mrb[32].mxu0 %v9885_v23  ;;  %v2139_v45 = vadd.f32 1.0, %v2123_v24  ;;  %v2138_v5 = vadd.f32 1.0, %v2122_v42  ;;  %v2108_v40 = vsub.f32 1.0, %v2092_v15  ;;  %v13396_v24 = vld [vmem:[#allocation17_spill] sm:$0xff] }
 0x451   : > { %2247 = vmatprep.mubr.f32.mxu0 %v2153_v10  ;;  %v2125_v20 = vmul.f32 %v2109_v30, %v9777_v9  ;;  %v2015_v29 = vmul.f32 %v9882_v43, %v1999_v21  ;;  %v1902_v12 = vadd.f32 -1.4531521, %v1886_v48  ;;  %v1889_v3 = vmul.f32 1.0614054, %v9908_v6  ;;  %6618 = vmatpush1.bf16.msra.mxu0 %v8163_v54  ;;  %v13397_v42 = vld [vmem:[#allocation176_spill] sm:$0xff]  ;;  %v13506_v54 = vld [vmem:[#allocation53_spill] sm:$0xff] }
 0x452   : > { %v2152_v32 = vmul.f32 %v2136_v49, %v9716_v34  ;;  %v2155_v46 = vmul.f32 %v2139_v45, %v9743_v16  ;;  %v2124_v4 = vmul.f32 %v2108_v40, %v9774_v27  ;;  %v1888_v23 = vmul.f32 1.0614054, %v9896_v7  ;;  %6620 = vmatprep.subr.bf16.mxu0 %v8171_v57  ;;  %v13505_v57 = vld [vmem:[#allocation52_spill] sm:$0xff] }
 0x453   : > { %v2141_v25 = vadd.f32 1.0, %v2125_v20  ;;  %v2095_v9 = vmul.f32 %v9891_v61, %v2015_v29  ;;  %v1918_v43 = vmul.f32 %v9878_v19, %v1902_v12  ;;  %v1905_v56 = vadd.f32 -1.4531521, %v1889_v3 }
 0x454   : > { %2248 = vmatmul.mubr.f32.gmra.mrb[34].mxu0 %v2152_v32  ;;  %v2154_v28 = vmul.f32 %v2138_v5, %v9734_v1  ;;  %v2140_v18 = vadd.f32 1.0, %v2124_v4  ;;  %v1904_v38 = vadd.f32 -1.4531521, %v1888_v23  ;;  %v1891_v34 = vmul.f32 1.0614054, %v9927_v58  ;;  %v13398_v32 = vld [vmem:[#allocation18_spill] sm:$0xff] }
 0x455   : > { %2253 = vmatprep.mubr.f32.mxu0 %v2155_v46  ;;  %v2157_v16 = vmul.f32 %v2141_v25, %v9771_v2  ;;  %v2111_v27 = vsub.f32 1.0, %v2095_v9  ;;  %v1934_v35 = vadd.f32 1.4214138, %v1918_v43  ;;  %v1921_v52 = vmul.f32 %v9908_v6, %v1905_v56  ;;  %6622 = vmatpush1.bf16.msra.mxu0 %v8180_v60  ;;  %v13399_v9 = vld [vmem:[#allocation19_spill] sm:$0xff]  ;;  %v13400_v43 = vld [vmem:[#allocation193_spill] sm:$0xff] }
 0x456   : > { %v2156_v61 = vmul.f32 %v2140_v18, %v9762_v0  ;;  %v1920_v33 = vmul.f32 %v9896_v7, %v1904_v38  ;;  %v1907_v50 = vadd.f32 -1.4531521, %v1891_v34  ;;  %v1890_v1 = vmul.f32 1.0614054, %v9916_v26  ;;  %6624 = vmatprep.subr.bf16.mxu0 %v8189_v63  ;;  %v13503_v63 = vld [vmem:[#allocation50_spill] sm:$0xff]  ;;  %v13504_v60 = vld [vmem:[#allocation51_spill] sm:$0xff] }
 0x457   : > { %v2127_v55 = vmul.f32 %v2111_v27, %v13394_v59  ;;  %v1950_v44 = vmul.f32 %v9878_v19, %v1934_v35  ;;  %v1937_v2 = vadd.f32 1.4214138, %v1921_v52  ;;  %v1893_v31 = vmul.f32 1.0614054, %v9952_v62  ;;  %v13401_v27 = vld [vmem:[#allocation182_spill] sm:$0xff]  ;;  %v13402_v35 = vld [vmem:[#allocation191_spill] sm:$0xff] }
 0x458   : > { %2254 = vmatmul.mubr.f32.gmra.mrb[36].mxu0 %v2154_v28  ;;  %v1936_v41 = vadd.f32 1.4214138, %v1920_v33  ;;  %v1923_v47 = vmul.f32 %v9927_v58, %v1907_v50  ;;  %v1906_v53 = vadd.f32 -1.4531521, %v1890_v1  ;;  %v1892_v0 = vmul.f32 1.0614054, %v9940_v22 }
 0x459   : > { %2259 = vmatprep.mubr.f32.mxu0 %v2157_v16  ;;  %v2143_v14 = vadd.f32 1.0, %v2127_v55  ;;  %v1966_v13 = vadd.f32 -0.28449672, %v1950_v44  ;;  %v1953_v11 = vmul.f32 %v9908_v6, %v1937_v2  ;;  %v1909_v36 = vadd.f32 -1.4531521, %v1893_v31  ;;  %6626 = vmatpush1.bf16.msra.mxu0 %v13395_v51  ;;  %v13403_v50 = vld [vmem:[#allocation21_spill] sm:$0xff] }
 0x45a   : > { %v1952_v10 = vmul.f32 %v9896_v7, %v1936_v41  ;;  %v1939_v37 = vadd.f32 1.4214138, %v1923_v47  ;;  %v1922_v39 = vmul.f32 %v9916_v26, %v1906_v53  ;;  %v1908_v49 = vadd.f32 -1.4531521, %v1892_v0  ;;  %6628 = vmatprep.subr.bf16.mxu0 %v13396_v24  ;;  %v13404_v44 = vld [vmem:[#allocation23_spill] sm:$0xff]  ;;  %v13406_v41 = vld [vmem:[#allocation194_spill] sm:$0xff] }
 0x45b   : > { %v2159_v15 = vmul.f32 %v2143_v14, %v13397_v42  ;;  %v1982_v30 = vmul.f32 %v9878_v19, %v1966_v13  ;;  %v1969_v21 = vadd.f32 -0.28449672, %v1953_v11  ;;  %v1925_v48 = vmul.f32 %v9952_v62, %v1909_v36  ;;  %v13405_v2 = vld [vmem:[#allocation179_spill] sm:$0xff]  ;;  %v13407_v0 = vld [vmem:[#allocation192_spill] sm:$0xff]  ;;  %v13502_v51 = vld [vmem:[#allocation49_spill] sm:$0xff] }
 0x45c   : > { %2260 = vmatmul.mubr.f32.gmra.mrb[38].mxu0 %v2156_v61  ;;  %v1968_v45 = vadd.f32 -0.28449672, %v1952_v10  ;;  %v1955_v5 = vmul.f32 %v9927_v58, %v1939_v37  ;;  %v1938_v40 = vadd.f32 1.4214138, %v1922_v39  ;;  %v1924_v20 = vmul.f32 %v9940_v22, %v1908_v49  ;;  %v13409_v10 = vld [vmem:[#allocation180_spill] sm:$0xff] }
 0x45d   : > { %7487 = vpow2.f32 %v9967_v8  ;;  %2265 = vmatprep.mubr.f32.mxu0 %v2159_v15  ;;  %v1998_v29 = vadd.f32 0.2548296, %v1982_v30  ;;  %v1985_v12 = vmul.f32 %v9908_v6, %v1969_v21  ;;  %v1941_v3 = vadd.f32 1.4214138, %v1925_v48  ;;  %6630 = vmatpush1.bf16.msra.mxu0 %v13398_v32  ;;  %v13410_v42 = vld [vmem:[#allocation24_spill] sm:$0xff]  ;;  %v13500_v32 = vld [vmem:[#allocation47_spill] sm:$0xff] }
 0x45e   : > { %v1984_v46 = vmul.f32 %v9896_v7, %v1968_v45  ;;  %v1971_v4 = vadd.f32 -0.28449672, %v1955_v5  ;;  %v1954_v23 = vmul.f32 %v9916_v26, %v1938_v40  ;;  %v1940_v25 = vadd.f32 1.4214138, %v1924_v20  ;;  %6632 = vmatprep.subr.bf16.mxu0 %v13399_v9  ;;  %v13412_v5 = vld [vmem:[#allocation186_spill] sm:$0xff]  ;;  %v13501_v24 = vld [vmem:[#allocation48_spill] sm:$0xff] }
 0x45f   : > { %7489 = vpow2.f32 %v13400_v43  ;;  %v2014_v56 = vmul.f32 %v9878_v19, %v1998_v29  ;;  %v2001_v8 = vadd.f32 0.2548296, %v1985_v12  ;;  %v1957_v28 = vmul.f32 %v9952_v62, %v1941_v3  ;;  %v13413_v20 = vld [vmem:[#allocation190_spill] sm:$0xff]  ;;  %v13414_v3 = vld [vmem:[#allocation188_spill] sm:$0xff] }
 0x460   : > { %v2000_v18 = vadd.f32 0.2548296, %v1984_v46  ;;  %v1987_v38 = vmul.f32 %v9927_v58, %v1971_v4  ;;  %v1970_v34 = vadd.f32 -0.28449672, %v1954_v23  ;;  %v1956_v16 = vmul.f32 %v9940_v22, %v1940_v25  ;;  %v13415_v23 = vld [vmem:[#allocation195_spill] sm:$0xff]  ;;  %v13499_v9 = vld [vmem:[#allocation46_spill] sm:$0xff] }
 0x461   : > { %vm1779_vm13 = vcmp.ge.f32.partialorder %v13401_v27, 0.0  ;;  %v2094_v52 = vmul.f32 %v13402_v35, %v2014_v56  ;;  %v2017_v61 = vmul.f32 %v9908_v6, %v2001_v8  ;;  %v1973_v33 = vadd.f32 -0.28449672, %v1957_v28  ;;  %6634 = vmatpush1.bf16.msra.mxu0 %v13403_v50  ;;  %v13417_v56 = vld [vmem:[#allocation175_spill] sm:$0xff]  ;;  %v13498_v50 = vld [vmem:[#allocation45_spill] sm:$0xff] }
 0x462   : > { %v2016_v19 = vmul.f32 %v9896_v7, %v2000_v18  ;;  %v2003_v1 = vadd.f32 0.2548296, %v1987_v38  ;;  %v1986_v59 = vmul.f32 %v9916_v26, %v1970_v34  ;;  %v1972_v55 = vadd.f32 -0.28449672, %v1956_v16  ;;  %6636 = vmatprep.subr.bf16.mxu0 %v13404_v44  ;;  %v13418_v38 = vld [vmem:[#allocation26_spill] sm:$0xff]  ;;  %v13419_v35 = vld [vmem:[#allocation27_spill] sm:$0xff] }
 0x463   : > { %vm1778_vm14 = vcmp.ge.f32.partialorder %v13405_v2, 0.0  ;;  %v2110_v31 = vsub.f32 1.0, %v2094_v52  ;;  %v2097_v47 = vmul.f32 %v13406_v41, %v2017_v61  ;;  %v1989_v53 = vmul.f32 %v9952_v62, %v1973_v33  ;;  %v13421_v33 = vld [vmem:[#allocation189_spill] sm:$0xff]  ;;  %v13497_v44 = vld [vmem:[#allocation44_spill] sm:$0xff] }
 0x464   : > { %v2096_v6 = vmul.f32 %v13407_v0, %v2016_v19  ;;  %v2019_v14 = vmul.f32 %v9927_v58, %v2003_v1  ;;  %v2002_v13 = vadd.f32 0.2548296, %v1986_v59  ;;  %v1988_v7 = vmul.f32 %v9940_v22, %v1972_v55  ;;  %v13411_v58 = vld [vmem:[#allocation25_spill] sm:$0xff] }
 0x465   : > { %v13408_v11 = vmov -1.0   ;;  %v2126_v37 = vmul.f32 %v2110_v31, %v13409_v10  ;;  %v2113_v39 = vsub.f32 1.0, %v2097_v47  ;;  %v2005_v49 = vadd.f32 0.2548296, %v1989_v53  ;;  %6638 = vmatpush1.bf16.msra.mxu0 %v13410_v42  ;;  %v13422_v53 = vld [vmem:[#allocation181_spill] sm:$0xff]  ;;  %v13496_v42 = vld [vmem:[#allocation43_spill] sm:$0xff] }
 0x466   : > { %v1795_v36 = vsel %vm1779_vm13, 1.0, %v13408_v11  ;;  %v2112_v15 = vsub.f32 1.0, %v2096_v6  ;;  %v2099_v30 = vmul.f32 %v9995_v17, %v2019_v14  ;;  %v2018_v21 = vmul.f32 %v9916_v26, %v2002_v13  ;;  %6640 = vmatprep.subr.bf16.mxu0 %v13411_v58  ;;  %v13416_v26 = vld [vmem:[#allocation187_spill] sm:$0xff]  ;;  %v13423_v6 = vld [vmem:[#allocation60_spill] sm:$0xff]  ;;  %v13425_v10 = vld [vmem:[#allocation177_spill] sm:$0xff] }
 0x467   : > { %v2004_v48 = vadd.f32 0.2548296, %v1988_v7  ;;  %v7488_v45 = vpop.eup %7487  ;;  %vm1780_vm15 = vcmp.ge.f32.partialorder %v13412_v5, 0.0  ;;  %v2142_v40 = vadd.f32 1.0, %v2126_v37  ;;  %v2129_v29 = vmul.f32 %v2113_v39, %v13413_v20  ;;  %v13426_v39 = vld [vmem:[#allocation185_spill] sm:$0xff]  ;;  %v13428_v5 = vld [vmem:[#allocation63_spill] sm:$0xff] }
 0x468   : > { %v2021_v12 = vmul.f32 %v9952_v62, %v2005_v49  ;;  %v2128_v46 = vmul.f32 %v2112_v15, %v13414_v3  ;;  %v2115_v4 = vsub.f32 1.0, %v2099_v30  ;;  %v2098_v25 = vmul.f32 %v13415_v23, %v2018_v21  ;;  %v13431_v3 = vld [vmem:[#allocation65_spill] sm:$0xff]  ;;  %v13434_v23 = vld [vmem:[#allocation68_spill] sm:$0xff]  ;;  %v13495_v58 = vld [vmem:[#allocation42_spill] sm:$0xff] }
 0x469   : > { %v2020_v17 = vmul.f32 %v9940_v22, %v2004_v48  ;;  %v7490_v43 = vpop.eup %7489  ;;  %vm1781_vm1 = vcmp.ge.f32.partialorder %v13416_v26, 0.0  ;;  %v2158_v8 = vmul.f32 %v2142_v40, %v13417_v56  ;;  %v2145_v28 = vadd.f32 1.0, %v2129_v29  ;;  %6642 = vmatpush1.bf16.msra.mxu0 %v13418_v38  ;;  %v13420_v22 = vld [vmem:[#allocation178_spill] sm:$0xff]  ;;  %v13429_v40 = vld [vmem:[#allocation184_spill] sm:$0xff]  ;;  %v13439_v56 = vld [vmem:[#allocation73_spill] sm:$0xff] }
 0x46a   : > { %v2101_v18 = vmul.f32 %v7488_v45, %v2021_v12  ;;  %v2144_v34 = vadd.f32 1.0, %v2128_v46  ;;  %v2131_v16 = vmul.f32 %v2115_v4, %v1795_v36  ;;  %v2114_v27 = vsub.f32 1.0, %v2098_v25  ;;  %6644 = vmatprep.subr.bf16.mxu0 %v13419_v35  ;;  %v13424_v36 = vld [vmem:[#allocation61_spill] sm:$0xff]  ;;  %v13427_v45 = vld [vmem:[#allocation62_spill] sm:$0xff]  ;;  %v13430_v12 = vld [vmem:[#allocation64_spill] sm:$0xff] }
 0x46b   : > { %v2100_v62 = vmul.f32 %v7490_v43, %v2020_v17  ;;  %v1794_v52 = vsel %vm1778_vm14, 1.0, %v13408_v11  ;;  %v1747_v61 = vmul.f32 0.5, %v13420_v22  ;;  %2266 = vmatmul.mubr.f32.gmra.mrb[40].mxu0 %v2158_v8  ;;  %v2161_v19 = vmul.f32 %v2145_v28, %v13421_v33  ;;  %v13432_v46 = vld [vmem:[#allocation66_spill] sm:$0xff]  ;;  %v13433_v4 = vld [vmem:[#allocation67_spill] sm:$0xff]  ;;  %v13435_v25 = vld [vmem:[#allocation69_spill] sm:$0xff] }
 0x46c   : > { %v2117_v1 = vsub.f32 1.0, %v2101_v18  ;;  %v1797_v59 = vsel %vm1781_vm1, 1.0, %v13408_v11  ;;  %v2147_v55 = vadd.f32 1.0, %v2131_v16  ;;  %v2130_v31 = vmul.f32 %v2114_v27, %v1794_v52  ;;  %v13436_v17 = vld [vmem:[#allocation70_spill] sm:$0xff]  ;;  %v13437_v43 = vld [vmem:[#allocation71_spill] sm:$0xff]  ;;  %v13438_v26 = vld [vmem:[#allocation72_spill] sm:$0xff] }
 0x46d   : > { %v2116_v41 = vsub.f32 1.0, %v2100_v62  ;;  %v1796_v47 = vsel %vm1780_vm15, 1.0, %v13408_v11  ;;  %2271 = vmatprep.mubr.f32.mxu0 %v2161_v19  ;;  %v2160_v0 = vmul.f32 %v2144_v34, %v13422_v53  ;;  %6646 = vmatpush1.bf16.msra.mxu0 %v13423_v6  ;;  %v1746_v37 = vmul.f32 0.5, %v13425_v10  ;;  %v13440_v8 = vld [vmem:[#allocation74_spill] sm:$0xff]  ;;  %v13441_v28 = vld [vmem:[#allocation75_spill] sm:$0xff]  ;;  %v13442_v18 = vld [vmem:[#allocation76_spill] sm:$0xff]  ;;  %v10091_v19 = vpop.permute.xlu0 %2308 }
 0x46e   : > { %v2133_v2 = vmul.f32 %v2117_v1, %v1797_v59  ;;  %v2163_v14 = vmul.f32 %v2147_v55, %v1747_v61  ;;  %v2146_v13 = vadd.f32 1.0, %v2130_v31  ;;  %6648 = vmatprep.subr.bf16.mxu0 %v13424_v36  ;;  %v1749_v49 = vmul.f32 0.5, %v13426_v39  ;;  %v13443_v34 = vld [vmem:[#allocation109_spill] sm:$0xff]  ;;  %v1029_v16 = vld [vmem:[%s12663_s11] sm:$0x3]  ;;  %v13446_v52 = vld [vmem:[#allocation20_spill] sm:$0xff]  ;;  %v10089_v61 = vpop.permute.xlu1 %2313 }
 0x46f   : > { %v2132_v7 = vmul.f32 %v2116_v41, %v1796_v47  ;;  %2272 = vmatmul.mubr.f32.gmra.mrb[42].mxu0 %v2160_v0  ;;  %v1748_v20 = vmul.f32 0.5, %v13429_v40  ;;  %v13444_v27 = vld [vmem:[#allocation22_spill] sm:$0xff]  ;;  %v10087_v22 = vrot.slane %v1029_v16, %v13446_v52  ;;  %13448 = vst [vmem:[#allocation193_spill] sm:$0xff] %v10089_v61  ;;  %13449 = vst [vmem:[#allocation182_spill] sm:$0xff] %v10091_v19  ;;  %v13451_v53 = vld [vmem:[#allocation123_spill] sm:$0xff] }
 0x470   : > { %v2149_v15 = vadd.f32 1.0, %v2133_v2  ;;  %2277 = vmatprep.mubr.f32.mxu0 %v2163_v14  ;;  %v2162_v30 = vmul.f32 %v2146_v13, %v1746_v37  ;;  %v10084_v62 = vrot.slane %v1029_v16, %v13444_v27  ;;  %v13450_v31 = vld [vmem:[#allocation122_spill] sm:$0xff]  ;;  %v13492_v6 = vld [vmem:[#allocation39_spill] sm:$0xff]  ;;  %v13493_v35 = vld [vmem:[#allocation40_spill] sm:$0xff] }
 0x471   : > { %v2148_v48 = vadd.f32 1.0, %v2132_v7  ;;  %6650 = vmatpush1.bf16.msra.mxu0 %v13427_v45  ;;  %13447 = vst [vmem:[#allocation176_spill] sm:$0xff] %v10087_v22  ;;  %v10101_v10 = vpop.permute.xlu0 %2364  ;;  %v13454_v37 = vld [vmem:[#allocation126_spill] sm:$0xff]  ;;  %v13490_v45 = vld [vmem:[#allocation37_spill] sm:$0xff] }
 0x472   : > { %v2165_v21 = vmul.f32 %v2149_v15, %v1749_v49  ;;  %6652 = vmatprep.subr.bf16.mxu0 %v13428_v5  ;;  %13445 = vst [vmem:[#allocation183_spill] sm:$0xff] %v10084_v62  ;;  %v10098_v13 = vpop.permute.xlu1 %2369  ;;  %13453 = vst [vmem:[#allocation179_spill] sm:$0xff] %v10101_v10  ;;  %v13455_v15 = vld [vmem:[#allocation125_spill] sm:$0xff]  ;;  %v13489_v5 = vld [vmem:[#allocation36_spill] sm:$0xff] }
 0x473   : > { %2278 = vmatmul.mubr.f32.gmra.mrb[44].mxu0 %v2162_v30  ;;  %v2164_v29 = vmul.f32 %v2148_v48, %v1748_v20  ;;  %13452 = vst [vmem:[#allocation191_spill] sm:$0xff] %v10098_v13  ;;  %v13491_v36 = vld [vmem:[#allocation38_spill] sm:$0xff]  ;;  %v13494_v38 = vld [vmem:[#allocation41_spill] sm:$0xff] }
 0x474   : > { %2283 = vmatprep.mubr.f32.mxu0 %v2165_v21 }
 0x475   : > { %6654 = vmatpush1.bf16.msra.mxu0 %v13430_v12  ;;  %v13488_v12 = vld [vmem:[#allocation35_spill] sm:$0xff] }
 0x476   : > { %6656 = vmatprep.subr.bf16.mxu0 %v13431_v3 }
 0x477   : > { %2284 = vmatmul.mubr.f32.gmra.mrb[46].mxu0 %v2164_v29 }
 0x479   : > { %6658 = vmatpush1.bf16.msra.mxu0 %v13432_v46  ;;  %v13477_v46 = vld [vmem:[#allocation145_spill] sm:$0xff] }
 0x47a   : > { %6660 = vmatprep.subr.bf16.mxu0 %v13433_v4 }
 0x47d   : > { %6662 = vmatpush1.bf16.msra.mxu0 %v13434_v23 }
 0x47e   : > { %6664 = vmatprep.subr.bf16.mxu0 %v13435_v25 }
 0x481   : > { %6666 = vmatpush1.bf16.msra.mxu0 %v13436_v17 }
 0x482   : > { %6668 = vmatprep.subr.bf16.mxu0 %v13437_v43 }
 0x485   : > { %6670 = vmatpush1.bf16.msra.mxu0 %v13438_v26  ;;  %v13471_v26 = vld [vmem:[#allocation138_spill] sm:$0xff] }
 0x486   : > { %6672 = vmatprep.subr.bf16.mxu0 %v13439_v56 }
 0x489   : > { %6674 = vmatpush1.bf16.msra.mxu0 %v13440_v8  ;;  %v13470_v8 = vld [vmem:[#allocation140_spill] sm:$0xff] }
 0x48a   : > { %6676 = vmatprep.subr.bf16.mxu0 %v13441_v28 }
 0x48d   : > { %6678 = vmatpush1.bf16.msra.mxu0 %v13442_v18 }
 0x48e   : > { %6744 = vmatprep.subr.bf16.mxu0 %v13443_v34 }
 0x523   : > { %v2243_v33 = vpop.f32.mrb[32].mxu0 }
 0x524   : > { %v2244_v1 = vadd.f32 %v2243_v33, %v10084_v62  ;;  %v2245_v59 = vpop.f32.mrb[33].mxu0  ;;  %v10114_v33 = vpop.permute.xlu1 %2323 }
 0x525   : > { %v2246_v55 = vadd.f32 %v2245_v59, %v10087_v22  ;;  %13456 = vst [vmem:[#allocation194_spill] sm:$0xff] %v10114_v33 }
 0x526   : > { %v2290_v0 = vadd.f32 %v2244_v1, %v13451_v53  ;;  %v13457_v1 = vld [vmem:[#allocation128_spill] sm:$0xff] }
 0x527   : > { %v2291_v41 = vadd.f32 %v2246_v55, %v13450_v31  ;;  %v2249_v47 = vpop.f32.mrb[34].mxu0 }
 0x528   : > { %v2250_v2 = vadd.f32 %v2249_v47, %v10084_v62  ;;  %v2251_v14 = vpop.f32.mrb[35].mxu0  ;;  %v2346_v48 = vmul.f32 %v10091_v19, %v2290_v0  ;;  %v10123_v47 = vpop.permute.xlu0 %2318  ;;  %v13459_v0 = vld [vmem:[#allocation130_spill] sm:$0xff] }
 0x529   : > { %v2252_v7 = vadd.f32 %v2251_v14, %v10087_v22  ;;  %v2347_v49 = vmul.f32 %v10091_v19, %v2291_v41  ;;  %13458 = vst [vmem:[#allocation192_spill] sm:$0xff] %v10123_v47 }
 0x52a   : > { %v2292_v39 = vadd.f32 %v2250_v2, %v13454_v37  ;;  %v10126_v53 = vadd.f32 %v10101_v10, %v2346_v48 }
 0x52b   : > { %v2293_v30 = vadd.f32 %v2252_v7, %v13455_v15  ;;  %v2255_v21 = vpop.f32.mrb[36].mxu0  ;;  %v10118_v31 = vadd.f32 %v10101_v10, %v2347_v49  ;;  %v13460_v49 = vld [vmem:[#allocation133_spill] sm:$0xff] }
 0x52c   : > { %v2348_v40 = vmul.f32 %v10089_v61, %v2292_v39  ;;  %v2256_v20 = vadd.f32 %v2255_v21, %v10084_v62  ;;  %v2257_v29 = vpop.f32.mrb[37].mxu0 }
 0x52d   : > { %v2349_v16 = vmul.f32 %v10089_v61, %v2293_v30  ;;  %v2258_v27 = vadd.f32 %v2257_v29, %v10087_v22  ;;  %v13517_v61 = vld [vmem:[#allocation81_spill] sm:$0xff] }
 0x52e   : > { %v10112_v52 = vadd.f32 %v10098_v13, %v2348_v40  ;;  %v2294_v2 = vadd.f32 %v2256_v20, %v13459_v0  ;;  %v13461_v40 = vld [vmem:[#allocation132_spill] sm:$0xff] }
 0x52f   : > { %v2295_v59 = vadd.f32 %v2258_v27, %v13457_v1  ;;  %v2261_v55 = vpop.f32.mrb[38].mxu0  ;;  %v10121_v41 = vadd.f32 %v10098_v13, %v2349_v16  ;;  %v10140_v16 = vpop.permute.xlu1 %2379  ;;  %v13516_v13 = vld [vmem:[#allocation80_spill] sm:$0xff] }
 0x530   : > { %v2262_v14 = vadd.f32 %v2261_v55, %v10084_v62  ;;  %v2263_v7 = vpop.f32.mrb[39].mxu0  ;;  %v6537_v30 = vpack.c.bf16 %v10112_v52, %v10126_v53  ;;  %v2350_v20 = vmul.f32 %v10123_v47, %v2294_v2  ;;  %13462 = vst [vmem:[#allocation180_spill] sm:$0xff] %v10140_v16  ;;  %v10143_v1 = vpop.permute.xlu0 %2374 }
 0x531   : > { %v2264_v37 = vadd.f32 %v2263_v7, %v10087_v22  ;;  %v6535_v39 = vpack.c.bf16 %v10121_v41, %v10118_v31  ;;  %v2351_v21 = vmul.f32 %v10123_v47, %v2295_v59  ;;  %13463 = vst [vmem:[#allocation186_spill] sm:$0xff] %v10143_v1  ;;  %v13515_v47 = vld [vmem:[#allocation79_spill] sm:$0xff] }
 0x532   : > { %v2296_v15 = vadd.f32 %v2262_v14, %v13460_v49  ;;  %v10155_v2 = vadd.f32 %v10143_v1, %v2350_v20 }
 0x533   : > { %v2297_v48 = vadd.f32 %v2264_v37, %v13461_v40  ;;  %6536 = vmatprep.subr.bf16.mxu1 %v6535_v39  ;;  %v10149_v0 = vadd.f32 %v10143_v1, %v2351_v21  ;;  %v10161_v37 = vpop.permute.xlu1 %2333  ;;  %v13466_v40 = vld [vmem:[#allocation135_spill] sm:$0xff] }
 0x534   : > { %v2352_v29 = vmul.f32 %v10114_v33, %v2296_v15  ;;  %6538 = vmatpush1.bf16.msra.mxu1 %v6537_v30  ;;  %13464 = vst [vmem:[#allocation190_spill] sm:$0xff] %v10161_v37  ;;  %v10163_v49 = vpop.permute.xlu0 %2328 }
 0x535   : > { %v2353_v27 = vmul.f32 %v10114_v33, %v2297_v48  ;;  %13465 = vst [vmem:[#allocation188_spill] sm:$0xff] %v10163_v49 }
 0x536   : > { %v10146_v55 = vadd.f32 %v10140_v16, %v2352_v29  ;;  %v13467_v29 = vld [vmem:[#allocation136_spill] sm:$0xff] }
 0x537   : > { %v10152_v59 = vadd.f32 %v10140_v16, %v2353_v27  ;;  %v13514_v16 = vld [vmem:[#allocation78_spill] sm:$0xff] }
 0x538   : > { %v6541_v7 = vpack.c.bf16 %v10146_v55, %v10155_v2  ;;  %v10173_v28 = vpop.permute.xlu0 %2384 }
 0x539   : > { %v6539_v14 = vpack.c.bf16 %v10152_v59, %v10149_v0  ;;  %13469 = vst [vmem:[#allocation187_spill] sm:$0xff] %v10173_v28 }
 0x53b   : > { %6540 = vmatprep.subr.bf16.mxu1 %v6539_v14  ;;  %v10170_v14 = vpop.permute.xlu1 %2389 }
 0x53c   : > { %6542 = vmatpush1.bf16.msra.mxu1 %v6541_v7  ;;  %13468 = vst [vmem:[#allocation195_spill] sm:$0xff] %v10170_v14 }
 0x53e   : > { %v2267_v39 = vpop.f32.mrb[40].mxu0 }
 0x53f   : > { %v2268_v15 = vadd.f32 %v2267_v39, %v10084_v62  ;;  %v2269_v30 = vpop.f32.mrb[41].mxu0 }
 0x540   : > { %v2270_v21 = vadd.f32 %v2269_v30, %v10087_v22 }
 0x541   : > { %v2298_v27 = vadd.f32 %v2268_v15, %v13467_v29 }
 0x542   : > { %v2299_v48 = vadd.f32 %v2270_v21, %v13466_v40  ;;  %v2273_v20 = vpop.f32.mrb[42].mxu0 }
 0x543   : > { %v2274_v34 = vadd.f32 %v2273_v20, %v10084_v62  ;;  %v2275_v18 = vpop.f32.mrb[43].mxu0  ;;  %v2354_v21 = vmul.f32 %v10163_v49, %v2298_v27 }
 0x544   : > { %v2276_v7 = vadd.f32 %v2275_v18, %v10087_v22  ;;  %v2355_v39 = vmul.f32 %v10163_v49, %v2299_v48 }
 0x545   : > { %v2300_v56 = vadd.f32 %v2274_v34, %v13470_v8  ;;  %v10186_v8 = vpop.permute.xlu1 %2343  ;;  %v13473_v34 = vld [vmem:[#allocation142_spill] sm:$0xff]  ;;  %v10198_v27 = vadd.f32 %v10173_v28, %v2354_v21 }
 0x546   : > { %v2301_v30 = vadd.f32 %v2276_v7, %v13471_v26  ;;  %v2279_v43 = vpop.f32.mrb[44].mxu0  ;;  %13472 = vst [vmem:[#allocation175_spill] sm:$0xff] %v10186_v8  ;;  %v10190_v7 = vadd.f32 %v10173_v28, %v2355_v39  ;;  %v13476_v39 = vld [vmem:[#allocation146_spill] sm:$0xff] }
 0x547   : > { %v2356_v15 = vmul.f32 %v10161_v37, %v2300_v56  ;;  %v2280_v40 = vadd.f32 %v2279_v43, %v10084_v62  ;;  %v2281_v20 = vpop.f32.mrb[45].mxu0  ;;  %v10195_v43 = vpop.permute.xlu0 %2338  ;;  %v13511_v28 = vld [vmem:[#allocation58_spill] sm:$0xff] }
 0x548   : > { %v2357_v29 = vmul.f32 %v10161_v37, %v2301_v30  ;;  %v2282_v18 = vadd.f32 %v2281_v20, %v10087_v22  ;;  %13474 = vst [vmem:[#allocation178_spill] sm:$0xff] %v10195_v43  ;;  %v13475_v30 = vld [vmem:[#allocation143_spill] sm:$0xff]  ;;  %v13513_v37 = vld [vmem:[#allocation77_spill] sm:$0xff] }
 0x549   : > { %v10184_v17 = vadd.f32 %v10170_v14, %v2356_v15  ;;  %v2302_v20 = vadd.f32 %v2280_v40, %v13475_v30  ;;  %v10212_v30 = vpop.permute.xlu1 %2399 }
 0x54a   : > { %v2303_v48 = vadd.f32 %v2282_v18, %v13473_v34  ;;  %v2285_v26 = vpop.f32.mrb[46].mxu0  ;;  %v10193_v56 = vadd.f32 %v10170_v14, %v2357_v29  ;;  %13478 = vst [vmem:[#allocation189_spill] sm:$0xff] %v10212_v30  ;;  %v13512_v14 = vld [vmem:[#allocation59_spill] sm:$0xff] }
 0x54b   : > { %v2286_v15 = vadd.f32 %v2285_v26, %v10084_v62  ;;  %v2287_v25 = vpop.f32.mrb[47].mxu0  ;;  %v6545_v29 = vpack.c.bf16 %v10184_v17, %v10198_v27  ;;  %v2358_v40 = vmul.f32 %v10195_v43, %v2302_v20  ;;  %v10215_v3 = vpop.permute.xlu0 %2394  ;;  %v13533_v62 = vld [vmem:[#allocation111_spill] sm:$0xff] }
 0x54c   : > { %v2288_v23 = vadd.f32 %v2287_v25, %v10087_v22  ;;  %v6543_v18 = vpack.c.bf16 %v10193_v56, %v10190_v7  ;;  %v2359_v4 = vmul.f32 %v10195_v43, %v2303_v48  ;;  %13479 = vst [vmem:[#allocation181_spill] sm:$0xff] %v10215_v3  ;;  %v13510_v43 = vld [vmem:[#allocation57_spill] sm:$0xff]  ;;  %v13518_v22 = vld [vmem:[#allocation82_spill] sm:$0xff] }
 0x54d   : > { %v2304_v34 = vadd.f32 %v2286_v15, %v13476_v39 }
 0x54e   : > { %v2305_v21 = vadd.f32 %v2288_v23, %v13477_v46  ;;  %6544 = vmatprep.subr.bf16.mxu1 %v6543_v18  ;;  %v10221_v39 = vadd.f32 %v10215_v3, %v2359_v4  ;;  %v10227_v23 = vadd.f32 %v10215_v3, %v2358_v40  ;;  %v13480_v18 = vld [vmem:[#allocation28_spill] sm:$0xff]  ;;  %v7683_v4 = vld [vmem:[%s12655_s3] sm:$0xff] }
 0x54f   : > { %v2360_v26 = vmul.f32 %v10186_v8, %v2304_v34  ;;  %6546 = vmatpush1.bf16.msra.mxu1 %v6545_v29  ;;  %v13481_v34 = vmov 0.0   ;;  %v13482_v29 = vld [vmem:[#allocation29_spill] sm:$0xff]  ;;  %v7684_v40 = vld [vmem:[%s12655_s3 + $0x8] sm:$0xff]  ;;  %v13507_v3 = vld [vmem:[#allocation54_spill] sm:$0xff] }
 0x550   : > { %v2361_v25 = vmul.f32 %v10186_v8, %v2305_v21  ;;  %v13483_v21 = vld [vmem:[#allocation30_spill] sm:$0xff]  ;;  %v13509_v8 = vld [vmem:[#allocation56_spill] sm:$0xff] }
 0x551   : > { %v10218_v15 = vadd.f32 %v10212_v30, %v2360_v26  ;;  %v13484_v26 = vld [vmem:[#allocation31_spill] sm:$0xff] }
 0x552   : > { %v10224_v46 = vadd.f32 %v10212_v30, %v2361_v25  ;;  %v13485_v25 = vld [vmem:[#allocation32_spill] sm:$0xff]  ;;  %v13508_v30 = vld [vmem:[#allocation55_spill] sm:$0xff] }
 0x553   : > { %v6549_v20 = vpack.c.bf16 %v10218_v15, %v10227_v23 }
 0x554   : > { %v6547_v48 = vpack.c.bf16 %v10224_v46, %v10221_v39 }
 0x556   : > { %6548 = vmatprep.subr.bf16.mxu1 %v6547_v48  ;;  %v7685_v48 = vld [vmem:[%s12655_s3 + $0x10] sm:$0xff] }
 0x557   : > { %6550 = vmatpush1.bf16.msra.mxu1 %v6549_v20  ;;  %v13486_v20 = vld [vmem:[#allocation33_spill] sm:$0xff] }
 0x558   : > { %6552 = vmatprep.subr.bf16.mxu1 %v13480_v18 }
 0x55a   : > { %6112 = vmatmul.mubr.msk.f32.vlgmr.msra.gmra.mrb[64].mxu1 %vm1030_vm0, %v7683_v4  ;;  %v13487_v4 = vld [vmem:[#allocation34_spill] sm:$0xff] }
 0x55b   : > { %2488 = vmatprep.mubr.f32.mxu1 %v13481_v34  ;;  %6554 = vmatpush1.bf16.msra.mxu1 %v13482_v29 }
 0x55c   : > { %6556 = vmatprep.subr.bf16.mxu1 %v13483_v21 }
 0x55e   : > { %6113 = vmatmul.mubr.msk.f32.gmra.mrb[66].mxu1 %vm1030_vm0, %v7684_v40  ;;  %v7686_v40 = vld [vmem:[%s12655_s3 + $0x18] sm:$0xff] }
 0x55f   : > { %2494 = vmatprep.mubr.f32.mxu1 %v13481_v34  ;;  %6558 = vmatpush1.bf16.msra.mxu1 %v13484_v26 }
 0x560   : > { %6560 = vmatprep.subr.bf16.mxu1 %v13485_v25 }
 0x562   : > { %6114 = vmatmul.mubr.msk.f32.gmra.mrb[68].mxu1 %vm1030_vm0, %v7685_v48  ;;  %v7687_v48 = vld [vmem:[%s12655_s3 + $0x20] sm:$0xff] }
 0x563   : > { %2500 = vmatprep.mubr.f32.mxu1 %v13481_v34  ;;  %6562 = vmatpush1.bf16.msra.mxu1 %v13486_v20 }
 0x564   : > { %6564 = vmatprep.subr.bf16.mxu1 %v13487_v4 }
 0x566   : > { %6115 = vmatmul.mubr.msk.f32.gmra.mrb[70].mxu1 %vm1030_vm0, %v7686_v40  ;;  %v7688_v40 = vld [vmem:[%s12655_s3 + $0x28] sm:$0xff] }
 0x567   : > { %2506 = vmatprep.mubr.f32.mxu1 %v13481_v34  ;;  %6566 = vmatpush1.bf16.msra.mxu1 %v13488_v12 }
 0x568   : > { %6568 = vmatprep.subr.bf16.mxu1 %v13489_v5 }
 0x56a   : > { %6116 = vmatmul.mubr.msk.f32.gmra.mrb[72].mxu1 %vm1030_vm0, %v7687_v48  ;;  %v7689_v48 = vld [vmem:[%s12655_s3 + $0x30] sm:$0xff] }
 0x56b   : > { %2512 = vmatprep.mubr.f32.mxu1 %v13481_v34  ;;  %6570 = vmatpush1.bf16.msra.mxu1 %v13490_v45 }
 0x56c   : > { %6572 = vmatprep.subr.bf16.mxu1 %v13491_v36 }
 0x56e   : > { %6117 = vmatmul.mubr.msk.f32.gmra.mrb[74].mxu1 %vm1030_vm0, %v7688_v40  ;;  %v7690_v40 = vld [vmem:[%s12655_s3 + $0x38] sm:$0xff] }
 0x56f   : > { %2518 = vmatprep.mubr.f32.mxu1 %v13481_v34  ;;  %6574 = vmatpush1.bf16.msra.mxu1 %v13492_v6 }
 0x570   : > { %6576 = vmatprep.subr.bf16.mxu1 %v13493_v35 }
 0x572   : > { %6118 = vmatmul.mubr.msk.f32.gmra.mrb[76].mxu1 %vm1030_vm0, %v7689_v48  ;;  %v7691_v48 = vld [vmem:[%s12655_s3 + $0x40] sm:$0xff] }
 0x573   : > { %2524 = vmatprep.mubr.f32.mxu1 %v13481_v34  ;;  %6578 = vmatpush1.bf16.msra.mxu1 %v13494_v38 }
 0x574   : > { %6580 = vmatprep.subr.bf16.mxu1 %v13495_v58 }
 0x576   : > { %6119 = vmatmul.mubr.msk.f32.gmra.mrb[78].mxu1 %vm1030_vm0, %v7690_v40  ;;  %v7692_v40 = vld [vmem:[%s12655_s3 + $0x48] sm:$0xff] }
 0x577   : > { %2530 = vmatprep.mubr.f32.mxu1 %v13481_v34  ;;  %6582 = vmatpush1.bf16.msra.mxu1 %v13496_v42 }
 0x578   : > { %6584 = vmatprep.subr.bf16.mxu1 %v13497_v44 }
 0x57a   : > { %6120 = vmatmul.mubr.msk.f32.gmra.mrb[80].mxu1 %vm1030_vm0, %v7691_v48  ;;  %v7693_v48 = vld [vmem:[%s12655_s3 + $0x50] sm:$0xff] }
 0x57b   : > { %2536 = vmatprep.mubr.f32.mxu1 %v13481_v34  ;;  %6586 = vmatpush1.bf16.msra.mxu1 %v13498_v50 }
 0x57c   : > { %6588 = vmatprep.subr.bf16.mxu1 %v13499_v9 }
 0x57e   : > { %6121 = vmatmul.mubr.msk.f32.gmra.mrb[82].mxu1 %vm1030_vm0, %v7692_v40  ;;  %v7694_v40 = vld [vmem:[%s12655_s3 + $0x58] sm:$0xff] }
 0x57f   : > { %2542 = vmatprep.mubr.f32.mxu1 %v13481_v34  ;;  %6590 = vmatpush1.bf16.msra.mxu1 %v13500_v32 }
 0x580   : > { %6592 = vmatprep.subr.bf16.mxu1 %v13501_v24 }
 0x582   : > { %6122 = vmatmul.mubr.msk.f32.gmra.mrb[84].mxu1 %vm1030_vm0, %v7693_v48  ;;  %v7695_v48 = vld [vmem:[%s12655_s3 + $0x60] sm:$0xff] }
 0x583   : > { %2548 = vmatprep.mubr.f32.mxu1 %v13481_v34  ;;  %6594 = vmatpush1.bf16.msra.mxu1 %v13502_v51 }
 0x584   : > { %6596 = vmatprep.subr.bf16.mxu1 %v13503_v63 }
 0x586   : > { %6123 = vmatmul.mubr.msk.f32.gmra.mrb[86].mxu1 %vm1030_vm0, %v7694_v40  ;;  %v7696_v40 = vld [vmem:[%s12655_s3 + $0x68] sm:$0xff] }
 0x587   : > { %2554 = vmatprep.mubr.f32.mxu1 %v13481_v34  ;;  %6598 = vmatpush1.bf16.msra.mxu1 %v13504_v60  ;;  %v13576_v60 = vld [vmem:[#allocation115_spill] sm:$0xff] }
 0x588   : > { %6600 = vmatprep.subr.bf16.mxu1 %v13505_v57 }
 0x58a   : > { %6124 = vmatmul.mubr.msk.f32.gmra.mrb[88].mxu1 %vm1030_vm0, %v7695_v48  ;;  %v7697_v48 = vld [vmem:[%s12655_s3 + $0x70] sm:$0xff] }
 0x58b   : > { %2560 = vmatprep.mubr.f32.mxu1 %v13481_v34  ;;  %6602 = vmatpush1.bf16.msra.mxu1 %v13506_v54 }
 0x58c   : > { %6604 = vmatprep.subr.bf16.mxu1 %v13507_v3 }
 0x58e   : > { %6125 = vmatmul.mubr.msk.f32.gmra.mrb[90].mxu1 %vm1030_vm0, %v7696_v40  ;;  %v7698_v40 = vld [vmem:[%s12655_s3 + $0x78] sm:$0xff] }
 0x58f   : > { %2566 = vmatprep.mubr.f32.mxu1 %v13481_v34  ;;  %6606 = vmatpush1.bf16.msra.mxu1 %v13508_v30 }
 0x590   : > { %6608 = vmatprep.subr.bf16.mxu1 %v13509_v8 }
 0x592   : > { %6126 = vmatmul.mubr.msk.f32.gmra.mrb[92].mxu1 %vm1030_vm0, %v7697_v48 }
 0x593   : > { %2572 = vmatprep.mubr.f32.mxu1 %v13481_v34  ;;  %6610 = vmatpush1.bf16.msra.mxu1 %v13510_v43 }
 0x594   : > { %6612 = vmatprep.subr.bf16.mxu1 %v13511_v28 }
 0x596   : > { %6127 = vmatmul.mubr.msk.f32.gmra.mrb[94].mxu1 %vm1030_vm0, %v7698_v40 }
 0x597   : > { %6614 = vmatpush1.bf16.msra.mxu1 %v13512_v14 }
 0x598   : > { %6680 = vmatprep.subr.bf16.mxu1 %v13513_v37 }
 0x62d   : > { %v2484_v49 = vpop.f32.mrb[64].mxu1 }
 0x62e   : > { %v2486_v1 = vpop.f32.mrb[65].mxu1 }
 0x62f   : > { %2643 = vmatprep.mubr.f32.mxu1 %v2486_v1 }
 0x630   : > { %2644 = vmatmul.mubr.f32.vlgmr.msra.gmra.mrb[96].mxu1 %v2484_v49  ;;  %v13519_v49 = vld [vmem:[#allocation83_spill] sm:$0xff] }
 0x631   : > { %v2490_v48 = vpop.f32.mrb[66].mxu1  ;;  %6682 = vmatpush1.bf16.msra.mxu1 %v13514_v16 }
 0x632   : > { %v2492_v33 = vpop.f32.mrb[67].mxu1  ;;  %6684 = vmatprep.subr.bf16.mxu1 %v13515_v47  ;;  %v13520_v47 = vld [vmem:[#allocation84_spill] sm:$0xff] }
 0x633   : > { %2649 = vmatprep.mubr.f32.mxu1 %v2492_v33 }
 0x634   : > { %2650 = vmatmul.mubr.f32.gmra.mrb[98].mxu1 %v2490_v48  ;;  %v13521_v48 = vld [vmem:[#allocation85_spill] sm:$0xff] }
 0x635   : > { %v2496_v10 = vpop.f32.mrb[68].mxu1  ;;  %6686 = vmatpush1.bf16.msra.mxu1 %v13516_v13 }
 0x636   : > { %v2498_v40 = vpop.f32.mrb[69].mxu1  ;;  %6688 = vmatprep.subr.bf16.mxu1 %v13517_v61  ;;  %v13522_v61 = vld [vmem:[#allocation86_spill] sm:$0xff] }
 0x637   : > { %2655 = vmatprep.mubr.f32.mxu1 %v2498_v40  ;;  %v13523_v40 = vld [vmem:[#allocation87_spill] sm:$0xff] }
 0x638   : > { %2656 = vmatmul.mubr.f32.gmra.mrb[100].mxu1 %v2496_v10 }
 0x639   : > { %v2502_v19 = vpop.f32.mrb[70].mxu1  ;;  %6690 = vmatpush1.bf16.msra.mxu1 %v13518_v22 }
 0x63a   : > { %v2504_v1 = vpop.f32.mrb[71].mxu1  ;;  %6692 = vmatprep.subr.bf16.mxu1 %v13519_v49  ;;  %v13524_v49 = vld [vmem:[#allocation88_spill] sm:$0xff] }
 0x63b   : > { %2661 = vmatprep.mubr.f32.mxu1 %v2504_v1  ;;  %v13525_v1 = vld [vmem:[#allocation89_spill] sm:$0xff] }
 0x63c   : > { %2662 = vmatmul.mubr.f32.gmra.mrb[102].mxu1 %v2502_v19 }
 0x63d   : > { %v2508_v16 = vpop.f32.mrb[72].mxu1  ;;  %6694 = vmatpush1.bf16.msra.mxu1 %v13520_v47 }
 0x63e   : > { %v2510_v33 = vpop.f32.mrb[73].mxu1  ;;  %6696 = vmatprep.subr.bf16.mxu1 %v13521_v48  ;;  %v13526_v48 = vld [vmem:[#allocation90_spill] sm:$0xff] }
 0x63f   : > { %2667 = vmatprep.mubr.f32.mxu1 %v2510_v33  ;;  %v13527_v33 = vld [vmem:[#allocation91_spill] sm:$0xff] }
 0x640   : > { %2668 = vmatmul.mubr.f32.gmra.mrb[104].mxu1 %v2508_v16 }
 0x641   : > { %v2514_v13 = vpop.f32.mrb[74].mxu1  ;;  %6698 = vmatpush1.bf16.msra.mxu1 %v13522_v61 }
 0x642   : > { %v2516_v10 = vpop.f32.mrb[75].mxu1  ;;  %6700 = vmatprep.subr.bf16.mxu1 %v13523_v40  ;;  %v13528_v40 = vld [vmem:[#allocation92_spill] sm:$0xff] }
 0x643   : > { %2673 = vmatprep.mubr.f32.mxu1 %v2516_v10  ;;  %v13529_v10 = vld [vmem:[#allocation93_spill] sm:$0xff] }
 0x644   : > { %2674 = vmatmul.mubr.f32.gmra.mrb[106].mxu1 %v2514_v13 }
 0x645   : > { %v2520_v22 = vpop.f32.mrb[76].mxu1  ;;  %6702 = vmatpush1.bf16.msra.mxu1 %v13524_v49 }
 0x646   : > { %v2522_v19 = vpop.f32.mrb[77].mxu1  ;;  %6704 = vmatprep.subr.bf16.mxu1 %v13525_v1  ;;  %v13530_v1 = vld [vmem:[#allocation94_spill] sm:$0xff] }
 0x647   : > { %2679 = vmatprep.mubr.f32.mxu1 %v2522_v19 }
 0x648   : > { %2680 = vmatmul.mubr.f32.gmra.mrb[108].mxu1 %v2520_v22  ;;  %v13531_v22 = vld [vmem:[#allocation110_spill] sm:$0xff] }
 0x649   : > { %v2526_v47 = vpop.f32.mrb[78].mxu1  ;;  %6706 = vmatpush1.bf16.msra.mxu1 %v13526_v48  ;;  %v13532_v48 = vld [vmem:[#allocation95_spill] sm:$0xff] }
 0x64a   : > { %v2528_v16 = vpop.f32.mrb[79].mxu1  ;;  %6708 = vmatprep.subr.bf16.mxu1 %v13527_v33 }
 0x64b   : > { %2685 = vmatprep.mubr.f32.mxu1 %v2528_v16  ;;  %v13534_v16 = vld [vmem:[#allocation96_spill] sm:$0xff] }
 0x64c   : > { %2686 = vmatmul.mubr.f32.gmra.mrb[110].mxu1 %v2526_v47 }
 0x64d   : > { %v2532_v61 = vpop.f32.mrb[80].mxu1  ;;  %6710 = vmatpush1.bf16.msra.mxu1 %v13528_v40  ;;  %v13535_v40 = vld [vmem:[#allocation112_spill] sm:$0xff] }
 0x64e   : > { %v2534_v13 = vpop.f32.mrb[81].mxu1  ;;  %6712 = vmatprep.subr.bf16.mxu1 %v13529_v10 }
 0x64f   : > { %2756 = vmatprep.mubr.f32.mxu0 %v2534_v13  ;;  %v13536_v13 = vld [vmem:[#allocation97_spill] sm:$0xff] }
 0x650   : > { %2757 = vmatmul.mubr.f32.vlgmr.msra.gmra.mrb[48].mxu0 %v2532_v61  ;;  %v13537_v61 = vld [vmem:[#allocation113_spill] sm:$0xff] }
 0x651   : > { %v2538_v49 = vpop.f32.mrb[82].mxu1  ;;  %6714 = vmatpush1.bf16.msra.mxu1 %v13530_v1  ;;  %6746 = vmatpush1.bf16.msra.mxu0 %v13531_v22  ;;  %v13538_v1 = vld [vmem:[#allocation98_spill] sm:$0xff] }
 0x652   : > { %v2540_v19 = vpop.f32.mrb[83].mxu1  ;;  %6716 = vmatprep.subr.bf16.mxu1 %v13532_v48  ;;  %6748 = vmatprep.subr.bf16.mxu0 %v13533_v62  ;;  %v13539_v48 = vld [vmem:[#allocation114_spill] sm:$0xff] }
 0x653   : > { %2762 = vmatprep.mubr.f32.mxu0 %v2540_v19  ;;  %v13540_v19 = vld [vmem:[#allocation99_spill] sm:$0xff] }
 0x654   : > { %2763 = vmatmul.mubr.f32.gmra.mrb[50].mxu0 %v2538_v49  ;;  %v13541_v49 = vld [vmem:[#allocation147_spill] sm:$0xff] }
 0x655   : > { %v2544_v47 = vpop.f32.mrb[84].mxu1  ;;  %6718 = vmatpush1.bf16.msra.mxu1 %v13534_v16  ;;  %6750 = vmatpush1.bf16.msra.mxu0 %v13535_v40  ;;  %v13542_v16 = vld [vmem:[#allocation100_spill] sm:$0xff] }
 0x656   : > { %v2546_v10 = vpop.f32.mrb[85].mxu1  ;;  %6720 = vmatprep.subr.bf16.mxu1 %v13536_v13  ;;  %6752 = vmatprep.subr.bf16.mxu0 %v13537_v61  ;;  %v13543_v13 = vld [vmem:[#allocation148_spill] sm:$0xff] }
 0x657   : > { %2768 = vmatprep.mubr.f32.mxu0 %v2546_v10  ;;  %v13544_v10 = vld [vmem:[#allocation101_spill] sm:$0xff] }
 0x658   : > { %2769 = vmatmul.mubr.f32.gmra.mrb[52].mxu0 %v2544_v47  ;;  %v13545_v47 = vld [vmem:[#allocation149_spill] sm:$0xff] }
 0x659   : > { %v2550_v22 = vpop.f32.mrb[86].mxu1  ;;  %6722 = vmatpush1.bf16.msra.mxu1 %v13538_v1  ;;  %6754 = vmatpush1.bf16.msra.mxu0 %v13539_v48  ;;  %v13546_v1 = vld [vmem:[#allocation102_spill] sm:$0xff] }
 0x65a   : > { %v2552_v62 = vpop.f32.mrb[87].mxu1  ;;  %6724 = vmatprep.subr.bf16.mxu1 %v13540_v19  ;;  %6756 = vmatprep.subr.bf16.mxu0 %v13541_v49  ;;  %v13547_v19 = vld [vmem:[#allocation150_spill] sm:$0xff] }
 0x65b   : > { %2774 = vmatprep.mubr.f32.mxu0 %v2552_v62  ;;  %v13548_v62 = vld [vmem:[#allocation103_spill] sm:$0xff] }
 0x65c   : > { %2775 = vmatmul.mubr.f32.gmra.mrb[54].mxu0 %v2550_v22  ;;  %v13549_v22 = vld [vmem:[#allocation151_spill] sm:$0xff] }
 0x65d   : > { %v2556_v40 = vpop.f32.mrb[88].mxu1  ;;  %6726 = vmatpush1.bf16.msra.mxu1 %v13542_v16  ;;  %6758 = vmatpush1.bf16.msra.mxu0 %v13543_v13  ;;  %v13550_v16 = vld [vmem:[#allocation104_spill] sm:$0xff] }
 0x65e   : > { %v2558_v61 = vpop.f32.mrb[89].mxu1  ;;  %6728 = vmatprep.subr.bf16.mxu1 %v13544_v10  ;;  %6760 = vmatprep.subr.bf16.mxu0 %v13545_v47  ;;  %v13551_v10 = vld [vmem:[#allocation152_spill] sm:$0xff] }
 0x65f   : > { %2780 = vmatprep.mubr.f32.mxu0 %v2558_v61  ;;  %v13552_v61 = vld [vmem:[#allocation105_spill] sm:$0xff] }
 0x660   : > { %2781 = vmatmul.mubr.f32.gmra.mrb[56].mxu0 %v2556_v40  ;;  %v13553_v40 = vld [vmem:[#allocation153_spill] sm:$0xff] }
 0x661   : > { %v2562_v48 = vpop.f32.mrb[90].mxu1  ;;  %6730 = vmatpush1.bf16.msra.mxu1 %v13546_v1  ;;  %6762 = vmatpush1.bf16.msra.mxu0 %v13547_v19  ;;  %v13554_v1 = vld [vmem:[#allocation106_spill] sm:$0xff] }
 0x662   : > { %v2564_v49 = vpop.f32.mrb[91].mxu1  ;;  %6732 = vmatprep.subr.bf16.mxu1 %v13548_v62  ;;  %6764 = vmatprep.subr.bf16.mxu0 %v13549_v22  ;;  %v13555_v62 = vld [vmem:[#allocation154_spill] sm:$0xff] }
 0x663   : > { %2786 = vmatprep.mubr.f32.mxu0 %v2564_v49  ;;  %v13556_v49 = vld [vmem:[#allocation107_spill] sm:$0xff] }
 0x664   : > { %2787 = vmatmul.mubr.f32.gmra.mrb[58].mxu0 %v2562_v48  ;;  %v13557_v48 = vld [vmem:[#allocation155_spill] sm:$0xff] }
 0x665   : > { %v2568_v13 = vpop.f32.mrb[92].mxu1  ;;  %6734 = vmatpush1.bf16.msra.mxu1 %v13550_v16  ;;  %6766 = vmatpush1.bf16.msra.mxu0 %v13551_v10  ;;  %v13558_v10 = vld [vmem:[#allocation108_spill] sm:$0xff] }
 0x666   : > { %v2570_v47 = vpop.f32.mrb[93].mxu1  ;;  %6736 = vmatprep.subr.bf16.mxu1 %v13552_v61  ;;  %6768 = vmatprep.subr.bf16.mxu0 %v13553_v40  ;;  %v13559_v16 = vld [vmem:[#allocation156_spill] sm:$0xff]  ;;  %v13560_v61 = vld [vmem:[#allocation157_spill] sm:$0xff]  ;;  %v13565_v40 = vld [vmem:[#allocation162_spill] sm:$0xff] }
 0x667   : > { %2792 = vmatprep.mubr.f32.mxu0 %v2570_v47  ;;  %v13561_v47 = vld [vmem:[#allocation158_spill] sm:$0xff] }
 0x668   : > { %2793 = vmatmul.mubr.f32.gmra.mrb[60].mxu0 %v2568_v13  ;;  %v13562_v13 = vld [vmem:[#allocation159_spill] sm:$0xff] }
 0x669   : > { %v2574_v19 = vpop.f32.mrb[94].mxu1  ;;  %6738 = vmatpush1.bf16.msra.mxu1 %v13554_v1  ;;  %6770 = vmatpush1.bf16.msra.mxu0 %v13555_v62  ;;  %v13563_v1 = vld [vmem:[#allocation160_spill] sm:$0xff]  ;;  %v13564_v62 = vld [vmem:[#allocation161_spill] sm:$0xff] }
 0x66a   : > { %v2576_v22 = vpop.f32.mrb[95].mxu1  ;;  %6740 = vmatprep.subr.bf16.mxu1 %v13556_v49  ;;  %6772 = vmatprep.subr.bf16.mxu0 %v13557_v48  ;;  %v13566_v49 = vld [vmem:[#allocation163_spill] sm:$0xff] }
 0x66b   : > { %2798 = vmatprep.mubr.f32.mxu0 %v2576_v22  ;;  %v13567_v22 = vld [vmem:[#allocation164_spill] sm:$0xff] }
 0x66c   : > { %2799 = vmatmul.mubr.f32.gmra.mrb[62].mxu0 %v2574_v19  ;;  %v13568_v19 = vld [vmem:[#allocation165_spill] sm:$0xff] }
 0x66d   : > { %6742 = vmatpush1.bf16.msra.mxu1 %v13558_v10  ;;  %6774 = vmatpush1.bf16.msra.mxu0 %v13559_v16  ;;  %v13569_v10 = vld [vmem:[#allocation166_spill] sm:$0xff]  ;;  %v13570_v16 = vld [vmem:[#allocation167_spill] sm:$0xff] }
 0x66e   : > { %6776 = vmatprep.subr.bf16.mxu0 %v13560_v61  ;;  %v13571_v61 = vld [vmem:[#allocation168_spill] sm:$0xff] }
 0x671   : > { %6778 = vmatpush1.bf16.msra.mxu0 %v13561_v47  ;;  %v13572_v47 = vld [vmem:[#allocation169_spill] sm:$0xff] }
 0x672   : > { %6780 = vmatprep.subr.bf16.mxu0 %v13562_v13  ;;  %v13573_v13 = vld [vmem:[#allocation170_spill] sm:$0xff] }
 0x675   : > { %6782 = vmatpush1.bf16.msra.mxu0 %v13563_v1  ;;  %v13574_v1 = vld [vmem:[#allocation171_spill] sm:$0xff] }
 0x676   : > { %6784 = vmatprep.subr.bf16.mxu0 %v13564_v62  ;;  %v13575_v62 = vld [vmem:[#allocation172_spill] sm:$0xff] }
 0x679   : > { %6786 = vmatpush1.bf16.msra.mxu0 %v13565_v40 }
 0x67a   : > { %6788 = vmatprep.subr.bf16.mxu0 %v13566_v49 }
 0x67d   : > { %6790 = vmatpush1.bf16.msra.mxu0 %v13567_v22 }
 0x67e   : > { %6792 = vmatprep.subr.bf16.mxu0 %v13568_v19 }
 0x681   : > { %6794 = vmatpush1.bf16.msra.mxu0 %v13569_v10 }
 0x682   : > { %6796 = vmatprep.subr.bf16.mxu0 %v13570_v16 }
 0x685   : > { %6798 = vmatpush1.bf16.msra.mxu0 %v13571_v61 }
 0x686   : > { %6800 = vmatprep.subr.bf16.mxu0 %v13572_v47 }
 0x689   : > { %6802 = vmatpush1.bf16.msra.mxu0 %v13573_v13 }
 0x68a   : > { %6804 = vmatprep.subr.bf16.mxu0 %v13574_v1 }
 0x68d   : > { %6806 = vmatpush1.bf16.msra.mxu0 %v13575_v62 }
 0x68e   : > { %6824 = vmatprep.subr.bf16.mxu0 %v13480_v18 }
 0x703   : > { %v2645_v49 = vpop.f32.mrb[96].mxu1 }
 0x704   : > { %v2647_v22 = vpop.f32.mrb[97].mxu1 }
 0x707   : > { %v2651_v40 = vpop.f32.mrb[98].mxu1 }
 0x708   : > { %v2653_v19 = vpop.f32.mrb[99].mxu1 }
 0x70b   : > { %v2657_v48 = vpop.f32.mrb[100].mxu1 }
 0x70c   : > { %v2659_v10 = vpop.f32.mrb[101].mxu1 }
 0x70f   : > { %v2663_v33 = vpop.f32.mrb[102].mxu1 }
 0x710   : > { %v2665_v16 = vpop.f32.mrb[103].mxu1 }
 0x713   : > { %v2669_v37 = vpop.f32.mrb[104].mxu1 }
 0x714   : > { %v2671_v61 = vpop.f32.mrb[105].mxu1 }
 0x717   : > { %v10408_v14 = vpop.f32.mrb[106].mxu1 }
 0x718   : > { %v10410_v47 = vpop.f32.mrb[107].mxu1 }
 0x71b   : > { %v10412_v13 = vpop.f32.mrb[108].mxu1 }
 0x71c   : > { %v10414_v1 = vpop.f32.mrb[109].mxu1 }
 0x71f   : > { %v10416_v62 = vpop.f32.mrb[110].mxu1 }
 0x720   : > { %v10418_v18 = vpop.f32.mrb[111].mxu1 }
 0x723   : > { %v2758_v28 = vpop.f32.mrb[48].mxu0 }
 0x724   : > { %v2805_v43 = vsub.f32 %v2645_v49, %v2758_v28  ;;  %v2760_v8 = vpop.f32.mrb[49].mxu0  ;;  %v13577_v28 = vld [vmem:[#allocation117_spill] sm:$0xff] }
 0x725   : > { %v2806_v30 = vsub.f32 %v2647_v22, %v2760_v8 }
 0x726   : > { %v2821_v3 = vadd.f32 %v2805_v43, %v10126_v53 }
 0x727   : > { %v2822_v54 = vadd.f32 %v2806_v30, %v10118_v31  ;;  %v2764_v57 = vpop.f32.mrb[50].mxu0  ;;  %v13580_v31 = vld [vmem:[#allocation116_spill] sm:$0xff] }
 0x728   : > { %v2837_v63 = vmul.f32 %v2821_v3, %v13576_v60  ;;  %v2807_v51 = vsub.f32 %v2651_v40, %v2764_v57  ;;  %v2766_v24 = vpop.f32.mrb[51].mxu0 }
 0x729   : > { %v2838_v32 = vmul.f32 %v2822_v54, %v13576_v60  ;;  %v2808_v9 = vsub.f32 %v2653_v19, %v2766_v24 }
 0x72a   : > { %v2823_v50 = vadd.f32 %v2807_v51, %v10112_v52  ;;  %v10430_v53 = vadd.f32 %v2837_v63, %v13577_v28  ;;  %v13583_v63 = vld [vmem:[#allocation119_spill] sm:$0xff] }
 0x72b   : > { %v2824_v44 = vadd.f32 %v2808_v9, %v10121_v41  ;;  %v2770_v42 = vpop.f32.mrb[52].mxu0  ;;  %v10427_v49 = vadd.f32 %v2838_v32, %v13577_v28  ;;  %v13581_v32 = vld [vmem:[#allocation118_spill] sm:$0xff] }
 0x72c   : > { %13579 = vst [vmem:[#allocation185_spill] sm:$0xff] %v10430_v53  ;;  %v2839_v8 = vmul.f32 %v2823_v50, %v13580_v31  ;;  %v2809_v43 = vsub.f32 %v2657_v48, %v2770_v42  ;;  %v2772_v3 = vpop.f32.mrb[53].mxu0  ;;  %v13585_v48 = vld [vmem:[#allocation120_spill] sm:$0xff] }
 0x72d   : > { %13578 = vst [vmem:[#allocation177_spill] sm:$0xff] %v10427_v49  ;;  %v2840_v57 = vmul.f32 %v2824_v44, %v13580_v31  ;;  %v2810_v30 = vsub.f32 %v2659_v10, %v2772_v3  ;;  %2933 = vmatprep.mubr.f32.mxu1 %v10427_v49 }
 0x72e   : > { %v2825_v54 = vadd.f32 %v2809_v43, %v10155_v2  ;;  %2934 = vmatmul.mubr.f32.vlgmr.msra.gmra.mrb[112].mxu1 %v10430_v53  ;;  %v10443_v41 = vadd.f32 %v2839_v8, %v13581_v32 }
 0x72f   : > { %v2826_v51 = vadd.f32 %v2810_v30, %v10149_v0  ;;  %v2776_v24 = vpop.f32.mrb[54].mxu0  ;;  %v10439_v9 = vadd.f32 %v2840_v57, %v13581_v32 }
 0x730   : > { %v2841_v52 = vmul.f32 %v2825_v54, %v13583_v63  ;;  %v2811_v50 = vsub.f32 %v2663_v33, %v2776_v24  ;;  %v2778_v42 = vpop.f32.mrb[55].mxu0  ;;  %13584 = vst [vmem:[#allocation22_spill] sm:$0xff] %v10443_v41  ;;  %v13587_v33 = vld [vmem:[#allocation121_spill] sm:$0xff]  ;;  %v13589_v54 = vld [vmem:[#allocation124_spill] sm:$0xff] }
 0x731   : > { %13582 = vst [vmem:[#allocation184_spill] sm:$0xff] %v10439_v9  ;;  %v2842_v44 = vmul.f32 %v2826_v51, %v13583_v63  ;;  %v2812_v10 = vsub.f32 %v2665_v16, %v2778_v42  ;;  %2939 = vmatprep.mubr.f32.mxu1 %v10439_v9 }
 0x732   : > { %v2827_v2 = vadd.f32 %v2811_v50, %v10146_v55  ;;  %2940 = vmatmul.mubr.f32.gmra.mrb[114].mxu1 %v10443_v41  ;;  %v10455_v3 = vadd.f32 %v2841_v52, %v13585_v48 }
 0x733   : > { %v2828_v0 = vadd.f32 %v2812_v10, %v10152_v59  ;;  %v2782_v40 = vpop.f32.mrb[56].mxu0  ;;  %v10451_v22 = vadd.f32 %v2842_v44, %v13585_v48 }
 0x734   : > { %v2843_v19 = vmul.f32 %v2827_v2, %v13587_v33  ;;  %v2813_v43 = vsub.f32 %v2669_v37, %v2782_v40  ;;  %v2784_v8 = vpop.f32.mrb[57].mxu0  ;;  %13588 = vst [vmem:[#allocation122_spill] sm:$0xff] %v10455_v3  ;;  %v13591_v37 = vld [vmem:[#allocation127_spill] sm:$0xff]  ;;  %v13593_v2 = vld [vmem:[#allocation129_spill] sm:$0xff] }
 0x735   : > { %13586 = vst [vmem:[#allocation20_spill] sm:$0xff] %v10451_v22  ;;  %v2844_v16 = vmul.f32 %v2828_v0, %v13587_v33  ;;  %v2814_v57 = vsub.f32 %v2671_v61, %v2784_v8  ;;  %2945 = vmatprep.mubr.f32.mxu1 %v10451_v22 }
 0x736   : > { %v2829_v55 = vadd.f32 %v2813_v43, %v10198_v27  ;;  %2946 = vmatmul.mubr.f32.gmra.mrb[116].mxu1 %v10455_v3  ;;  %v10468_v42 = vadd.f32 %v2843_v19, %v13589_v54 }
 0x737   : > { %v2830_v59 = vadd.f32 %v2814_v57, %v10190_v7  ;;  %v2788_v30 = vpop.f32.mrb[58].mxu0  ;;  %v10463_v51 = vadd.f32 %v2844_v16, %v13589_v54 }
 0x738   : > { %v2845_v24 = vmul.f32 %v2829_v55, %v13591_v37  ;;  %v2815_v52 = vsub.f32 %v10408_v14, %v2788_v30  ;;  %v2790_v50 = vpop.f32.mrb[59].mxu0  ;;  %13592 = vst [vmem:[#allocation126_spill] sm:$0xff] %v10468_v42  ;;  %v13595_v14 = vld [vmem:[#allocation131_spill] sm:$0xff]  ;;  %v13597_v55 = vld [vmem:[#allocation134_spill] sm:$0xff] }
 0x739   : > { %13590 = vst [vmem:[#allocation123_spill] sm:$0xff] %v10463_v51  ;;  %v2846_v61 = vmul.f32 %v2830_v59, %v13591_v37  ;;  %v2816_v27 = vsub.f32 %v10410_v47, %v2790_v50  ;;  %2951 = vmatprep.mubr.f32.mxu1 %v10463_v51 }
 0x73a   : > { %v2831_v7 = vadd.f32 %v2815_v52, %v10184_v17  ;;  %2952 = vmatmul.mubr.f32.gmra.mrb[118].mxu1 %v10468_v42  ;;  %v10482_v8 = vadd.f32 %v2845_v24, %v13593_v2 }
 0x73b   : > { %v2832_v44 = vadd.f32 %v2816_v27, %v10193_v56  ;;  %v2794_v10 = vpop.f32.mrb[60].mxu0  ;;  %v10477_v0 = vadd.f32 %v2846_v61, %v13593_v2  ;;  %v13601_v27 = vld [vmem:[#allocation139_spill] sm:$0xff] }
 0x73c   : > { %v2847_v40 = vmul.f32 %v2831_v7, %v13595_v14  ;;  %v2817_v19 = vsub.f32 %v10412_v13, %v2794_v10  ;;  %v2796_v43 = vpop.f32.mrb[61].mxu0  ;;  %13596 = vst [vmem:[#allocation128_spill] sm:$0xff] %v10482_v8  ;;  %v13599_v13 = vld [vmem:[#allocation137_spill] sm:$0xff] }
 0x73d   : > { %13594 = vst [vmem:[#allocation125_spill] sm:$0xff] %v10477_v0  ;;  %v2848_v47 = vmul.f32 %v2832_v44, %v13595_v14  ;;  %v2818_v17 = vsub.f32 %v10414_v1, %v2796_v43  ;;  %2957 = vmatprep.mubr.f32.mxu1 %v10477_v0  ;;  %v13608_v43 = vld [vmem:[#allocation173_spill] sm:$0xff] }
 0x73e   : > { %v2833_v56 = vadd.f32 %v2817_v19, %v10227_v23  ;;  %2958 = vmatmul.mubr.f32.gmra.mrb[120].mxu1 %v10482_v8  ;;  %v10496_v50 = vadd.f32 %v2847_v40, %v13597_v55 }
 0x73f   : > { %v2834_v16 = vadd.f32 %v2818_v17, %v10221_v39  ;;  %v2800_v57 = vpop.f32.mrb[62].mxu0  ;;  %v10491_v59 = vadd.f32 %v2848_v47, %v13597_v55 }
 0x740   : > { %v2849_v30 = vmul.f32 %v2833_v56, %v13599_v13  ;;  %v2819_v24 = vsub.f32 %v10416_v62, %v2800_v57  ;;  %v2802_v52 = vpop.f32.mrb[63].mxu0  ;;  %13600 = vst [vmem:[#allocation133_spill] sm:$0xff] %v10496_v50  ;;  %v13603_v62 = vld [vmem:[#allocation141_spill] sm:$0xff]  ;;  %v13609_v56 = vld [vmem:[#allocation174_spill] sm:$0xff] }
 0x741   : > { %13598 = vst [vmem:[#allocation130_spill] sm:$0xff] %v10491_v59  ;;  %v2850_v1 = vmul.f32 %v2834_v16, %v13599_v13  ;;  %v2820_v23 = vsub.f32 %v10418_v18, %v2802_v52  ;;  %2963 = vmatprep.mubr.f32.mxu1 %v10491_v59  ;;  %v13605_v18 = vld [vmem:[#allocation144_spill] sm:$0xff] }
 0x742   : > { %v2835_v39 = vadd.f32 %v2819_v24, %v10218_v15  ;;  %2964 = vmatmul.mubr.f32.gmra.mrb[122].mxu1 %v10496_v50  ;;  %v10509_v10 = vadd.f32 %v2849_v30, %v13601_v27 }
 0x743   : > { %v2836_v61 = vadd.f32 %v2820_v23, %v10224_v46  ;;  %v10505_v7 = vadd.f32 %v2850_v1, %v13601_v27 }
 0x744   : > { %v2851_v44 = vmul.f32 %v2835_v39, %v13603_v62  ;;  %13604 = vst [vmem:[#allocation135_spill] sm:$0xff] %v10509_v10 }
 0x745   : > { %13602 = vst [vmem:[#allocation132_spill] sm:$0xff] %v10505_v7  ;;  %v2852_v40 = vmul.f32 %v2836_v61, %v13603_v62  ;;  %2969 = vmatprep.mubr.f32.mxu1 %v10505_v7 }
 0x746   : > { %2970 = vmatmul.mubr.f32.gmra.mrb[124].mxu1 %v10509_v10  ;;  %v10518_v19 = vadd.f32 %v2851_v44, %v13605_v18 }
 0x747   : > { %v10515_v15 = vadd.f32 %v2852_v40, %v13605_v18 }
 0x748   : > { %13607 = vst [vmem:[#allocation140_spill] sm:$0xff] %v10518_v19 }
 0x749   : > { %13606 = vst [vmem:[#allocation136_spill] sm:$0xff] %v10515_v15  ;;  %2975 = vmatprep.mubr.f32.mxu1 %v10515_v15 }
 0x74a   : > { %2976 = vmatmul.mubr.f32.gmra.mrb[126].mxu1 %v10518_v19 }
 0x74b   : > { %3639 = vmatprep.mubr.f32.mxu1 %v13481_v34 }
 0x801   : > { %v2935_v46 = vpop.f32.mrb[112].mxu1 }
 0x802   : > { %v2936_v47 = vadd.f32 %v2935_v46, %v13608_v43  ;;  %v2937_v17 = vpop.f32.mrb[113].mxu1 }
 0x803   : > { %v2938_v16 = vadd.f32 %v2937_v17, %v13609_v56 }
 0x804   : > { %v2998_v57 = vmul.f32 0.70710677, %v2936_v47  ;;  %v10527_v2 = vmul.f32 0.5, %v2936_v47 }
 0x805   : > { %v2999_v30 = vmul.f32 0.70710677, %v2938_v16  ;;  %v2941_v24 = vpop.f32.mrb[114].mxu1  ;;  %v10533_v63 = vmul.f32 0.5, %v2938_v16 }
 0x806   : > { %v3046_v52 = vand.u32 2147483647, %v2998_v57  ;;  %v2942_v1 = vadd.f32 %v2941_v24, %v13608_v43  ;;  %v2943_v23 = vpop.f32.mrb[115].mxu1  ;;  %vm3014_vm2 = vcmp.ge.f32.partialorder %v2998_v57, 0.0 }
 0x807   : > { %v2944_v39 = vadd.f32 %v2943_v23, %v13609_v56  ;;  %v3047_v44 = vand.u32 2147483647, %v2999_v30  ;;  %vm3015_vm3 = vcmp.ge.f32.partialorder %v2999_v30, 0.0 }
 0x808   : > { %v3062_v61 = vmul.f32 0.3275911, %v3046_v52  ;;  %v3000_v40 = vmul.f32 0.70710677, %v2942_v1  ;;  %v3270_v62 = vsub.f32 0.0, %v3046_v52  ;;  %v10541_v60 = vsel %vm3015_vm3, 1.0, %v13408_v11 }
 0x809   : > { %v3001_v27 = vmul.f32 0.70710677, %v2944_v39  ;;  %v2947_v13 = vpop.f32.mrb[116].mxu1  ;;  %v3063_v17 = vmul.f32 0.3275911, %v3047_v44  ;;  %v3271_v14 = vsub.f32 0.0, %v3047_v44 }
 0x80a   : > { %v3078_v18 = vadd.f32 1.0, %v3062_v61  ;;  %v3048_v46 = vand.u32 2147483647, %v3000_v40  ;;  %v2949_v55 = vpop.f32.mrb[117].mxu1  ;;  %v3286_v24 = vmul.f32 %v3270_v62, %v3046_v52  ;;  %v2948_v23 = vadd.f32 %v2947_v13, %v13608_v43 }
 0x80b   : > { %v3049_v33 = vand.u32 2147483647, %v3001_v27  ;;  %v10531_v61 = vsel %vm3014_vm2, 1.0, %v13408_v11  ;;  %v2950_v57 = vadd.f32 %v2949_v55, %v13609_v56  ;;  %v3287_v32 = vmul.f32 %v3271_v14, %v3047_v44 }
 0x80c   : > { %7491 = vrcp.f32 %v3078_v18  ;;  %v3272_v54 = vsub.f32 0.0, %v3048_v46  ;;  %v3079_v18 = vadd.f32 1.0, %v3063_v17  ;;  %vm3016_vm4 = vcmp.ge.f32.partialorder %v3000_v40, 0.0 }
 0x80d   : > { %v2953_v37 = vpop.f32.mrb[118].mxu1  ;;  %v10536_v47 = vmul.f32 0.70710677, %v2948_v23  ;;  %v3064_v31 = vmul.f32 0.3275911, %v3048_v46  ;;  %v3273_v62 = vsub.f32 0.0, %v3049_v33 }
 0x80e   : > { %v2955_v48 = vpop.f32.mrb[119].mxu1  ;;  %v10538_v52 = vmul.f32 0.70710677, %v2950_v57  ;;  %v3302_v13 = vmul.f32 1.442695, %v3286_v24  ;;  %v3288_v34 = vmul.f32 %v3272_v54, %v3048_v46  ;;  %v10544_v15 = vmul.f32 0.5, %v2942_v1 }
 0x80f   : > { %v3050_v16 = vand.u32 2147483647, %v10536_v47  ;;  %v10547_v14 = vsel %vm3016_vm4, 1.0, %v13408_v11  ;;  %v10549_v55 = vmul.f32 0.5, %v2944_v39  ;;  %v3304_v40 = vmul.f32 1.442695, %v3287_v32 }
 0x810   : > { %v3051_v44 = vand.u32 2147483647, %v10538_v52  ;;  %vm3017_vm5 = vcmp.ge.f32.partialorder %v3001_v27, 0.0  ;;  %v3065_v17 = vmul.f32 0.3275911, %v3049_v33  ;;  %7493 = vrcp.f32 %v3079_v18 }
 0x811   : > { %v2959_v28 = vpop.f32.mrb[120].mxu1  ;;  %v3274_v24 = vsub.f32 0.0, %v3050_v16  ;;  %v3080_v19 = vadd.f32 1.0, %v3064_v31  ;;  %v3289_v10 = vmul.f32 %v3273_v62, %v3049_v33  ;;  %v2954_v54 = vadd.f32 %v2953_v37, %v13608_v43 }
 0x812   : > { %v2961_v30 = vpop.f32.mrb[121].mxu1  ;;  %7495 = vpow2.f32 %v3302_v13  ;;  %v3306_v1 = vmul.f32 1.442695, %v3288_v34  ;;  %v3066_v59 = vmul.f32 0.3275911, %v3050_v16  ;;  %v2956_v39 = vadd.f32 %v2955_v48, %v13609_v56 }
 0x813   : > { %v10560_v27 = vsel %vm3017_vm5, 1.0, %v13408_v11  ;;  %v3067_v18 = vmul.f32 0.3275911, %v3051_v44  ;;  %v3275_v31 = vsub.f32 0.0, %v3051_v44  ;;  %7497 = vpow2.f32 %v3304_v40 }
 0x814   : > { %v3081_v33 = vadd.f32 1.0, %v3065_v17  ;;  %v3290_v37 = vmul.f32 %v3274_v24, %v3050_v16  ;;  %v3004_v62 = vmul.f32 0.70710677, %v2954_v54  ;;  %7499 = vrcp.f32 %v3080_v19 }
 0x815   : > { %v2965_v46 = vpop.f32.mrb[122].mxu1  ;;  %v3308_v13 = vmul.f32 1.442695, %v3289_v10  ;;  %v10562_v34 = vmul.f32 0.5, %v2948_v23  ;;  %v3082_v0 = vadd.f32 1.0, %v3066_v59  ;;  %v2960_v42 = vadd.f32 %v2959_v28, %v13608_v43 }
 0x816   : > { %v10553_v7 = vpop.eup %7491  ;;  %v10556_v50 = vpop.f32.mrb[123].mxu1  ;;  %v3052_v48 = vand.u32 2147483647, %v3004_v62  ;;  %v3005_v51 = vmul.f32 0.70710677, %v2956_v39  ;;  %7501 = vpow2.f32 %v3306_v1  ;;  %v3083_v9 = vadd.f32 1.0, %v3067_v18 }
 0x817   : > { %v3126_v32 = vmul.f32 1.0614054, %v10553_v7  ;;  %v3291_v40 = vmul.f32 %v3275_v31, %v3051_v44  ;;  %7503 = vrcp.f32 %v3081_v33  ;;  %vm3018_vm6 = vcmp.ge.f32.partialorder %v10536_v47, 0.0 }
 0x818   : > { %v3310_v10 = vmul.f32 1.442695, %v3290_v37  ;;  %v10571_v19 = vmul.f32 0.5, %v2950_v57  ;;  %7505 = vpow2.f32 %v3308_v13  ;;  %vm3019_vm7 = vcmp.ge.f32.partialorder %v10538_v52, 0.0 }
 0x819   : > { %v3142_v8 = vadd.f32 -1.4531521, %v3126_v32  ;;  %v10565_v3 = vpop.f32.mrb[124].mxu1  ;;  %v10574_v28 = vmul.f32 0.70710677, %v2960_v42  ;;  %7507 = vrcp.f32 %v3082_v0  ;;  %v2962_v44 = vadd.f32 %v2961_v30, %v13609_v56 }
 0x81a   : > { %v10568_v17 = vpop.f32.mrb[125].mxu1  ;;  %v3053_v16 = vand.u32 2147483647, %v3005_v51  ;;  %v10581_v1 = vpop.eup %7493  ;;  %7509 = vrcp.f32 %v3083_v9  ;;  %v3312_v47 = vmul.f32 1.442695, %v3291_v40  ;;  %v10588_v32 = vsel %vm3019_vm7, 1.0, %v13408_v11 }
 0x81b   : > { %v3158_v22 = vmul.f32 %v10553_v7, %v3142_v8  ;;  %v3276_v8 = vsub.f32 0.0, %v3052_v48  ;;  %7511 = vpow2.f32 %v3310_v10  ;;  %v10590_v0 = vmul.f32 0.5, %v2954_v54 }
 0x81c   : > { %v7496_v52 = vpop.eup %7495  ;;  %v3054_v30 = vand.u32 2147483647, %v10574_v28  ;;  %vm3020_vm8 = vcmp.ge.f32.partialorder %v3004_v62, 0.0  ;;  %v3068_v31 = vmul.f32 0.3275911, %v3052_v48  ;;  %vm3021_vm9 = vcmp.ge.f32.partialorder %v3005_v51, 0.0 }
 0x81d   : > { %v3174_v59 = vadd.f32 1.4214138, %v3158_v22  ;;  %v10576_v23 = vpop.f32.mrb[126].mxu1  ;;  %v10585_v22 = vsel %vm3018_vm6, 1.0, %v13408_v11  ;;  %v10593_v33 = vpop.eup %7497  ;;  %v3292_v37 = vmul.f32 %v3276_v8, %v3052_v48  ;;  %v3277_v13 = vsub.f32 0.0, %v3053_v16 }
 0x81e   : > { %v10579_v24 = vpop.f32.mrb[127].mxu1  ;;  %v2966_v9 = vadd.f32 %v2965_v46, %v13608_v43  ;;  %v10596_v40 = vpop.eup %7499  ;;  %7513 = vpow2.f32 %v3312_v47  ;;  %v10599_v54 = vmul.f32 0.5, %v2956_v39  ;;  %v3069_v41 = vmul.f32 0.3275911, %v3053_v16 }
 0x81f   : > { %v3190_v57 = vmul.f32 %v10553_v7, %v3174_v59  ;;  %v3007_v59 = vmul.f32 0.70710677, %v2962_v44  ;;  %v10605_v51 = vsel %vm3021_vm9, 1.0, %v13408_v11  ;;  %v3278_v62 = vsub.f32 0.0, %v3054_v30 }
 0x820   : > { %v10607_v8 = vpop.eup %7501  ;;  %v3084_v46 = vadd.f32 1.0, %v3068_v31  ;;  %v10609_v49 = vmul.f32 0.5, %v2960_v42  ;;  %vm3022_vm10 = vcmp.ge.f32.partialorder %v10574_v28, 0.0  ;;  %v3314_v39 = vmul.f32 1.442695, %v3292_v37 }
 0x821   : > { %v3206_v18 = vadd.f32 -0.28449672, %v3190_v57  ;;  %v10602_v57 = vsel %vm3020_vm8, 1.0, %v13408_v11  ;;  %v3055_v48 = vand.u32 2147483647, %v3007_v59  ;;  %v10612_v47 = vpop.eup %7503  ;;  %v10618_v38 = vadd.f32 %v10556_v50, %v13609_v56 }
 0x822   : > { %13610 = vst [vmem:[#allocation138_spill] sm:$0xff] %v10609_v49  ;;  %v10614_v58 = vmul.f32 0.70710677, %v2966_v9  ;;  %v10620_v35 = vpop.eup %7505  ;;  %v3070_v31 = vmul.f32 0.3275911, %v3054_v30  ;;  %v3294_v36 = vmul.f32 %v3278_v62, %v3054_v30  ;;  %v10625_v45 = vmul.f32 0.5, %v2962_v44 }
 0x823   : > { %v3222_v10 = vmul.f32 %v10553_v7, %v3206_v18  ;;  %v3293_v18 = vmul.f32 %v3277_v13, %v3053_v16  ;;  %v3279_v42 = vsub.f32 0.0, %v3055_v48  ;;  %v10623_v49 = vpop.eup %7507  ;;  %v3071_v37 = vmul.f32 0.3275911, %v3055_v48 }
 0x824   : > { %13611 = vst [vmem:[#allocation142_spill] sm:$0xff] %v10625_v45  ;;  %v3056_v16 = vand.u32 2147483647, %v10614_v58  ;;  %v10628_v13 = vpop.eup %7509  ;;  %7515 = vrcp.f32 %v3084_v46  ;;  %v10631_v50 = vmul.f32 0.70710677, %v10618_v38  ;;  %v10641_v30 = vadd.f32 %v10568_v17, %v13609_v56 }
 0x825   : > { %v3238_v53 = vadd.f32 0.2548296, %v3222_v10  ;;  %v3085_v10 = vadd.f32 1.0, %v3069_v41  ;;  %v10637_v41 = vpop.eup %7511  ;;  %7517 = vpow2.f32 %v3314_v39  ;;  %v3086_v62 = vadd.f32 1.0, %v3070_v31 }
 0x826   : > { %v3280_v44 = vsub.f32 0.0, %v3056_v16  ;;  %13613 = vst [vmem:[#allocation146_spill] sm:$0xff] %v10641_v30  ;;  %v3318_v46 = vmul.f32 1.442695, %v3294_v36  ;;  %vm3023_vm11 = vcmp.ge.f32.partialorder %v3007_v59, 0.0  ;;  %v3087_v12 = vadd.f32 1.0, %v3071_v37 }
 0x827   : > { %v3254_v6 = vmul.f32 %v10553_v7, %v3238_v53  ;;  %v10635_v53 = vadd.f32 %v10565_v3, %v13608_v43  ;;  %v3316_v7 = vmul.f32 1.442695, %v3293_v18  ;;  %7519 = vrcp.f32 %v3085_v10 }
 0x828   : > { %v3072_v45 = vmul.f32 0.3275911, %v3056_v16  ;;  %v10644_v3 = vpop.eup %7513  ;;  %v3296_v20 = vmul.f32 %v3280_v44, %v3056_v16  ;;  %v10652_v17 = vsel %vm3022_vm10, 1.0, %v13408_v11  ;;  %v10657_v36 = vmul.f32 0.70710677, %v10641_v30 }
 0x829   : > { %v3334_v5 = vmul.f32 %v7496_v52, %v3254_v6  ;;  %13612 = vst [vmem:[#allocation143_spill] sm:$0xff] %v10635_v53  ;;  %v3295_v6 = vmul.f32 %v3279_v42, %v3055_v48  ;;  %v3057_v52 = vand.u32 2147483647, %v10631_v50  ;;  %v10647_v18 = vmul.f32 0.70710677, %v10635_v53  ;;  %13615 = vst [vmem:[#allocation29_spill] sm:$0xff] %v10652_v17 }
 0x82a   : > { %7521 = vpow2.f32 %v3316_v7  ;;  %v10654_v48 = vmul.f32 0.5, %v2966_v9  ;;  %13617 = vst [vmem:[#allocation31_spill] sm:$0xff] %v10657_v36  ;;  %v10660_v59 = vsel %vm3023_vm11, 1.0, %v13408_v11  ;;  %v3088_v31 = vadd.f32 1.0, %v3072_v45 }
 0x82b   : > { %v3350_v4 = vsub.f32 1.0, %v3334_v5  ;;  %v3281_v39 = vsub.f32 0.0, %v3057_v52  ;;  %13614 = vst [vmem:[#allocation145_spill] sm:$0xff] %v10647_v18  ;;  %7523 = vrcp.f32 %v3086_v62  ;;  %13618 = vst [vmem:[#allocation32_spill] sm:$0xff] %v10660_v59  ;;  %v3320_v5 = vmul.f32 1.442695, %v3295_v6 }
 0x82c   : > { %13616 = vst [vmem:[#allocation30_spill] sm:$0xff] %v10654_v48  ;;  %v3073_v10 = vmul.f32 0.3275911, %v3057_v52  ;;  %7525 = vpow2.f32 %v3318_v46  ;;  %v3058_v37 = vand.u32 2147483647, %v10647_v18  ;;  %vm3024_vm12 = vcmp.ge.f32.partialorder %v10614_v58, 0.0 }
 0x82d   : > { %v3297_v42 = vmul.f32 %v3281_v39, %v3057_v52  ;;  %v3366_v28 = vmul.f32 %v3350_v4, %v10531_v61  ;;  %7527 = vrcp.f32 %v3087_v12  ;;  %v3322_v9 = vmul.f32 1.442695, %v3296_v20 }
 0x82e   : > { %v3074_v16 = vmul.f32 0.3275911, %v3058_v37  ;;  %v3282_v7 = vsub.f32 0.0, %v3058_v37  ;;  %v3059_v44 = vand.u32 2147483647, %v10657_v36  ;;  %v10668_v62 = vadd.f32 %v10576_v23, %v13608_v43  ;;  %v10670_v6 = vpop.eup %7515 }
 0x82f   : > { %7529 = vpow2.f32 %v3320_v5  ;;  %vm3025_vm13 = vcmp.ge.f32.partialorder %v10631_v50, 0.0  ;;  %v3089_v45 = vadd.f32 1.0, %v3073_v10  ;;  %v10675_v12 = vadd.f32 %v10579_v24, %v13609_v56  ;;  %v10677_v4 = vpop.eup %7517 }
 0x830   : > { %13619 = vst [vmem:[#allocation196_spill] sm:$0xff] %v10668_v62  ;;  %7531 = vrcp.f32 %v3088_v31  ;;  %v3324_v20 = vmul.f32 1.442695, %v3297_v42  ;;  %v3298_v61 = vmul.f32 %v3282_v7, %v3058_v37  ;;  %v3075_v52 = vmul.f32 0.3275911, %v3059_v44 }
 0x831   : > { %13620 = vst [vmem:[#allocation197_spill] sm:$0xff] %v10675_v12  ;;  %v10679_v46 = vpop.eup %7519  ;;  %v3382_v23 = vadd.f32 1.0, %v3366_v28  ;;  %v3283_v39 = vsub.f32 0.0, %v3059_v44  ;;  %v10682_v43 = vmul.f32 0.70710677, %v10668_v62  ;;  %7533 = vpow2.f32 %v3322_v9 }
 0x832   : > { %v10685_v5 = vmul.f32 0.70710677, %v10675_v12  ;;  %v3090_v10 = vadd.f32 1.0, %v3074_v16  ;;  %v3127_v24 = vmul.f32 1.0614054, %v10581_v1  ;;  %7535 = vrcp.f32 %v3089_v45 }
 0x833   : > { %13621 = vst [vmem:[#allocation198_spill] sm:$0xff] %v10682_v43  ;;  %v3129_v56 = vmul.f32 1.0614054, %v10612_v47  ;;  %v3326_v31 = vmul.f32 1.442695, %v3298_v61  ;;  %v10696_v7 = vsel %vm3024_vm12, 1.0, %v13408_v11  ;;  %7537 = vpow2.f32 %v3324_v20 }
 0x834   : > { %13622 = vst [vmem:[#allocation199_spill] sm:$0xff] %v10685_v5  ;;  %v3060_v42 = vand.u32 2147483647, %v10682_v43  ;;  %v3061_v37 = vand.u32 2147483647, %v10685_v5  ;;  %v10691_v28 = vpop.eup %7521  ;;  %13623 = vst [vmem:[#allocation200_spill] sm:$0xff] %v10696_v7  ;;  %v3299_v62 = vmul.f32 %v3283_v39, %v3059_v44  ;;  %7539 = vrcp.f32 %v3090_v10 }
 0x835   : > { %v10699_v9 = vmul.f32 0.5, %v10618_v38  ;;  %v10704_v16 = vsel %vm3025_vm13, 1.0, %v13408_v11  ;;  %v10706_v45 = vpop.eup %7523  ;;  %v3091_v61 = vadd.f32 1.0, %v3075_v52  ;;  %v3143_v30 = vadd.f32 -1.4531521, %v3127_v24 }
 0x836   : > { %13625 = vst [vmem:[#allocation202_spill] sm:$0xff] %v10704_v16  ;;  %v3076_v12 = vmul.f32 0.3275911, %v3060_v42  ;;  %v3284_v53 = vsub.f32 0.0, %v3060_v42  ;;  %v10708_v48 = vpop.eup %7525  ;;  %v3077_v58 = vmul.f32 0.3275911, %v3061_v37  ;;  %7541 = vpow2.f32 %v3326_v31 }
 0x837   : > { %13624 = vst [vmem:[#allocation201_spill] sm:$0xff] %v10699_v9  ;;  %13626 = vst [vmem:[#allocation203_spill] sm:$0xff] %v10708_v48  ;;  %v3145_v5 = vadd.f32 -1.4531521, %v3129_v56  ;;  %v10710_v38 = vpop.eup %7527  ;;  %v10713_v9 = vmul.f32 %v3382_v23, %v10527_v2  ;;  %v3285_v50 = vsub.f32 0.0, %v3061_v37  ;;  %v3159_v44 = vmul.f32 %v10581_v1, %v3143_v30 }
 0x838   : > { %v3128_v20 = vmul.f32 1.0614054, %v10596_v40  ;;  %v3300_v7 = vmul.f32 %v3284_v53, %v3060_v42  ;;  %v3131_v39 = vmul.f32 1.0614054, %v10628_v13  ;;  %7543 = vrcp.f32 %v3091_v61 }
 0x839   : > { %v3161_v52 = vmul.f32 %v10612_v47, %v3145_v5  ;;  %v10719_v10 = vpop.eup %7529  ;;  %v10721_v56 = vmul.f32 1.442695, %v3299_v62  ;;  %v3130_v2 = vmul.f32 1.0614054, %v10623_v49  ;;  %v3092_v31 = vadd.f32 1.0, %v3076_v12 }
 0x83a   : > { %v3144_v24 = vadd.f32 -1.4531521, %v3128_v20  ;;  %v10724_v23 = vpop.eup %7531  ;;  %v3093_v16 = vadd.f32 1.0, %v3077_v58  ;;  %v3175_v43 = vadd.f32 1.4214138, %v3159_v44  ;;  %v10726_v42 = vmul.f32 %v3285_v50, %v3061_v37 }
 0x83b   : > { %v3177_v53 = vadd.f32 1.4214138, %v3161_v52  ;;  %v3147_v5 = vadd.f32 -1.4531521, %v3131_v39  ;;  %v3146_v17 = vadd.f32 -1.4531521, %v3130_v2  ;;  %v10729_v11 = vpop.eup %7533  ;;  %7545 = vrcp.f32 %v3092_v31 }
 0x83c   : > { %v3160_v30 = vmul.f32 %v10596_v40, %v3144_v24  ;;  %13627 = vst [vmem:[#allocation204_spill] sm:$0xff] %v10729_v11  ;;  %v10731_v61 = vmul.f32 1.442695, %v3300_v7  ;;  %v3191_v62 = vmul.f32 %v10581_v1, %v3175_v43  ;;  %v3133_v18 = vmul.f32 1.0614054, %v10679_v46  ;;  %v10736_v12 = vpop.eup %7535 }
 0x83d   : > { %v3193_v20 = vmul.f32 %v10612_v47, %v3177_v53  ;;  %v3163_v37 = vmul.f32 %v10628_v13, %v3147_v5  ;;  %v3162_v50 = vmul.f32 %v10623_v49, %v3146_v17  ;;  %v3132_v44 = vmul.f32 1.0614054, %v10670_v6  ;;  %v10741_v52 = vpop.eup %7537 }
 0x83e   : > { %13628 = vst [vmem:[#allocation205_spill] sm:$0xff] %v10731_v61  ;;  %v3176_v58 = vadd.f32 1.4214138, %v3160_v30  ;;  %13629 = vst [vmem:[#allocation206_spill] sm:$0xff] %v10741_v52  ;;  %v3207_v7 = vadd.f32 -0.28449672, %v3191_v62  ;;  %v10744_v48 = vpop.eup %7539  ;;  %7547 = vrcp.f32 %v3093_v16 }
 0x83f   : > { %v3209_v39 = vadd.f32 -0.28449672, %v3193_v20  ;;  %v3149_v24 = vadd.f32 -1.4531521, %v3133_v18  ;;  %v3179_v2 = vadd.f32 1.4214138, %v3163_v37  ;;  %7549 = vpow2.f32 %v10721_v56 }
 0x840   : > { %v3192_v43 = vmul.f32 %v10596_v40, %v3176_v58  ;;  %v3178_v53 = vadd.f32 1.4214138, %v3162_v50  ;;  %v3148_v11 = vadd.f32 -1.4531521, %v3132_v44  ;;  %v3223_v30 = vmul.f32 %v10581_v1, %v3207_v7  ;;  %v10750_v52 = vpop.eup %7541 }
 0x841   : > { %v3225_v5 = vmul.f32 %v10612_v47, %v3209_v39  ;;  %v3165_v17 = vmul.f32 %v10679_v46, %v3149_v24  ;;  %v3135_v36 = vmul.f32 1.0614054, %v10710_v38  ;;  %13630 = vst [vmem:[#allocation207_spill] sm:$0xff] %v10750_v52  ;;  %v3195_v18 = vmul.f32 %v10628_v13, %v3179_v2 }
 0x842   : > { %v3208_v31 = vadd.f32 -0.28449672, %v3192_v43  ;;  %v3194_v62 = vmul.f32 %v10623_v49, %v3178_v53  ;;  %v3164_v20 = vmul.f32 %v10670_v6, %v3148_v11  ;;  %v3239_v58 = vadd.f32 0.2548296, %v3223_v30  ;;  %v10755_v44 = vpop.eup %7543 }
 0x843   : > { %v3241_v37 = vadd.f32 0.2548296, %v3225_v5  ;;  %v3181_v50 = vadd.f32 1.4214138, %v3165_v17  ;;  %v3211_v39 = vadd.f32 -0.28449672, %v3195_v18 }
 0x844   : > { %v3224_v7 = vmul.f32 %v10596_v40, %v3208_v31  ;;  %v3210_v24 = vadd.f32 -0.28449672, %v3194_v62  ;;  %v3180_v61 = vadd.f32 1.4214138, %v3164_v20  ;;  %v3255_v52 = vmul.f32 %v10581_v1, %v3239_v58 }
 0x845   : > { %v3257_v43 = vmul.f32 %v10612_v47, %v3241_v37  ;;  %v3197_v2 = vmul.f32 %v10679_v46, %v3181_v50  ;;  %v3151_v53 = vadd.f32 -1.4531521, %v3135_v36  ;;  %v3227_v11 = vmul.f32 %v10628_v13, %v3211_v39  ;;  %v10768_v36 = vpop.eup %7545 }
 0x846   : > { %v3240_v59 = vadd.f32 0.2548296, %v3224_v7  ;;  %v3226_v16 = vmul.f32 %v10623_v49, %v3210_v24  ;;  %v3196_v30 = vmul.f32 %v10670_v6, %v3180_v61  ;;  %v3335_v5 = vmul.f32 %v10593_v33, %v3255_v52 }
 0x847   : > { %v3337_v17 = vmul.f32 %v10620_v35, %v3257_v43  ;;  %v3213_v31 = vadd.f32 -0.28449672, %v3197_v2  ;;  %v3167_v18 = vmul.f32 %v10710_v38, %v3151_v53  ;;  %v3243_v47 = vadd.f32 0.2548296, %v3227_v11 }
 0x848   : > { %v3256_v1 = vmul.f32 %v10596_v40, %v3240_v59  ;;  %v3242_v62 = vadd.f32 0.2548296, %v3226_v16  ;;  %v3212_v20 = vadd.f32 -0.28449672, %v3196_v30  ;;  %v3351_v58 = vsub.f32 1.0, %v3335_v5 }
 0x849   : > { %v3353_v37 = vsub.f32 1.0, %v3337_v17  ;;  %v3229_v50 = vmul.f32 %v10679_v46, %v3213_v31  ;;  %v3183_v7 = vadd.f32 1.4214138, %v3167_v18  ;;  %v3259_v33 = vmul.f32 %v10628_v13, %v3243_v47 }
 0x84a   : > { %v3336_v61 = vmul.f32 %v10607_v8, %v3256_v1  ;;  %v3258_v35 = vmul.f32 %v10623_v49, %v3242_v62  ;;  %v3228_v52 = vmul.f32 %v10670_v6, %v3212_v20  ;;  %v3367_v40 = vmul.f32 %v3351_v58, %v10541_v60  ;;  %v10780_v8 = vpop.eup %7547 }
 0x84b   : > { %v3369_v59 = vmul.f32 %v3353_v37, %v10560_v27  ;;  %v3245_v39 = vadd.f32 0.2548296, %v3229_v50  ;;  %v3199_v24 = vmul.f32 %v10710_v38, %v3183_v7  ;;  %v3339_v2 = vmul.f32 %v10644_v3, %v3259_v33 }
 0x84c   : > { %v3352_v43 = vsub.f32 1.0, %v3336_v61  ;;  %v3338_v53 = vmul.f32 %v10637_v41, %v3258_v35  ;;  %v3244_v11 = vadd.f32 0.2548296, %v3228_v52  ;;  %v3383_v13 = vadd.f32 1.0, %v3367_v40 }
 0x84d   : > { %v3385_v16 = vadd.f32 1.0, %v3369_v59  ;;  %v3261_v49 = vmul.f32 %v10679_v46, %v3245_v39  ;;  %v3215_v30 = vadd.f32 -0.28449672, %v3199_v24  ;;  %v3355_v5 = vsub.f32 1.0, %v3339_v2 }
 0x84e   : > { %v3368_v60 = vmul.f32 %v3352_v43, %v10547_v14  ;;  %v3354_v27 = vsub.f32 1.0, %v3338_v53  ;;  %v3260_v17 = vmul.f32 %v10670_v6, %v3244_v11  ;;  %v3399_v31 = vmul.f32 %v3383_v13, %v10533_v63  ;;  %v13631_v43 = vld [vmem:[#allocation32_spill] sm:$0xff] }
 0x84f   : > { %v3401_v3 = vmul.f32 %v3385_v16, %v10549_v55  ;;  %v3341_v41 = vmul.f32 %v10691_v28, %v3261_v49  ;;  %v3231_v18 = vmul.f32 %v10710_v38, %v3215_v30  ;;  %v3371_v47 = vmul.f32 %v3355_v5, %v10588_v32  ;;  %v10823_v30 = vpop.eup %7549 }
 0x850   : > { %v3384_v1 = vadd.f32 1.0, %v3368_v60  ;;  %v3370_v46 = vmul.f32 %v3354_v27, %v10585_v22  ;;  %v3340_v62 = vmul.f32 %v10677_v4, %v3260_v17  ;;  %3478 = vmatprep.mubr.f32.mxu0 %v3399_v31  ;;  %v3134_v63 = vmul.f32 1.0614054, %v10706_v45  ;;  %v13632_v31 = vld [vmem:[#allocation33_spill] sm:$0xff] }
 0x851   : > { %v3357_v14 = vsub.f32 1.0, %v3341_v41  ;;  %v3247_v6 = vadd.f32 0.2548296, %v3231_v18  ;;  %v10795_v55 = vmul.f32 1.442695, %v10726_v42  ;;  %3479 = vmatmul.mubr.f32.vlgmr.msra.gmra.mrb[64].mxu0 %v10713_v9  ;;  %v3387_v28 = vadd.f32 1.0, %v3371_v47 }
 0x852   : > { %v3386_v20 = vadd.f32 1.0, %v3370_v46  ;;  %v3356_v58 = vsub.f32 1.0, %v3340_v62  ;;  %3484 = vmatprep.mubr.f32.mxu0 %v3401_v3  ;;  %v3150_v4 = vadd.f32 -1.4531521, %v3134_v63  ;;  %v3137_v56 = vmul.f32 1.0614054, %v10736_v12  ;;  %6826 = vmatpush1.bf16.msra.mxu0 %v13482_v29 }
 0x853   : > { %v3373_v22 = vmul.f32 %v3357_v14, %v10605_v51  ;;  %v3263_v32 = vmul.f32 %v10710_v38, %v3247_v6  ;;  %v3400_v37 = vmul.f32 %v3384_v1, %v10544_v15  ;;  %v3403_v42 = vmul.f32 %v3387_v28, %v10571_v19  ;;  %6828 = vmatprep.subr.bf16.mxu0 %v13483_v21  ;;  %v13633_v47 = vld [vmem:[#allocation34_spill] sm:$0xff] }
 0x854   : > { %v3372_v50 = vmul.f32 %v3356_v58, %v10602_v57  ;;  %v3136_v9 = vmul.f32 1.0614054, %v10724_v23  ;;  %v3166_v38 = vmul.f32 %v10706_v45, %v3150_v4  ;;  %v3153_v61 = vadd.f32 -1.4531521, %v3137_v56  ;;  %v13634_v46 = vld [vmem:[#allocation142_spill] sm:$0xff] }
 0x855   : > { %v3389_v7 = vadd.f32 1.0, %v3373_v22  ;;  %v3343_v51 = vmul.f32 %v10719_v10, %v3263_v32  ;;  %3485 = vmatmul.mubr.f32.gmra.mrb[66].mxu0 %v3400_v37  ;;  %v3402_v33 = vmul.f32 %v3386_v20, %v10562_v34  ;;  %v3139_v15 = vmul.f32 1.0614054, %v10755_v44  ;;  %v13635_v37 = vld [vmem:[#allocation35_spill] sm:$0xff] }
 0x856   : > { %v3388_v35 = vadd.f32 1.0, %v3372_v50  ;;  %v3152_v52 = vadd.f32 -1.4531521, %v3136_v9  ;;  %3490 = vmatprep.mubr.f32.mxu0 %v3403_v42  ;;  %v3182_v40 = vadd.f32 1.4214138, %v3166_v38  ;;  %v3169_v59 = vmul.f32 %v10736_v12, %v3153_v61  ;;  %6830 = vmatpush1.bf16.msra.mxu0 %v13484_v26  ;;  %v13637_v38 = vld [vmem:[#allocation205_spill] sm:$0xff] }
 0x857   : > { %v3405_v19 = vmul.f32 %v3389_v7, %v10599_v54  ;;  %v3359_v57 = vsub.f32 1.0, %v3343_v51  ;;  %v3155_v24 = vadd.f32 -1.4531521, %v3139_v15  ;;  %v3138_v34 = vmul.f32 1.0614054, %v10744_v48  ;;  %6832 = vmatprep.subr.bf16.mxu0 %v13485_v25  ;;  %v13636_v51 = vld [vmem:[#allocation36_spill] sm:$0xff] }
 0x858   : > { %v3404_v10 = vmul.f32 %v3388_v35, %v10590_v0  ;;  %v3168_v39 = vmul.f32 %v10724_v23, %v3152_v52  ;;  %v3198_v53 = vmul.f32 %v10706_v45, %v3182_v40  ;;  %v3185_v54 = vadd.f32 1.4214138, %v3169_v59  ;;  %v13639_v40 = vld [vmem:[#allocation203_spill] sm:$0xff] }
 0x859   : > { %v3375_v2 = vmul.f32 %v3359_v57, %v13631_v43  ;;  %v3141_v11 = vmul.f32 1.0614054, %v10780_v8  ;;  %3491 = vmatmul.mubr.f32.gmra.mrb[68].mxu0 %v3402_v33  ;;  %v3171_v16 = vmul.f32 %v10755_v44, %v3155_v24  ;;  %v3154_v49 = vadd.f32 -1.4531521, %v3138_v34  ;;  %v13638_v57 = vld [vmem:[#allocation31_spill] sm:$0xff]  ;;  %v13640_v24 = vld [vmem:[#allocation37_spill] sm:$0xff] }
 0x85a   : > { %v3184_v13 = vadd.f32 1.4214138, %v3168_v39  ;;  %v3140_v0 = vmul.f32 1.0614054, %v10768_v36  ;;  %3496 = vmatprep.mubr.f32.mxu0 %v3405_v19  ;;  %v3214_v5 = vadd.f32 -0.28449672, %v3198_v53  ;;  %v3201_v27 = vmul.f32 %v10736_v12, %v3185_v54  ;;  %6834 = vmatpush1.bf16.msra.mxu0 %v13632_v31 }
 0x85b   : > { %v3391_v60 = vadd.f32 1.0, %v3375_v2  ;;  %v3157_v17 = vadd.f32 -1.4531521, %v3141_v11  ;;  %v3187_v41 = vadd.f32 1.4214138, %v3171_v16  ;;  %v3170_v18 = vmul.f32 %v10744_v48, %v3154_v49  ;;  %6836 = vmatprep.subr.bf16.mxu0 %v13633_v47  ;;  %v13641_v53 = vld [vmem:[#allocation38_spill] sm:$0xff] }
 0x85c   : > { %v3200_v3 = vmul.f32 %v10724_v23, %v3184_v13  ;;  %v3156_v1 = vadd.f32 -1.4531521, %v3140_v0  ;;  %v3230_v14 = vmul.f32 %v10706_v45, %v3214_v5  ;;  %v3217_v6 = vadd.f32 -0.28449672, %v3201_v27  ;;  %v13642_v54 = vld [vmem:[#allocation145_spill] sm:$0xff]  ;;  %v13643_v13 = vld [vmem:[#allocation206_spill] sm:$0xff] }
 0x85d   : > { %v3407_v62 = vmul.f32 %v3391_v60, %v13634_v46  ;;  %v3173_v63 = vmul.f32 %v10780_v8, %v3157_v17  ;;  %3497 = vmatmul.mubr.f32.gmra.mrb[70].mxu0 %v3404_v10  ;;  %v3203_v20 = vmul.f32 %v10755_v44, %v3187_v41  ;;  %v3186_v58 = vadd.f32 1.4214138, %v3170_v18  ;;  %v13644_v0 = vld [vmem:[#allocation204_spill] sm:$0xff]  ;;  %v13647_v46 = vld [vmem:[#allocation39_spill] sm:$0xff] }
 0x85e   : > { %v3216_v28 = vadd.f32 -0.28449672, %v3200_v3  ;;  %v3172_v22 = vmul.f32 %v10768_v36, %v3156_v1  ;;  %7551 = vpow2.f32 %v10795_v55  ;;  %v3246_v32 = vadd.f32 0.2548296, %v3230_v14  ;;  %6838 = vmatpush1.bf16.msra.mxu0 %v13635_v37  ;;  %v13646_v3 = vld [vmem:[#allocation29_spill] sm:$0xff] }
 0x85f   : > { %3502 = vmatprep.mubr.f32.mxu0 %v3407_v62  ;;  %v3233_v4 = vmul.f32 %v10736_v12, %v3217_v6  ;;  %v3189_v56 = vadd.f32 1.4214138, %v3173_v63  ;;  %v3219_v50 = vadd.f32 -0.28449672, %v3203_v20  ;;  %v3202_v9 = vmul.f32 %v10744_v48, %v3186_v58  ;;  %6840 = vmatprep.subr.bf16.mxu0 %v13636_v51  ;;  %v13649_v20 = vld [vmem:[#allocation198_spill] sm:$0xff] }
 0x860   : > { %v3232_v42 = vmul.f32 %v10724_v23, %v3216_v28  ;;  %v3188_v7 = vadd.f32 1.4214138, %v3172_v22  ;;  %7553 = vpow2.f32 %v13637_v38  ;;  %v3262_v61 = vmul.f32 %v10706_v45, %v3246_v32  ;;  %v13650_v22 = vld [vmem:[#allocation202_spill] sm:$0xff] }
 0x861   : > { %v3249_v55 = vadd.f32 0.2548296, %v3233_v4  ;;  %v3205_v33 = vmul.f32 %v10780_v8, %v3189_v56  ;;  %v3235_v52 = vmul.f32 %v10755_v44, %v3219_v50  ;;  %v3218_v15 = vadd.f32 -0.28449672, %v3202_v9  ;;  %v13651_v56 = vld [vmem:[#allocation200_spill] sm:$0xff]  ;;  %v13652_v9 = vld [vmem:[#allocation207_spill] sm:$0xff] }
 0x862   : > { %v3248_v35 = vadd.f32 0.2548296, %v3232_v42  ;;  %v3204_v19 = vmul.f32 %v10768_v36, %v3188_v7  ;;  %vm3027_vm14 = vcmp.ge.f32.partialorder %v13638_v57, 0.0  ;;  %v3342_v59 = vmul.f32 %v13639_v40, %v3262_v61  ;;  %6842 = vmatpush1.bf16.msra.mxu0 %v13640_v24  ;;  %v13654_v61 = vld [vmem:[#allocation138_spill] sm:$0xff] }
 0x863   : > { %v3265_v10 = vmul.f32 %v10736_v12, %v3249_v55  ;;  %v3221_v39 = vadd.f32 -0.28449672, %v3205_v33  ;;  %v3251_v34 = vadd.f32 0.2548296, %v3235_v52  ;;  %v3234_v43 = vmul.f32 %v10744_v48, %v3218_v15  ;;  %6844 = vmatprep.subr.bf16.mxu0 %v13641_v53  ;;  %v13655_v52 = vld [vmem:[#allocation41_spill] sm:$0xff]  ;;  %v13656_v40 = vld [vmem:[#allocation42_spill] sm:$0xff] }
 0x864   : > { %v3264_v45 = vmul.f32 %v10724_v23, %v3248_v35  ;;  %v3220_v2 = vadd.f32 -0.28449672, %v3204_v19  ;;  %vm3026_vm15 = vcmp.ge.f32.partialorder %v13642_v54, 0.0  ;;  %v3358_v11 = vsub.f32 1.0, %v3342_v59 }
 0x865   : > { %v3345_v16 = vmul.f32 %v13643_v13, %v3265_v10  ;;  %v3237_v49 = vmul.f32 %v10780_v8, %v3221_v39  ;;  %v3267_v60 = vmul.f32 %v10755_v44, %v3251_v34  ;;  %v3250_v5 = vadd.f32 0.2548296, %v3234_v43  ;;  %v13648_v44 = vld [vmem:[#allocation40_spill] sm:$0xff]  ;;  %v13658_v39 = vld [vmem:[#allocation201_spill] sm:$0xff] }
 0x866   : > { %v3344_v12 = vmul.f32 %v13644_v0, %v3264_v45  ;;  %v3236_v23 = vmul.f32 %v10768_v36, %v3220_v2  ;;  %v13645_v27 = vmov -1.0   ;;  %v3374_v41 = vmul.f32 %v3358_v11, %v13646_v3  ;;  %6846 = vmatpush1.bf16.msra.mxu0 %v13647_v46  ;;  %v13662_v3 = vld [vmem:[#allocation143_spill] sm:$0xff] }
 0x867   : > { %v3043_v17 = vsel %vm3027_vm14, 1.0, %v13645_v27  ;;  %v3361_v18 = vsub.f32 1.0, %v3345_v16  ;;  %v3253_v1 = vadd.f32 0.2548296, %v3237_v49  ;;  %v3347_v14 = vmul.f32 %v10823_v30, %v3267_v60  ;;  %6848 = vmatprep.subr.bf16.mxu0 %v13648_v44  ;;  %v13659_v49 = vld [vmem:[#allocation30_spill] sm:$0xff] }
 0x868   : > { %v3360_v62 = vsub.f32 1.0, %v3344_v12  ;;  %v3266_v6 = vmul.f32 %v10744_v48, %v3250_v5  ;;  %v3252_v63 = vadd.f32 0.2548296, %v3236_v23  ;;  %v7552_v28 = vpop.eup %7551  ;;  %vm3028_vm1 = vcmp.ge.f32.partialorder %v13649_v20, 0.0  ;;  %v13653_v48 = vld [vmem:[#allocation199_spill] sm:$0xff]  ;;  %v13665_v20 = vld [vmem:[#allocation46_spill] sm:$0xff] }
 0x869   : > { %v3390_v58 = vadd.f32 1.0, %v3374_v41  ;;  %v3377_v32 = vmul.f32 %v3361_v18, %v13650_v22  ;;  %v3269_v4 = vmul.f32 %v10780_v8, %v3253_v1  ;;  %v3363_v50 = vsub.f32 1.0, %v3347_v14  ;;  %v13660_v12 = vld [vmem:[#allocation43_spill] sm:$0xff]  ;;  %v13663_v18 = vld [vmem:[#allocation197_spill] sm:$0xff] }
 0x86a   : > { %v3376_v42 = vmul.f32 %v3360_v62, %v13651_v56  ;;  %v3346_v7 = vmul.f32 %v13652_v9, %v3266_v6  ;;  %v3268_v30 = vmul.f32 %v10768_v36, %v3252_v63  ;;  %v7554_v38 = vpop.eup %7553  ;;  %vm3029_vm2 = vcmp.ge.f32.partialorder %v13653_v48, 0.0  ;;  %6850 = vmatpush1.bf16.msra.mxu0 %v13655_v52  ;;  %v13657_v36 = vld [vmem:[#allocation146_spill] sm:$0xff]  ;;  %v13668_v56 = vld [vmem:[#allocation48_spill] sm:$0xff]  ;;  %v13671_v9 = vld [vmem:[#allocation51_spill] sm:$0xff] }
 0x86b   : > { %v3406_v55 = vmul.f32 %v3390_v58, %v13654_v61  ;;  %v3393_v33 = vadd.f32 1.0, %v3377_v32  ;;  %v3349_v35 = vmul.f32 %v7552_v28, %v3269_v4  ;;  %v3379_v19 = vmul.f32 %v3363_v50, %v3043_v17  ;;  %6852 = vmatprep.subr.bf16.mxu0 %v13656_v40  ;;  %v13661_v17 = vld [vmem:[#allocation44_spill] sm:$0xff]  ;;  %v13664_v28 = vld [vmem:[#allocation45_spill] sm:$0xff]  ;;  %v13667_v4 = vld [vmem:[#allocation47_spill] sm:$0xff] }
 0x86c   : > { %v3392_v15 = vadd.f32 1.0, %v3376_v42  ;;  %v3362_v57 = vsub.f32 1.0, %v3346_v7  ;;  %v3348_v8 = vmul.f32 %v7554_v38, %v3268_v30  ;;  %v3042_v59 = vsel %vm3026_vm15, 1.0, %v13645_v27  ;;  %v13666_v58 = vld [vmem:[#allocation196_spill] sm:$0xff]  ;;  %v13669_v42 = vld [vmem:[#allocation49_spill] sm:$0xff]  ;;  %v13670_v50 = vld [vmem:[#allocation50_spill] sm:$0xff] }
 0x86d   : > { %v2995_v10 = vmul.f32 0.5, %v13657_v36  ;;  %3503 = vmatmul.mubr.f32.gmra.mrb[72].mxu0 %v3406_v55  ;;  %v3409_v45 = vmul.f32 %v3393_v33, %v13658_v39  ;;  %v3365_v34 = vsub.f32 1.0, %v3349_v35  ;;  %v3045_v43 = vsel %vm3029_vm2, 1.0, %v13645_v27  ;;  %v13672_v7 = vld [vmem:[#allocation52_spill] sm:$0xff]  ;;  %v13673_v30 = vld [vmem:[#allocation53_spill] sm:$0xff]  ;;  %v13674_v38 = vld [vmem:[#allocation54_spill] sm:$0xff] }
 0x86e   : > { %v3395_v2 = vadd.f32 1.0, %v3379_v19  ;;  %v3378_v11 = vmul.f32 %v3362_v57, %v3042_v59  ;;  %v3364_v13 = vsub.f32 1.0, %v3348_v8  ;;  %v3044_v16 = vsel %vm3028_vm1, 1.0, %v13645_v27  ;;  %6854 = vmatpush1.bf16.msra.mxu0 %v13660_v12  ;;  %v13675_v48 = vld [vmem:[#allocation55_spill] sm:$0xff]  ;;  %v13676_v61 = vld [vmem:[#allocation56_spill] sm:$0xff]  ;;  %v13677_v55 = vld [vmem:[#allocation57_spill] sm:$0xff] }
 0x86f   : > { %3508 = vmatprep.mubr.f32.mxu0 %v3409_v45  ;;  %v3408_v0 = vmul.f32 %v3392_v15, %v13659_v49  ;;  %v3381_v54 = vmul.f32 %v3365_v34, %v3045_v43  ;;  %6856 = vmatprep.subr.bf16.mxu0 %v13661_v17  ;;  %v2994_v41 = vmul.f32 0.5, %v13662_v3  ;;  %v2997_v1 = vmul.f32 0.5, %v13663_v18  ;;  %v13678_v33 = vld [vmem:[#allocation58_spill] sm:$0xff]  ;;  %v13679_v35 = vld [vmem:[#allocation59_spill] sm:$0xff]  ;;  %v13680_v15 = vld [vmem:[#allocation77_spill] sm:$0xff] }
 0x870   : > { %v3411_v60 = vmul.f32 %v3395_v2, %v2995_v10  ;;  %v3394_v5 = vadd.f32 1.0, %v3378_v11  ;;  %v3380_v23 = vmul.f32 %v3364_v13, %v3044_v16  ;;  %v2996_v22 = vmul.f32 0.5, %v13666_v58  ;;  %v13681_v57 = vld [vmem:[#allocation183_spill] sm:$0xff]  ;;  %v13682_v36 = vld [vmem:[#allocation176_spill] sm:$0xff]  ;;  %v13683_v39 = vld [vmem:[#allocation177_spill] sm:$0xff] }
 0x871   : > { %3509 = vmatmul.mubr.f32.gmra.mrb[74].mxu0 %v3408_v0  ;;  %v3397_v62 = vadd.f32 1.0, %v3381_v54  ;;  %v13684_v43 = vld [vmem:[#allocation185_spill] sm:$0xff]  ;;  %v13685_v49 = vld [vmem:[#allocation22_spill] sm:$0xff]  ;;  %v13689_v58 = vld [vmem:[#allocation191_spill] sm:$0xff] }
 0x872   : > { %3514 = vmatprep.mubr.f32.mxu0 %v3411_v60  ;;  %v3410_v14 = vmul.f32 %v3394_v5, %v2994_v41  ;;  %v3396_v63 = vadd.f32 1.0, %v3380_v23  ;;  %6858 = vmatpush1.bf16.msra.mxu0 %v13664_v28  ;;  %v13686_v54 = vld [vmem:[#allocation182_spill] sm:$0xff]  ;;  %v13687_v5 = vld [vmem:[#allocation184_spill] sm:$0xff]  ;;  %v13688_v18 = vld [vmem:[#allocation193_spill] sm:$0xff] }
 0x873   : > { %v3413_v6 = vmul.f32 %v3397_v62, %v2997_v1  ;;  %6860 = vmatprep.subr.bf16.mxu0 %v13665_v20 }
 0x874   : > { %v3412_v32 = vmul.f32 %v3396_v63, %v2996_v22 }
 0x875   : > { %3515 = vmatmul.mubr.f32.gmra.mrb[76].mxu0 %v3410_v14 }
 0x876   : > { %3520 = vmatprep.mubr.f32.mxu0 %v3413_v6  ;;  %6862 = vmatpush1.bf16.msra.mxu0 %v13667_v4 }
 0x877   : > { %6864 = vmatprep.subr.bf16.mxu0 %v13668_v56 }
 0x879   : > { %3521 = vmatmul.mubr.f32.gmra.mrb[78].mxu0 %v3412_v32  ;;  %v13690_v32 = vld [vmem:[#allocation20_spill] sm:$0xff] }
 0x87a   : > { %6866 = vmatpush1.bf16.msra.mxu0 %v13669_v42 }
 0x87b   : > { %6868 = vmatprep.subr.bf16.mxu0 %v13670_v50 }
 0x87e   : > { %6870 = vmatpush1.bf16.msra.mxu0 %v13671_v9  ;;  %v13812_v9 = vld [vmem:[#allocation115_spill] sm:$0xff] }
 0x87f   : > { %6872 = vmatprep.subr.bf16.mxu0 %v13672_v7 }
 0x882   : > { %6874 = vmatpush1.bf16.msra.mxu0 %v13673_v30 }
 0x883   : > { %6876 = vmatprep.subr.bf16.mxu0 %v13674_v38 }
 0x886   : > { %6878 = vmatpush1.bf16.msra.mxu0 %v13675_v48 }
 0x887   : > { %6880 = vmatprep.subr.bf16.mxu0 %v13676_v61 }
 0x88a   : > { %6882 = vmatpush1.bf16.msra.mxu0 %v13677_v55 }
 0x88b   : > { %6884 = vmatprep.subr.bf16.mxu0 %v13678_v33 }
 0x88e   : > { %6886 = vmatpush1.bf16.msra.mxu0 %v13679_v35 }
 0x88f   : > { %6952 = vmatprep.subr.bf16.mxu0 %v13680_v15 }
 0x924   : > { %v3480_v19 = vpop.f32.mrb[64].mxu0 }
 0x925   : > { %v3481_v8 = vadd.f32 %v3480_v19, %v13681_v57  ;;  %v3482_v59 = vpop.f32.mrb[65].mxu0 }
 0x926   : > { %v3483_v10 = vadd.f32 %v3482_v59, %v13682_v36  ;;  %v13691_v59 = vld [vmem:[#allocation179_spill] sm:$0xff] }
 0x927   : > { %v3527_v2 = vadd.f32 %v3481_v8, %v13684_v43 }
 0x928   : > { %v3528_v45 = vadd.f32 %v3483_v10, %v13683_v39  ;;  %v3486_v34 = vpop.f32.mrb[66].mxu0 }
 0x929   : > { %v3487_v11 = vadd.f32 %v3486_v34, %v13681_v57  ;;  %v3488_v13 = vpop.f32.mrb[67].mxu0  ;;  %v3543_v41 = vmul.f32 %v3527_v2, %v13686_v54  ;;  %v13692_v34 = vld [vmem:[#allocation122_spill] sm:$0xff] }
 0x92a   : > { %v3489_v16 = vadd.f32 %v3488_v13, %v13682_v36  ;;  %v3544_v60 = vmul.f32 %v3528_v45, %v13686_v54  ;;  %v13707_v54 = vld [vmem:[#allocation187_spill] sm:$0xff] }
 0x92b   : > { %v3529_v0 = vadd.f32 %v3487_v11, %v13685_v49  ;;  %v10933_v45 = vadd.f32 %v3543_v41, %v13691_v59  ;;  %v13693_v49 = vld [vmem:[#allocation126_spill] sm:$0xff] }
 0x92c   : > { %v3530_v23 = vadd.f32 %v3489_v16, %v13687_v5  ;;  %v3492_v3 = vpop.f32.mrb[68].mxu0  ;;  %v10927_v10 = vadd.f32 %v3544_v60, %v13691_v59  ;;  %v13694_v5 = vld [vmem:[#allocation192_spill] sm:$0xff] }
 0x92d   : > { %v3545_v1 = vmul.f32 %v3529_v0, %v13688_v18  ;;  %v3493_v62 = vadd.f32 %v3492_v3, %v13681_v57  ;;  %v3494_v14 = vpop.f32.mrb[69].mxu0  ;;  %v13695_v3 = vld [vmem:[#allocation123_spill] sm:$0xff] }
 0x92e   : > { %v3546_v6 = vmul.f32 %v3530_v23, %v13688_v18  ;;  %v3495_v63 = vadd.f32 %v3494_v14, %v13682_v36 }
 0x92f   : > { %v10923_v22 = vadd.f32 %v3545_v1, %v13689_v58  ;;  %v3531_v43 = vadd.f32 %v3493_v62, %v13692_v34  ;;  %v13696_v62 = vld [vmem:[#allocation194_spill] sm:$0xff] }
 0x930   : > { %v3532_v19 = vadd.f32 %v3495_v63, %v13690_v32  ;;  %v3498_v8 = vpop.f32.mrb[70].mxu0  ;;  %v10930_v39 = vadd.f32 %v3546_v6, %v13689_v58  ;;  %v13697_v63 = vld [vmem:[#allocation180_spill] sm:$0xff] }
 0x931   : > { %v3499_v2 = vadd.f32 %v3498_v8, %v13681_v57  ;;  %v3500_v11 = vpop.f32.mrb[71].mxu0  ;;  %v6809_v60 = vpack.c.bf16 %v10923_v22, %v10933_v45  ;;  %v3547_v1 = vmul.f32 %v3531_v43, %v13694_v5  ;;  %v13698_v8 = vld [vmem:[#allocation186_spill] sm:$0xff] }
 0x932   : > { %v3501_v13 = vadd.f32 %v3500_v11, %v13682_v36  ;;  %v6807_v16 = vpack.c.bf16 %v10930_v39, %v10927_v10  ;;  %v3548_v23 = vmul.f32 %v3532_v19, %v13694_v5  ;;  %v13703_v5 = vld [vmem:[#allocation130_spill] sm:$0xff] }
 0x933   : > { %v3533_v0 = vadd.f32 %v3499_v2, %v13693_v49  ;;  %v10958_v19 = vadd.f32 %v3547_v1, %v13698_v8 }
 0x934   : > { %v3534_v41 = vadd.f32 %v3501_v13, %v13695_v3  ;;  %6808 = vmatprep.subr.bf16.mxu1 %v6807_v16  ;;  %v10952_v34 = vadd.f32 %v3548_v23, %v13698_v8 }
 0x935   : > { %v3549_v14 = vmul.f32 %v3533_v0, %v13696_v62  ;;  %6810 = vmatpush1.bf16.msra.mxu1 %v6809_v60  ;;  %v13699_v60 = vld [vmem:[#allocation125_spill] sm:$0xff] }
 0x936   : > { %v3550_v6 = vmul.f32 %v3534_v41, %v13696_v62  ;;  %v13700_v41 = vld [vmem:[#allocation128_spill] sm:$0xff] }
 0x937   : > { %v10949_v32 = vadd.f32 %v3549_v14, %v13697_v63 }
 0x938   : > { %v10955_v2 = vadd.f32 %v3550_v6, %v13697_v63  ;;  %v13701_v63 = vld [vmem:[#allocation133_spill] sm:$0xff] }
 0x939   : > { %v6813_v11 = vpack.c.bf16 %v10949_v32, %v10958_v19 }
 0x93a   : > { %v6811_v43 = vpack.c.bf16 %v10955_v2, %v10952_v34 }
 0x93c   : > { %6812 = vmatprep.subr.bf16.mxu1 %v6811_v43  ;;  %v13702_v43 = vld [vmem:[#allocation188_spill] sm:$0xff] }
 0x93d   : > { %6814 = vmatpush1.bf16.msra.mxu1 %v6813_v11 }
 0x940   : > { %v3504_v13 = vpop.f32.mrb[72].mxu0 }
 0x941   : > { %v3505_v16 = vadd.f32 %v3504_v13, %v13681_v57  ;;  %v3506_v49 = vpop.f32.mrb[73].mxu0 }
 0x942   : > { %v3507_v0 = vadd.f32 %v3506_v49, %v13682_v36  ;;  %v13704_v49 = vld [vmem:[#allocation190_spill] sm:$0xff] }
 0x943   : > { %v3535_v1 = vadd.f32 %v3505_v16, %v13700_v41  ;;  %v13705_v41 = vld [vmem:[#allocation195_spill] sm:$0xff] }
 0x944   : > { %v3536_v23 = vadd.f32 %v3507_v0, %v13699_v60  ;;  %v3510_v3 = vpop.f32.mrb[74].mxu0 }
 0x945   : > { %v3511_v14 = vadd.f32 %v3510_v3, %v13681_v57  ;;  %v3512_v6 = vpop.f32.mrb[75].mxu0  ;;  %v3551_v58 = vmul.f32 %v3535_v1, %v13702_v43  ;;  %v13708_v1 = vld [vmem:[#allocation135_spill] sm:$0xff] }
 0x946   : > { %v3513_v8 = vadd.f32 %v3512_v6, %v13682_v36  ;;  %v3552_v11 = vmul.f32 %v3536_v23, %v13702_v43  ;;  %v13711_v43 = vld [vmem:[#allocation136_spill] sm:$0xff] }
 0x947   : > { %v3537_v62 = vadd.f32 %v3511_v14, %v13701_v63  ;;  %v13706_v63 = vld [vmem:[#allocation132_spill] sm:$0xff] }
 0x948   : > { %v3538_v59 = vadd.f32 %v3513_v8, %v13703_v5  ;;  %v3516_v13 = vpop.f32.mrb[76].mxu0  ;;  %v10983_v5 = vadd.f32 %v3552_v11, %v13707_v54 }
 0x949   : > { %v3553_v18 = vmul.f32 %v3537_v62, %v13704_v49  ;;  %v3517_v0 = vadd.f32 %v3516_v13, %v13681_v57  ;;  %v3518_v60 = vpop.f32.mrb[77].mxu0  ;;  %v10989_v62 = vadd.f32 %v3551_v58, %v13707_v54  ;;  %v13713_v54 = vld [vmem:[#allocation189_spill] sm:$0xff] }
 0x94a   : > { %v3554_v16 = vmul.f32 %v3538_v59, %v13704_v49  ;;  %v3519_v3 = vadd.f32 %v3518_v60, %v13682_v36 }
 0x94b   : > { %v10979_v6 = vadd.f32 %v3553_v18, %v13705_v41  ;;  %v3539_v13 = vadd.f32 %v3517_v0, %v13708_v1  ;;  %v13712_v1 = vld [vmem:[#allocation175_spill] sm:$0xff] }
 0x94c   : > { %v3540_v14 = vadd.f32 %v3519_v3, %v13706_v63  ;;  %v3522_v23 = vpop.f32.mrb[78].mxu0  ;;  %v10986_v8 = vadd.f32 %v3554_v16, %v13705_v41  ;;  %v13709_v63 = vld [vmem:[#allocation140_spill] sm:$0xff]  ;;  %v13710_v16 = vld [vmem:[#allocation178_spill] sm:$0xff] }
 0x94d   : > { %v3523_v59 = vadd.f32 %v3522_v23, %v13681_v57  ;;  %v3524_v60 = vpop.f32.mrb[79].mxu0  ;;  %v6817_v11 = vpack.c.bf16 %v10979_v6, %v10989_v62  ;;  %v3555_v0 = vmul.f32 %v3539_v13, %v13710_v16  ;;  %v13714_v57 = vld [vmem:[#allocation181_spill] sm:$0xff]  ;;  %v13715_v13 = vld [vmem:[#allocation11_spill] sm:$0xff] }
 0x94e   : > { %v3525_v18 = vadd.f32 %v3524_v60, %v13682_v36  ;;  %v6815_v3 = vpack.c.bf16 %v10986_v8, %v10983_v5  ;;  %v3556_v41 = vmul.f32 %v3540_v14, %v13710_v16 }
 0x94f   : > { %v3541_v49 = vadd.f32 %v3523_v59, %v13709_v63  ;;  %v11014_v14 = vadd.f32 %v3555_v0, %v13714_v57  ;;  %v13719_v0 = vld [vmem:[#allocation14_spill] sm:$0xff] }
 0x950   : > { %v3542_v58 = vadd.f32 %v3525_v18, %v13711_v43  ;;  %6816 = vmatprep.subr.bf16.mxu1 %v6815_v3  ;;  %v11008_v59 = vadd.f32 %v3556_v41, %v13714_v57  ;;  %v7699_v41 = vld [vmem:[%s12655_s3] sm:$0xff]  ;;  %v13716_v18 = vmov 0.0   ;;  %v13717_v3 = vld [vmem:[#allocation12_spill] sm:$0xff] }
 0x951   : > { %v3557_v23 = vmul.f32 %v3541_v49, %v13712_v1  ;;  %6818 = vmatpush1.bf16.msra.mxu1 %v6817_v11  ;;  %v13718_v11 = vld [vmem:[#allocation13_spill] sm:$0xff]  ;;  %v13751_v57 = vld [vmem:[#allocation80_spill] sm:$0xff] }
 0x952   : > { %v3558_v60 = vmul.f32 %v3542_v58, %v13712_v1  ;;  %v7700_v58 = vld [vmem:[%s12655_s3 + $0x8] sm:$0xff] }
 0x953   : > { %v11005_v36 = vadd.f32 %v3557_v23, %v13713_v54  ;;  %v13720_v23 = vld [vmem:[#allocation15_spill] sm:$0xff] }
 0x954   : > { %v11011_v63 = vadd.f32 %v3558_v60, %v13713_v54  ;;  %v7701_v60 = vld [vmem:[%s12655_s3 + $0x10] sm:$0xff]  ;;  %v13768_v1 = vld [vmem:[#allocation111_spill] sm:$0xff] }
 0x955   : > { %v6821_v49 = vpack.c.bf16 %v11005_v36, %v11014_v14  ;;  %v13752_v54 = vld [vmem:[#allocation81_spill] sm:$0xff] }
 0x956   : > { %v6819_v43 = vpack.c.bf16 %v11011_v63, %v11008_v59 }
 0x958   : > { %6820 = vmatprep.subr.bf16.mxu1 %v6819_v43  ;;  %v13721_v43 = vld [vmem:[#allocation16_spill] sm:$0xff] }
 0x959   : > { %6822 = vmatpush1.bf16.msra.mxu1 %v6821_v49  ;;  %v13722_v49 = vld [vmem:[#allocation17_spill] sm:$0xff] }
 0x95a   : > { %6888 = vmatprep.subr.bf16.mxu1 %v13715_v13  ;;  %v13750_v13 = vld [vmem:[#allocation79_spill] sm:$0xff] }
 0x95c   : > { %6128 = vmatmul.mubr.msk.f32.vlgmr.msra.gmra.mrb[128].mxu1 %vm1030_vm0, %v7699_v41  ;;  %v7702_v41 = vld [vmem:[%s12655_s3 + $0x18] sm:$0xff] }
 0x95d   : > { %3645 = vmatprep.mubr.f32.mxu1 %v13716_v18  ;;  %6890 = vmatpush1.bf16.msra.mxu1 %v13717_v3  ;;  %v13749_v3 = vld [vmem:[#allocation78_spill] sm:$0xff] }
 0x95e   : > { %6892 = vmatprep.subr.bf16.mxu1 %v13718_v11 }
 0x960   : > { %6129 = vmatmul.mubr.msk.f32.gmra.mrb[130].mxu1 %vm1030_vm0, %v7700_v58  ;;  %v13723_v58 = vld [vmem:[#allocation18_spill] sm:$0xff] }
 0x961   : > { %3651 = vmatprep.mubr.f32.mxu1 %v13716_v18  ;;  %6894 = vmatpush1.bf16.msra.mxu1 %v13719_v0 }
 0x962   : > { %6896 = vmatprep.subr.bf16.mxu1 %v13720_v23  ;;  %v13724_v23 = vld [vmem:[#allocation19_spill] sm:$0xff] }
 0x964   : > { %6130 = vmatmul.mubr.msk.f32.gmra.mrb[132].mxu1 %vm1030_vm0, %v7701_v60  ;;  %v7703_v60 = vld [vmem:[%s12655_s3 + $0x20] sm:$0xff] }
 0x965   : > { %3657 = vmatprep.mubr.f32.mxu1 %v13716_v18  ;;  %6898 = vmatpush1.bf16.msra.mxu1 %v13721_v43  ;;  %v13726_v43 = vld [vmem:[#allocation23_spill] sm:$0xff] }
 0x966   : > { %6900 = vmatprep.subr.bf16.mxu1 %v13722_v49  ;;  %v13725_v49 = vld [vmem:[#allocation21_spill] sm:$0xff] }
 0x968   : > { %6131 = vmatmul.mubr.msk.f32.gmra.mrb[134].mxu1 %vm1030_vm0, %v7702_v41  ;;  %v7704_v41 = vld [vmem:[%s12655_s3 + $0x28] sm:$0xff] }
 0x969   : > { %3663 = vmatprep.mubr.f32.mxu1 %v13716_v18  ;;  %6902 = vmatpush1.bf16.msra.mxu1 %v13723_v58  ;;  %v13728_v58 = vld [vmem:[#allocation25_spill] sm:$0xff] }
 0x96a   : > { %6904 = vmatprep.subr.bf16.mxu1 %v13724_v23  ;;  %v13727_v23 = vld [vmem:[#allocation24_spill] sm:$0xff] }
 0x96c   : > { %6132 = vmatmul.mubr.msk.f32.gmra.mrb[136].mxu1 %vm1030_vm0, %v7703_v60  ;;  %v7705_v60 = vld [vmem:[%s12655_s3 + $0x30] sm:$0xff] }
 0x96d   : > { %3669 = vmatprep.mubr.f32.mxu1 %v13716_v18  ;;  %6906 = vmatpush1.bf16.msra.mxu1 %v13725_v49  ;;  %v13730_v49 = vld [vmem:[#allocation27_spill] sm:$0xff] }
 0x96e   : > { %6908 = vmatprep.subr.bf16.mxu1 %v13726_v43  ;;  %v13729_v43 = vld [vmem:[#allocation26_spill] sm:$0xff] }
 0x970   : > { %6133 = vmatmul.mubr.msk.f32.gmra.mrb[138].mxu1 %vm1030_vm0, %v7704_v41  ;;  %v7706_v41 = vld [vmem:[%s12655_s3 + $0x38] sm:$0xff] }
 0x971   : > { %3675 = vmatprep.mubr.f32.mxu1 %v13716_v18  ;;  %6910 = vmatpush1.bf16.msra.mxu1 %v13727_v23  ;;  %v13732_v23 = vld [vmem:[#allocation61_spill] sm:$0xff] }
 0x972   : > { %6912 = vmatprep.subr.bf16.mxu1 %v13728_v58  ;;  %v13731_v58 = vld [vmem:[#allocation60_spill] sm:$0xff] }
 0x974   : > { %6134 = vmatmul.mubr.msk.f32.gmra.mrb[140].mxu1 %vm1030_vm0, %v7705_v60  ;;  %v7707_v60 = vld [vmem:[%s12655_s3 + $0x40] sm:$0xff] }
 0x975   : > { %3681 = vmatprep.mubr.f32.mxu1 %v13716_v18  ;;  %6914 = vmatpush1.bf16.msra.mxu1 %v13729_v43  ;;  %v13734_v43 = vld [vmem:[#allocation63_spill] sm:$0xff] }
 0x976   : > { %6916 = vmatprep.subr.bf16.mxu1 %v13730_v49  ;;  %v13733_v49 = vld [vmem:[#allocation62_spill] sm:$0xff] }
 0x978   : > { %6135 = vmatmul.mubr.msk.f32.gmra.mrb[142].mxu1 %vm1030_vm0, %v7706_v41  ;;  %v7708_v41 = vld [vmem:[%s12655_s3 + $0x48] sm:$0xff] }
 0x979   : > { %3687 = vmatprep.mubr.f32.mxu1 %v13716_v18  ;;  %6918 = vmatpush1.bf16.msra.mxu1 %v13731_v58  ;;  %v13736_v58 = vld [vmem:[#allocation65_spill] sm:$0xff] }
 0x97a   : > { %6920 = vmatprep.subr.bf16.mxu1 %v13732_v23  ;;  %v13735_v23 = vld [vmem:[#allocation64_spill] sm:$0xff] }
 0x97c   : > { %6136 = vmatmul.mubr.msk.f32.gmra.mrb[144].mxu1 %vm1030_vm0, %v7707_v60  ;;  %v7709_v60 = vld [vmem:[%s12655_s3 + $0x50] sm:$0xff] }
 0x97d   : > { %3693 = vmatprep.mubr.f32.mxu1 %v13716_v18  ;;  %6922 = vmatpush1.bf16.msra.mxu1 %v13733_v49  ;;  %v13738_v49 = vld [vmem:[#allocation67_spill] sm:$0xff] }
 0x97e   : > { %6924 = vmatprep.subr.bf16.mxu1 %v13734_v43  ;;  %v13737_v43 = vld [vmem:[#allocation66_spill] sm:$0xff] }
 0x980   : > { %6137 = vmatmul.mubr.msk.f32.gmra.mrb[146].mxu1 %vm1030_vm0, %v7708_v41  ;;  %v7710_v41 = vld [vmem:[%s12655_s3 + $0x58] sm:$0xff] }
 0x981   : > { %3699 = vmatprep.mubr.f32.mxu1 %v13716_v18  ;;  %6926 = vmatpush1.bf16.msra.mxu1 %v13735_v23  ;;  %v13740_v23 = vld [vmem:[#allocation69_spill] sm:$0xff] }
 0x982   : > { %6928 = vmatprep.subr.bf16.mxu1 %v13736_v58  ;;  %v13739_v58 = vld [vmem:[#allocation68_spill] sm:$0xff] }
 0x984   : > { %6138 = vmatmul.mubr.msk.f32.gmra.mrb[148].mxu1 %vm1030_vm0, %v7709_v60  ;;  %v7711_v60 = vld [vmem:[%s12655_s3 + $0x60] sm:$0xff] }
 0x985   : > { %3705 = vmatprep.mubr.f32.mxu1 %v13716_v18  ;;  %6930 = vmatpush1.bf16.msra.mxu1 %v13737_v43  ;;  %v13742_v43 = vld [vmem:[#allocation71_spill] sm:$0xff] }
 0x986   : > { %6932 = vmatprep.subr.bf16.mxu1 %v13738_v49  ;;  %v13741_v49 = vld [vmem:[#allocation70_spill] sm:$0xff] }
 0x988   : > { %6139 = vmatmul.mubr.msk.f32.gmra.mrb[150].mxu1 %vm1030_vm0, %v7710_v41  ;;  %v7712_v41 = vld [vmem:[%s12655_s3 + $0x68] sm:$0xff] }
 0x989   : > { %3711 = vmatprep.mubr.f32.mxu1 %v13716_v18  ;;  %6934 = vmatpush1.bf16.msra.mxu1 %v13739_v58  ;;  %v13744_v58 = vld [vmem:[#allocation73_spill] sm:$0xff] }
 0x98a   : > { %6936 = vmatprep.subr.bf16.mxu1 %v13740_v23  ;;  %v13743_v23 = vld [vmem:[#allocation72_spill] sm:$0xff] }
 0x98c   : > { %6140 = vmatmul.mubr.msk.f32.gmra.mrb[152].mxu1 %vm1030_vm0, %v7711_v60  ;;  %v7713_v60 = vld [vmem:[%s12655_s3 + $0x70] sm:$0xff] }
 0x98d   : > { %3717 = vmatprep.mubr.f32.mxu1 %v13716_v18  ;;  %6938 = vmatpush1.bf16.msra.mxu1 %v13741_v49  ;;  %v13746_v49 = vld [vmem:[#allocation75_spill] sm:$0xff] }
 0x98e   : > { %6940 = vmatprep.subr.bf16.mxu1 %v13742_v43  ;;  %v13745_v43 = vld [vmem:[#allocation74_spill] sm:$0xff] }
 0x990   : > { %6141 = vmatmul.mubr.msk.f32.gmra.mrb[154].mxu1 %vm1030_vm0, %v7712_v41  ;;  %v7714_v41 = vld [vmem:[%s12655_s3 + $0x78] sm:$0xff] }
 0x991   : > { %3723 = vmatprep.mubr.f32.mxu1 %v13716_v18  ;;  %6942 = vmatpush1.bf16.msra.mxu1 %v13743_v23  ;;  %v13747_v23 = vld [vmem:[#allocation76_spill] sm:$0xff] }
 0x992   : > { %6944 = vmatprep.subr.bf16.mxu1 %v13744_v58  ;;  %v13748_v58 = vld [vmem:[#allocation109_spill] sm:$0xff] }
 0x994   : > { %6142 = vmatmul.mubr.msk.f32.gmra.mrb[156].mxu1 %vm1030_vm0, %v7713_v60 }
 0x995   : > { %3729 = vmatprep.mubr.f32.mxu1 %v13716_v18  ;;  %6946 = vmatpush1.bf16.msra.mxu1 %v13745_v43 }
 0x996   : > { %6948 = vmatprep.subr.bf16.mxu1 %v13746_v49 }
 0x998   : > { %6143 = vmatmul.mubr.msk.f32.gmra.mrb[158].mxu1 %vm1030_vm0, %v7714_v41 }
 0x999   : > { %6950 = vmatpush1.bf16.msra.mxu1 %v13747_v23  ;;  %v13753_v23 = vld [vmem:[#allocation82_spill] sm:$0xff] }
 0x99a   : > { %7016 = vmatprep.subr.bf16.mxu1 %v13748_v58 }
 0xa2f   : > { %v3641_v0 = vpop.f32.mrb[128].mxu1 }
 0xa30   : > { %v3643_v11 = vpop.f32.mrb[129].mxu1 }
 0xa31   : > { %3800 = vmatprep.mubr.f32.mxu0 %v3643_v11 }
 0xa32   : > { %3801 = vmatmul.mubr.f32.vlgmr.msra.gmra.mrb[80].mxu0 %v3641_v0  ;;  %v13754_v0 = vld [vmem:[#allocation83_spill] sm:$0xff] }
 0xa33   : > { %v3647_v60 = vpop.f32.mrb[130].mxu1  ;;  %6954 = vmatpush1.bf16.msra.mxu0 %v13749_v3 }
 0xa34   : > { %v3649_v43 = vpop.f32.mrb[131].mxu1  ;;  %6956 = vmatprep.subr.bf16.mxu0 %v13750_v13  ;;  %v13755_v13 = vld [vmem:[#allocation84_spill] sm:$0xff] }
 0xa35   : > { %3806 = vmatprep.mubr.f32.mxu0 %v3649_v43 }
 0xa36   : > { %3807 = vmatmul.mubr.f32.gmra.mrb[82].mxu0 %v3647_v60  ;;  %v13756_v60 = vld [vmem:[#allocation85_spill] sm:$0xff] }
 0xa37   : > { %v3653_v49 = vpop.f32.mrb[132].mxu1  ;;  %6958 = vmatpush1.bf16.msra.mxu0 %v13751_v57 }
 0xa38   : > { %v3655_v41 = vpop.f32.mrb[133].mxu1  ;;  %6960 = vmatprep.subr.bf16.mxu0 %v13752_v54  ;;  %v13757_v54 = vld [vmem:[#allocation86_spill] sm:$0xff] }
 0xa39   : > { %3812 = vmatprep.mubr.f32.mxu0 %v3655_v41  ;;  %v13758_v41 = vld [vmem:[#allocation87_spill] sm:$0xff] }
 0xa3a   : > { %3813 = vmatmul.mubr.f32.gmra.mrb[84].mxu0 %v3653_v49 }
 0xa3b   : > { %v3659_v58 = vpop.f32.mrb[134].mxu1  ;;  %6962 = vmatpush1.bf16.msra.mxu0 %v13753_v23 }
 0xa3c   : > { %v3661_v11 = vpop.f32.mrb[135].mxu1  ;;  %6964 = vmatprep.subr.bf16.mxu0 %v13754_v0  ;;  %v13759_v0 = vld [vmem:[#allocation88_spill] sm:$0xff] }
 0xa3d   : > { %3818 = vmatprep.mubr.f32.mxu0 %v3661_v11  ;;  %v13760_v11 = vld [vmem:[#allocation89_spill] sm:$0xff] }
 0xa3e   : > { %3819 = vmatmul.mubr.f32.gmra.mrb[86].mxu0 %v3659_v58 }
 0xa3f   : > { %v3665_v3 = vpop.f32.mrb[136].mxu1  ;;  %6966 = vmatpush1.bf16.msra.mxu0 %v13755_v13 }
 0xa40   : > { %v3667_v43 = vpop.f32.mrb[137].mxu1  ;;  %6968 = vmatprep.subr.bf16.mxu0 %v13756_v60  ;;  %v13761_v60 = vld [vmem:[#allocation90_spill] sm:$0xff] }
 0xa41   : > { %3824 = vmatprep.mubr.f32.mxu0 %v3667_v43  ;;  %v13762_v43 = vld [vmem:[#allocation91_spill] sm:$0xff] }
 0xa42   : > { %3825 = vmatmul.mubr.f32.gmra.mrb[88].mxu0 %v3665_v3 }
 0xa43   : > { %v3671_v57 = vpop.f32.mrb[138].mxu1  ;;  %6970 = vmatpush1.bf16.msra.mxu0 %v13757_v54 }
 0xa44   : > { %v3673_v49 = vpop.f32.mrb[139].mxu1  ;;  %6972 = vmatprep.subr.bf16.mxu0 %v13758_v41  ;;  %v13763_v41 = vld [vmem:[#allocation92_spill] sm:$0xff] }
 0xa45   : > { %3830 = vmatprep.mubr.f32.mxu0 %v3673_v49  ;;  %v13764_v49 = vld [vmem:[#allocation93_spill] sm:$0xff] }
 0xa46   : > { %3831 = vmatmul.mubr.f32.gmra.mrb[90].mxu0 %v3671_v57 }
 0xa47   : > { %v3677_v23 = vpop.f32.mrb[140].mxu1  ;;  %6974 = vmatpush1.bf16.msra.mxu0 %v13759_v0 }
 0xa48   : > { %v3679_v58 = vpop.f32.mrb[141].mxu1  ;;  %6976 = vmatprep.subr.bf16.mxu0 %v13760_v11  ;;  %v13765_v11 = vld [vmem:[#allocation94_spill] sm:$0xff] }
 0xa49   : > { %3836 = vmatprep.mubr.f32.mxu0 %v3679_v58 }
 0xa4a   : > { %3837 = vmatmul.mubr.f32.gmra.mrb[92].mxu0 %v3677_v23  ;;  %v13766_v23 = vld [vmem:[#allocation110_spill] sm:$0xff] }
 0xa4b   : > { %v3683_v13 = vpop.f32.mrb[142].mxu1  ;;  %6978 = vmatpush1.bf16.msra.mxu0 %v13761_v60  ;;  %v13767_v60 = vld [vmem:[#allocation95_spill] sm:$0xff] }
 0xa4c   : > { %v3685_v3 = vpop.f32.mrb[143].mxu1  ;;  %6980 = vmatprep.subr.bf16.mxu0 %v13762_v43 }
 0xa4d   : > { %3842 = vmatprep.mubr.f32.mxu0 %v3685_v3  ;;  %v13769_v3 = vld [vmem:[#allocation96_spill] sm:$0xff] }
 0xa4e   : > { %3843 = vmatmul.mubr.f32.gmra.mrb[94].mxu0 %v3683_v13 }
 0xa4f   : > { %v3689_v54 = vpop.f32.mrb[144].mxu1  ;;  %6982 = vmatpush1.bf16.msra.mxu0 %v13763_v41  ;;  %v13770_v41 = vld [vmem:[#allocation112_spill] sm:$0xff] }
 0xa50   : > { %v3691_v57 = vpop.f32.mrb[145].mxu1  ;;  %6984 = vmatprep.subr.bf16.mxu0 %v13764_v49 }
 0xa51   : > { %3913 = vmatprep.mubr.f32.mxu1 %v3691_v57  ;;  %v13771_v57 = vld [vmem:[#allocation97_spill] sm:$0xff] }
 0xa52   : > { %3914 = vmatmul.mubr.f32.vlgmr.msra.gmra.mrb[160].mxu1 %v3689_v54  ;;  %v13772_v54 = vld [vmem:[#allocation113_spill] sm:$0xff] }
 0xa53   : > { %v3695_v0 = vpop.f32.mrb[146].mxu1  ;;  %6986 = vmatpush1.bf16.msra.mxu0 %v13765_v11  ;;  %7018 = vmatpush1.bf16.msra.mxu1 %v13766_v23  ;;  %v13773_v11 = vld [vmem:[#allocation98_spill] sm:$0xff] }
 0xa54   : > { %v3697_v58 = vpop.f32.mrb[147].mxu1  ;;  %6988 = vmatprep.subr.bf16.mxu0 %v13767_v60  ;;  %7020 = vmatprep.subr.bf16.mxu1 %v13768_v1  ;;  %v13774_v60 = vld [vmem:[#allocation114_spill] sm:$0xff] }
 0xa55   : > { %3919 = vmatprep.mubr.f32.mxu1 %v3697_v58  ;;  %v13775_v58 = vld [vmem:[#allocation99_spill] sm:$0xff] }
 0xa56   : > { %3920 = vmatmul.mubr.f32.gmra.mrb[162].mxu1 %v3695_v0  ;;  %v13776_v0 = vld [vmem:[#allocation147_spill] sm:$0xff] }
 0xa57   : > { %v3701_v13 = vpop.f32.mrb[148].mxu1  ;;  %6990 = vmatpush1.bf16.msra.mxu0 %v13769_v3  ;;  %7022 = vmatpush1.bf16.msra.mxu1 %v13770_v41  ;;  %v13777_v3 = vld [vmem:[#allocation100_spill] sm:$0xff] }
 0xa58   : > { %v3703_v49 = vpop.f32.mrb[149].mxu1  ;;  %6992 = vmatprep.subr.bf16.mxu0 %v13771_v57  ;;  %7024 = vmatprep.subr.bf16.mxu1 %v13772_v54  ;;  %v13778_v57 = vld [vmem:[#allocation148_spill] sm:$0xff] }
 0xa59   : > { %3925 = vmatprep.mubr.f32.mxu1 %v3703_v49  ;;  %v13779_v49 = vld [vmem:[#allocation101_spill] sm:$0xff] }
 0xa5a   : > { %3926 = vmatmul.mubr.f32.gmra.mrb[164].mxu1 %v3701_v13  ;;  %v13780_v13 = vld [vmem:[#allocation149_spill] sm:$0xff] }
 0xa5b   : > { %v3707_v23 = vpop.f32.mrb[150].mxu1  ;;  %6994 = vmatpush1.bf16.msra.mxu0 %v13773_v11  ;;  %7026 = vmatpush1.bf16.msra.mxu1 %v13774_v60  ;;  %v13781_v11 = vld [vmem:[#allocation102_spill] sm:$0xff] }
 0xa5c   : > { %v3709_v1 = vpop.f32.mrb[151].mxu1  ;;  %6996 = vmatprep.subr.bf16.mxu0 %v13775_v58  ;;  %7028 = vmatprep.subr.bf16.mxu1 %v13776_v0  ;;  %v13782_v58 = vld [vmem:[#allocation150_spill] sm:$0xff] }
 0xa5d   : > { %3931 = vmatprep.mubr.f32.mxu1 %v3709_v1  ;;  %v13783_v1 = vld [vmem:[#allocation103_spill] sm:$0xff] }
 0xa5e   : > { %3932 = vmatmul.mubr.f32.gmra.mrb[166].mxu1 %v3707_v23  ;;  %v13784_v23 = vld [vmem:[#allocation151_spill] sm:$0xff] }
 0xa5f   : > { %v3713_v41 = vpop.f32.mrb[152].mxu1  ;;  %6998 = vmatpush1.bf16.msra.mxu0 %v13777_v3  ;;  %7030 = vmatpush1.bf16.msra.mxu1 %v13778_v57  ;;  %v13785_v3 = vld [vmem:[#allocation104_spill] sm:$0xff] }
 0xa60   : > { %v3715_v54 = vpop.f32.mrb[153].mxu1  ;;  %7000 = vmatprep.subr.bf16.mxu0 %v13779_v49  ;;  %7032 = vmatprep.subr.bf16.mxu1 %v13780_v13  ;;  %v13786_v49 = vld [vmem:[#allocation152_spill] sm:$0xff] }
 0xa61   : > { %3937 = vmatprep.mubr.f32.mxu1 %v3715_v54  ;;  %v13787_v54 = vld [vmem:[#allocation105_spill] sm:$0xff] }
 0xa62   : > { %3938 = vmatmul.mubr.f32.gmra.mrb[168].mxu1 %v3713_v41  ;;  %v13788_v41 = vld [vmem:[#allocation153_spill] sm:$0xff] }
 0xa63   : > { %v3719_v60 = vpop.f32.mrb[154].mxu1  ;;  %7002 = vmatpush1.bf16.msra.mxu0 %v13781_v11  ;;  %7034 = vmatpush1.bf16.msra.mxu1 %v13782_v58  ;;  %v13789_v11 = vld [vmem:[#allocation106_spill] sm:$0xff] }
 0xa64   : > { %v3721_v0 = vpop.f32.mrb[155].mxu1  ;;  %7004 = vmatprep.subr.bf16.mxu0 %v13783_v1  ;;  %7036 = vmatprep.subr.bf16.mxu1 %v13784_v23  ;;  %v13790_v1 = vld [vmem:[#allocation154_spill] sm:$0xff] }
 0xa65   : > { %3943 = vmatprep.mubr.f32.mxu1 %v3721_v0  ;;  %v13791_v0 = vld [vmem:[#allocation107_spill] sm:$0xff] }
 0xa66   : > { %3944 = vmatmul.mubr.f32.gmra.mrb[170].mxu1 %v3719_v60  ;;  %v13792_v60 = vld [vmem:[#allocation155_spill] sm:$0xff] }
 0xa67   : > { %v3725_v57 = vpop.f32.mrb[156].mxu1  ;;  %7006 = vmatpush1.bf16.msra.mxu0 %v13785_v3  ;;  %7038 = vmatpush1.bf16.msra.mxu1 %v13786_v49  ;;  %v13793_v49 = vld [vmem:[#allocation108_spill] sm:$0xff] }
 0xa68   : > { %v3727_v13 = vpop.f32.mrb[157].mxu1  ;;  %7008 = vmatprep.subr.bf16.mxu0 %v13787_v54  ;;  %7040 = vmatprep.subr.bf16.mxu1 %v13788_v41  ;;  %v13794_v3 = vld [vmem:[#allocation156_spill] sm:$0xff]  ;;  %v13795_v54 = vld [vmem:[#allocation157_spill] sm:$0xff]  ;;  %v13800_v41 = vld [vmem:[#allocation162_spill] sm:$0xff] }
 0xa69   : > { %3949 = vmatprep.mubr.f32.mxu1 %v3727_v13  ;;  %v13796_v13 = vld [vmem:[#allocation158_spill] sm:$0xff] }
 0xa6a   : > { %3950 = vmatmul.mubr.f32.gmra.mrb[172].mxu1 %v3725_v57  ;;  %v13797_v57 = vld [vmem:[#allocation159_spill] sm:$0xff] }
 0xa6b   : > { %v3731_v58 = vpop.f32.mrb[158].mxu1  ;;  %7010 = vmatpush1.bf16.msra.mxu0 %v13789_v11  ;;  %7042 = vmatpush1.bf16.msra.mxu1 %v13790_v1  ;;  %v13798_v11 = vld [vmem:[#allocation160_spill] sm:$0xff]  ;;  %v13799_v1 = vld [vmem:[#allocation161_spill] sm:$0xff] }
 0xa6c   : > { %v3733_v23 = vpop.f32.mrb[159].mxu1  ;;  %7012 = vmatprep.subr.bf16.mxu0 %v13791_v0  ;;  %7044 = vmatprep.subr.bf16.mxu1 %v13792_v60  ;;  %v13801_v0 = vld [vmem:[#allocation163_spill] sm:$0xff] }
 0xa6d   : > { %3955 = vmatprep.mubr.f32.mxu1 %v3733_v23  ;;  %v13802_v23 = vld [vmem:[#allocation164_spill] sm:$0xff] }
 0xa6e   : > { %3956 = vmatmul.mubr.f32.gmra.mrb[174].mxu1 %v3731_v58  ;;  %v13803_v58 = vld [vmem:[#allocation165_spill] sm:$0xff] }
 0xa6f   : > { %7014 = vmatpush1.bf16.msra.mxu0 %v13793_v49  ;;  %7046 = vmatpush1.bf16.msra.mxu1 %v13794_v3  ;;  %v13804_v49 = vld [vmem:[#allocation166_spill] sm:$0xff]  ;;  %v13805_v3 = vld [vmem:[#allocation167_spill] sm:$0xff] }
 0xa70   : > { %7048 = vmatprep.subr.bf16.mxu1 %v13795_v54  ;;  %v13806_v54 = vld [vmem:[#allocation168_spill] sm:$0xff] }
 0xa73   : > { %7050 = vmatpush1.bf16.msra.mxu1 %v13796_v13  ;;  %v13807_v13 = vld [vmem:[#allocation169_spill] sm:$0xff] }
 0xa74   : > { %7052 = vmatprep.subr.bf16.mxu1 %v13797_v57  ;;  %v13808_v57 = vld [vmem:[#allocation170_spill] sm:$0xff] }
 0xa77   : > { %7054 = vmatpush1.bf16.msra.mxu1 %v13798_v11  ;;  %v13809_v11 = vld [vmem:[#allocation171_spill] sm:$0xff] }
 0xa78   : > { %7056 = vmatprep.subr.bf16.mxu1 %v13799_v1  ;;  %v13810_v1 = vld [vmem:[#allocation172_spill] sm:$0xff] }
 0xa7b   : > { %7058 = vmatpush1.bf16.msra.mxu1 %v13800_v41  ;;  %v13811_v41 = vld [vmem:[#allocation28_spill] sm:$0xff] }
 0xa7c   : > { %7060 = vmatprep.subr.bf16.mxu1 %v13801_v0 }
 0xa7f   : > { %7062 = vmatpush1.bf16.msra.mxu1 %v13802_v23 }
 0xa80   : > { %7064 = vmatprep.subr.bf16.mxu1 %v13803_v58 }
 0xa83   : > { %7066 = vmatpush1.bf16.msra.mxu1 %v13804_v49 }
 0xa84   : > { %7068 = vmatprep.subr.bf16.mxu1 %v13805_v3 }
 0xa87   : > { %7070 = vmatpush1.bf16.msra.mxu1 %v13806_v54 }
 0xa88   : > { %7072 = vmatprep.subr.bf16.mxu1 %v13807_v13 }
 0xa8b   : > { %7074 = vmatpush1.bf16.msra.mxu1 %v13808_v57 }
 0xa8c   : > { %7076 = vmatprep.subr.bf16.mxu1 %v13809_v11 }
 0xa8f   : > { %7078 = vmatpush1.bf16.msra.mxu1 %v13810_v1 }
 0xa90   : > { %7096 = vmatprep.subr.bf16.mxu1 %v13811_v41 }
 0xb05   : > { %v3802_v0 = vpop.f32.mrb[80].mxu0 }
 0xb06   : > { %v3804_v23 = vpop.f32.mrb[81].mxu0 }
 0xb09   : > { %v3808_v60 = vpop.f32.mrb[82].mxu0 }
 0xb0a   : > { %v3810_v58 = vpop.f32.mrb[83].mxu0 }
 0xb0d   : > { %v3814_v43 = vpop.f32.mrb[84].mxu0 }
 0xb0e   : > { %v3816_v49 = vpop.f32.mrb[85].mxu0 }
 0xb11   : > { %v3820_v16 = vpop.f32.mrb[86].mxu0 }
 0xb12   : > { %v3822_v3 = vpop.f32.mrb[87].mxu0 }
 0xb15   : > { %v3826_v15 = vpop.f32.mrb[88].mxu0 }
 0xb16   : > { %v3828_v54 = vpop.f32.mrb[89].mxu0 }
 0xb19   : > { %v11195_v35 = vpop.f32.mrb[90].mxu0 }
 0xb1a   : > { %v11197_v13 = vpop.f32.mrb[91].mxu0 }
 0xb1d   : > { %v11199_v57 = vpop.f32.mrb[92].mxu0 }
 0xb1e   : > { %v11201_v11 = vpop.f32.mrb[93].mxu0 }
 0xb21   : > { %v11203_v1 = vpop.f32.mrb[94].mxu0 }
 0xb22   : > { %v11205_v41 = vpop.f32.mrb[95].mxu0 }
 0xb25   : > { %v3915_v33 = vpop.f32.mrb[160].mxu1 }
 0xb26   : > { %v3962_v55 = vsub.f32 %v3802_v0, %v3915_v33  ;;  %v3917_v61 = vpop.f32.mrb[161].mxu1  ;;  %v13813_v33 = vld [vmem:[#allocation117_spill] sm:$0xff] }
 0xb27   : > { %v3963_v48 = vsub.f32 %v3804_v23, %v3917_v61 }
 0xb28   : > { %v3978_v38 = vadd.f32 %v3962_v55, %v10933_v45 }
 0xb29   : > { %v3979_v30 = vadd.f32 %v3963_v48, %v10927_v10  ;;  %v3921_v7 = vpop.f32.mrb[162].mxu1  ;;  %v13816_v48 = vld [vmem:[#allocation116_spill] sm:$0xff] }
 0xb2a   : > { %v3994_v50 = vmul.f32 %v3978_v38, %v13812_v9  ;;  %v3964_v42 = vsub.f32 %v3808_v60, %v3921_v7  ;;  %v3923_v56 = vpop.f32.mrb[163].mxu1  ;;  %v13821_v60 = vld [vmem:[#allocation120_spill] sm:$0xff] }
 0xb2b   : > { %v3995_v4 = vmul.f32 %v3979_v30, %v13812_v9  ;;  %v3965_v20 = vsub.f32 %v3810_v58, %v3923_v56 }
 0xb2c   : > { %v3980_v28 = vadd.f32 %v3964_v42, %v10923_v22  ;;  %v11217_v61 = vadd.f32 %v3994_v50, %v13813_v33  ;;  %v13817_v42 = vld [vmem:[#allocation118_spill] sm:$0xff]  ;;  %v13819_v50 = vld [vmem:[#allocation119_spill] sm:$0xff] }
 0xb2d   : > { %v3981_v17 = vadd.f32 %v3965_v20, %v10930_v39  ;;  %v3927_v12 = vpop.f32.mrb[164].mxu1  ;;  %v11214_v0 = vadd.f32 %v3995_v4, %v13813_v33 }
 0xb2e   : > { %13815 = vst [vmem:[#allocation142_spill] sm:$0xff] %v11217_v61  ;;  %v3996_v55 = vmul.f32 %v3980_v28, %v13816_v48  ;;  %v3966_v10 = vsub.f32 %v3814_v43, %v3927_v12  ;;  %v3929_v38 = vpop.f32.mrb[165].mxu1 }
 0xb2f   : > { %13814 = vst [vmem:[#allocation32_spill] sm:$0xff] %v11214_v0  ;;  %v3997_v7 = vmul.f32 %v3981_v17, %v13816_v48  ;;  %v3967_v45 = vsub.f32 %v3816_v49, %v3929_v38  ;;  %4090 = vmatprep.mubr.f32.mxu0 %v11214_v0 }
 0xb30   : > { %v3982_v56 = vadd.f32 %v3966_v10, %v10958_v19  ;;  %4091 = vmatmul.mubr.f32.vlgmr.msra.gmra.mrb[96].mxu0 %v11217_v61  ;;  %v11230_v39 = vadd.f32 %v3996_v55, %v13817_v42 }
 0xb31   : > { %v3983_v20 = vadd.f32 %v3967_v45, %v10952_v34  ;;  %v3933_v4 = vpop.f32.mrb[166].mxu1  ;;  %v11226_v30 = vadd.f32 %v3997_v7, %v13817_v42 }
 0xb32   : > { %v3998_v22 = vmul.f32 %v3982_v56, %v13819_v50  ;;  %v3968_v28 = vsub.f32 %v3820_v16, %v3933_v4  ;;  %v3935_v12 = vpop.f32.mrb[167].mxu1  ;;  %13820 = vst [vmem:[#allocation31_spill] sm:$0xff] %v11230_v39  ;;  %v13823_v16 = vld [vmem:[#allocation121_spill] sm:$0xff]  ;;  %v13825_v56 = vld [vmem:[#allocation124_spill] sm:$0xff] }
 0xb33   : > { %13818 = vst [vmem:[#allocation205_spill] sm:$0xff] %v11226_v30  ;;  %v3999_v17 = vmul.f32 %v3983_v20, %v13819_v50  ;;  %v3969_v43 = vsub.f32 %v3822_v3, %v3935_v12  ;;  %4096 = vmatprep.mubr.f32.mxu0 %v11226_v30 }
 0xb34   : > { %v3984_v19 = vadd.f32 %v3968_v28, %v10949_v32  ;;  %4097 = vmatmul.mubr.f32.gmra.mrb[98].mxu0 %v11230_v39  ;;  %v11242_v38 = vadd.f32 %v3998_v22, %v13821_v60 }
 0xb35   : > { %v3985_v34 = vadd.f32 %v3969_v43, %v10955_v2  ;;  %v3939_v49 = vpop.f32.mrb[168].mxu1  ;;  %v11238_v23 = vadd.f32 %v3999_v17, %v13821_v60 }
 0xb36   : > { %v4000_v58 = vmul.f32 %v3984_v19, %v13823_v16  ;;  %v3970_v10 = vsub.f32 %v3826_v15, %v3939_v49  ;;  %v3941_v55 = vpop.f32.mrb[169].mxu1  ;;  %13824 = vst [vmem:[#allocation145_spill] sm:$0xff] %v11242_v38  ;;  %v13827_v15 = vld [vmem:[#allocation127_spill] sm:$0xff]  ;;  %v13829_v19 = vld [vmem:[#allocation129_spill] sm:$0xff] }
 0xb37   : > { %13822 = vst [vmem:[#allocation203_spill] sm:$0xff] %v11238_v23  ;;  %v4001_v3 = vmul.f32 %v3985_v34, %v13823_v16  ;;  %v3971_v7 = vsub.f32 %v3828_v54, %v3941_v55  ;;  %4102 = vmatprep.mubr.f32.mxu0 %v11238_v23 }
 0xb38   : > { %v3986_v32 = vadd.f32 %v3970_v10, %v10989_v62  ;;  %4103 = vmatmul.mubr.f32.gmra.mrb[100].mxu0 %v11242_v38  ;;  %v11255_v12 = vadd.f32 %v4000_v58, %v13825_v56 }
 0xb39   : > { %v3987_v2 = vadd.f32 %v3971_v7, %v10983_v5  ;;  %v3945_v45 = vpop.f32.mrb[170].mxu1  ;;  %v11250_v20 = vadd.f32 %v4001_v3, %v13825_v56 }
 0xb3a   : > { %v4002_v4 = vmul.f32 %v3986_v32, %v13827_v15  ;;  %v3972_v22 = vsub.f32 %v11195_v35, %v3945_v45  ;;  %v3947_v28 = vpop.f32.mrb[171].mxu1  ;;  %13828 = vst [vmem:[#allocation204_spill] sm:$0xff] %v11255_v12  ;;  %v13831_v35 = vld [vmem:[#allocation131_spill] sm:$0xff]  ;;  %v13833_v32 = vld [vmem:[#allocation134_spill] sm:$0xff] }
 0xb3b   : > { %13826 = vst [vmem:[#allocation206_spill] sm:$0xff] %v11250_v20  ;;  %v4003_v54 = vmul.f32 %v3987_v2, %v13827_v15  ;;  %v3973_v62 = vsub.f32 %v11197_v13, %v3947_v28  ;;  %4108 = vmatprep.mubr.f32.mxu0 %v11250_v20 }
 0xb3c   : > { %v3988_v5 = vadd.f32 %v3972_v22, %v10979_v6  ;;  %4109 = vmatmul.mubr.f32.gmra.mrb[102].mxu0 %v11255_v12  ;;  %v11269_v55 = vadd.f32 %v4002_v4, %v13829_v19 }
 0xb3d   : > { %v3989_v17 = vadd.f32 %v3973_v62, %v10986_v8  ;;  %v3951_v43 = vpop.f32.mrb[172].mxu1  ;;  %v11264_v34 = vadd.f32 %v4003_v54, %v13829_v19  ;;  %v13837_v62 = vld [vmem:[#allocation139_spill] sm:$0xff] }
 0xb3e   : > { %v4004_v49 = vmul.f32 %v3988_v5, %v13831_v35  ;;  %v3974_v58 = vsub.f32 %v11199_v57, %v3951_v43  ;;  %v3953_v10 = vpop.f32.mrb[173].mxu1  ;;  %13832 = vst [vmem:[#allocation198_spill] sm:$0xff] %v11269_v55  ;;  %v13835_v57 = vld [vmem:[#allocation137_spill] sm:$0xff] }
 0xb3f   : > { %13830 = vst [vmem:[#allocation29_spill] sm:$0xff] %v11264_v34  ;;  %v4005_v13 = vmul.f32 %v3989_v17, %v13831_v35  ;;  %v3975_v6 = vsub.f32 %v11201_v11, %v3953_v10  ;;  %4114 = vmatprep.mubr.f32.mxu0 %v11264_v34  ;;  %v13844_v10 = vld [vmem:[#allocation173_spill] sm:$0xff] }
 0xb40   : > { %v3990_v8 = vadd.f32 %v3974_v58, %v11014_v14  ;;  %4115 = vmatmul.mubr.f32.gmra.mrb[104].mxu0 %v11269_v55  ;;  %v11283_v28 = vadd.f32 %v4004_v49, %v13833_v32 }
 0xb41   : > { %v3991_v3 = vadd.f32 %v3975_v6, %v11008_v59  ;;  %v3957_v7 = vpop.f32.mrb[174].mxu1  ;;  %v11278_v2 = vadd.f32 %v4005_v13, %v13833_v32 }
 0xb42   : > { %v4006_v45 = vmul.f32 %v3990_v8, %v13835_v57  ;;  %v3976_v4 = vsub.f32 %v11203_v1, %v3957_v7  ;;  %v3959_v22 = vpop.f32.mrb[175].mxu1  ;;  %13836 = vst [vmem:[#allocation200_spill] sm:$0xff] %v11283_v28  ;;  %v13839_v1 = vld [vmem:[#allocation141_spill] sm:$0xff]  ;;  %v13845_v8 = vld [vmem:[#allocation174_spill] sm:$0xff] }
 0xb43   : > { %13834 = vst [vmem:[#allocation202_spill] sm:$0xff] %v11278_v2  ;;  %v4007_v11 = vmul.f32 %v3991_v3, %v13835_v57  ;;  %v3977_v14 = vsub.f32 %v11205_v41, %v3959_v22  ;;  %4120 = vmatprep.mubr.f32.mxu0 %v11278_v2  ;;  %v13841_v41 = vld [vmem:[#allocation144_spill] sm:$0xff] }
 0xb44   : > { %v3992_v59 = vadd.f32 %v3976_v4, %v11005_v36  ;;  %4121 = vmatmul.mubr.f32.gmra.mrb[106].mxu0 %v11283_v28  ;;  %v11296_v43 = vadd.f32 %v4006_v45, %v13837_v62 }
 0xb45   : > { %v3993_v54 = vadd.f32 %v3977_v14, %v11011_v63  ;;  %v11292_v5 = vadd.f32 %v4007_v11, %v13837_v62 }
 0xb46   : > { %v4008_v17 = vmul.f32 %v3992_v59, %v13839_v1  ;;  %13840 = vst [vmem:[#allocation199_spill] sm:$0xff] %v11296_v43 }
 0xb47   : > { %13838 = vst [vmem:[#allocation207_spill] sm:$0xff] %v11292_v5  ;;  %v4009_v49 = vmul.f32 %v3993_v54, %v13839_v1  ;;  %4126 = vmatprep.mubr.f32.mxu0 %v11292_v5 }
 0xb48   : > { %4127 = vmatmul.mubr.f32.gmra.mrb[108].mxu0 %v11296_v43  ;;  %v11305_v58 = vadd.f32 %v4008_v17, %v13841_v41 }
 0xb49   : > { %v11302_v36 = vadd.f32 %v4009_v49, %v13841_v41 }
 0xb4a   : > { %13843 = vst [vmem:[#allocation146_spill] sm:$0xff] %v11305_v58 }
 0xb4b   : > { %13842 = vst [vmem:[#allocation138_spill] sm:$0xff] %v11302_v36  ;;  %4132 = vmatprep.mubr.f32.mxu0 %v11302_v36 }
 0xb4c   : > { %4133 = vmatmul.mubr.f32.gmra.mrb[110].mxu0 %v11305_v58 }
 0xb4d   : > { %4796 = vmatprep.mubr.f32.mxu0 %v13716_v18 }
 0xc03   : > { %v4092_v63 = vpop.f32.mrb[96].mxu0 }
 0xc04   : > { %v4093_v13 = vadd.f32 %v4092_v63, %v13844_v10  ;;  %v4094_v6 = vpop.f32.mrb[97].mxu0 }
 0xc05   : > { %v4095_v3 = vadd.f32 %v4094_v6, %v13845_v8 }
 0xc06   : > { %v4155_v7 = vmul.f32 0.70710677, %v4093_v13  ;;  %v11314_v19 = vmul.f32 0.5, %v4093_v13 }
 0xc07   : > { %v4156_v45 = vmul.f32 0.70710677, %v4095_v3  ;;  %v4098_v4 = vpop.f32.mrb[98].mxu0  ;;  %v11320_v50 = vmul.f32 0.5, %v4095_v3 }
 0xc08   : > { %v4203_v22 = vand.u32 2147483647, %v4155_v7  ;;  %v4099_v11 = vadd.f32 %v4098_v4, %v13844_v10  ;;  %v4100_v14 = vpop.f32.mrb[99].mxu0  ;;  %vm4171_vm3 = vcmp.ge.f32.partialorder %v4155_v7, 0.0 }
 0xc09   : > { %v4101_v59 = vadd.f32 %v4100_v14, %v13845_v8  ;;  %v4204_v17 = vand.u32 2147483647, %v4156_v45  ;;  %vm4172_vm4 = vcmp.ge.f32.partialorder %v4156_v45, 0.0 }
 0xc0a   : > { %v4219_v54 = vmul.f32 0.3275911, %v4203_v22  ;;  %v4157_v49 = vmul.f32 0.70710677, %v4099_v11  ;;  %v4427_v1 = vsub.f32 0.0, %v4203_v22  ;;  %v11328_v9 = vsel %vm4172_vm4, 1.0, %v13645_v27 }
 0xc0b   : > { %v4158_v62 = vmul.f32 0.70710677, %v4101_v59  ;;  %v4104_v57 = vpop.f32.mrb[100].mxu0  ;;  %v4220_v6 = vmul.f32 0.3275911, %v4204_v17  ;;  %v4428_v35 = vsub.f32 0.0, %v4204_v17 }
 0xc0c   : > { %v4235_v41 = vadd.f32 1.0, %v4219_v54  ;;  %v4205_v63 = vand.u32 2147483647, %v4157_v49  ;;  %v4106_v32 = vpop.f32.mrb[101].mxu0  ;;  %v4443_v4 = vmul.f32 %v4427_v1, %v4203_v22  ;;  %v4105_v14 = vadd.f32 %v4104_v57, %v13844_v10 }
 0xc0d   : > { %v4206_v16 = vand.u32 2147483647, %v4158_v62  ;;  %v11318_v54 = vsel %vm4171_vm3, 1.0, %v13645_v27  ;;  %v4107_v7 = vadd.f32 %v4106_v32, %v13845_v8  ;;  %v4444_v42 = vmul.f32 %v4428_v35, %v4204_v17 }
 0xc0e   : > { %7555 = vrcp.f32 %v4235_v41  ;;  %v4429_v56 = vsub.f32 0.0, %v4205_v63  ;;  %v4236_v41 = vadd.f32 1.0, %v4220_v6  ;;  %vm4173_vm5 = vcmp.ge.f32.partialorder %v4157_v49, 0.0 }
 0xc0f   : > { %v4110_v15 = vpop.f32.mrb[102].mxu0  ;;  %v11323_v13 = vmul.f32 0.70710677, %v4105_v14  ;;  %v4221_v48 = vmul.f32 0.3275911, %v4205_v63  ;;  %v4430_v1 = vsub.f32 0.0, %v4206_v16 }
 0xc10   : > { %v4112_v60 = vpop.f32.mrb[103].mxu0  ;;  %v11325_v22 = vmul.f32 0.70710677, %v4107_v7  ;;  %v4459_v57 = vmul.f32 1.442695, %v4443_v4  ;;  %v4445_v18 = vmul.f32 %v4429_v56, %v4205_v63  ;;  %v11331_v36 = vmul.f32 0.5, %v4099_v11 }
 0xc11   : > { %v4207_v3 = vand.u32 2147483647, %v11323_v13  ;;  %v11334_v35 = vsel %vm4173_vm5, 1.0, %v13645_v27  ;;  %v11336_v32 = vmul.f32 0.5, %v4101_v59  ;;  %v4461_v49 = vmul.f32 1.442695, %v4444_v42 }
 0xc12   : > { %v4208_v17 = vand.u32 2147483647, %v11325_v22  ;;  %vm4174_vm6 = vcmp.ge.f32.partialorder %v4158_v62, 0.0  ;;  %v4222_v6 = vmul.f32 0.3275911, %v4206_v16  ;;  %7557 = vrcp.f32 %v4236_v41 }
 0xc13   : > { %v4116_v33 = vpop.f32.mrb[104].mxu0  ;;  %v4431_v4 = vsub.f32 0.0, %v4207_v3  ;;  %v4237_v58 = vadd.f32 1.0, %v4221_v48  ;;  %v4446_v43 = vmul.f32 %v4430_v1, %v4206_v16  ;;  %v4111_v56 = vadd.f32 %v4110_v15, %v13844_v10 }
 0xc14   : > { %v4118_v45 = vpop.f32.mrb[105].mxu0  ;;  %7559 = vpow2.f32 %v4459_v57  ;;  %v4463_v11 = vmul.f32 1.442695, %v4445_v18  ;;  %v4223_v2 = vmul.f32 0.3275911, %v4207_v3  ;;  %v4113_v59 = vadd.f32 %v4112_v60, %v13845_v8 }
 0xc15   : > { %v11347_v62 = vsel %vm4174_vm6, 1.0, %v13645_v27  ;;  %v4224_v41 = vmul.f32 0.3275911, %v4208_v17  ;;  %v4432_v48 = vsub.f32 0.0, %v4208_v17  ;;  %7561 = vpow2.f32 %v4461_v49 }
 0xc16   : > { %v4238_v16 = vadd.f32 1.0, %v4222_v6  ;;  %v4447_v15 = vmul.f32 %v4431_v4, %v4207_v3  ;;  %v4161_v1 = vmul.f32 0.70710677, %v4111_v56  ;;  %7563 = vrcp.f32 %v4237_v58 }
 0xc17   : > { %v4122_v63 = vpop.f32.mrb[106].mxu0  ;;  %v4465_v57 = vmul.f32 1.442695, %v4446_v43  ;;  %v11349_v18 = vmul.f32 0.5, %v4105_v14  ;;  %v4239_v34 = vadd.f32 1.0, %v4223_v2  ;;  %v4117_v12 = vadd.f32 %v4116_v33, %v13844_v10 }
 0xc18   : > { %v11340_v5 = vpop.eup %7555  ;;  %v11343_v28 = vpop.f32.mrb[107].mxu0  ;;  %v4209_v60 = vand.u32 2147483647, %v4161_v1  ;;  %v4162_v20 = vmul.f32 0.70710677, %v4113_v59  ;;  %7565 = vpow2.f32 %v4463_v11  ;;  %v4240_v30 = vadd.f32 1.0, %v4224_v41 }
 0xc19   : > { %v4283_v42 = vmul.f32 1.0614054, %v11340_v5  ;;  %v4448_v49 = vmul.f32 %v4432_v48, %v4208_v17  ;;  %7567 = vrcp.f32 %v4238_v16  ;;  %vm4175_vm7 = vcmp.ge.f32.partialorder %v11323_v13, 0.0 }
 0xc1a   : > { %v4467_v43 = vmul.f32 1.442695, %v4447_v15  ;;  %v11358_v58 = vmul.f32 0.5, %v4107_v7  ;;  %7569 = vpow2.f32 %v4465_v57  ;;  %vm4176_vm8 = vcmp.ge.f32.partialorder %v11325_v22, 0.0 }
 0xc1b   : > { %v4299_v55 = vadd.f32 -1.4531521, %v4283_v42  ;;  %v11352_v38 = vpop.f32.mrb[108].mxu0  ;;  %v11361_v33 = vmul.f32 0.70710677, %v4117_v12  ;;  %7571 = vrcp.f32 %v4239_v34  ;;  %v4119_v17 = vadd.f32 %v4118_v45, %v13845_v8 }
 0xc1c   : > { %v11355_v6 = vpop.f32.mrb[109].mxu0  ;;  %v4210_v3 = vand.u32 2147483647, %v4162_v20  ;;  %v11368_v11 = vpop.eup %7557  ;;  %7573 = vrcp.f32 %v4240_v30  ;;  %v4469_v13 = vmul.f32 1.442695, %v4448_v49  ;;  %v11375_v42 = vsel %vm4176_vm8, 1.0, %v13645_v27 }
 0xc1d   : > { %v4315_v23 = vmul.f32 %v11340_v5, %v4299_v55  ;;  %v4433_v55 = vsub.f32 0.0, %v4209_v60  ;;  %7575 = vpow2.f32 %v4467_v43  ;;  %v11377_v34 = vmul.f32 0.5, %v4111_v56 }
 0xc1e   : > { %v7560_v22 = vpop.eup %7559  ;;  %v4211_v45 = vand.u32 2147483647, %v11361_v33  ;;  %vm4177_vm9 = vcmp.ge.f32.partialorder %v4161_v1, 0.0  ;;  %v4225_v48 = vmul.f32 0.3275911, %v4209_v60  ;;  %vm4178_vm10 = vcmp.ge.f32.partialorder %v4162_v20, 0.0 }
 0xc1f   : > { %v4331_v2 = vadd.f32 1.4214138, %v4315_v23  ;;  %v11363_v14 = vpop.f32.mrb[110].mxu0  ;;  %v11372_v23 = vsel %vm4175_vm7, 1.0, %v13645_v27  ;;  %v11380_v16 = vpop.eup %7561  ;;  %v4449_v15 = vmul.f32 %v4433_v55, %v4209_v60  ;;  %v4434_v57 = vsub.f32 0.0, %v4210_v3 }
 0xc20   : > { %v11366_v4 = vpop.f32.mrb[111].mxu0  ;;  %v4123_v30 = vadd.f32 %v4122_v63, %v13844_v10  ;;  %v11383_v49 = vpop.eup %7563  ;;  %7577 = vpow2.f32 %v4469_v13  ;;  %v11386_v56 = vmul.f32 0.5, %v4113_v59  ;;  %v4226_v39 = vmul.f32 0.3275911, %v4210_v3 }
 0xc21   : > { %v4347_v7 = vmul.f32 %v11340_v5, %v4331_v2  ;;  %v4164_v2 = vmul.f32 0.70710677, %v4119_v17  ;;  %v11392_v20 = vsel %vm4178_vm10, 1.0, %v13645_v27  ;;  %v4435_v1 = vsub.f32 0.0, %v4211_v45 }
 0xc22   : > { %v11394_v55 = vpop.eup %7565  ;;  %v4241_v63 = vadd.f32 1.0, %v4225_v48  ;;  %v11396_v0 = vmul.f32 0.5, %v4117_v12  ;;  %vm4179_vm11 = vcmp.ge.f32.partialorder %v11361_v33, 0.0  ;;  %v4471_v59 = vmul.f32 1.442695, %v4449_v15 }
 0xc23   : > { %v4363_v41 = vadd.f32 -0.28449672, %v4347_v7  ;;  %v11389_v7 = vsel %vm4177_vm9, 1.0, %v13645_v27  ;;  %v4212_v60 = vand.u32 2147483647, %v4164_v2  ;;  %v11399_v13 = vpop.eup %7567  ;;  %v11405_v52 = vadd.f32 %v11343_v28, %v13845_v8 }
 0xc24   : > { %13846 = vst [vmem:[#allocation201_spill] sm:$0xff] %v11396_v0  ;;  %v11401_v40 = vmul.f32 0.70710677, %v4123_v30  ;;  %v11407_v44 = vpop.eup %7569  ;;  %v4227_v48 = vmul.f32 0.3275911, %v4211_v45  ;;  %v4451_v53 = vmul.f32 %v4435_v1, %v4211_v45  ;;  %v11412_v24 = vmul.f32 0.5, %v4119_v17 }
 0xc25   : > { %v4379_v43 = vmul.f32 %v11340_v5, %v4363_v41  ;;  %v4450_v41 = vmul.f32 %v4434_v57, %v4210_v3  ;;  %v4436_v12 = vsub.f32 0.0, %v4212_v60  ;;  %v11410_v0 = vpop.eup %7571  ;;  %v4228_v15 = vmul.f32 0.3275911, %v4212_v60 }
 0xc26   : > { %13847 = vst [vmem:[#allocation30_spill] sm:$0xff] %v11412_v24  ;;  %v4213_v3 = vand.u32 2147483647, %v11401_v40  ;;  %v11415_v57 = vpop.eup %7573  ;;  %7579 = vrcp.f32 %v4241_v63  ;;  %v11418_v28 = vmul.f32 0.70710677, %v11405_v52  ;;  %v11428_v45 = vadd.f32 %v11355_v6, %v13845_v8 }
 0xc27   : > { %v4395_v61 = vadd.f32 0.2548296, %v4379_v43  ;;  %v4242_v43 = vadd.f32 1.0, %v4226_v39  ;;  %v11424_v39 = vpop.eup %7575  ;;  %7581 = vpow2.f32 %v4471_v59  ;;  %v4243_v1 = vadd.f32 1.0, %v4227_v48 }
 0xc28   : > { %v4437_v17 = vsub.f32 0.0, %v4213_v3  ;;  %13849 = vst [vmem:[#allocation197_spill] sm:$0xff] %v11428_v45  ;;  %v4475_v63 = vmul.f32 1.442695, %v4451_v53  ;;  %vm4180_vm12 = vcmp.ge.f32.partialorder %v4164_v2, 0.0  ;;  %v4244_v37 = vadd.f32 1.0, %v4228_v15 }
 0xc29   : > { %v4411_v46 = vmul.f32 %v11340_v5, %v4395_v61  ;;  %v11422_v61 = vadd.f32 %v11352_v38, %v13844_v10  ;;  %v4473_v5 = vmul.f32 1.442695, %v4450_v41  ;;  %7583 = vrcp.f32 %v4242_v43 }
 0xc2a   : > { %v4229_v24 = vmul.f32 0.3275911, %v4213_v3  ;;  %v11431_v38 = vpop.eup %7577  ;;  %v4453_v31 = vmul.f32 %v4437_v17, %v4213_v3  ;;  %v11439_v6 = vsel %vm4179_vm11, 1.0, %v13645_v27  ;;  %v11444_v53 = vmul.f32 0.70710677, %v11428_v45 }
 0xc2b   : > { %v4491_v51 = vmul.f32 %v7560_v22, %v4411_v46  ;;  %13848 = vst [vmem:[#allocation143_spill] sm:$0xff] %v11422_v61  ;;  %v4452_v46 = vmul.f32 %v4436_v12, %v4212_v60  ;;  %v4214_v22 = vand.u32 2147483647, %v11418_v28  ;;  %v11434_v41 = vmul.f32 0.70710677, %v11422_v61  ;;  %13851 = vst [vmem:[#allocation177_spill] sm:$0xff] %v11439_v6 }
 0xc2c   : > { %7585 = vpow2.f32 %v4473_v5  ;;  %v11441_v60 = vmul.f32 0.5, %v4123_v30  ;;  %13853 = vst [vmem:[#allocation22_spill] sm:$0xff] %v11444_v53  ;;  %v11447_v2 = vsel %vm4180_vm12, 1.0, %v13645_v27  ;;  %v4245_v48 = vadd.f32 1.0, %v4229_v24 }
 0xc2d   : > { %v4507_v47 = vsub.f32 1.0, %v4491_v51  ;;  %v4438_v59 = vsub.f32 0.0, %v4214_v22  ;;  %13850 = vst [vmem:[#allocation196_spill] sm:$0xff] %v11434_v41  ;;  %7587 = vrcp.f32 %v4243_v1  ;;  %13854 = vst [vmem:[#allocation184_spill] sm:$0xff] %v11447_v2  ;;  %v4477_v51 = vmul.f32 1.442695, %v4452_v46 }
 0xc2e   : > { %13852 = vst [vmem:[#allocation185_spill] sm:$0xff] %v11441_v60  ;;  %v4230_v43 = vmul.f32 0.3275911, %v4214_v22  ;;  %7589 = vpow2.f32 %v4475_v63  ;;  %v4215_v15 = vand.u32 2147483647, %v11434_v41  ;;  %vm4181_vm13 = vcmp.ge.f32.partialorder %v11401_v40, 0.0 }
 0xc2f   : > { %v4454_v12 = vmul.f32 %v4438_v59, %v4214_v22  ;;  %v4523_v33 = vmul.f32 %v4507_v47, %v11318_v54  ;;  %7591 = vrcp.f32 %v4244_v37  ;;  %v4479_v30 = vmul.f32 1.442695, %v4453_v31 }
 0xc30   : > { %v4231_v3 = vmul.f32 0.3275911, %v4215_v15  ;;  %v4439_v5 = vsub.f32 0.0, %v4215_v15  ;;  %v4216_v17 = vand.u32 2147483647, %v11444_v53  ;;  %v11455_v1 = vadd.f32 %v11363_v14, %v13844_v10  ;;  %v11457_v46 = vpop.eup %7579 }
 0xc31   : > { %7593 = vpow2.f32 %v4477_v51  ;;  %vm4182_vm14 = vcmp.ge.f32.partialorder %v11418_v28, 0.0  ;;  %v4246_v24 = vadd.f32 1.0, %v4230_v43  ;;  %v11462_v47 = vadd.f32 %v11366_v4, %v13845_v8  ;;  %v11464_v37 = vpop.eup %7581 }
 0xc32   : > { %13855 = vst [vmem:[#allocation20_spill] sm:$0xff] %v11455_v1  ;;  %7595 = vrcp.f32 %v4245_v48  ;;  %v4481_v31 = vmul.f32 1.442695, %v4454_v12  ;;  %v4455_v54 = vmul.f32 %v4439_v5, %v4215_v15  ;;  %v4232_v22 = vmul.f32 0.3275911, %v4216_v17 }
 0xc33   : > { %13856 = vst [vmem:[#allocation122_spill] sm:$0xff] %v11462_v47  ;;  %v11466_v63 = vpop.eup %7583  ;;  %v4539_v14 = vadd.f32 1.0, %v4523_v33  ;;  %v4440_v59 = vsub.f32 0.0, %v4216_v17  ;;  %v11469_v10 = vmul.f32 0.70710677, %v11455_v1  ;;  %7597 = vpow2.f32 %v4479_v30 }
 0xc34   : > { %v11472_v51 = vmul.f32 0.70710677, %v11462_v47  ;;  %v4247_v43 = vadd.f32 1.0, %v4231_v3  ;;  %v4284_v4 = vmul.f32 1.0614054, %v11368_v11  ;;  %7599 = vrcp.f32 %v4246_v24 }
 0xc35   : > { %13857 = vst [vmem:[#allocation126_spill] sm:$0xff] %v11469_v10  ;;  %v4286_v8 = vmul.f32 1.0614054, %v11399_v13  ;;  %v4483_v48 = vmul.f32 1.442695, %v4455_v54  ;;  %v11483_v5 = vsel %vm4181_vm13, 1.0, %v13645_v27  ;;  %7601 = vpow2.f32 %v4481_v31 }
 0xc36   : > { %13858 = vst [vmem:[#allocation123_spill] sm:$0xff] %v11472_v51  ;;  %v4217_v12 = vand.u32 2147483647, %v11469_v10  ;;  %v4218_v15 = vand.u32 2147483647, %v11472_v51  ;;  %v11478_v33 = vpop.eup %7585  ;;  %13859 = vst [vmem:[#allocation125_spill] sm:$0xff] %v11483_v5  ;;  %v4456_v1 = vmul.f32 %v4440_v59, %v4216_v17  ;;  %7603 = vrcp.f32 %v4247_v43 }
 0xc37   : > { %v11486_v30 = vmul.f32 0.5, %v11405_v52  ;;  %v11491_v3 = vsel %vm4182_vm14, 1.0, %v13645_v27  ;;  %v11493_v24 = vpop.eup %7587  ;;  %v4248_v54 = vadd.f32 1.0, %v4232_v22  ;;  %v4300_v45 = vadd.f32 -1.4531521, %v4284_v4 }
 0xc38   : > { %13861 = vst [vmem:[#allocation133_spill] sm:$0xff] %v11491_v3  ;;  %v4233_v47 = vmul.f32 0.3275911, %v4217_v12  ;;  %v4441_v61 = vsub.f32 0.0, %v4217_v12  ;;  %v11495_v60 = vpop.eup %7589  ;;  %v4234_v40 = vmul.f32 0.3275911, %v4218_v15  ;;  %7605 = vpow2.f32 %v4483_v48 }
 0xc39   : > { %13860 = vst [vmem:[#allocation128_spill] sm:$0xff] %v11486_v30  ;;  %13862 = vst [vmem:[#allocation130_spill] sm:$0xff] %v11495_v60  ;;  %v4302_v51 = vadd.f32 -1.4531521, %v4286_v8  ;;  %v11497_v52 = vpop.eup %7591  ;;  %v11500_v30 = vmul.f32 %v4539_v14, %v11314_v19  ;;  %v4442_v28 = vsub.f32 0.0, %v4218_v15  ;;  %v4316_v17 = vmul.f32 %v11368_v11, %v4300_v45 }
 0xc3a   : > { %v4285_v31 = vmul.f32 1.0614054, %v11383_v49  ;;  %v4457_v5 = vmul.f32 %v4441_v61, %v4217_v12  ;;  %v4288_v59 = vmul.f32 1.0614054, %v11415_v57  ;;  %7607 = vrcp.f32 %v4248_v54 }
 0xc3b   : > { %v4318_v22 = vmul.f32 %v11399_v13, %v4302_v51  ;;  %v11506_v43 = vpop.eup %7593  ;;  %v11508_v8 = vmul.f32 1.442695, %v4456_v1  ;;  %v4287_v19 = vmul.f32 1.0614054, %v11410_v0  ;;  %v4249_v48 = vadd.f32 1.0, %v4233_v47 }
 0xc3c   : > { %v4301_v4 = vadd.f32 -1.4531521, %v4285_v31  ;;  %v11511_v14 = vpop.eup %7595  ;;  %v4250_v3 = vadd.f32 1.0, %v4234_v40  ;;  %v4332_v10 = vadd.f32 1.4214138, %v4316_v17  ;;  %v11513_v12 = vmul.f32 %v4442_v28, %v4218_v15 }
 0xc3d   : > { %v4334_v61 = vadd.f32 1.4214138, %v4318_v22  ;;  %v4304_v51 = vadd.f32 -1.4531521, %v4288_v59  ;;  %v4303_v6 = vadd.f32 -1.4531521, %v4287_v19  ;;  %v11516_v27 = vpop.eup %7597  ;;  %7609 = vrcp.f32 %v4249_v48 }
 0xc3e   : > { %v4317_v45 = vmul.f32 %v11383_v49, %v4301_v4  ;;  %13863 = vst [vmem:[#allocation132_spill] sm:$0xff] %v11516_v27  ;;  %v11518_v54 = vmul.f32 1.442695, %v4457_v5  ;;  %v4348_v1 = vmul.f32 %v11368_v11, %v4332_v10  ;;  %v4290_v41 = vmul.f32 1.0614054, %v11466_v63  ;;  %v11523_v47 = vpop.eup %7599 }
 0xc3f   : > { %v4350_v31 = vmul.f32 %v11399_v13, %v4334_v61  ;;  %v4320_v15 = vmul.f32 %v11415_v57, %v4304_v51  ;;  %v4319_v28 = vmul.f32 %v11410_v0, %v4303_v6  ;;  %v4289_v17 = vmul.f32 1.0614054, %v11457_v46  ;;  %v11528_v22 = vpop.eup %7601 }
 0xc40   : > { %13864 = vst [vmem:[#allocation135_spill] sm:$0xff] %v11518_v54  ;;  %v4333_v40 = vadd.f32 1.4214138, %v4317_v45  ;;  %13865 = vst [vmem:[#allocation140_spill] sm:$0xff] %v11528_v22  ;;  %v4364_v5 = vadd.f32 -0.28449672, %v4348_v1  ;;  %v11531_v60 = vpop.eup %7603  ;;  %7611 = vrcp.f32 %v4250_v3 }
 0xc41   : > { %v4366_v59 = vadd.f32 -0.28449672, %v4350_v31  ;;  %v4306_v4 = vadd.f32 -1.4531521, %v4290_v41  ;;  %v4336_v19 = vadd.f32 1.4214138, %v4320_v15  ;;  %7613 = vpow2.f32 %v11508_v8 }
 0xc42   : > { %v4349_v10 = vmul.f32 %v11383_v49, %v4333_v40  ;;  %v4335_v61 = vadd.f32 1.4214138, %v4319_v28  ;;  %v4305_v27 = vadd.f32 -1.4531521, %v4289_v17  ;;  %v4380_v45 = vmul.f32 %v11368_v11, %v4364_v5  ;;  %v11537_v22 = vpop.eup %7605 }
 0xc43   : > { %v4382_v51 = vmul.f32 %v11399_v13, %v4366_v59  ;;  %v4322_v6 = vmul.f32 %v11466_v63, %v4306_v4  ;;  %v4292_v53 = vmul.f32 1.0614054, %v11497_v52  ;;  %13866 = vst [vmem:[#allocation136_spill] sm:$0xff] %v11537_v22  ;;  %v4352_v41 = vmul.f32 %v11415_v57, %v4336_v19 }
 0xc44   : > { %v4365_v48 = vadd.f32 -0.28449672, %v4349_v10  ;;  %v4351_v1 = vmul.f32 %v11410_v0, %v4335_v61  ;;  %v4321_v31 = vmul.f32 %v11457_v46, %v4305_v27  ;;  %v4396_v40 = vadd.f32 0.2548296, %v4380_v45  ;;  %v11542_v17 = vpop.eup %7607 }
 0xc45   : > { %v4398_v15 = vadd.f32 0.2548296, %v4382_v51  ;;  %v4338_v28 = vadd.f32 1.4214138, %v4322_v6  ;;  %v4368_v59 = vadd.f32 -0.28449672, %v4352_v41 }
 0xc46   : > { %v4381_v5 = vmul.f32 %v11383_v49, %v4365_v48  ;;  %v4367_v4 = vadd.f32 -0.28449672, %v4351_v1  ;;  %v4337_v54 = vadd.f32 1.4214138, %v4321_v31  ;;  %v4412_v22 = vmul.f32 %v11368_v11, %v4396_v40 }
 0xc47   : > { %v4414_v10 = vmul.f32 %v11399_v13, %v4398_v15  ;;  %v4354_v19 = vmul.f32 %v11466_v63, %v4338_v28  ;;  %v4308_v61 = vadd.f32 -1.4531521, %v4292_v53  ;;  %v4384_v27 = vmul.f32 %v11415_v57, %v4368_v59  ;;  %v11555_v53 = vpop.eup %7609 }
 0xc48   : > { %v4397_v2 = vadd.f32 0.2548296, %v4381_v5  ;;  %v4383_v3 = vmul.f32 %v11410_v0, %v4367_v4  ;;  %v4353_v45 = vmul.f32 %v11457_v46, %v4337_v54  ;;  %v4492_v51 = vmul.f32 %v11380_v16, %v4412_v22 }
 0xc49   : > { %v4494_v6 = vmul.f32 %v11407_v44, %v4414_v10  ;;  %v4370_v48 = vadd.f32 -0.28449672, %v4354_v19  ;;  %v4324_v41 = vmul.f32 %v11497_v52, %v4308_v61  ;;  %v4400_v13 = vadd.f32 0.2548296, %v4384_v27 }
 0xc4a   : > { %v4413_v11 = vmul.f32 %v11383_v49, %v4397_v2  ;;  %v4399_v1 = vadd.f32 0.2548296, %v4383_v3  ;;  %v4369_v31 = vadd.f32 -0.28449672, %v4353_v45  ;;  %v4508_v40 = vsub.f32 1.0, %v4492_v51 }
 0xc4b   : > { %v4510_v15 = vsub.f32 1.0, %v4494_v6  ;;  %v4386_v28 = vmul.f32 %v11466_v63, %v4370_v48  ;;  %v4340_v5 = vadd.f32 1.4214138, %v4324_v41  ;;  %v4416_v16 = vmul.f32 %v11415_v57, %v4400_v13 }
 0xc4c   : > { %v4493_v54 = vmul.f32 %v11394_v55, %v4413_v11  ;;  %v4415_v44 = vmul.f32 %v11410_v0, %v4399_v1  ;;  %v4385_v22 = vmul.f32 %v11457_v46, %v4369_v31  ;;  %v4524_v49 = vmul.f32 %v4508_v40, %v11328_v9  ;;  %v11567_v55 = vpop.eup %7611 }
 0xc4d   : > { %v4526_v2 = vmul.f32 %v4510_v15, %v11347_v62  ;;  %v4402_v59 = vadd.f32 0.2548296, %v4386_v28  ;;  %v4356_v4 = vmul.f32 %v11497_v52, %v4340_v5  ;;  %v4496_v19 = vmul.f32 %v11431_v38, %v4416_v16 }
 0xc4e   : > { %v4509_v10 = vsub.f32 1.0, %v4493_v54  ;;  %v4495_v61 = vmul.f32 %v11424_v39, %v4415_v44  ;;  %v4401_v27 = vadd.f32 0.2548296, %v4385_v22  ;;  %v4540_v57 = vadd.f32 1.0, %v4524_v49 }
 0xc4f   : > { %v4542_v3 = vadd.f32 1.0, %v4526_v2  ;;  %v4418_v0 = vmul.f32 %v11466_v63, %v4402_v59  ;;  %v4372_v45 = vadd.f32 -0.28449672, %v4356_v4  ;;  %v4512_v51 = vsub.f32 1.0, %v4496_v19  ;;  %v13867_v59 = vld [vmem:[#allocation184_spill] sm:$0xff] }
 0xc50   : > { %v4525_v9 = vmul.f32 %v4509_v10, %v11334_v35  ;;  %v4511_v62 = vsub.f32 1.0, %v4495_v61  ;;  %v4417_v6 = vmul.f32 %v11457_v46, %v4401_v27  ;;  %v4556_v48 = vmul.f32 %v4540_v57, %v11320_v50  ;;  %v11610_v57 = vpop.eup %7613 }
 0xc51   : > { %v4558_v38 = vmul.f32 %v4542_v3, %v11336_v32  ;;  %v4498_v39 = vmul.f32 %v11478_v33, %v4418_v0  ;;  %v4388_v41 = vmul.f32 %v11497_v52, %v4372_v45  ;;  %v4528_v13 = vmul.f32 %v4512_v51, %v11375_v42 }
 0xc52   : > { %v4541_v11 = vadd.f32 1.0, %v4525_v9  ;;  %v4527_v63 = vmul.f32 %v4511_v62, %v11372_v23  ;;  %v4497_v1 = vmul.f32 %v11464_v37, %v4417_v6  ;;  %4635 = vmatprep.mubr.f32.mxu1 %v4556_v48  ;;  %v4291_v50 = vmul.f32 1.0614054, %v11493_v24  ;;  %v13868_v9 = vld [vmem:[#allocation33_spill] sm:$0xff] }
 0xc53   : > { %v4514_v35 = vsub.f32 1.0, %v4498_v39  ;;  %v4404_v46 = vadd.f32 0.2548296, %v4388_v41  ;;  %v11582_v32 = vmul.f32 1.442695, %v11513_v12  ;;  %4636 = vmatmul.mubr.f32.vlgmr.msra.gmra.mrb[176].mxu1 %v11500_v30  ;;  %v4544_v33 = vadd.f32 1.0, %v4528_v13 }
 0xc54   : > { %v4543_v31 = vadd.f32 1.0, %v4527_v63  ;;  %v4513_v40 = vsub.f32 1.0, %v4497_v1  ;;  %4641 = vmatprep.mubr.f32.mxu1 %v4558_v38  ;;  %v4307_v37 = vadd.f32 -1.4531521, %v4291_v50  ;;  %v4294_v8 = vmul.f32 1.0614054, %v11523_v47  ;;  %7098 = vmatpush1.bf16.msra.mxu1 %v13482_v29 }
 0xc55   : > { %v4530_v23 = vmul.f32 %v4514_v35, %v11392_v20  ;;  %v4420_v42 = vmul.f32 %v11497_v52, %v4404_v46  ;;  %v4557_v15 = vmul.f32 %v4541_v11, %v11331_v36  ;;  %v4560_v12 = vmul.f32 %v4544_v33, %v11358_v58  ;;  %7100 = vmatprep.subr.bf16.mxu1 %v13483_v21  ;;  %v13869_v38 = vld [vmem:[#allocation34_spill] sm:$0xff] }
 0xc56   : > { %v4529_v28 = vmul.f32 %v4513_v40, %v11389_v7  ;;  %v4293_v30 = vmul.f32 1.0614054, %v11511_v14  ;;  %v4323_v52 = vmul.f32 %v11493_v24, %v4307_v37  ;;  %v4310_v54 = vadd.f32 -1.4531521, %v4294_v8  ;;  %v13870_v39 = vld [vmem:[#allocation30_spill] sm:$0xff] }
 0xc57   : > { %v4546_v5 = vadd.f32 1.0, %v4530_v23  ;;  %v4500_v20 = vmul.f32 %v11506_v43, %v4420_v42  ;;  %4642 = vmatmul.mubr.f32.gmra.mrb[178].mxu1 %v4557_v15  ;;  %v4559_v16 = vmul.f32 %v4543_v31, %v11349_v18  ;;  %v4296_v36 = vmul.f32 1.0614054, %v11542_v17  ;;  %v13871_v23 = vld [vmem:[#allocation35_spill] sm:$0xff] }
 0xc58   : > { %v4545_v29 = vadd.f32 1.0, %v4529_v28  ;;  %v4309_v44 = vadd.f32 -1.4531521, %v4293_v30  ;;  %4647 = vmatprep.mubr.f32.mxu1 %v4560_v12  ;;  %v4339_v22 = vadd.f32 1.4214138, %v4323_v52  ;;  %v4326_v21 = vmul.f32 %v11523_v47, %v4310_v54  ;;  %7102 = vmatpush1.bf16.msra.mxu1 %v13484_v26  ;;  %v13872_v12 = vld [vmem:[#allocation36_spill] sm:$0xff] }
 0xc59   : > { %v4562_v58 = vmul.f32 %v4546_v5, %v11386_v56  ;;  %v4516_v7 = vsub.f32 1.0, %v4500_v20  ;;  %v4312_v2 = vadd.f32 -1.4531521, %v4296_v36  ;;  %v4295_v18 = vmul.f32 1.0614054, %v11531_v60  ;;  %7104 = vmatprep.subr.bf16.mxu1 %v13485_v25  ;;  %v13873_v28 = vld [vmem:[#allocation135_spill] sm:$0xff] }
 0xc5a   : > { %v4561_v43 = vmul.f32 %v4545_v29, %v11377_v34  ;;  %v4325_v49 = vmul.f32 %v11511_v14, %v4309_v44  ;;  %v4355_v10 = vmul.f32 %v11493_v24, %v4339_v22  ;;  %v4342_v56 = vadd.f32 1.4214138, %v4326_v21  ;;  %v13874_v29 = vld [vmem:[#allocation22_spill] sm:$0xff]  ;;  %v13876_v22 = vld [vmem:[#allocation37_spill] sm:$0xff] }
 0xc5b   : > { %v4532_v4 = vmul.f32 %v4516_v7, %v13867_v59  ;;  %v4298_v19 = vmul.f32 1.0614054, %v11567_v55  ;;  %4648 = vmatmul.mubr.f32.gmra.mrb[180].mxu1 %v4559_v16  ;;  %v4328_v26 = vmul.f32 %v11542_v17, %v4312_v2  ;;  %v4311_v27 = vadd.f32 -1.4531521, %v4295_v18  ;;  %v13875_v44 = vld [vmem:[#allocation130_spill] sm:$0xff]  ;;  %v13878_v18 = vld [vmem:[#allocation196_spill] sm:$0xff] }
 0xc5c   : > { %v4341_v61 = vadd.f32 1.4214138, %v4325_v49  ;;  %v4297_v34 = vmul.f32 1.0614054, %v11555_v53  ;;  %4653 = vmatprep.mubr.f32.mxu1 %v4562_v58  ;;  %v4371_v0 = vadd.f32 -0.28449672, %v4355_v10  ;;  %v4358_v25 = vmul.f32 %v11523_v47, %v4342_v56  ;;  %7106 = vmatpush1.bf16.msra.mxu1 %v13868_v9 }
 0xc5d   : > { %v4548_v3 = vadd.f32 1.0, %v4532_v4  ;;  %v4314_v45 = vadd.f32 -1.4531521, %v4298_v19  ;;  %v4344_v62 = vadd.f32 1.4214138, %v4328_v26  ;;  %v4327_v6 = vmul.f32 %v11531_v60, %v4311_v27  ;;  %7108 = vmatprep.subr.bf16.mxu1 %v13869_v38  ;;  %v13877_v2 = vld [vmem:[#allocation38_spill] sm:$0xff] }
 0xc5e   : > { %v4357_v51 = vmul.f32 %v11511_v14, %v4341_v61  ;;  %v4313_v48 = vadd.f32 -1.4531521, %v4297_v34  ;;  %v4387_v11 = vmul.f32 %v11493_v24, %v4371_v0  ;;  %v4374_v13 = vadd.f32 -0.28449672, %v4358_v25  ;;  %v13879_v4 = vld [vmem:[#allocation140_spill] sm:$0xff]  ;;  %v13883_v9 = vld [vmem:[#allocation39_spill] sm:$0xff] }
 0xc5f   : > { %v4564_v41 = vmul.f32 %v4548_v3, %v13870_v39  ;;  %v4330_v63 = vmul.f32 %v11567_v55, %v4314_v45  ;;  %4654 = vmatmul.mubr.f32.gmra.mrb[182].mxu1 %v4561_v43  ;;  %v4360_v35 = vmul.f32 %v11542_v17, %v4344_v62  ;;  %v4343_v46 = vadd.f32 1.4214138, %v4327_v6  ;;  %v13880_v19 = vld [vmem:[#allocation132_spill] sm:$0xff]  ;;  %v13882_v3 = vld [vmem:[#allocation177_spill] sm:$0xff]  ;;  %v13885_v39 = vld [vmem:[#allocation126_spill] sm:$0xff] }
 0xc60   : > { %v4373_v1 = vadd.f32 -0.28449672, %v4357_v51  ;;  %v4329_v50 = vmul.f32 %v11555_v53, %v4313_v48  ;;  %7615 = vpow2.f32 %v11582_v32  ;;  %v4403_v33 = vadd.f32 0.2548296, %v4387_v11  ;;  %7110 = vmatpush1.bf16.msra.mxu1 %v13871_v23  ;;  %v13886_v11 = vld [vmem:[#allocation133_spill] sm:$0xff] }
 0xc61   : > { %4659 = vmatprep.mubr.f32.mxu1 %v4564_v41  ;;  %v4390_v31 = vmul.f32 %v11523_v47, %v4374_v13  ;;  %v4346_v40 = vadd.f32 1.4214138, %v4330_v63  ;;  %v4376_v37 = vadd.f32 -0.28449672, %v4360_v35  ;;  %v4359_v8 = vmul.f32 %v11531_v60, %v4343_v46  ;;  %7112 = vmatprep.subr.bf16.mxu1 %v13872_v12 }
 0xc62   : > { %v4389_v42 = vmul.f32 %v11511_v14, %v4373_v1  ;;  %v4345_v15 = vadd.f32 1.4214138, %v4329_v50  ;;  %7617 = vpow2.f32 %v13873_v28  ;;  %v4419_v30 = vmul.f32 %v11493_v24, %v4403_v33  ;;  %v13887_v1 = vld [vmem:[#allocation125_spill] sm:$0xff]  ;;  %v13888_v50 = vld [vmem:[#allocation136_spill] sm:$0xff] }
 0xc63   : > { %v4406_v32 = vadd.f32 0.2548296, %v4390_v31  ;;  %v4362_v5 = vmul.f32 %v11567_v55, %v4346_v40  ;;  %v4392_v52 = vmul.f32 %v11542_v17, %v4376_v37  ;;  %v4375_v54 = vadd.f32 -0.28449672, %v4359_v8  ;;  %v13890_v40 = vld [vmem:[#allocation201_spill] sm:$0xff] }
 0xc64   : > { %v4405_v20 = vadd.f32 0.2548296, %v4389_v42  ;;  %v4361_v16 = vmul.f32 %v11555_v53, %v4345_v15  ;;  %vm4184_vm15 = vcmp.ge.f32.partialorder %v13874_v29, 0.0  ;;  %v4499_v36 = vmul.f32 %v13875_v44, %v4419_v30  ;;  %7114 = vmatpush1.bf16.msra.mxu1 %v13876_v22  ;;  %v13891_v8 = vld [vmem:[#allocation41_spill] sm:$0xff]  ;;  %v13892_v30 = vld [vmem:[#allocation42_spill] sm:$0xff] }
 0xc65   : > { %v4422_v58 = vmul.f32 %v11523_v47, %v4406_v32  ;;  %v4378_v7 = vadd.f32 -0.28449672, %v4362_v5  ;;  %v4408_v21 = vadd.f32 0.2548296, %v4392_v52  ;;  %v4391_v43 = vmul.f32 %v11531_v60, %v4375_v54  ;;  %7116 = vmatprep.subr.bf16.mxu1 %v13877_v2 }
 0xc66   : > { %v4421_v24 = vmul.f32 %v11511_v14, %v4405_v20  ;;  %v4377_v49 = vadd.f32 -0.28449672, %v4361_v16  ;;  %vm4183_vm1 = vcmp.ge.f32.partialorder %v13878_v18, 0.0  ;;  %v4515_v59 = vsub.f32 1.0, %v4499_v36  ;;  %v13894_v20 = vld [vmem:[#allocation128_spill] sm:$0xff] }
 0xc67   : > { %v4502_v10 = vmul.f32 %v13879_v4, %v4422_v58  ;;  %v4394_v56 = vmul.f32 %v11567_v55, %v4378_v7  ;;  %v4424_v61 = vmul.f32 %v11542_v17, %v4408_v21  ;;  %v4407_v26 = vadd.f32 0.2548296, %v4391_v43  ;;  %v13884_v17 = vld [vmem:[#allocation40_spill] sm:$0xff]  ;;  %v13895_v7 = vld [vmem:[#allocation185_spill] sm:$0xff]  ;;  %v13896_v21 = vld [vmem:[#allocation43_spill] sm:$0xff] }
 0xc68   : > { %v4501_v47 = vmul.f32 %v13880_v19, %v4421_v24  ;;  %v4393_v14 = vmul.f32 %v11555_v53, %v4377_v49  ;;  %v13881_v27 = vmov -1.0   ;;  %v4531_v0 = vmul.f32 %v4515_v59, %v13882_v3  ;;  %7118 = vmatpush1.bf16.msra.mxu1 %v13883_v9  ;;  %v13897_v18 = vld [vmem:[#allocation44_spill] sm:$0xff]  ;;  %v13898_v59 = vld [vmem:[#allocation143_spill] sm:$0xff] }
 0xc69   : > { %v4200_v34 = vsel %vm4184_vm15, 1.0, %v13881_v27  ;;  %v4518_v25 = vsub.f32 1.0, %v4502_v10  ;;  %v4410_v45 = vadd.f32 0.2548296, %v4394_v56  ;;  %v4504_v62 = vmul.f32 %v11610_v57, %v4424_v61  ;;  %7120 = vmatprep.subr.bf16.mxu1 %v13884_v17  ;;  %v13899_v10 = vld [vmem:[#allocation122_spill] sm:$0xff]  ;;  %v13902_v3 = vld [vmem:[#allocation20_spill] sm:$0xff] }
 0xc6a   : > { %v4517_v51 = vsub.f32 1.0, %v4501_v47  ;;  %v4423_v6 = vmul.f32 %v11531_v60, %v4407_v26  ;;  %v4409_v48 = vadd.f32 0.2548296, %v4393_v14  ;;  %v7616_v38 = vpop.eup %7615  ;;  %vm4185_vm2 = vcmp.ge.f32.partialorder %v13885_v39, 0.0  ;;  %v13889_v60 = vld [vmem:[#allocation123_spill] sm:$0xff]  ;;  %v13900_v14 = vld [vmem:[#allocation45_spill] sm:$0xff] }
 0xc6b   : > { %v4547_v41 = vadd.f32 1.0, %v4531_v0  ;;  %v4534_v13 = vmul.f32 %v4518_v25, %v13886_v11  ;;  %v4426_v63 = vmul.f32 %v11567_v55, %v4410_v45  ;;  %v4520_v46 = vsub.f32 1.0, %v4504_v62  ;;  %v13903_v45 = vld [vmem:[#allocation47_spill] sm:$0xff]  ;;  %v13904_v9 = vld [vmem:[#allocation48_spill] sm:$0xff]  ;;  %v13906_v62 = vld [vmem:[#allocation50_spill] sm:$0xff] }
 0xc6c   : > { %v4533_v35 = vmul.f32 %v4517_v51, %v13887_v1  ;;  %v4503_v33 = vmul.f32 %v13888_v50, %v4423_v6  ;;  %v4425_v57 = vmul.f32 %v11555_v53, %v4409_v48  ;;  %v7618_v31 = vpop.eup %7617  ;;  %vm4186_vm3 = vcmp.ge.f32.partialorder %v13889_v60, 0.0  ;;  %7122 = vmatpush1.bf16.msra.mxu1 %v13891_v8  ;;  %v13893_v53 = vld [vmem:[#allocation197_spill] sm:$0xff]  ;;  %v13907_v6 = vld [vmem:[#allocation51_spill] sm:$0xff]  ;;  %v13908_v48 = vld [vmem:[#allocation52_spill] sm:$0xff] }
 0xc6d   : > { %v4563_v23 = vmul.f32 %v4547_v41, %v13890_v40  ;;  %v4550_v42 = vadd.f32 1.0, %v4534_v13  ;;  %v4506_v37 = vmul.f32 %v7616_v38, %v4426_v63  ;;  %v4536_v12 = vmul.f32 %v4520_v46, %v4200_v34  ;;  %7124 = vmatprep.subr.bf16.mxu1 %v13892_v30  ;;  %v13901_v34 = vld [vmem:[#allocation46_spill] sm:$0xff]  ;;  %v13905_v51 = vld [vmem:[#allocation49_spill] sm:$0xff]  ;;  %v13911_v39 = vld [vmem:[#allocation55_spill] sm:$0xff] }
 0xc6e   : > { %v4549_v15 = vadd.f32 1.0, %v4533_v35  ;;  %v4519_v28 = vsub.f32 1.0, %v4503_v33  ;;  %v4505_v55 = vmul.f32 %v7618_v31, %v4425_v57  ;;  %v4199_v32 = vsel %vm4183_vm1, 1.0, %v13881_v27  ;;  %v13909_v17 = vld [vmem:[#allocation53_spill] sm:$0xff]  ;;  %v13910_v38 = vld [vmem:[#allocation54_spill] sm:$0xff]  ;;  %v13912_v41 = vld [vmem:[#allocation56_spill] sm:$0xff] }
 0xc6f   : > { %v4152_v5 = vmul.f32 0.5, %v13893_v53  ;;  %4660 = vmatmul.mubr.f32.gmra.mrb[184].mxu1 %v4563_v23  ;;  %v4566_v52 = vmul.f32 %v4550_v42, %v13894_v20  ;;  %v4522_v54 = vsub.f32 1.0, %v4506_v37  ;;  %v4202_v16 = vsel %vm4186_vm3, 1.0, %v13881_v27  ;;  %v13913_v11 = vld [vmem:[#allocation57_spill] sm:$0xff]  ;;  %v13914_v13 = vld [vmem:[#allocation58_spill] sm:$0xff]  ;;  %v13915_v63 = vld [vmem:[#allocation59_spill] sm:$0xff] }
 0xc70   : > { %v4552_v29 = vadd.f32 1.0, %v4536_v12  ;;  %v4535_v44 = vmul.f32 %v4519_v28, %v4199_v32  ;;  %v4521_v36 = vsub.f32 1.0, %v4505_v55  ;;  %v4201_v58 = vsel %vm4185_vm2, 1.0, %v13881_v27  ;;  %7126 = vmatpush1.bf16.msra.mxu1 %v13896_v21  ;;  %v13916_v1 = vld [vmem:[#allocation77_spill] sm:$0xff]  ;;  %v13917_v46 = vld [vmem:[#allocation183_spill] sm:$0xff]  ;;  %v13918_v57 = vld [vmem:[#allocation176_spill] sm:$0xff] }
 0xc71   : > { %4665 = vmatprep.mubr.f32.mxu1 %v4566_v52  ;;  %v4565_v22 = vmul.f32 %v4549_v15, %v13895_v7  ;;  %v4538_v24 = vmul.f32 %v4522_v54, %v4202_v16  ;;  %7128 = vmatprep.subr.bf16.mxu1 %v13897_v18  ;;  %v4151_v4 = vmul.f32 0.5, %v13898_v59  ;;  %v4154_v56 = vmul.f32 0.5, %v13899_v10  ;;  %v13919_v60 = vld [vmem:[#allocation32_spill] sm:$0xff]  ;;  %v13920_v42 = vld [vmem:[#allocation142_spill] sm:$0xff]  ;;  %v13921_v28 = vld [vmem:[#allocation31_spill] sm:$0xff] }
 0xc72   : > { %v4568_v43 = vmul.f32 %v4552_v29, %v4152_v5  ;;  %v4551_v49 = vadd.f32 1.0, %v4535_v44  ;;  %v4537_v2 = vmul.f32 %v4521_v36, %v4201_v58  ;;  %v4153_v0 = vmul.f32 0.5, %v13902_v3  ;;  %v13922_v30 = vld [vmem:[#allocation182_spill] sm:$0xff]  ;;  %v13923_v53 = vld [vmem:[#allocation205_spill] sm:$0xff]  ;;  %v13925_v7 = vld [vmem:[#allocation191_spill] sm:$0xff] }
 0xc73   : > { %4666 = vmatmul.mubr.f32.gmra.mrb[186].mxu1 %v4565_v22  ;;  %v4554_v19 = vadd.f32 1.0, %v4538_v24  ;;  %v13924_v54 = vld [vmem:[#allocation193_spill] sm:$0xff]  ;;  %v13926_v24 = vld [vmem:[#allocation203_spill] sm:$0xff]  ;;  %v13930_v3 = vld [vmem:[#allocation192_spill] sm:$0xff] }
 0xc74   : > { %4671 = vmatprep.mubr.f32.mxu1 %v4568_v43  ;;  %v4567_v47 = vmul.f32 %v4551_v49, %v4151_v4  ;;  %v4553_v26 = vadd.f32 1.0, %v4537_v2  ;;  %7130 = vmatpush1.bf16.msra.mxu1 %v13900_v14  ;;  %v13927_v49 = vld [vmem:[#allocation179_spill] sm:$0xff]  ;;  %v13928_v4 = vld [vmem:[#allocation145_spill] sm:$0xff] }
 0xc75   : > { %v4570_v61 = vmul.f32 %v4554_v19, %v4154_v56  ;;  %7132 = vmatprep.subr.bf16.mxu1 %v13901_v34 }
 0xc76   : > { %v4569_v25 = vmul.f32 %v4553_v26, %v4153_v0  ;;  %v13929_v26 = vld [vmem:[#allocation204_spill] sm:$0xff] }
 0xc77   : > { %4672 = vmatmul.mubr.f32.gmra.mrb[188].mxu1 %v4567_v47 }
 0xc78   : > { %4677 = vmatprep.mubr.f32.mxu1 %v4570_v61  ;;  %7134 = vmatpush1.bf16.msra.mxu1 %v13903_v45 }
 0xc79   : > { %7136 = vmatprep.subr.bf16.mxu1 %v13904_v9 }
 0xc7b   : > { %4678 = vmatmul.mubr.f32.gmra.mrb[190].mxu1 %v4569_v25  ;;  %v13931_v25 = vld [vmem:[#allocation206_spill] sm:$0xff] }
 0xc7c   : > { %7138 = vmatpush1.bf16.msra.mxu1 %v13905_v51  ;;  %v13932_v51 = vld [vmem:[#allocation194_spill] sm:$0xff] }
 0xc7d   : > { %7140 = vmatprep.subr.bf16.mxu1 %v13906_v62 }
 0xc80   : > { %7142 = vmatpush1.bf16.msra.mxu1 %v13907_v6 }
 0xc81   : > { %7144 = vmatprep.subr.bf16.mxu1 %v13908_v48  ;;  %v13933_v48 = vld [vmem:[#allocation180_spill] sm:$0xff] }
 0xc84   : > { %7146 = vmatpush1.bf16.msra.mxu1 %v13909_v17 }
 0xc85   : > { %7148 = vmatprep.subr.bf16.mxu1 %v13910_v38  ;;  %v13934_v38 = vld [vmem:[#allocation186_spill] sm:$0xff] }
 0xc88   : > { %7150 = vmatpush1.bf16.msra.mxu1 %v13911_v39 }
 0xc89   : > { %7152 = vmatprep.subr.bf16.mxu1 %v13912_v41 }
 0xc8c   : > { %7154 = vmatpush1.bf16.msra.mxu1 %v13913_v11 }
 0xc8d   : > { %7156 = vmatprep.subr.bf16.mxu1 %v13914_v13 }
 0xc90   : > { %7158 = vmatpush1.bf16.msra.mxu1 %v13915_v63 }
 0xc91   : > { %7224 = vmatprep.subr.bf16.mxu1 %v13916_v1 }
 0xd26   : > { %v4637_v35 = vpop.f32.mrb[176].mxu1 }
 0xd27   : > { %v4638_v50 = vadd.f32 %v4637_v35, %v13917_v46  ;;  %v4639_v33 = vpop.f32.mrb[177].mxu1 }
 0xd28   : > { %v4640_v31 = vadd.f32 %v4639_v33, %v13918_v57 }
 0xd29   : > { %v4684_v37 = vadd.f32 %v4638_v50, %v13920_v42 }
 0xd2a   : > { %v4685_v40 = vadd.f32 %v4640_v31, %v13919_v60  ;;  %v4643_v23 = vpop.f32.mrb[178].mxu1  ;;  %v13935_v31 = vld [vmem:[#allocation29_spill] sm:$0xff] }
 0xd2b   : > { %v4644_v8 = vadd.f32 %v4643_v23, %v13917_v46  ;;  %v4645_v15 = vpop.f32.mrb[179].mxu1  ;;  %v4700_v52 = vmul.f32 %v4684_v37, %v13922_v30  ;;  %v13936_v23 = vld [vmem:[#allocation198_spill] sm:$0xff] }
 0xd2c   : > { %v4646_v12 = vadd.f32 %v4645_v15, %v13918_v57  ;;  %v4701_v32 = vmul.f32 %v4685_v40, %v13922_v30 }
 0xd2d   : > { %v4686_v55 = vadd.f32 %v4644_v8, %v13921_v28  ;;  %v11720_v59 = vadd.f32 %v4700_v52, %v13927_v49 }
 0xd2e   : > { %v4687_v5 = vadd.f32 %v4646_v12, %v13923_v53  ;;  %v4649_v20 = vpop.f32.mrb[180].mxu1  ;;  %v11714_v2 = vadd.f32 %v4701_v32, %v13927_v49  ;;  %v13937_v12 = vld [vmem:[#allocation200_spill] sm:$0xff]  ;;  %v13939_v53 = vld [vmem:[#allocation202_spill] sm:$0xff] }
 0xd2f   : > { %v4702_v16 = vmul.f32 %v4686_v55, %v13924_v54  ;;  %v4650_v29 = vadd.f32 %v4649_v20, %v13917_v46  ;;  %v4651_v44 = vpop.f32.mrb[181].mxu1  ;;  %v13938_v55 = vld [vmem:[#allocation188_spill] sm:$0xff] }
 0xd30   : > { %v4703_v36 = vmul.f32 %v4687_v5, %v13924_v54  ;;  %v4652_v58 = vadd.f32 %v4651_v44, %v13918_v57 }
 0xd31   : > { %v11710_v22 = vadd.f32 %v4702_v16, %v13925_v7  ;;  %v4688_v10 = vadd.f32 %v4650_v29, %v13928_v4  ;;  %v13940_v16 = vld [vmem:[#allocation190_spill] sm:$0xff]  ;;  %v13942_v4 = vld [vmem:[#allocation207_spill] sm:$0xff] }
 0xd32   : > { %v4689_v21 = vadd.f32 %v4652_v58, %v13926_v24  ;;  %v4655_v43 = vpop.f32.mrb[182].mxu1  ;;  %v11717_v18 = vadd.f32 %v4703_v36, %v13925_v7 }
 0xd33   : > { %v4656_v56 = vadd.f32 %v4655_v43, %v13917_v46  ;;  %v4657_v19 = vpop.f32.mrb[183].mxu1  ;;  %v7081_v34 = vpack.c.bf16 %v11710_v22, %v11720_v59  ;;  %v4704_v9 = vmul.f32 %v4688_v10, %v13930_v3 }
 0xd34   : > { %v4658_v47 = vadd.f32 %v4657_v19, %v13918_v57  ;;  %v7079_v61 = vpack.c.bf16 %v11717_v18, %v11714_v2  ;;  %v4705_v0 = vmul.f32 %v4689_v21, %v13930_v3  ;;  %v13941_v21 = vld [vmem:[#allocation195_spill] sm:$0xff] }
 0xd35   : > { %v4690_v14 = vadd.f32 %v4656_v56, %v13929_v26  ;;  %v11745_v11 = vadd.f32 %v4704_v9, %v13934_v38  ;;  %v13943_v19 = vld [vmem:[#allocation187_spill] sm:$0xff] }
 0xd36   : > { %v4691_v45 = vadd.f32 %v4658_v47, %v13931_v25  ;;  %7080 = vmatprep.subr.bf16.mxu0 %v7079_v61  ;;  %v11739_v39 = vadd.f32 %v4705_v0, %v13934_v38 }
 0xd37   : > { %v4706_v62 = vmul.f32 %v4690_v14, %v13932_v51  ;;  %7082 = vmatpush1.bf16.msra.mxu0 %v7081_v34  ;;  %v13944_v14 = vld [vmem:[#allocation199_spill] sm:$0xff] }
 0xd38   : > { %v4707_v6 = vmul.f32 %v4691_v45, %v13932_v51 }
 0xd39   : > { %v11736_v17 = vadd.f32 %v4706_v62, %v13933_v48  ;;  %v13945_v62 = vld [vmem:[#allocation146_spill] sm:$0xff] }
 0xd3a   : > { %v11742_v41 = vadd.f32 %v4707_v6, %v13933_v48 }
 0xd3b   : > { %v7085_v63 = vpack.c.bf16 %v11736_v17, %v11745_v11 }
 0xd3c   : > { %v7083_v13 = vpack.c.bf16 %v11742_v41, %v11739_v39 }
 0xd3e   : > { %7084 = vmatprep.subr.bf16.mxu0 %v7083_v13 }
 0xd3f   : > { %7086 = vmatpush1.bf16.msra.mxu0 %v7085_v63  ;;  %v13946_v63 = vld [vmem:[#allocation178_spill] sm:$0xff] }
 0xd42   : > { %v4661_v1 = vpop.f32.mrb[184].mxu1 }
 0xd43   : > { %v4662_v35 = vadd.f32 %v4661_v1, %v13917_v46  ;;  %v4663_v50 = vpop.f32.mrb[185].mxu1 }
 0xd44   : > { %v4664_v33 = vadd.f32 %v4663_v50, %v13918_v57 }
 0xd45   : > { %v4692_v42 = vadd.f32 %v4662_v35, %v13936_v23  ;;  %v13947_v35 = vld [vmem:[#allocation138_spill] sm:$0xff]  ;;  %v13949_v23 = vld [vmem:[#allocation189_spill] sm:$0xff] }
 0xd46   : > { %v4693_v60 = vadd.f32 %v4664_v33, %v13935_v31  ;;  %v4667_v40 = vpop.f32.mrb[186].mxu1  ;;  %v13948_v31 = vld [vmem:[#allocation175_spill] sm:$0xff] }
 0xd47   : > { %v4668_v37 = vadd.f32 %v4667_v40, %v13917_v46  ;;  %v4669_v8 = vpop.f32.mrb[187].mxu1  ;;  %v4708_v52 = vmul.f32 %v4692_v42, %v13938_v55 }
 0xd48   : > { %v4670_v15 = vadd.f32 %v4669_v8, %v13918_v57  ;;  %v4709_v32 = vmul.f32 %v4693_v60, %v13938_v55 }
 0xd49   : > { %v4694_v28 = vadd.f32 %v4668_v37, %v13937_v12  ;;  %v11776_v26 = vadd.f32 %v4708_v52, %v13943_v19  ;;  %v13950_v37 = vld [vmem:[#allocation181_spill] sm:$0xff]  ;;  %v13953_v52 = vld [vmem:[#allocation12_spill] sm:$0xff] }
 0xd4a   : > { %v4695_v5 = vadd.f32 %v4670_v15, %v13939_v53  ;;  %v4673_v20 = vpop.f32.mrb[188].mxu1  ;;  %v11770_v47 = vadd.f32 %v4709_v32, %v13943_v19  ;;  %v13951_v53 = vld [vmem:[#allocation11_spill] sm:$0xff] }
 0xd4b   : > { %v4710_v29 = vmul.f32 %v4694_v28, %v13940_v16  ;;  %v4674_v44 = vadd.f32 %v4673_v20, %v13917_v46  ;;  %v4675_v36 = vpop.f32.mrb[189].mxu1  ;;  %v13952_v20 = vmov 0.0  }
 0xd4c   : > { %v4711_v58 = vmul.f32 %v4695_v5, %v13940_v16  ;;  %v4676_v24 = vadd.f32 %v4675_v36, %v13918_v57  ;;  %v7715_v5 = vld [vmem:[%s12655_s3] sm:$0xff] }
 0xd4d   : > { %v11766_v43 = vadd.f32 %v4710_v29, %v13941_v21  ;;  %v4696_v34 = vadd.f32 %v4674_v44, %v13944_v14  ;;  %v13954_v29 = vld [vmem:[#allocation13_spill] sm:$0xff]  ;;  %v7716_v44 = vld [vmem:[%s12655_s3 + $0x8] sm:$0xff]  ;;  %v13955_v36 = vld [vmem:[#allocation14_spill] sm:$0xff] }
 0xd4e   : > { %v4697_v10 = vadd.f32 %v4676_v24, %v13942_v4  ;;  %v4679_v56 = vpop.f32.mrb[190].mxu1  ;;  %v11773_v61 = vadd.f32 %v4711_v58, %v13941_v21  ;;  %v13956_v58 = vld [vmem:[#allocation15_spill] sm:$0xff]  ;;  %v7717_v24 = vld [vmem:[%s12655_s3 + $0x10] sm:$0xff]  ;;  %v13959_v14 = vld [vmem:[#allocation18_spill] sm:$0xff] }
 0xd4f   : > { %v4680_v0 = vadd.f32 %v4679_v56, %v13917_v46  ;;  %v4681_v25 = vpop.f32.mrb[191].mxu1  ;;  %v7089_v13 = vpack.c.bf16 %v11766_v43, %v11776_v26  ;;  %v4712_v33 = vmul.f32 %v4696_v34, %v13946_v63  ;;  %v13957_v4 = vld [vmem:[#allocation16_spill] sm:$0xff]  ;;  %v7718_v56 = vld [vmem:[%s12655_s3 + $0x18] sm:$0xff]  ;;  %v13960_v34 = vld [vmem:[#allocation19_spill] sm:$0xff] }
 0xd50   : > { %v4682_v45 = vadd.f32 %v4681_v25, %v13918_v57  ;;  %v7087_v9 = vpack.c.bf16 %v11773_v61, %v11770_v47  ;;  %v4713_v1 = vmul.f32 %v4697_v10, %v13946_v63  ;;  %v13958_v10 = vld [vmem:[#allocation17_spill] sm:$0xff] }
 0xd51   : > { %v4698_v6 = vadd.f32 %v4680_v0, %v13945_v62  ;;  %v11801_v12 = vadd.f32 %v4712_v33, %v13950_v37  ;;  %v7719_v0 = vld [vmem:[%s12655_s3 + $0x20] sm:$0xff]  ;;  %v13961_v25 = vld [vmem:[#allocation21_spill] sm:$0xff]  ;;  %v13963_v62 = vld [vmem:[#allocation24_spill] sm:$0xff] }
 0xd52   : > { %v4699_v50 = vadd.f32 %v4682_v45, %v13947_v35  ;;  %7088 = vmatprep.subr.bf16.mxu0 %v7087_v9  ;;  %v11795_v8 = vadd.f32 %v4713_v1, %v13950_v37  ;;  %v13962_v45 = vld [vmem:[#allocation23_spill] sm:$0xff]  ;;  %v13965_v1 = vld [vmem:[#allocation26_spill] sm:$0xff]  ;;  %v13967_v33 = vld [vmem:[#allocation60_spill] sm:$0xff] }
 0xd53   : > { %v4714_v60 = vmul.f32 %v4698_v6, %v13948_v31  ;;  %7090 = vmatpush1.bf16.msra.mxu0 %v7089_v13  ;;  %v7720_v9 = vld [vmem:[%s12655_s3 + $0x28] sm:$0xff]  ;;  %v13964_v6 = vld [vmem:[#allocation25_spill] sm:$0xff] }
 0xd54   : > { %v4715_v40 = vmul.f32 %v4699_v50, %v13948_v31  ;;  %v7721_v13 = vld [vmem:[%s12655_s3 + $0x30] sm:$0xff]  ;;  %v13966_v35 = vld [vmem:[#allocation27_spill] sm:$0xff]  ;;  %v7722_v50 = vld [vmem:[%s12655_s3 + $0x38] sm:$0xff] }
 0xd55   : > { %v11792_v42 = vadd.f32 %v4714_v60, %v13949_v23  ;;  %v13968_v60 = vld [vmem:[#allocation61_spill] sm:$0xff] }
 0xd56   : > { %v11798_v15 = vadd.f32 %v4715_v40, %v13949_v23  ;;  %v7723_v40 = vld [vmem:[%s12655_s3 + $0x40] sm:$0xff] }
 0xd57   : > { %v7093_v32 = vpack.c.bf16 %v11792_v42, %v11801_v12 }
 0xd58   : > { %v7091_v28 = vpack.c.bf16 %v11798_v15, %v11795_v8 }
 0xd5a   : > { %7092 = vmatprep.subr.bf16.mxu0 %v7091_v28  ;;  %v13969_v28 = vld [vmem:[#allocation62_spill] sm:$0xff] }
 0xd5b   : > { %7094 = vmatpush1.bf16.msra.mxu0 %v7093_v32  ;;  %v13970_v32 = vld [vmem:[#allocation63_spill] sm:$0xff] }
 0xd5c   : > { %7160 = vmatprep.subr.bf16.mxu0 %v13951_v53  ;;  %v7724_v53 = vld [vmem:[%s12655_s3 + $0x48] sm:$0xff] }
 0xd5e   : > { %6144 = vmatmul.mubr.msk.f32.vlgmr.msra.gmra.mrb[112].mxu0 %vm1030_vm0, %v7715_v5  ;;  %v13971_v5 = vld [vmem:[#allocation64_spill] sm:$0xff] }
 0xd5f   : > { %4802 = vmatprep.mubr.f32.mxu0 %v13952_v20  ;;  %7162 = vmatpush1.bf16.msra.mxu0 %v13953_v52  ;;  %v13972_v52 = vld [vmem:[#allocation65_spill] sm:$0xff] }
 0xd60   : > { %7164 = vmatprep.subr.bf16.mxu0 %v13954_v29  ;;  %v7725_v29 = vld [vmem:[%s12655_s3 + $0x50] sm:$0xff] }
 0xd62   : > { %6145 = vmatmul.mubr.msk.f32.gmra.mrb[114].mxu0 %vm1030_vm0, %v7716_v44  ;;  %v13973_v44 = vld [vmem:[#allocation66_spill] sm:$0xff] }
 0xd63   : > { %4808 = vmatprep.mubr.f32.mxu0 %v13952_v20  ;;  %7166 = vmatpush1.bf16.msra.mxu0 %v13955_v36  ;;  %v13974_v36 = vld [vmem:[#allocation67_spill] sm:$0xff] }
 0xd64   : > { %7168 = vmatprep.subr.bf16.mxu0 %v13956_v58  ;;  %v7726_v58 = vld [vmem:[%s12655_s3 + $0x58] sm:$0xff] }
 0xd66   : > { %6146 = vmatmul.mubr.msk.f32.gmra.mrb[116].mxu0 %vm1030_vm0, %v7717_v24  ;;  %v13975_v24 = vld [vmem:[#allocation68_spill] sm:$0xff] }
 0xd67   : > { %4814 = vmatprep.mubr.f32.mxu0 %v13952_v20  ;;  %7170 = vmatpush1.bf16.msra.mxu0 %v13957_v4  ;;  %v13976_v4 = vld [vmem:[#allocation69_spill] sm:$0xff] }
 0xd68   : > { %7172 = vmatprep.subr.bf16.mxu0 %v13958_v10  ;;  %v7727_v10 = vld [vmem:[%s12655_s3 + $0x60] sm:$0xff] }
 0xd6a   : > { %6147 = vmatmul.mubr.msk.f32.gmra.mrb[118].mxu0 %vm1030_vm0, %v7718_v56  ;;  %v13977_v56 = vld [vmem:[#allocation70_spill] sm:$0xff] }
 0xd6b   : > { %4820 = vmatprep.mubr.f32.mxu0 %v13952_v20  ;;  %7174 = vmatpush1.bf16.msra.mxu0 %v13959_v14  ;;  %v13978_v14 = vld [vmem:[#allocation71_spill] sm:$0xff] }
 0xd6c   : > { %7176 = vmatprep.subr.bf16.mxu0 %v13960_v34  ;;  %v7728_v34 = vld [vmem:[%s12655_s3 + $0x68] sm:$0xff] }
 0xd6e   : > { %6148 = vmatmul.mubr.msk.f32.gmra.mrb[120].mxu0 %vm1030_vm0, %v7719_v0  ;;  %v13979_v0 = vld [vmem:[#allocation72_spill] sm:$0xff] }
 0xd6f   : > { %4826 = vmatprep.mubr.f32.mxu0 %v13952_v20  ;;  %7178 = vmatpush1.bf16.msra.mxu0 %v13961_v25  ;;  %v13980_v25 = vld [vmem:[#allocation73_spill] sm:$0xff] }
 0xd70   : > { %7180 = vmatprep.subr.bf16.mxu0 %v13962_v45  ;;  %v7729_v45 = vld [vmem:[%s12655_s3 + $0x70] sm:$0xff] }
 0xd72   : > { %6149 = vmatmul.mubr.msk.f32.gmra.mrb[122].mxu0 %vm1030_vm0, %v7720_v9  ;;  %v13981_v9 = vld [vmem:[#allocation74_spill] sm:$0xff] }
 0xd73   : > { %4832 = vmatprep.mubr.f32.mxu0 %v13952_v20  ;;  %7182 = vmatpush1.bf16.msra.mxu0 %v13963_v62  ;;  %v13982_v62 = vld [vmem:[#allocation75_spill] sm:$0xff] }
 0xd74   : > { %7184 = vmatprep.subr.bf16.mxu0 %v13964_v6  ;;  %v7730_v6 = vld [vmem:[%s12655_s3 + $0x78] sm:$0xff] }
 0xd76   : > { %6150 = vmatmul.mubr.msk.f32.gmra.mrb[124].mxu0 %vm1030_vm0, %v7721_v13  ;;  %v13983_v13 = vld [vmem:[#allocation76_spill] sm:$0xff] }
 0xd77   : > { %4838 = vmatprep.mubr.f32.mxu0 %v13952_v20  ;;  %7186 = vmatpush1.bf16.msra.mxu0 %v13965_v1  ;;  %v13984_v1 = vld [vmem:[#allocation109_spill] sm:$0xff] }
 0xd78   : > { %7188 = vmatprep.subr.bf16.mxu0 %v13966_v35 }
 0xd7a   : > { %6151 = vmatmul.mubr.msk.f32.gmra.mrb[126].mxu0 %vm1030_vm0, %v7722_v50 }
 0xd7b   : > { %4844 = vmatprep.mubr.f32.mxu0 %v13952_v20  ;;  %7190 = vmatpush1.bf16.msra.mxu0 %v13967_v33 }
 0xd7c   : > { %7192 = vmatprep.subr.bf16.mxu0 %v13968_v60 }
 0xd7e   : > { %6152 = vmatmul.mubr.msk.f32.gmra.mrb[128].mxu0 %vm1030_vm0, %v7723_v40  ;;  %v13986_v40 = vld [vmem:[#allocation79_spill] sm:$0xff] }
 0xd7f   : > { %4850 = vmatprep.mubr.f32.mxu0 %v13952_v20  ;;  %7194 = vmatpush1.bf16.msra.mxu0 %v13969_v28 }
 0xd80   : > { %7196 = vmatprep.subr.bf16.mxu0 %v13970_v32  ;;  %v13987_v32 = vld [vmem:[#allocation80_spill] sm:$0xff] }
 0xd82   : > { %6153 = vmatmul.mubr.msk.f32.gmra.mrb[130].mxu0 %vm1030_vm0, %v7724_v53 }
 0xd83   : > { %4856 = vmatprep.mubr.f32.mxu0 %v13952_v20  ;;  %7198 = vmatpush1.bf16.msra.mxu0 %v13971_v5  ;;  %v13988_v5 = vld [vmem:[#allocation81_spill] sm:$0xff] }
 0xd84   : > { %7200 = vmatprep.subr.bf16.mxu0 %v13972_v52 }
 0xd86   : > { %6154 = vmatmul.mubr.msk.f32.gmra.mrb[132].mxu0 %vm1030_vm0, %v7725_v29  ;;  %v13989_v29 = vld [vmem:[#allocation82_spill] sm:$0xff] }
 0xd87   : > { %4862 = vmatprep.mubr.f32.mxu0 %v13952_v20  ;;  %7202 = vmatpush1.bf16.msra.mxu0 %v13973_v44 }
 0xd88   : > { %7204 = vmatprep.subr.bf16.mxu0 %v13974_v36  ;;  %v13990_v36 = vld [vmem:[#allocation83_spill] sm:$0xff] }
 0xd8a   : > { %6155 = vmatmul.mubr.msk.f32.gmra.mrb[134].mxu0 %vm1030_vm0, %v7726_v58 }
 0xd8b   : > { %4868 = vmatprep.mubr.f32.mxu0 %v13952_v20  ;;  %7206 = vmatpush1.bf16.msra.mxu0 %v13975_v24  ;;  %v13991_v24 = vld [vmem:[#allocation84_spill] sm:$0xff] }
 0xd8c   : > { %7208 = vmatprep.subr.bf16.mxu0 %v13976_v4 }
 0xd8e   : > { %6156 = vmatmul.mubr.msk.f32.gmra.mrb[136].mxu0 %vm1030_vm0, %v7727_v10  ;;  %v13992_v10 = vld [vmem:[#allocation85_spill] sm:$0xff] }
 0xd8f   : > { %4874 = vmatprep.mubr.f32.mxu0 %v13952_v20  ;;  %7210 = vmatpush1.bf16.msra.mxu0 %v13977_v56 }
 0xd90   : > { %7212 = vmatprep.subr.bf16.mxu0 %v13978_v14  ;;  %v13993_v14 = vld [vmem:[#allocation86_spill] sm:$0xff] }
 0xd92   : > { %6157 = vmatmul.mubr.msk.f32.gmra.mrb[138].mxu0 %vm1030_vm0, %v7728_v34 }
 0xd93   : > { %4880 = vmatprep.mubr.f32.mxu0 %v13952_v20  ;;  %7214 = vmatpush1.bf16.msra.mxu0 %v13979_v0  ;;  %v13994_v0 = vld [vmem:[#allocation87_spill] sm:$0xff] }
 0xd94   : > { %7216 = vmatprep.subr.bf16.mxu0 %v13980_v25 }
 0xd96   : > { %6158 = vmatmul.mubr.msk.f32.gmra.mrb[140].mxu0 %vm1030_vm0, %v7729_v45  ;;  %v13995_v45 = vld [vmem:[#allocation88_spill] sm:$0xff] }
 0xd97   : > { %4886 = vmatprep.mubr.f32.mxu0 %v13952_v20  ;;  %7218 = vmatpush1.bf16.msra.mxu0 %v13981_v9  ;;  %v13985_v20 = vld [vmem:[#allocation78_spill] sm:$0xff] }
 0xd98   : > { %7220 = vmatprep.subr.bf16.mxu0 %v13982_v62  ;;  %v13996_v62 = vld [vmem:[#allocation89_spill] sm:$0xff] }
 0xd9a   : > { %6159 = vmatmul.mubr.msk.f32.gmra.mrb[142].mxu0 %vm1030_vm0, %v7730_v6 }
 0xd9b   : > { %7222 = vmatpush1.bf16.msra.mxu0 %v13983_v13  ;;  %v13997_v13 = vld [vmem:[#allocation90_spill] sm:$0xff] }
 0xd9c   : > { %7288 = vmatprep.subr.bf16.mxu0 %v13984_v1 }
 0xe31   : > { %v4798_v35 = vpop.f32.mrb[112].mxu0 }
 0xe32   : > { %v4800_v50 = vpop.f32.mrb[113].mxu0 }
 0xe33   : > { %4957 = vmatprep.mubr.f32.mxu1 %v4800_v50 }
 0xe34   : > { %4958 = vmatmul.mubr.f32.vlgmr.msra.gmra.mrb[192].mxu1 %v4798_v35  ;;  %v13998_v35 = vld [vmem:[#allocation91_spill] sm:$0xff] }
 0xe35   : > { %v4804_v33 = vpop.f32.mrb[114].mxu0  ;;  %7226 = vmatpush1.bf16.msra.mxu1 %v13985_v20 }
 0xe36   : > { %v4806_v60 = vpop.f32.mrb[115].mxu0  ;;  %7228 = vmatprep.subr.bf16.mxu1 %v13986_v40 }
 0xe37   : > { %4963 = vmatprep.mubr.f32.mxu1 %v4806_v60  ;;  %v14000_v60 = vld [vmem:[#allocation93_spill] sm:$0xff] }
 0xe38   : > { %4964 = vmatmul.mubr.f32.gmra.mrb[194].mxu1 %v4804_v33  ;;  %v13999_v33 = vld [vmem:[#allocation92_spill] sm:$0xff] }
 0xe39   : > { %v4810_v28 = vpop.f32.mrb[116].mxu0  ;;  %7230 = vmatpush1.bf16.msra.mxu1 %v13987_v32  ;;  %v14002_v32 = vld [vmem:[#allocation110_spill] sm:$0xff] }
 0xe3a   : > { %v4812_v53 = vpop.f32.mrb[117].mxu0  ;;  %7232 = vmatprep.subr.bf16.mxu1 %v13988_v5  ;;  %v14003_v5 = vld [vmem:[#allocation95_spill] sm:$0xff] }
 0xe3b   : > { %4969 = vmatprep.mubr.f32.mxu1 %v4812_v53 }
 0xe3c   : > { %4970 = vmatmul.mubr.f32.gmra.mrb[196].mxu1 %v4810_v28  ;;  %v14001_v28 = vld [vmem:[#allocation94_spill] sm:$0xff] }
 0xe3d   : > { %v4816_v52 = vpop.f32.mrb[118].mxu0  ;;  %7234 = vmatpush1.bf16.msra.mxu1 %v13989_v29 }
 0xe3e   : > { %v4818_v44 = vpop.f32.mrb[119].mxu0  ;;  %7236 = vmatprep.subr.bf16.mxu1 %v13990_v36  ;;  %v14006_v36 = vld [vmem:[#allocation112_spill] sm:$0xff] }
 0xe3f   : > { %4975 = vmatprep.mubr.f32.mxu1 %v4818_v44  ;;  %v14005_v44 = vld [vmem:[#allocation96_spill] sm:$0xff] }
 0xe40   : > { %4976 = vmatmul.mubr.f32.gmra.mrb[198].mxu1 %v4816_v52  ;;  %v14004_v52 = vld [vmem:[#allocation111_spill] sm:$0xff] }
 0xe41   : > { %v4822_v58 = vpop.f32.mrb[120].mxu0  ;;  %7238 = vmatpush1.bf16.msra.mxu1 %v13991_v24  ;;  %v14007_v24 = vld [vmem:[#allocation97_spill] sm:$0xff] }
 0xe42   : > { %v4824_v4 = vpop.f32.mrb[121].mxu0  ;;  %7240 = vmatprep.subr.bf16.mxu1 %v13992_v10 }
 0xe43   : > { %4981 = vmatprep.mubr.f32.mxu1 %v4824_v4  ;;  %v14008_v4 = vld [vmem:[#allocation113_spill] sm:$0xff] }
 0xe44   : > { %4982 = vmatmul.mubr.f32.gmra.mrb[200].mxu1 %v4822_v58 }
 0xe45   : > { %v4828_v56 = vpop.f32.mrb[122].mxu0  ;;  %7242 = vmatpush1.bf16.msra.mxu1 %v13993_v14  ;;  %v14010_v14 = vld [vmem:[#allocation114_spill] sm:$0xff] }
 0xe46   : > { %v4830_v34 = vpop.f32.mrb[123].mxu0  ;;  %7244 = vmatprep.subr.bf16.mxu1 %v13994_v0  ;;  %v14011_v0 = vld [vmem:[#allocation99_spill] sm:$0xff] }
 0xe47   : > { %4987 = vmatprep.mubr.f32.mxu1 %v4830_v34 }
 0xe48   : > { %4988 = vmatmul.mubr.f32.gmra.mrb[202].mxu1 %v4828_v56  ;;  %v14009_v56 = vld [vmem:[#allocation98_spill] sm:$0xff] }
 0xe49   : > { %v4834_v25 = vpop.f32.mrb[124].mxu0  ;;  %7246 = vmatpush1.bf16.msra.mxu1 %v13995_v45 }
 0xe4a   : > { %v4836_v9 = vpop.f32.mrb[125].mxu0  ;;  %7248 = vmatprep.subr.bf16.mxu1 %v13996_v62  ;;  %v14014_v62 = vld [vmem:[#allocation148_spill] sm:$0xff] }
 0xe4b   : > { %4993 = vmatprep.mubr.f32.mxu1 %v4836_v9  ;;  %v14013_v9 = vld [vmem:[#allocation100_spill] sm:$0xff] }
 0xe4c   : > { %4994 = vmatmul.mubr.f32.gmra.mrb[204].mxu1 %v4834_v25  ;;  %v14012_v25 = vld [vmem:[#allocation147_spill] sm:$0xff] }
 0xe4d   : > { %v4840_v6 = vpop.f32.mrb[126].mxu0  ;;  %7250 = vmatpush1.bf16.msra.mxu1 %v13997_v13  ;;  %v14015_v13 = vld [vmem:[#allocation101_spill] sm:$0xff] }
 0xe4e   : > { %v4842_v1 = vpop.f32.mrb[127].mxu0  ;;  %7252 = vmatprep.subr.bf16.mxu1 %v13998_v35 }
 0xe4f   : > { %4999 = vmatprep.mubr.f32.mxu1 %v4842_v1  ;;  %v14016_v1 = vld [vmem:[#allocation149_spill] sm:$0xff] }
 0xe50   : > { %5000 = vmatmul.mubr.f32.gmra.mrb[206].mxu1 %v4840_v6 }
 0xe51   : > { %v4846_v50 = vpop.f32.mrb[128].mxu0  ;;  %7254 = vmatpush1.bf16.msra.mxu1 %v13999_v33  ;;  %v14018_v33 = vld [vmem:[#allocation150_spill] sm:$0xff] }
 0xe52   : > { %v4848_v20 = vpop.f32.mrb[129].mxu0  ;;  %7256 = vmatprep.subr.bf16.mxu1 %v14000_v60  ;;  %v14019_v60 = vld [vmem:[#allocation103_spill] sm:$0xff] }
 0xe53   : > { %5070 = vmatprep.mubr.f32.mxu0 %v4848_v20 }
 0xe54   : > { %5071 = vmatmul.mubr.f32.vlgmr.msra.gmra.mrb[144].mxu0 %v4846_v50  ;;  %v14017_v50 = vld [vmem:[#allocation102_spill] sm:$0xff] }
 0xe55   : > { %v4852_v40 = vpop.f32.mrb[130].mxu0  ;;  %7258 = vmatpush1.bf16.msra.mxu1 %v14001_v28  ;;  %7290 = vmatpush1.bf16.msra.mxu0 %v14002_v32  ;;  %v14021_v32 = vld [vmem:[#allocation104_spill] sm:$0xff] }
 0xe56   : > { %v4854_v53 = vpop.f32.mrb[131].mxu0  ;;  %7260 = vmatprep.subr.bf16.mxu1 %v14003_v5  ;;  %7292 = vmatprep.subr.bf16.mxu0 %v14004_v52  ;;  %v14023_v52 = vld [vmem:[#allocation105_spill] sm:$0xff] }
 0xe57   : > { %5076 = vmatprep.mubr.f32.mxu0 %v4854_v53  ;;  %v14022_v53 = vld [vmem:[#allocation152_spill] sm:$0xff] }
 0xe58   : > { %5077 = vmatmul.mubr.f32.gmra.mrb[146].mxu0 %v4852_v40  ;;  %v14020_v40 = vld [vmem:[#allocation151_spill] sm:$0xff] }
 0xe59   : > { %v4858_v29 = vpop.f32.mrb[132].mxu0  ;;  %7262 = vmatpush1.bf16.msra.mxu1 %v14005_v44  ;;  %7294 = vmatpush1.bf16.msra.mxu0 %v14006_v36  ;;  %v14025_v36 = vld [vmem:[#allocation106_spill] sm:$0xff] }
 0xe5a   : > { %v4860_v58 = vpop.f32.mrb[133].mxu0  ;;  %7264 = vmatprep.subr.bf16.mxu1 %v14007_v24  ;;  %7296 = vmatprep.subr.bf16.mxu0 %v14008_v4  ;;  %v14027_v4 = vld [vmem:[#allocation107_spill] sm:$0xff] }
 0xe5b   : > { %5082 = vmatprep.mubr.f32.mxu0 %v4860_v58  ;;  %v14026_v58 = vld [vmem:[#allocation154_spill] sm:$0xff] }
 0xe5c   : > { %5083 = vmatmul.mubr.f32.gmra.mrb[148].mxu0 %v4858_v29  ;;  %v14024_v29 = vld [vmem:[#allocation153_spill] sm:$0xff] }
 0xe5d   : > { %v4864_v10 = vpop.f32.mrb[134].mxu0  ;;  %7266 = vmatpush1.bf16.msra.mxu1 %v14009_v56  ;;  %7298 = vmatpush1.bf16.msra.mxu0 %v14010_v14  ;;  %v14029_v56 = vld [vmem:[#allocation108_spill] sm:$0xff] }
 0xe5e   : > { %v4866_v34 = vpop.f32.mrb[135].mxu0  ;;  %7268 = vmatprep.subr.bf16.mxu1 %v14011_v0  ;;  %7300 = vmatprep.subr.bf16.mxu0 %v14012_v25  ;;  %v14030_v14 = vld [vmem:[#allocation156_spill] sm:$0xff]  ;;  %v14032_v0 = vld [vmem:[#allocation158_spill] sm:$0xff]  ;;  %v14033_v25 = vld [vmem:[#allocation159_spill] sm:$0xff] }
 0xe5f   : > { %5088 = vmatprep.mubr.f32.mxu0 %v4866_v34  ;;  %v14031_v34 = vld [vmem:[#allocation157_spill] sm:$0xff] }
 0xe60   : > { %5089 = vmatmul.mubr.f32.gmra.mrb[150].mxu0 %v4864_v10  ;;  %v14028_v10 = vld [vmem:[#allocation155_spill] sm:$0xff] }
 0xe61   : > { %v4870_v45 = vpop.f32.mrb[136].mxu0  ;;  %7270 = vmatpush1.bf16.msra.mxu1 %v14013_v9  ;;  %7302 = vmatpush1.bf16.msra.mxu0 %v14014_v62  ;;  %v14035_v9 = vld [vmem:[#allocation161_spill] sm:$0xff]  ;;  %v14036_v62 = vld [vmem:[#allocation162_spill] sm:$0xff] }
 0xe62   : > { %v4872_v6 = vpop.f32.mrb[137].mxu0  ;;  %7272 = vmatprep.subr.bf16.mxu1 %v14015_v13  ;;  %7304 = vmatprep.subr.bf16.mxu0 %v14016_v1  ;;  %v14038_v13 = vld [vmem:[#allocation164_spill] sm:$0xff]  ;;  %v14039_v1 = vld [vmem:[#allocation165_spill] sm:$0xff] }
 0xe63   : > { %5094 = vmatprep.mubr.f32.mxu0 %v4872_v6  ;;  %v14037_v6 = vld [vmem:[#allocation163_spill] sm:$0xff] }
 0xe64   : > { %5095 = vmatmul.mubr.f32.gmra.mrb[152].mxu0 %v4870_v45  ;;  %v14034_v45 = vld [vmem:[#allocation160_spill] sm:$0xff] }
 0xe65   : > { %v4876_v35 = vpop.f32.mrb[138].mxu0  ;;  %7274 = vmatpush1.bf16.msra.mxu1 %v14017_v50  ;;  %7306 = vmatpush1.bf16.msra.mxu0 %v14018_v33  ;;  %v14041_v50 = vld [vmem:[#allocation167_spill] sm:$0xff]  ;;  %v14042_v33 = vld [vmem:[#allocation168_spill] sm:$0xff] }
 0xe66   : > { %v4878_v20 = vpop.f32.mrb[139].mxu0  ;;  %7276 = vmatprep.subr.bf16.mxu1 %v14019_v60  ;;  %7308 = vmatprep.subr.bf16.mxu0 %v14020_v40  ;;  %v14044_v60 = vld [vmem:[#allocation170_spill] sm:$0xff]  ;;  %v14045_v40 = vld [vmem:[#allocation171_spill] sm:$0xff] }
 0xe67   : > { %5100 = vmatprep.mubr.f32.mxu0 %v4878_v20  ;;  %v14043_v20 = vld [vmem:[#allocation169_spill] sm:$0xff] }
 0xe68   : > { %5101 = vmatmul.mubr.f32.gmra.mrb[154].mxu0 %v4876_v35  ;;  %v14040_v35 = vld [vmem:[#allocation166_spill] sm:$0xff] }
 0xe69   : > { %v4882_v28 = vpop.f32.mrb[140].mxu0  ;;  %7278 = vmatpush1.bf16.msra.mxu1 %v14021_v32  ;;  %7310 = vmatpush1.bf16.msra.mxu0 %v14022_v53 }
 0xe6a   : > { %v4884_v5 = vpop.f32.mrb[141].mxu0  ;;  %7280 = vmatprep.subr.bf16.mxu1 %v14023_v52  ;;  %7312 = vmatprep.subr.bf16.mxu0 %v14024_v29 }
 0xe6b   : > { %5106 = vmatprep.mubr.f32.mxu0 %v4884_v5 }
 0xe6c   : > { %5107 = vmatmul.mubr.f32.gmra.mrb[156].mxu0 %v4882_v28  ;;  %v14046_v28 = vld [vmem:[#allocation172_spill] sm:$0xff] }
 0xe6d   : > { %v4888_v44 = vpop.f32.mrb[142].mxu0  ;;  %7282 = vmatpush1.bf16.msra.mxu1 %v14025_v36  ;;  %7314 = vmatpush1.bf16.msra.mxu0 %v14026_v58 }
 0xe6e   : > { %v4890_v24 = vpop.f32.mrb[143].mxu0  ;;  %7284 = vmatprep.subr.bf16.mxu1 %v14027_v4  ;;  %7316 = vmatprep.subr.bf16.mxu0 %v14028_v10 }
 0xe6f   : > { %5112 = vmatprep.mubr.f32.mxu0 %v4890_v24 }
 0xe70   : > { %5113 = vmatmul.mubr.f32.gmra.mrb[158].mxu0 %v4888_v44 }
 0xe71   : > { %7286 = vmatpush1.bf16.msra.mxu1 %v14029_v56  ;;  %7318 = vmatpush1.bf16.msra.mxu0 %v14030_v14 }
 0xe72   : > { %7320 = vmatprep.subr.bf16.mxu0 %v14031_v34 }
 0xe75   : > { %7322 = vmatpush1.bf16.msra.mxu0 %v14032_v0 }
 0xe76   : > { %7324 = vmatprep.subr.bf16.mxu0 %v14033_v25 }
 0xe79   : > { %7326 = vmatpush1.bf16.msra.mxu0 %v14034_v45 }
 0xe7a   : > { %7328 = vmatprep.subr.bf16.mxu0 %v14035_v9 }
 0xe7d   : > { %7330 = vmatpush1.bf16.msra.mxu0 %v14036_v62 }
 0xe7e   : > { %7332 = vmatprep.subr.bf16.mxu0 %v14037_v6 }
 0xe81   : > { %7334 = vmatpush1.bf16.msra.mxu0 %v14038_v13 }
 0xe82   : > { %7336 = vmatprep.subr.bf16.mxu0 %v14039_v1 }
 0xe85   : > { %7338 = vmatpush1.bf16.msra.mxu0 %v14040_v35 }
 0xe86   : > { %7340 = vmatprep.subr.bf16.mxu0 %v14041_v50  ;;  %v14047_v50 = vld [vmem:[#allocation115_spill] sm:$0xff] }
 0xe89   : > { %7342 = vmatpush1.bf16.msra.mxu0 %v14042_v33 }
 0xe8a   : > { %7344 = vmatprep.subr.bf16.mxu0 %v14043_v20 }
 0xe8d   : > { %7346 = vmatpush1.bf16.msra.mxu0 %v14044_v60 }
 0xe8e   : > { %7348 = vmatprep.subr.bf16.mxu0 %v14045_v40 }
 0xe91   : > { %7350 = vmatpush1.bf16.msra.mxu0 %v14046_v28 }
 0xf07   : > { %v4959_v32 = vpop.f32.mrb[192].mxu1 }
 0xf08   : > { %v4961_v53 = vpop.f32.mrb[193].mxu1 }
 0xf0b   : > { %v4965_v5 = vpop.f32.mrb[194].mxu1 }
 0xf0c   : > { %v4967_v52 = vpop.f32.mrb[195].mxu1 }
 0xf0f   : > { %v4971_v29 = vpop.f32.mrb[196].mxu1 }
 0xf10   : > { %v4973_v44 = vpop.f32.mrb[197].mxu1 }
 0xf13   : > { %v4977_v36 = vpop.f32.mrb[198].mxu1 }
 0xf14   : > { %v4979_v58 = vpop.f32.mrb[199].mxu1 }
 0xf17   : > { %v4983_v24 = vpop.f32.mrb[200].mxu1 }
 0xf18   : > { %v4985_v4 = vpop.f32.mrb[201].mxu1 }
 0xf1b   : > { %v11981_v10 = vpop.f32.mrb[202].mxu1 }
 0xf1c   : > { %v11983_v56 = vpop.f32.mrb[203].mxu1 }
 0xf1f   : > { %v11985_v14 = vpop.f32.mrb[204].mxu1 }
 0xf20   : > { %v11987_v34 = vpop.f32.mrb[205].mxu1 }
 0xf23   : > { %v11989_v0 = vpop.f32.mrb[206].mxu1 }
 0xf24   : > { %v11991_v25 = vpop.f32.mrb[207].mxu1 }
 0xf27   : > { %v5072_v45 = vpop.f32.mrb[144].mxu0 }
 0xf28   : > { %v5119_v9 = vsub.f32 %v4959_v32, %v5072_v45  ;;  %v5074_v62 = vpop.f32.mrb[145].mxu0  ;;  %v14048_v32 = vld [vmem:[#allocation117_spill] sm:$0xff] }
 0xf29   : > { %v5120_v6 = vsub.f32 %v4961_v53, %v5074_v62 }
 0xf2a   : > { %v5135_v13 = vadd.f32 %v5119_v9, %v11720_v59 }
 0xf2b   : > { %v5136_v1 = vadd.f32 %v5120_v6, %v11714_v2  ;;  %v5078_v35 = vpop.f32.mrb[146].mxu0  ;;  %v14051_v2 = vld [vmem:[#allocation116_spill] sm:$0xff] }
 0xf2c   : > { %v5151_v33 = vmul.f32 %v5135_v13, %v14047_v50  ;;  %v5121_v20 = vsub.f32 %v4965_v5, %v5078_v35  ;;  %v5080_v60 = vpop.f32.mrb[147].mxu0  ;;  %v14052_v13 = vld [vmem:[#allocation118_spill] sm:$0xff]  ;;  %v14054_v35 = vld [vmem:[#allocation119_spill] sm:$0xff] }
 0xf2d   : > { %v5152_v40 = vmul.f32 %v5136_v1, %v14047_v50  ;;  %v5122_v28 = vsub.f32 %v4967_v52, %v5080_v60 }
 0xf2e   : > { %v5137_v23 = vadd.f32 %v5121_v20, %v11710_v22  ;;  %v12003_v59 = vadd.f32 %v5151_v33, %v14048_v32  ;;  %v14056_v20 = vld [vmem:[#allocation120_spill] sm:$0xff] }
 0xf2f   : > { %v5138_v31 = vadd.f32 %v5122_v28, %v11717_v18  ;;  %v5084_v37 = vpop.f32.mrb[148].mxu0  ;;  %v12000_v45 = vadd.f32 %v5152_v40, %v14048_v32 }
 0xf30   : > { %14050 = vst [vmem:[#allocation184_spill] sm:$0xff] %v12003_v59  ;;  %v5153_v53 = vmul.f32 %v5137_v23, %v14051_v2  ;;  %v5123_v9 = vsub.f32 %v4971_v29, %v5084_v37  ;;  %v5086_v62 = vpop.f32.mrb[149].mxu0 }
 0xf31   : > { %14049 = vst [vmem:[#allocation28_spill] sm:$0xff] %v12000_v45  ;;  %v5154_v5 = vmul.f32 %v5138_v31, %v14051_v2  ;;  %v5124_v6 = vsub.f32 %v4973_v44, %v5086_v62  ;;  %5247 = vmatprep.mubr.f32.mxu1 %v12000_v45  ;;  %v14060_v62 = vld [vmem:[#allocation124_spill] sm:$0xff] }
 0xf32   : > { %v5139_v22 = vadd.f32 %v5123_v9, %v11745_v11  ;;  %5248 = vmatmul.mubr.f32.vlgmr.msra.gmra.mrb[208].mxu1 %v12003_v59  ;;  %v12016_v29 = vadd.f32 %v5153_v53, %v14052_v13 }
 0xf33   : > { %v5140_v18 = vadd.f32 %v5124_v6, %v11739_v39  ;;  %v5090_v52 = vpop.f32.mrb[150].mxu0  ;;  %v12012_v1 = vadd.f32 %v5154_v5, %v14052_v13 }
 0xf34   : > { %v5155_v50 = vmul.f32 %v5139_v22, %v14054_v35  ;;  %v5125_v23 = vsub.f32 %v4977_v36, %v5090_v52  ;;  %v5092_v37 = vpop.f32.mrb[151].mxu0  ;;  %14055 = vst [vmem:[#allocation34_spill] sm:$0xff] %v12016_v29  ;;  %v14058_v36 = vld [vmem:[#allocation121_spill] sm:$0xff] }
 0xf35   : > { %14053 = vst [vmem:[#allocation33_spill] sm:$0xff] %v12012_v1  ;;  %v5156_v31 = vmul.f32 %v5140_v18, %v14054_v35  ;;  %v5126_v44 = vsub.f32 %v4979_v58, %v5092_v37  ;;  %5253 = vmatprep.mubr.f32.mxu1 %v12012_v1 }
 0xf36   : > { %v5141_v11 = vadd.f32 %v5125_v23, %v11736_v17  ;;  %5254 = vmatmul.mubr.f32.gmra.mrb[210].mxu1 %v12016_v29  ;;  %v12028_v2 = vadd.f32 %v5155_v50, %v14056_v20  ;;  %v14064_v50 = vld [vmem:[#allocation129_spill] sm:$0xff] }
 0xf37   : > { %v5142_v39 = vadd.f32 %v5126_v44, %v11742_v41  ;;  %v5096_v33 = vpop.f32.mrb[152].mxu0  ;;  %v12024_v60 = vadd.f32 %v5156_v31, %v14056_v20  ;;  %v14068_v20 = vld [vmem:[#allocation134_spill] sm:$0xff] }
 0xf38   : > { %v5157_v40 = vmul.f32 %v5141_v11, %v14058_v36  ;;  %v5127_v28 = vsub.f32 %v4983_v24, %v5096_v33  ;;  %v5098_v32 = vpop.f32.mrb[153].mxu0  ;;  %14059 = vst [vmem:[#allocation35_spill] sm:$0xff] %v12028_v2  ;;  %v14062_v24 = vld [vmem:[#allocation127_spill] sm:$0xff] }
 0xf39   : > { %14057 = vst [vmem:[#allocation30_spill] sm:$0xff] %v12024_v60  ;;  %v5158_v58 = vmul.f32 %v5142_v39, %v14058_v36  ;;  %v5128_v53 = vsub.f32 %v4985_v4, %v5098_v32  ;;  %5259 = vmatprep.mubr.f32.mxu1 %v12024_v60 }
 0xf3a   : > { %v5143_v17 = vadd.f32 %v5127_v28, %v11776_v26  ;;  %5260 = vmatmul.mubr.f32.gmra.mrb[212].mxu1 %v12028_v2  ;;  %v12041_v52 = vadd.f32 %v5157_v40, %v14060_v62 }
 0xf3b   : > { %v5144_v41 = vadd.f32 %v5128_v53, %v11770_v47  ;;  %v5102_v9 = vpop.f32.mrb[154].mxu0  ;;  %v12036_v5 = vadd.f32 %v5158_v58, %v14060_v62 }
 0xf3c   : > { %v5159_v6 = vmul.f32 %v5143_v17, %v14062_v24  ;;  %v5129_v22 = vsub.f32 %v11981_v10, %v5102_v9  ;;  %v5104_v18 = vpop.f32.mrb[155].mxu0  ;;  %14063 = vst [vmem:[#allocation135_spill] sm:$0xff] %v12041_v52  ;;  %v14066_v10 = vld [vmem:[#allocation131_spill] sm:$0xff] }
 0xf3d   : > { %14061 = vst [vmem:[#allocation36_spill] sm:$0xff] %v12036_v5  ;;  %v5160_v4 = vmul.f32 %v5144_v41, %v14062_v24  ;;  %v5130_v26 = vsub.f32 %v11983_v56, %v5104_v18  ;;  %5265 = vmatprep.mubr.f32.mxu1 %v12036_v5  ;;  %v14072_v17 = vld [vmem:[#allocation139_spill] sm:$0xff] }
 0xf3e   : > { %v5145_v47 = vadd.f32 %v5129_v22, %v11766_v43  ;;  %5266 = vmatmul.mubr.f32.gmra.mrb[214].mxu1 %v12041_v52  ;;  %v12055_v11 = vadd.f32 %v5159_v6, %v14064_v50  ;;  %v14079_v22 = vld [vmem:[#allocation173_spill] sm:$0xff] }
 0xf3f   : > { %v5146_v13 = vadd.f32 %v5130_v26, %v11773_v61  ;;  %v5108_v35 = vpop.f32.mrb[156].mxu0  ;;  %v12050_v23 = vadd.f32 %v5160_v4, %v14064_v50  ;;  %v14080_v26 = vld [vmem:[#allocation174_spill] sm:$0xff] }
 0xf40   : > { %v5161_v37 = vmul.f32 %v5145_v47, %v14066_v10  ;;  %v5131_v31 = vsub.f32 %v11985_v14, %v5108_v35  ;;  %v5110_v44 = vpop.f32.mrb[157].mxu0  ;;  %14067 = vst [vmem:[#allocation130_spill] sm:$0xff] %v12055_v11  ;;  %v14070_v14 = vld [vmem:[#allocation137_spill] sm:$0xff] }
 0xf41   : > { %14065 = vst [vmem:[#allocation22_spill] sm:$0xff] %v12050_v23  ;;  %v5162_v56 = vmul.f32 %v5146_v13, %v14066_v10  ;;  %v5132_v43 = vsub.f32 %v11987_v34, %v5110_v44  ;;  %5271 = vmatprep.mubr.f32.mxu1 %v12050_v23 }
 0xf42   : > { %v5147_v61 = vadd.f32 %v5131_v31, %v11801_v12  ;;  %5272 = vmatmul.mubr.f32.gmra.mrb[216].mxu1 %v12055_v11  ;;  %v12069_v58 = vadd.f32 %v5161_v37, %v14068_v20 }
 0xf43   : > { %v5148_v39 = vadd.f32 %v5132_v43, %v11795_v8  ;;  %v5114_v33 = vpop.f32.mrb[158].mxu0  ;;  %v12064_v36 = vadd.f32 %v5162_v56, %v14068_v20 }
 0xf44   : > { %v5163_v40 = vmul.f32 %v5147_v61, %v14070_v14  ;;  %v5133_v28 = vsub.f32 %v11989_v0, %v5114_v33  ;;  %v5116_v32 = vpop.f32.mrb[159].mxu0  ;;  %14071 = vst [vmem:[#allocation38_spill] sm:$0xff] %v12069_v58  ;;  %v14074_v0 = vld [vmem:[#allocation141_spill] sm:$0xff] }
 0xf45   : > { %14069 = vst [vmem:[#allocation37_spill] sm:$0xff] %v12064_v36  ;;  %v5164_v34 = vmul.f32 %v5148_v39, %v14070_v14  ;;  %v5134_v12 = vsub.f32 %v11991_v25, %v5116_v32  ;;  %5277 = vmatprep.mubr.f32.mxu1 %v12064_v36  ;;  %v14076_v25 = vld [vmem:[#allocation144_spill] sm:$0xff] }
 0xf46   : > { %v5149_v8 = vadd.f32 %v5133_v28, %v11792_v42  ;;  %5278 = vmatmul.mubr.f32.gmra.mrb[218].mxu1 %v12069_v58  ;;  %v12082_v62 = vadd.f32 %v5163_v40, %v14072_v17 }
 0xf47   : > { %v5150_v53 = vadd.f32 %v5134_v12, %v11798_v15  ;;  %v12078_v41 = vadd.f32 %v5164_v34, %v14072_v17 }
 0xf48   : > { %v5165_v9 = vmul.f32 %v5149_v8, %v14074_v0  ;;  %14075 = vst [vmem:[#allocation140_spill] sm:$0xff] %v12082_v62 }
 0xf49   : > { %14073 = vst [vmem:[#allocation196_spill] sm:$0xff] %v12078_v41  ;;  %v5166_v24 = vmul.f32 %v5150_v53, %v14074_v0  ;;  %5283 = vmatprep.mubr.f32.mxu1 %v12078_v41 }
 0xf4a   : > { %5284 = vmatmul.mubr.f32.gmra.mrb[220].mxu1 %v12082_v62  ;;  %v12091_v6 = vadd.f32 %v5165_v9, %v14076_v25 }
 0xf4b   : > { %v12088_v42 = vadd.f32 %v5166_v24, %v14076_v25 }
 0xf4c   : > { %14078 = vst [vmem:[#allocation177_spill] sm:$0xff] %v12091_v6 }
 0xf4d   : > { %14077 = vst [vmem:[#allocation132_spill] sm:$0xff] %v12088_v42  ;;  %5289 = vmatprep.mubr.f32.mxu1 %v12088_v42 }
 0xf4e   : > { %5290 = vmatmul.mubr.f32.gmra.mrb[222].mxu1 %v12091_v6 }
0x1005   : > { %v5249_v15 = vpop.f32.mrb[208].mxu1 }
0x1006   : > { %v5250_v18 = vadd.f32 %v5249_v15, %v14079_v22  ;;  %v5251_v4 = vpop.f32.mrb[209].mxu1 }
0x1007   : > { %v5252_v47 = vadd.f32 %v5251_v4, %v14080_v26 }
0x1008   : > { %v5312_v13 = vmul.f32 0.70710677, %v5250_v18  ;;  %v12099_v12 = vmul.f32 0.5, %v5250_v18 }
0x1009   : > { %v5313_v35 = vmul.f32 0.70710677, %v5252_v47  ;;  %v5255_v50 = vpop.f32.mrb[210].mxu1  ;;  %v12105_v15 = vmul.f32 0.5, %v5252_v47 }
0x100a   : > { %v5360_v10 = vand.u32 2147483647, %v5312_v13  ;;  %v5256_v37 = vadd.f32 %v5255_v50, %v14079_v22  ;;  %v5257_v31 = vpop.f32.mrb[211].mxu1  ;;  %vm5328_vm0 = vcmp.ge.f32.partialorder %v5312_v13, 0.0 }
0x100b   : > { %v5258_v44 = vadd.f32 %v5257_v31, %v14080_v26  ;;  %v5361_v43 = vand.u32 2147483647, %v5313_v35  ;;  %v12103_v25 = vsel %vm5328_vm0, 1.0, %v13881_v27  ;;  %vm5329_vm4 = vcmp.ge.f32.partialorder %v5313_v35, 0.0 }
0x100c   : > { %v5376_v56 = vmul.f32 0.3275911, %v5360_v10  ;;  %v5314_v61 = vmul.f32 0.70710677, %v5256_v37  ;;  %v5584_v33 = vsub.f32 0.0, %v5360_v10  ;;  %v12116_v6 = vmul.f32 0.5, %v5256_v37 }
0x100d   : > { %v5315_v20 = vmul.f32 0.70710677, %v5258_v44  ;;  %v5261_v14 = vpop.f32.mrb[212].mxu1  ;;  %v5377_v32 = vmul.f32 0.3275911, %v5361_v43  ;;  %v5585_v34 = vsub.f32 0.0, %v5361_v43 }
0x100e   : > { %v5392_v39 = vadd.f32 1.0, %v5376_v56  ;;  %v5362_v40 = vand.u32 2147483647, %v5314_v61  ;;  %v5263_v28 = vpop.f32.mrb[213].mxu1  ;;  %v5600_v53 = vmul.f32 %v5584_v33, %v5360_v10  ;;  %v5262_v9 = vadd.f32 %v5261_v14, %v14079_v22 }
0x100f   : > { %v5363_v0 = vand.u32 2147483647, %v5315_v20  ;;  %v5264_v4 = vadd.f32 %v5263_v28, %v14080_v26  ;;  %v5393_v13 = vadd.f32 1.0, %v5377_v32  ;;  %v5601_v50 = vmul.f32 %v5585_v34, %v5361_v43 }
0x1010   : > { %7619 = vrcp.f32 %v5392_v39  ;;  %v5586_v17 = vsub.f32 0.0, %v5362_v40  ;;  %vm5330_vm5 = vcmp.ge.f32.partialorder %v5314_v61, 0.0  ;;  %v12108_v18 = vmul.f32 0.70710677, %v5262_v9 }
0x1011   : > { %v5267_v8 = vpop.f32.mrb[214].mxu1  ;;  %v5378_v31 = vmul.f32 0.3275911, %v5362_v40  ;;  %v5587_v10 = vsub.f32 0.0, %v5363_v0  ;;  %v12110_v56 = vmul.f32 0.70710677, %v5264_v4  ;;  %7621 = vrcp.f32 %v5393_v13 }
0x1012   : > { %v5269_v24 = vpop.f32.mrb[215].mxu1  ;;  %v5616_v33 = vmul.f32 1.442695, %v5600_v53  ;;  %v12113_v14 = vsel %vm5329_vm4, 1.0, %v13881_v27  ;;  %v5602_v42 = vmul.f32 %v5586_v17, %v5362_v40  ;;  %v5364_v47 = vand.u32 2147483647, %v12108_v18 }
0x1013   : > { %v12119_v43 = vsel %vm5330_vm5, 1.0, %v13881_v27  ;;  %v12121_v61 = vmul.f32 0.5, %v5258_v44  ;;  %v5365_v28 = vand.u32 2147483647, %v12110_v56  ;;  %v5618_v32 = vmul.f32 1.442695, %v5601_v50 }
0x1014   : > { %vm5331_vm6 = vcmp.ge.f32.partialorder %v5315_v20, 0.0  ;;  %v5379_v34 = vmul.f32 0.3275911, %v5363_v0  ;;  %v5588_v53 = vsub.f32 0.0, %v5364_v47  ;;  %v5394_v63 = vadd.f32 1.0, %v5378_v31 }
0x1015   : > { %v5273_v39 = vpop.f32.mrb[216].mxu1  ;;  %v5603_v41 = vmul.f32 %v5587_v10, %v5363_v0  ;;  %v5268_v40 = vadd.f32 %v5267_v8, %v14079_v22  ;;  %7623 = vpow2.f32 %v5616_v33  ;;  %v5620_v37 = vmul.f32 1.442695, %v5602_v42 }
0x1016   : > { %v5275_v35 = vpop.f32.mrb[217].mxu1  ;;  %v5380_v21 = vmul.f32 0.3275911, %v5364_v47  ;;  %v5270_v44 = vadd.f32 %v5269_v24, %v14080_v26  ;;  %v12132_v20 = vsel %vm5331_vm6, 1.0, %v13881_v27  ;;  %v5381_v13 = vmul.f32 0.3275911, %v5365_v28 }
0x1017   : > { %v5589_v31 = vsub.f32 0.0, %v5365_v28  ;;  %7625 = vpow2.f32 %v5618_v32  ;;  %v5395_v0 = vadd.f32 1.0, %v5379_v34  ;;  %v5604_v8 = vmul.f32 %v5588_v53, %v5364_v47 }
0x1018   : > { %v5318_v10 = vmul.f32 0.70710677, %v5268_v40  ;;  %7627 = vrcp.f32 %v5394_v63  ;;  %v5622_v33 = vmul.f32 1.442695, %v5603_v41  ;;  %v12134_v42 = vmul.f32 0.5, %v5262_v9 }
0x1019   : > { %v5279_v17 = vpop.f32.mrb[218].mxu1  ;;  %v5396_v58 = vadd.f32 1.0, %v5380_v21  ;;  %v5319_v19 = vmul.f32 0.70710677, %v5270_v44  ;;  %v5274_v55 = vadd.f32 %v5273_v39, %v14079_v22  ;;  %7629 = vpow2.f32 %v5620_v37 }
0x101a   : > { %v12125_v62 = vpop.eup %7619  ;;  %v12128_v16 = vpop.f32.mrb[219].mxu1  ;;  %v5366_v24 = vand.u32 2147483647, %v5318_v10  ;;  %v5397_v48 = vadd.f32 1.0, %v5381_v13  ;;  %v5605_v32 = vmul.f32 %v5589_v31, %v5365_v28  ;;  %7631 = vrcp.f32 %v5395_v0 }
0x101b   : > { %v5440_v50 = vmul.f32 1.0614054, %v12125_v62  ;;  %vm5332_vm7 = vcmp.ge.f32.partialorder %v12108_v18, 0.0  ;;  %v5624_v63 = vmul.f32 1.442695, %v5604_v8  ;;  %v12143_v41 = vmul.f32 0.5, %v5264_v4  ;;  %v12153_v37 = vpop.eup %7621 }
0x101c   : > { %7633 = vpow2.f32 %v5622_v33  ;;  %vm5333_vm8 = vcmp.ge.f32.partialorder %v12110_v56, 0.0  ;;  %v12146_v9 = vmul.f32 0.70710677, %v5274_v55  ;;  %v5367_v47 = vand.u32 2147483647, %v5319_v19 }
0x101d   : > { %v5456_v36 = vadd.f32 -1.4531521, %v5440_v50  ;;  %v12137_v23 = vpop.f32.mrb[220].mxu1  ;;  %7635 = vrcp.f32 %v5396_v58  ;;  %v5276_v28 = vadd.f32 %v5275_v35, %v14080_v26  ;;  %v5626_v18 = vmul.f32 1.442695, %v5605_v32 }
0x101e   : > { %v12140_v34 = vpop.f32.mrb[221].mxu1  ;;  %7637 = vrcp.f32 %v5397_v48  ;;  %v12160_v50 = vsel %vm5333_vm8, 1.0, %v13881_v27  ;;  %v12162_v58 = vmul.f32 0.5, %v5268_v40  ;;  %v5368_v35 = vand.u32 2147483647, %v12146_v9 }
0x101f   : > { %v5472_v11 = vmul.f32 %v12125_v62, %v5456_v36  ;;  %v5590_v36 = vsub.f32 0.0, %v5366_v24  ;;  %v7624_v56 = vpop.eup %7623  ;;  %7639 = vpow2.f32 %v5624_v63  ;;  %vm5334_vm9 = vcmp.ge.f32.partialorder %v5318_v10, 0.0 }
0x1020   : > { %v5382_v31 = vmul.f32 0.3275911, %v5366_v24  ;;  %vm5335_vm10 = vcmp.ge.f32.partialorder %v5319_v19, 0.0  ;;  %v5591_v33 = vsub.f32 0.0, %v5367_v47  ;;  %v5280_v48 = vadd.f32 %v5279_v17, %v14079_v22 }
0x1021   : > { %v5488_v21 = vadd.f32 1.4214138, %v5472_v11  ;;  %v12148_v39 = vpop.f32.mrb[222].mxu1  ;;  %v12157_v11 = vsel %vm5332_vm7, 1.0, %v13881_v27  ;;  %v12165_v0 = vpop.eup %7625  ;;  %v5606_v8 = vmul.f32 %v5590_v36, %v5366_v24  ;;  %7641 = vpow2.f32 %v5626_v18 }
0x1022   : > { %v12151_v53 = vpop.f32.mrb[223].mxu1  ;;  %v12168_v32 = vpop.eup %7627  ;;  %v12171_v40 = vmul.f32 0.5, %v5270_v44  ;;  %v5383_v51 = vmul.f32 0.3275911, %v5367_v47  ;;  %v12177_v19 = vsel %vm5335_vm10, 1.0, %v13881_v27  ;;  %v5592_v10 = vsub.f32 0.0, %v5368_v35 }
0x1023   : > { %v5504_v4 = vmul.f32 %v12125_v62, %v5488_v21  ;;  %v5321_v21 = vmul.f32 0.70710677, %v5276_v28  ;;  %v12179_v36 = vpop.eup %7629  ;;  %v5398_v17 = vadd.f32 1.0, %v5382_v31  ;;  %v12181_v52 = vmul.f32 0.5, %v5274_v55 }
0x1024   : > { %vm5336_vm11 = vcmp.ge.f32.partialorder %v12146_v9, 0.0  ;;  %v12184_v18 = vpop.eup %7631  ;;  %v5628_v44 = vmul.f32 1.442695, %v5606_v8  ;;  %v12186_v38 = vmul.f32 0.70710677, %v5280_v48  ;;  %v12190_v3 = vadd.f32 %v12128_v16, %v14080_v26 }
0x1025   : > { %v5520_v13 = vadd.f32 -0.28449672, %v5504_v4  ;;  %v12174_v4 = vsel %vm5334_vm9, 1.0, %v13881_v27  ;;  %v5369_v24 = vand.u32 2147483647, %v5321_v21  ;;  %14081 = vst [vmem:[#allocation39_spill] sm:$0xff] %v12181_v52  ;;  %v5608_v49 = vmul.f32 %v5592_v10, %v5368_v35 }
0x1026   : > { %v12192_v60 = vpop.eup %7633  ;;  %v5384_v31 = vmul.f32 0.3275911, %v5368_v35  ;;  %v12197_v54 = vmul.f32 0.5, %v5276_v28  ;;  %7643 = vrcp.f32 %v5398_v17  ;;  %v12203_v16 = vmul.f32 0.70710677, %v12190_v3 }
0x1027   : > { %v5536_v63 = vmul.f32 %v12125_v62, %v5520_v13  ;;  %v5607_v13 = vmul.f32 %v5591_v33, %v5367_v47  ;;  %v5593_v55 = vsub.f32 0.0, %v5369_v24  ;;  %v12195_v7 = vpop.eup %7635  ;;  %v5385_v8 = vmul.f32 0.3275911, %v5369_v24 }
0x1028   : > { %v5370_v47 = vand.u32 2147483647, %v12186_v38  ;;  %v12200_v33 = vpop.eup %7637  ;;  %7645 = vpow2.f32 %v5628_v44  ;;  %v12213_v35 = vadd.f32 %v12140_v34, %v14080_v26  ;;  %v5400_v10 = vadd.f32 1.0, %v5384_v31 }
0x1029   : > { %v5552_v5 = vadd.f32 0.2548296, %v5536_v63  ;;  %v5399_v63 = vadd.f32 1.0, %v5383_v51  ;;  %v12207_v51 = vadd.f32 %v12137_v23, %v14079_v22  ;;  %v5632_v17 = vmul.f32 1.442695, %v5608_v49 }
0x102a   : > { %v5594_v28 = vsub.f32 0.0, %v5370_v47  ;;  %14083 = vst [vmem:[#allocation126_spill] sm:$0xff] %v12213_v35  ;;  %vm5337_vm12 = vcmp.ge.f32.partialorder %v5321_v21, 0.0  ;;  %v5401_v29 = vadd.f32 1.0, %v5385_v8  ;;  %v5386_v30 = vmul.f32 0.3275911, %v5370_v47 }
0x102b   : > { %v5568_v2 = vmul.f32 %v12125_v62, %v5552_v5  ;;  %14082 = vst [vmem:[#allocation40_spill] sm:$0xff] %v12207_v51  ;;  %v12209_v5 = vpop.eup %7639  ;;  %v5630_v62 = vmul.f32 1.442695, %v5607_v13  ;;  %7647 = vrcp.f32 %v5399_v63  ;;  %v12219_v13 = vmul.f32 0.70710677, %v12207_v51 }
0x102c   : > { %v12216_v23 = vpop.eup %7641  ;;  %v5610_v59 = vmul.f32 %v5594_v28, %v5370_v47  ;;  %v12224_v34 = vsel %vm5336_vm11, 1.0, %v13881_v27  ;;  %v12229_v49 = vmul.f32 0.70710677, %v12213_v35  ;;  %v12232_v21 = vsel %vm5337_vm12, 1.0, %v13881_v27 }
0x102d   : > { %v5648_v1 = vmul.f32 %v7624_v56, %v5568_v2  ;;  %v5609_v2 = vmul.f32 %v5593_v55, %v5369_v24  ;;  %v5371_v56 = vand.u32 2147483647, %v12203_v16  ;;  %14084 = vst [vmem:[#allocation133_spill] sm:$0xff] %v12219_v13  ;;  %7649 = vpow2.f32 %v5630_v62  ;;  %14085 = vst [vmem:[#allocation125_spill] sm:$0xff] %v12224_v34 }
0x102e   : > { %v12226_v24 = vmul.f32 0.5, %v5280_v48  ;;  %7651 = vrcp.f32 %v5400_v10  ;;  %v5402_v31 = vadd.f32 1.0, %v5386_v30  ;;  %v5372_v8 = vand.u32 2147483647, %v12219_v13 }
0x102f   : > { %v5664_v45 = vsub.f32 1.0, %v5648_v1  ;;  %v5595_v44 = vsub.f32 0.0, %v5371_v56  ;;  %v5634_v1 = vmul.f32 1.442695, %v5609_v2  ;;  %v5387_v63 = vmul.f32 0.3275911, %v5371_v56 }
0x1030   : > { %14086 = vst [vmem:[#allocation136_spill] sm:$0xff] %v12226_v24  ;;  %7653 = vpow2.f32 %v5632_v17  ;;  %vm5338_vm13 = vcmp.ge.f32.partialorder %v12186_v38, 0.0  ;;  %v5636_v48 = vmul.f32 1.442695, %v5610_v59  ;;  %v5388_v47 = vmul.f32 0.3275911, %v5372_v8  ;;  %v12242_v2 = vpop.eup %7643 }
0x1031   : > { %v5611_v55 = vmul.f32 %v5595_v44, %v5371_v56  ;;  %v5680_v9 = vmul.f32 %v5664_v45, %v12103_v25  ;;  %7655 = vrcp.f32 %v5401_v29  ;;  %v5596_v62 = vsub.f32 0.0, %v5372_v8 }
0x1032   : > { %v5373_v28 = vand.u32 2147483647, %v12229_v49  ;;  %v12240_v10 = vadd.f32 %v12148_v39, %v14079_v22  ;;  %7657 = vpow2.f32 %v5634_v1  ;;  %vm5339_vm14 = vcmp.ge.f32.partialorder %v12203_v16, 0.0  ;;  %v12249_v29 = vpop.eup %7645 }
0x1033   : > { %v5403_v30 = vadd.f32 1.0, %v5387_v63  ;;  %v12247_v45 = vadd.f32 %v12151_v53, %v14080_v26  ;;  %7659 = vrcp.f32 %v5402_v31  ;;  %v5638_v59 = vmul.f32 1.442695, %v5611_v55 }
0x1034   : > { %14087 = vst [vmem:[#allocation123_spill] sm:$0xff] %v12240_v10  ;;  %v5612_v25 = vmul.f32 %v5596_v62, %v5372_v8  ;;  %v5389_v56 = vmul.f32 0.3275911, %v5373_v28  ;;  %v5696_v22 = vadd.f32 1.0, %v5680_v9  ;;  %v5597_v39 = vsub.f32 0.0, %v5373_v28 }
0x1035   : > { %14088 = vst [vmem:[#allocation201_spill] sm:$0xff] %v12247_v45  ;;  %v12251_v17 = vpop.eup %7647  ;;  %v12254_v44 = vmul.f32 0.70710677, %v12240_v10  ;;  %v12257_v1 = vmul.f32 0.70710677, %v12247_v45  ;;  %7661 = vpow2.f32 %v5636_v48  ;;  %v5404_v63 = vadd.f32 1.0, %v5388_v47 }
0x1036   : > { %v5441_v26 = vmul.f32 1.0614054, %v12153_v37  ;;  %v5443_v53 = vmul.f32 1.0614054, %v12184_v18  ;;  %7663 = vrcp.f32 %v5403_v30  ;;  %v5640_v31 = vmul.f32 1.442695, %v5612_v25 }
0x1037   : > { %14089 = vst [vmem:[#allocation41_spill] sm:$0xff] %v12254_v44  ;;  %14090 = vst [vmem:[#allocation42_spill] sm:$0xff] %v12257_v1  ;;  %v5374_v55 = vand.u32 2147483647, %v12254_v44  ;;  %v5375_v8 = vand.u32 2147483647, %v12257_v1  ;;  %v12263_v9 = vpop.eup %7649  ;;  %7665 = vpow2.f32 %v5638_v59  ;;  %v5613_v57 = vmul.f32 %v5597_v39, %v5373_v28 }
0x1038   : > { %v12268_v62 = vsel %vm5338_vm13, 1.0, %v13881_v27  ;;  %v12271_v48 = vmul.f32 0.5, %v12190_v3  ;;  %v12276_v47 = vsel %vm5339_vm14, 1.0, %v13881_v27  ;;  %v12278_v30 = vpop.eup %7651  ;;  %v5405_v25 = vadd.f32 1.0, %v5389_v56 }
0x1039   : > { %14091 = vst [vmem:[#allocation197_spill] sm:$0xff] %v12268_v62  ;;  %14093 = vst [vmem:[#allocation185_spill] sm:$0xff] %v12276_v47  ;;  %v5390_v46 = vmul.f32 0.3275911, %v5374_v55  ;;  %v5598_v10 = vsub.f32 0.0, %v5374_v55  ;;  %7667 = vrcp.f32 %v5404_v63  ;;  %v5599_v16 = vsub.f32 0.0, %v5375_v8 }
0x103a   : > { %14092 = vst [vmem:[#allocation128_spill] sm:$0xff] %v12271_v48  ;;  %v12280_v45 = vpop.eup %7653  ;;  %v5391_v38 = vmul.f32 0.3275911, %v5375_v8  ;;  %v5457_v51 = vadd.f32 -1.4531521, %v5441_v26  ;;  %v12285_v48 = vmul.f32 %v5696_v22, %v12099_v12  ;;  %7669 = vpow2.f32 %v5640_v31 }
0x103b   : > { %14094 = vst [vmem:[#allocation43_spill] sm:$0xff] %v12280_v45  ;;  %v5459_v24 = vadd.f32 -1.4531521, %v5443_v53  ;;  %v12282_v3 = vpop.eup %7655  ;;  %v5442_v59 = vmul.f32 1.0614054, %v12168_v32  ;;  %v5614_v35 = vmul.f32 %v5598_v10, %v5374_v55  ;;  %7671 = vrcp.f32 %v5405_v25 }
0x103c   : > { %v5473_v28 = vmul.f32 %v12153_v37, %v5457_v51  ;;  %v5445_v39 = vmul.f32 1.0614054, %v12200_v33  ;;  %v12291_v63 = vpop.eup %7657  ;;  %v12293_v26 = vmul.f32 1.442695, %v5613_v57  ;;  %v5444_v12 = vmul.f32 1.0614054, %v12195_v7 }
0x103d   : > { %v5475_v56 = vmul.f32 %v12184_v18, %v5459_v24  ;;  %v5458_v53 = vadd.f32 -1.4531521, %v5442_v59  ;;  %v12296_v22 = vpop.eup %7659  ;;  %v5406_v31 = vadd.f32 1.0, %v5390_v46  ;;  %v5407_v52 = vadd.f32 1.0, %v5391_v38 }
0x103e   : > { %v5489_v1 = vadd.f32 1.4214138, %v5473_v28  ;;  %v12298_v55 = vmul.f32 %v5599_v16, %v5375_v8  ;;  %v5461_v24 = vadd.f32 -1.4531521, %v5445_v39  ;;  %v5460_v62 = vadd.f32 -1.4531521, %v5444_v12 }
0x103f   : > { %v5491_v10 = vadd.f32 1.4214138, %v5475_v56  ;;  %v5474_v51 = vmul.f32 %v12168_v32, %v5458_v53  ;;  %v12301_v47 = vpop.eup %7661  ;;  %v12303_v25 = vmul.f32 1.442695, %v5614_v35  ;;  %v5447_v44 = vmul.f32 1.0614054, %v12251_v17 }
0x1040   : > { %14095 = vst [vmem:[#allocation44_spill] sm:$0xff] %v12301_v47  ;;  %v5505_v57 = vmul.f32 %v12153_v37, %v5489_v1  ;;  %v12308_v46 = vpop.eup %7663  ;;  %v5477_v8 = vmul.f32 %v12200_v33, %v5461_v24  ;;  %v5476_v16 = vmul.f32 %v12195_v7, %v5460_v62  ;;  %v5446_v28 = vmul.f32 1.0614054, %v12242_v2 }
0x1041   : > { %v5507_v59 = vmul.f32 %v12184_v18, %v5491_v10  ;;  %v5490_v38 = vadd.f32 1.4214138, %v5474_v51  ;;  %v12313_v56 = vpop.eup %7665  ;;  %7673 = vrcp.f32 %v5406_v31  ;;  %v5463_v53 = vadd.f32 -1.4531521, %v5447_v44 }
0x1042   : > { %14096 = vst [vmem:[#allocation143_spill] sm:$0xff] %v12313_v56  ;;  %v5521_v35 = vadd.f32 -0.28449672, %v5505_v57  ;;  %v5493_v12 = vadd.f32 1.4214138, %v5477_v8  ;;  %7675 = vrcp.f32 %v5407_v52  ;;  %vm5341_vm15 = vcmp.ge.f32.partialorder %v12229_v49, 0.0 }
0x1043   : > { %v5523_v39 = vadd.f32 -0.28449672, %v5507_v59  ;;  %v5506_v1 = vmul.f32 %v12168_v32, %v5490_v38  ;;  %v5492_v10 = vadd.f32 1.4214138, %v5476_v16  ;;  %v5462_v34 = vadd.f32 -1.4531521, %v5446_v28  ;;  %v12316_v27 = vpop.eup %7667 }
0x1044   : > { %v5537_v51 = vmul.f32 %v12153_v37, %v5521_v35  ;;  %v5479_v62 = vmul.f32 %v12251_v17, %v5463_v53  ;;  %v5449_v47 = vmul.f32 1.0614054, %v12282_v3  ;;  %v12322_v56 = vpop.eup %7669  ;;  %v5509_v44 = vmul.f32 %v12200_v33, %v5493_v12 }
0x1045   : > { %v5539_v24 = vmul.f32 %v12184_v18, %v5523_v39  ;;  %14097 = vst [vmem:[#allocation122_spill] sm:$0xff] %v12322_v56  ;;  %v5522_v31 = vadd.f32 -0.28449672, %v5506_v1  ;;  %v5508_v57 = vmul.f32 %v12195_v7, %v5492_v10  ;;  %v5478_v59 = vmul.f32 %v12242_v2, %v5462_v34  ;;  %v12327_v28 = vpop.eup %7671 }
0x1046   : > { %v5553_v38 = vadd.f32 0.2548296, %v5537_v51  ;;  %v5495_v16 = vadd.f32 1.4214138, %v5479_v62  ;;  %v5525_v39 = vadd.f32 -0.28449672, %v5509_v44  ;;  %7677 = vpow2.f32 %v12293_v26 }
0x1047   : > { %v5555_v8 = vadd.f32 0.2548296, %v5539_v24  ;;  %v5538_v35 = vmul.f32 %v12168_v32, %v5522_v31  ;;  %v5524_v53 = vadd.f32 -0.28449672, %v5508_v57  ;;  %v5494_v13 = vadd.f32 1.4214138, %v5478_v59 }
0x1048   : > { %v5569_v56 = vmul.f32 %v12153_v37, %v5553_v38  ;;  %v5511_v12 = vmul.f32 %v12251_v17, %v5495_v16  ;;  %v5465_v10 = vadd.f32 -1.4531521, %v5449_v47  ;;  %v5541_v52 = vmul.f32 %v12200_v33, %v5525_v39 }
0x1049   : > { %v5571_v1 = vmul.f32 %v12184_v18, %v5555_v8  ;;  %v5554_v45 = vadd.f32 0.2548296, %v5538_v35  ;;  %v5540_v34 = vmul.f32 %v12195_v7, %v5524_v53  ;;  %v5510_v51 = vmul.f32 %v12242_v2, %v5494_v13 }
0x104a   : > { %v5649_v24 = vmul.f32 %v12165_v0, %v5569_v56  ;;  %v5527_v31 = vadd.f32 -0.28449672, %v5511_v12  ;;  %v5481_v44 = vmul.f32 %v12282_v3, %v5465_v10  ;;  %v5557_v18 = vadd.f32 0.2548296, %v5541_v52 }
0x104b   : > { %v5651_v62 = vmul.f32 %v12192_v60, %v5571_v1  ;;  %v5570_v37 = vmul.f32 %v12168_v32, %v5554_v45  ;;  %v5556_v57 = vadd.f32 0.2548296, %v5540_v34  ;;  %v5526_v59 = vadd.f32 -0.28449672, %v5510_v51  ;;  %v12340_v47 = vpop.eup %7673 }
0x104c   : > { %v5665_v38 = vsub.f32 1.0, %v5649_v24  ;;  %v5543_v16 = vmul.f32 %v12251_v17, %v5527_v31  ;;  %v5497_v35 = vadd.f32 1.4214138, %v5481_v44  ;;  %v5573_v0 = vmul.f32 %v12200_v33, %v5557_v18 }
0x104d   : > { %v5667_v8 = vsub.f32 1.0, %v5651_v62  ;;  %v5650_v13 = vmul.f32 %v12179_v36, %v5570_v37  ;;  %v5572_v60 = vmul.f32 %v12195_v7, %v5556_v57  ;;  %v5542_v56 = vmul.f32 %v12242_v2, %v5526_v59  ;;  %v12352_v36 = vpop.eup %7675 }
0x104e   : > { %v5681_v32 = vmul.f32 %v5665_v38, %v12113_v14  ;;  %v5559_v39 = vadd.f32 0.2548296, %v5543_v16  ;;  %v5513_v53 = vmul.f32 %v12282_v3, %v5497_v35  ;;  %v5653_v12 = vmul.f32 %v12216_v23, %v5573_v0 }
0x104f   : > { %v5683_v45 = vmul.f32 %v5667_v8, %v12132_v20  ;;  %v5666_v1 = vsub.f32 1.0, %v5650_v13  ;;  %v5652_v10 = vmul.f32 %v12209_v5, %v5572_v60  ;;  %v5558_v52 = vadd.f32 0.2548296, %v5542_v56 }
0x1050   : > { %v5697_v33 = vadd.f32 1.0, %v5681_v32  ;;  %v5575_v7 = vmul.f32 %v12251_v17, %v5559_v39  ;;  %v5529_v51 = vadd.f32 -0.28449672, %v5513_v53  ;;  %v5669_v24 = vsub.f32 1.0, %v5653_v12 }
0x1051   : > { %v5699_v34 = vadd.f32 1.0, %v5683_v45  ;;  %v5682_v14 = vmul.f32 %v5666_v1, %v12119_v43  ;;  %v5668_v20 = vsub.f32 1.0, %v5652_v10  ;;  %v5574_v62 = vmul.f32 %v12242_v2, %v5558_v52 }
0x1052   : > { %v5713_v31 = vmul.f32 %v5697_v33, %v12105_v15  ;;  %v5655_v5 = vmul.f32 %v12263_v9, %v5575_v7  ;;  %v5545_v44 = vmul.f32 %v12282_v3, %v5529_v51  ;;  %v5685_v18 = vmul.f32 %v5669_v24, %v12160_v50 }
0x1053   : > { %v5715_v23 = vmul.f32 %v5699_v34, %v12121_v61  ;;  %v5698_v37 = vadd.f32 1.0, %v5682_v14  ;;  %v5684_v17 = vmul.f32 %v5668_v20, %v12157_v11  ;;  %v5654_v57 = vmul.f32 %v12249_v29, %v5574_v62 }
0x1054   : > { %5792 = vmatprep.mubr.f32.mxu0 %v5713_v31  ;;  %v5671_v43 = vsub.f32 1.0, %v5655_v5  ;;  %v5561_v2 = vadd.f32 0.2548296, %v5545_v44  ;;  %v5448_v15 = vmul.f32 1.0614054, %v12278_v30  ;;  %v5701_v9 = vadd.f32 1.0, %v5685_v18 }
0x1055   : > { %v5646_v61 = vmul.f32 1.442695, %v12298_v55  ;;  %5793 = vmatmul.mubr.f32.vlgmr.msra.gmra.mrb[160].mxu0 %v12285_v48  ;;  %v5700_v59 = vadd.f32 1.0, %v5684_v17  ;;  %v5670_v38 = vsub.f32 1.0, %v5654_v57  ;;  %v5451_v26 = vmul.f32 1.0614054, %v12308_v46 }
0x1056   : > { %5798 = vmatprep.mubr.f32.mxu0 %v5715_v23  ;;  %v5687_v50 = vmul.f32 %v5671_v43, %v12177_v19  ;;  %v5577_v11 = vmul.f32 %v12282_v3, %v5561_v2  ;;  %v5464_v29 = vadd.f32 -1.4531521, %v5448_v15  ;;  %v5714_v8 = vmul.f32 %v5698_v37, %v12116_v6 }
0x1057   : > { %v5717_v16 = vmul.f32 %v5701_v9, %v12143_v41  ;;  %v5686_v35 = vmul.f32 %v5670_v38, %v12174_v4  ;;  %v5450_v55 = vmul.f32 1.0614054, %v12296_v22  ;;  %v5467_v60 = vadd.f32 -1.4531521, %v5451_v26 }
0x1058   : > { %v5703_v48 = vadd.f32 1.0, %v5687_v50  ;;  %v5657_v13 = vmul.f32 %v12291_v63, %v5577_v11  ;;  %v5480_v0 = vmul.f32 %v12278_v30, %v5464_v29  ;;  %v5716_v19 = vmul.f32 %v5700_v59, %v12134_v42 }
0x1059   : > { %5799 = vmatmul.mubr.f32.gmra.mrb[162].mxu0 %v5714_v8  ;;  %v5702_v3 = vadd.f32 1.0, %v5686_v35  ;;  %v5466_v56 = vadd.f32 -1.4531521, %v5450_v55  ;;  %v5453_v32 = vmul.f32 1.0614054, %v12327_v28  ;;  %v5483_v45 = vmul.f32 %v12308_v46, %v5467_v60 }
0x105a   : > { %5804 = vmatprep.mubr.f32.mxu0 %v5717_v16  ;;  %v5719_v6 = vmul.f32 %v5703_v48, %v12171_v40  ;;  %v5673_v41 = vsub.f32 1.0, %v5657_v13  ;;  %v5496_v4 = vadd.f32 1.4214138, %v5480_v0  ;;  %v5452_v1 = vmul.f32 1.0614054, %v12316_v27  ;;  %v14098_v48 = vld [vmem:[#allocation43_spill] sm:$0xff] }
0x105b   : > { %v5718_v39 = vmul.f32 %v5702_v3, %v12162_v58  ;;  %v5482_v63 = vmul.f32 %v12296_v22, %v5466_v56  ;;  %v5469_v53 = vadd.f32 -1.4531521, %v5453_v32  ;;  %v5499_v10 = vadd.f32 1.4214138, %v5483_v45  ;;  %v7678_v58 = vpop.eup %7677  ;;  %v14099_v56 = vld [vmem:[#allocation133_spill] sm:$0xff]  ;;  %v14101_v45 = vld [vmem:[#allocation44_spill] sm:$0xff] }
0x105c   : > { %v5689_v42 = vmul.f32 %v5673_v41, %v12232_v21  ;;  %v5512_v12 = vmul.f32 %v12278_v30, %v5496_v4  ;;  %v5455_v52 = vmul.f32 1.0614054, %v12352_v36  ;;  %v5468_v34 = vadd.f32 -1.4531521, %v5452_v1 }
0x105d   : > { %5805 = vmatmul.mubr.f32.gmra.mrb[164].mxu0 %v5716_v19  ;;  %v5498_v40 = vadd.f32 1.4214138, %v5482_v63  ;;  %v5485_v33 = vmul.f32 %v12327_v28, %v5469_v53  ;;  %v5454_v7 = vmul.f32 1.0614054, %v12340_v47  ;;  %v5515_v24 = vmul.f32 %v12308_v46, %v5499_v10 }
0x105e   : > { %5810 = vmatprep.mubr.f32.mxu0 %v5719_v6  ;;  %v5705_v51 = vadd.f32 1.0, %v5689_v42  ;;  %v5528_v14 = vadd.f32 -0.28449672, %v5512_v12  ;;  %v5471_v20 = vadd.f32 -1.4531521, %v5455_v52  ;;  %v5484_v31 = vmul.f32 %v12316_v27, %v5468_v34  ;;  %v14100_v6 = vld [vmem:[#allocation143_spill] sm:$0xff] }
0x105f   : > { %v5514_v21 = vmul.f32 %v12296_v22, %v5498_v40  ;;  %v5501_v62 = vadd.f32 1.4214138, %v5485_v33  ;;  %v5470_v23 = vadd.f32 -1.4531521, %v5454_v7  ;;  %v5531_v37 = vadd.f32 -0.28449672, %v5515_v24 }
0x1060   : > { %v5721_v5 = vmul.f32 %v5705_v51, %v12197_v54  ;;  %v5544_v44 = vmul.f32 %v12278_v30, %v5528_v14  ;;  %v5487_v18 = vmul.f32 %v12352_v36, %v5471_v20  ;;  %v5500_v43 = vadd.f32 1.4214138, %v5484_v31  ;;  %v14103_v42 = vld [vmem:[#allocation125_spill] sm:$0xff] }
0x1061   : > { %5811 = vmatmul.mubr.f32.gmra.mrb[166].mxu0 %v5718_v39  ;;  %v5530_v17 = vadd.f32 -0.28449672, %v5514_v21  ;;  %v5517_v57 = vmul.f32 %v12327_v28, %v5501_v62  ;;  %v5486_v2 = vmul.f32 %v12340_v47, %v5470_v23  ;;  %7679 = vpow2.f32 %v5646_v61  ;;  %v14104_v14 = vld [vmem:[#allocation41_spill] sm:$0xff]  ;;  %v14107_v23 = vld [vmem:[#allocation122_spill] sm:$0xff] }
0x1062   : > { %5816 = vmatprep.mubr.f32.mxu0 %v5721_v5  ;;  %v5560_v15 = vadd.f32 0.2548296, %v5544_v44  ;;  %v5547_v9 = vmul.f32 %v12308_v46, %v5531_v37  ;;  %v5503_v59 = vadd.f32 1.4214138, %v5487_v18  ;;  %v5516_v50 = vmul.f32 %v12316_v27, %v5500_v43  ;;  %v14105_v24 = vld [vmem:[#allocation185_spill] sm:$0xff] }
0x1063   : > { %v5546_v54 = vmul.f32 %v12296_v22, %v5530_v17  ;;  %v5533_v38 = vadd.f32 -0.28449672, %v5517_v57  ;;  %v5502_v11 = vadd.f32 1.4214138, %v5486_v2  ;;  %7681 = vpow2.f32 %v12303_v25  ;;  %v14106_v62 = vld [vmem:[#allocation197_spill] sm:$0xff] }
0x1064   : > { %v5576_v29 = vmul.f32 %v12278_v30, %v5560_v15  ;;  %v5563_v26 = vadd.f32 0.2548296, %v5547_v9  ;;  %v5519_v8 = vmul.f32 %v12352_v36, %v5503_v59  ;;  %v5532_v35 = vadd.f32 -0.28449672, %v5516_v50  ;;  %v14110_v59 = vld [vmem:[#allocation126_spill] sm:$0xff] }
0x1065   : > { %v5562_v16 = vadd.f32 0.2548296, %v5546_v54  ;;  %v5549_v61 = vmul.f32 %v12327_v28, %v5533_v38  ;;  %v5518_v55 = vmul.f32 %v12340_v47, %v5502_v11  ;;  %vm5340_vm1 = vcmp.ge.f32.partialorder %v14099_v56, 0.0  ;;  %v14111_v38 = vld [vmem:[#allocation128_spill] sm:$0xff] }
0x1066   : > { %v5656_v13 = vmul.f32 %v14098_v48, %v5576_v29  ;;  %v5579_v0 = vmul.f32 %v12308_v46, %v5563_v26  ;;  %v5535_v60 = vadd.f32 -0.28449672, %v5519_v8  ;;  %v5548_v30 = vmul.f32 %v12316_v27, %v5532_v35 }
0x1067   : > { %v5578_v25 = vmul.f32 %v12296_v22, %v5562_v16  ;;  %v5565_v19 = vadd.f32 0.2548296, %v5549_v61  ;;  %v5534_v3 = vadd.f32 -0.28449672, %v5518_v55  ;;  %v14102_v1 = vmov -1.0   ;;  %v14112_v61 = vld [vmem:[#allocation136_spill] sm:$0xff] }
0x1068   : > { %v5672_v32 = vsub.f32 1.0, %v5656_v13  ;;  %v5659_v41 = vmul.f32 %v14100_v6, %v5579_v0  ;;  %v5551_v4 = vmul.f32 %v12352_v36, %v5535_v60  ;;  %v5564_v53 = vadd.f32 0.2548296, %v5548_v30  ;;  %v14113_v60 = vld [vmem:[#allocation40_spill] sm:$0xff] }
0x1069   : > { %v5658_v39 = vmul.f32 %v14101_v45, %v5578_v25  ;;  %v5581_v63 = vmul.f32 %v12327_v28, %v5565_v19  ;;  %v5550_v46 = vmul.f32 %v12340_v47, %v5534_v3  ;;  %v5357_v22 = vsel %vm5341_vm15, 1.0, %v14102_v1  ;;  %v14114_v19 = vld [vmem:[#allocation201_spill] sm:$0xff] }
0x106a   : > { %v5688_v12 = vmul.f32 %v5672_v32, %v14103_v42  ;;  %v5675_v10 = vsub.f32 1.0, %v5659_v41  ;;  %v5567_v52 = vadd.f32 0.2548296, %v5551_v4  ;;  %v5580_v34 = vmul.f32 %v12316_v27, %v5564_v53  ;;  %v14109_v27 = vld [vmem:[#allocation39_spill] sm:$0xff]  ;;  %v5936_v42 = vld [vmem:[%s12666_s14 + $0x90] sm:$0xff] }
0x106b   : > { %v5674_v40 = vsub.f32 1.0, %v5658_v39  ;;  %v5661_v33 = vmul.f32 %v7678_v58, %v5581_v63  ;;  %v5566_v7 = vadd.f32 0.2548296, %v5550_v46  ;;  %v7680_v51 = vpop.eup %7679  ;;  %vm5342_vm2 = vcmp.ge.f32.partialorder %v14104_v14, 0.0  ;;  %v14108_v58 = vld [vmem:[#allocation42_spill] sm:$0xff]  ;;  %v14115_v41 = vld [vmem:[#allocation123_spill] sm:$0xff] }
0x106c   : > { %v5704_v28 = vadd.f32 1.0, %v5688_v12  ;;  %v5691_v20 = vmul.f32 %v5675_v10, %v14105_v24  ;;  %v5583_v21 = vmul.f32 %v12352_v36, %v5567_v52  ;;  %v5660_v5 = vmul.f32 %v14107_v23, %v5580_v34  ;;  %v5934_v39 = vld [vmem:[%s12666_s14 + $0x80] sm:$0xff]  ;;  %v5935_v63 = vld [vmem:[%s12666_s14 + $0x88] sm:$0xff]  ;;  %v5937_v12 = vld [vmem:[%s12666_s14 + $0x98] sm:$0xff] }
0x106d   : > { %v5690_v49 = vmul.f32 %v5674_v40, %v14106_v62  ;;  %v5677_v31 = vsub.f32 1.0, %v5661_v33  ;;  %v5582_v44 = vmul.f32 %v12340_v47, %v5566_v7  ;;  %v7682_v37 = vpop.eup %7681  ;;  %vm5343_vm3 = vcmp.ge.f32.partialorder %v14108_v58, 0.0  ;;  %v5918_v46 = vld [vmem:[%s12666_s14] sm:$0xff]  ;;  %v5920_v52 = vld [vmem:[%s12666_s14 + $0x10] sm:$0xff]  ;;  %v5921_v40 = vld [vmem:[%s12666_s14 + $0x18] sm:$0xff] }
0x106e   : > { %v5720_v18 = vmul.f32 %v5704_v28, %v14109_v27  ;;  %v5707_v17 = vadd.f32 1.0, %v5691_v20  ;;  %v5663_v57 = vmul.f32 %v7680_v51, %v5583_v21  ;;  %v5676_v15 = vsub.f32 1.0, %v5660_v5  ;;  %v5938_v34 = vld [vmem:[%s12666_s14 + $0xa0] sm:$0xff]  ;;  %v5939_v7 = vld [vmem:[%s12666_s14 + $0xa8] sm:$0xff]  ;;  %v5940_v20 = vld [vmem:[%s12666_s14 + $0xb0] sm:$0xff] }
0x106f   : > { %v5706_v43 = vadd.f32 1.0, %v5690_v49  ;;  %v5693_v2 = vmul.f32 %v5677_v31, %v5357_v22  ;;  %v5662_v9 = vmul.f32 %v7682_v37, %v5582_v44  ;;  %v5356_v36 = vsel %vm5340_vm1, 1.0, %v14102_v1  ;;  %v5922_v14 = vld [vmem:[%s12666_s14 + $0x20] sm:$0xff]  ;;  %v5923_v28 = vld [vmem:[%s12666_s14 + $0x28] sm:$0xff]  ;;  %v5941_v21 = vld [vmem:[%s12666_s14 + $0xb8] sm:$0xff] }
0x1070   : > { %v5309_v54 = vmul.f32 0.5, %v14110_v59  ;;  %5817 = vmatmul.mubr.f32.gmra.mrb[168].mxu0 %v5720_v18  ;;  %v5723_v47 = vmul.f32 %v5707_v17, %v14111_v38  ;;  %v5679_v50 = vsub.f32 1.0, %v5663_v57  ;;  %v5359_v11 = vsel %vm5343_vm3, 1.0, %v14102_v1  ;;  %v5924_v49 = vld [vmem:[%s12666_s14 + $0x30] sm:$0xff]  ;;  %v5925_v31 = vld [vmem:[%s12666_s14 + $0x38] sm:$0xff]  ;;  %v5942_v5 = vld [vmem:[%s12666_s14 + $0xc0] sm:$0xff] }
0x1071   : > { %v5709_v29 = vadd.f32 1.0, %v5693_v2  ;;  %v5692_v26 = vmul.f32 %v5676_v15, %v5356_v36  ;;  %v5678_v8 = vsub.f32 1.0, %v5662_v9  ;;  %v5358_v16 = vsel %vm5342_vm2, 1.0, %v14102_v1  ;;  %v5919_v1 = vld [vmem:[%s12666_s14 + $0x8] sm:$0xff]  ;;  %v5926_v58 = vld [vmem:[%s12666_s14 + $0x40] sm:$0xff]  ;;  %v5944_v17 = vld [vmem:[%s12666_s14 + $0xd0] sm:$0xff] }
0x1072   : > { %5822 = vmatprep.mubr.f32.mxu0 %v5723_v47  ;;  %v5722_v35 = vmul.f32 %v5706_v43, %v14112_v61  ;;  %v5695_v55 = vmul.f32 %v5679_v50, %v5359_v11  ;;  %v5308_v25 = vmul.f32 0.5, %v14113_v60  ;;  %v5311_v30 = vmul.f32 0.5, %v14114_v19  ;;  %v5943_v44 = vld [vmem:[%s12666_s14 + $0xc8] sm:$0xff]  ;;  %v5945_v57 = vld [vmem:[%s12666_s14 + $0xd8] sm:$0xff]  ;;  %v5928_v2 = vld [vmem:[%s12666_s14 + $0x50] sm:$0xff] }
0x1073   : > { %v5725_v48 = vmul.f32 %v5709_v29, %v5309_v54  ;;  %v5708_v13 = vadd.f32 1.0, %v5692_v26  ;;  %v5694_v0 = vmul.f32 %v5678_v8, %v5358_v16  ;;  %v5310_v4 = vmul.f32 0.5, %v14115_v41  ;;  %v5927_v27 = vld [vmem:[%s12666_s14 + $0x48] sm:$0xff]  ;;  %v5929_v15 = vld [vmem:[%s12666_s14 + $0x58] sm:$0xff]  ;;  %v5946_v36 = vld [vmem:[%s12666_s14 + $0xe0] sm:$0xff] }
0x1074   : > { %5823 = vmatmul.mubr.f32.gmra.mrb[170].mxu0 %v5722_v35  ;;  %v5711_v3 = vadd.f32 1.0, %v5695_v55  ;;  %v7351_v53 = vpack.c.bf16 %v5935_v63, %v5934_v39  ;;  %v7353_v22 = vpack.c.bf16 %v5919_v1, %v5918_v46  ;;  %v7355_v10 = vpack.c.bf16 %v5937_v12, %v5936_v42  ;;  %v5947_v59 = vld [vmem:[%s12666_s14 + $0xe8] sm:$0xff]  ;;  %v5930_v54 = vld [vmem:[%s12666_s14 + $0x60] sm:$0xff]  ;;  %v5948_v50 = vld [vmem:[%s12666_s14 + $0xf0] sm:$0xff] }
0x1075   : > { %5828 = vmatprep.mubr.f32.mxu0 %v5725_v48  ;;  %v5724_v56 = vmul.f32 %v5708_v13, %v5308_v25  ;;  %v5710_v6 = vadd.f32 1.0, %v5694_v0  ;;  %v7357_v33 = vpack.c.bf16 %v5921_v40, %v5920_v52  ;;  %v7359_v51 = vpack.c.bf16 %v5939_v7, %v5938_v34  ;;  %v5931_v47 = vld [vmem:[%s12666_s14 + $0x68] sm:$0xff]  ;;  %v5949_v11 = vld [vmem:[%s12666_s14 + $0xf8] sm:$0xff]  ;;  %v5932_v8 = vld [vmem:[%s12666_s14 + $0x70] sm:$0xff] }
0x1076   : > { %v5727_v32 = vmul.f32 %v5711_v3, %v5311_v30  ;;  %7352 = vmatprep.subr.bf16.mxu1 %v7351_v53  ;;  %v7361_v24 = vpack.c.bf16 %v5923_v28, %v5922_v14  ;;  %v7363_v62 = vpack.c.bf16 %v5941_v21, %v5940_v20  ;;  %v7365_v23 = vpack.c.bf16 %v5925_v31, %v5924_v49  ;;  %v5933_v16 = vld [vmem:[%s12666_s14 + $0x78] sm:$0xff]  ;;  %v14116_v55 = vld [vmem:[#allocation183_spill] sm:$0xff]  ;;  %v14117_v0 = vld [vmem:[#allocation176_spill] sm:$0xff] }
0x1077   : > { %v5726_v45 = vmul.f32 %v5710_v6, %v5310_v4  ;;  %7354 = vmatpush3.bf16.msra.mxu1 %v7353_v22  ;;  %v7367_v37 = vpack.c.bf16 %v5943_v44, %v5942_v5  ;;  %v7369_v18 = vpack.c.bf16 %v5927_v27, %v5926_v58  ;;  %v7371_v43 = vpack.c.bf16 %v5945_v57, %v5944_v17  ;;  %v14118_v25 = vld [vmem:[#allocation184_spill] sm:$0xff]  ;;  %v14120_v4 = vld [vmem:[#allocation182_spill] sm:$0xff]  ;;  %v14122_v46 = vld [vmem:[#allocation33_spill] sm:$0xff] }
0x1078   : > { %5829 = vmatmul.mubr.f32.gmra.mrb[172].mxu0 %v5724_v56  ;;  %7356 = vmatprep.subr.bf16.mxu1 %v7355_v10  ;;  %v7373_v9 = vpack.c.bf16 %v5929_v15, %v5928_v2  ;;  %v7375_v38 = vpack.c.bf16 %v5947_v59, %v5946_v36  ;;  %v7377_v29 = vpack.c.bf16 %v5931_v47, %v5930_v54  ;;  %v14119_v30 = vld [vmem:[#allocation28_spill] sm:$0xff]  ;;  %v14121_v39 = vld [vmem:[#allocation34_spill] sm:$0xff]  ;;  %v14123_v42 = vld [vmem:[#allocation193_spill] sm:$0xff] }
0x1079   : > { %5834 = vmatprep.mubr.f32.mxu0 %v5727_v32  ;;  %v7379_v26 = vpack.c.bf16 %v5949_v11, %v5948_v50  ;;  %v7381_v61 = vpack.c.bf16 %v5933_v16, %v5932_v8  ;;  %v14124_v34 = vld [vmem:[#allocation179_spill] sm:$0xff]  ;;  %v14128_v5 = vld [vmem:[#allocation192_spill] sm:$0xff]  ;;  %v14129_v57 = vld [vmem:[#allocation186_spill] sm:$0xff] }
0x107a   : > { %v14126_v28 = vld [vmem:[#allocation35_spill] sm:$0xff]  ;;  %v14131_v36 = vld [vmem:[#allocation36_spill] sm:$0xff] }
0x107b   : > { %7358 = vmatpush3.bf16.msra.mxu1 %v7357_v33  ;;  %v14130_v2 = vld [vmem:[#allocation135_spill] sm:$0xff] }
0x107c   : > { %5835 = vmatmul.mubr.f32.gmra.mrb[174].mxu0 %v5726_v45  ;;  %7360 = vmatprep.subr.bf16.mxu1 %v7359_v51  ;;  %v14125_v51 = vld [vmem:[#allocation191_spill] sm:$0xff] }
0x107f   : > { %7362 = vmatpush3.bf16.msra.mxu1 %v7361_v24 }
0x1080   : > { %7364 = vmatprep.subr.bf16.mxu1 %v7363_v62  ;;  %v14127_v62 = vld [vmem:[#allocation30_spill] sm:$0xff] }
0x1083   : > { %7366 = vmatpush3.bf16.msra.mxu1 %v7365_v23 }
0x1084   : > { %7368 = vmatprep.subr.bf16.mxu1 %v7367_v37 }
0x1087   : > { %7370 = vmatpush3.bf16.msra.mxu1 %v7369_v18 }
0x1088   : > { %7372 = vmatprep.subr.bf16.mxu1 %v7371_v43 }
0x108b   : > { %7374 = vmatpush3.bf16.msra.mxu1 %v7373_v9 }
0x108c   : > { %7376 = vmatprep.subr.bf16.mxu1 %v7375_v38  ;;  %v14132_v38 = vld [vmem:[#allocation194_spill] sm:$0xff] }
0x108f   : > { %7378 = vmatpush3.bf16.msra.mxu1 %v7377_v29  ;;  %v14133_v29 = vld [vmem:[#allocation180_spill] sm:$0xff] }
0x1090   : > { %7380 = vmatprep.subr.bf16.mxu1 %v7379_v26 }
0x1093   : > { %7382 = vmatpush3.bf16.msra.mxu1 %v7381_v61 }
0x1128   : > { %v5794_v35 = vpop.f32.mrb[160].mxu0 }
0x1129   : > { %v5795_v48 = vadd.f32 %v5794_v35, %v14116_v55  ;;  %v5796_v13 = vpop.f32.mrb[161].mxu0 }
0x112a   : > { %v5797_v60 = vadd.f32 %v5796_v13, %v14117_v0 }
0x112b   : > { %v5841_v19 = vadd.f32 %v5795_v48, %v14118_v25  ;;  %v14134_v25 = vld [vmem:[#allocation130_spill] sm:$0xff] }
0x112c   : > { %v5842_v3 = vadd.f32 %v5797_v60, %v14119_v30  ;;  %v5800_v56 = vpop.f32.mrb[162].mxu0  ;;  %v14135_v30 = vld [vmem:[#allocation22_spill] sm:$0xff] }
0x112d   : > { %v5801_v32 = vadd.f32 %v5800_v56, %v14116_v55  ;;  %v5802_v6 = vpop.f32.mrb[163].mxu0  ;;  %v5857_v45 = vmul.f32 %v5841_v19, %v14120_v4 }
0x112e   : > { %v5803_v41 = vadd.f32 %v5802_v6, %v14117_v0  ;;  %v5858_v53 = vmul.f32 %v5842_v3, %v14120_v4 }
0x112f   : > { %v5843_v63 = vadd.f32 %v5801_v32, %v14121_v39  ;;  %v5873_v7 = vadd.f32 %v5857_v45, %v14124_v34  ;;  %v14136_v32 = vld [vmem:[#allocation188_spill] sm:$0xff] }
0x1130   : > { %v5844_v1 = vadd.f32 %v5803_v41, %v14122_v46  ;;  %v5806_v22 = vpop.f32.mrb[164].mxu0  ;;  %v5874_v20 = vadd.f32 %v5858_v53, %v14124_v34  ;;  %v14138_v46 = vld [vmem:[#allocation38_spill] sm:$0xff] }
0x1131   : > { %v5859_v12 = vmul.f32 %v5843_v63, %v14123_v42  ;;  %v5807_v10 = vadd.f32 %v5806_v22, %v14116_v55  ;;  %v5808_v52 = vpop.f32.mrb[165].mxu0  ;;  %v14137_v63 = vld [vmem:[#allocation187_spill] sm:$0xff] }
0x1132   : > { %v5860_v40 = vmul.f32 %v5844_v1, %v14123_v42  ;;  %v5809_v33 = vadd.f32 %v5808_v52, %v14117_v0  ;;  %v14139_v42 = vld [vmem:[#allocation37_spill] sm:$0xff] }
0x1133   : > { %v5875_v14 = vadd.f32 %v5859_v12, %v14125_v51  ;;  %v5845_v24 = vadd.f32 %v5807_v10, %v14126_v28 }
0x1134   : > { %v5876_v21 = vadd.f32 %v5860_v40, %v14125_v51  ;;  %v5846_v49 = vadd.f32 %v5809_v33, %v14127_v62  ;;  %v5812_v31 = vpop.f32.mrb[166].mxu0  ;;  %v14140_v40 = vld [vmem:[#allocation190_spill] sm:$0xff] }
0x1135   : > { %v5889_v23 = vadd.f32 %v5875_v14, %v5873_v7  ;;  %v5861_v44 = vmul.f32 %v5845_v24, %v14128_v5  ;;  %v5813_v37 = vadd.f32 %v5812_v31, %v14116_v55  ;;  %v5814_v58 = vpop.f32.mrb[167].mxu0  ;;  %v14141_v24 = vld [vmem:[#allocation195_spill] sm:$0xff]  ;;  %v14143_v31 = vld [vmem:[#allocation196_spill] sm:$0xff] }
0x1136   : > { %v5902_v27 = vadd.f32 %v5876_v21, %v5874_v20  ;;  %v5862_v18 = vmul.f32 %v5846_v49, %v14128_v5  ;;  %v5815_v17 = vadd.f32 %v5814_v58, %v14117_v0  ;;  %v14142_v21 = vld [vmem:[#allocation140_spill] sm:$0xff] }
0x1137   : > { %v5877_v43 = vadd.f32 %v5861_v44, %v14129_v57  ;;  %v5847_v15 = vadd.f32 %v5813_v37, %v14130_v2  ;;  %v14144_v37 = vld [vmem:[#allocation178_spill] sm:$0xff]  ;;  %v14145_v2 = vld [vmem:[#allocation181_spill] sm:$0xff] }
0x1138   : > { %v5878_v9 = vadd.f32 %v5862_v18, %v14129_v57  ;;  %v5848_v59 = vadd.f32 %v5815_v17, %v14131_v36 }
0x1139   : > { %v5890_v54 = vadd.f32 %v5889_v23, %v5877_v43  ;;  %v5863_v47 = vmul.f32 %v5847_v15, %v14132_v38 }
0x113a   : > { %v5903_v50 = vadd.f32 %v5902_v27, %v5878_v9  ;;  %v5864_v11 = vmul.f32 %v5848_v59, %v14132_v38  ;;  %v14146_v9 = vld [vmem:[#allocation177_spill] sm:$0xff] }
0x113b   : > { %v5879_v26 = vadd.f32 %v5863_v47, %v14133_v29 }
0x113c   : > { %v5880_v8 = vadd.f32 %v5864_v11, %v14133_v29 }
0x113d   : > { %v5891_v16 = vadd.f32 %v5890_v54, %v5879_v26  ;;  %v14147_v54 = vld [vmem:[#allocation132_spill] sm:$0xff]  ;;  %v14149_v26 = vld [vmem:[#allocation189_spill] sm:$0xff] }
0x113e   : > { %v5904_v61 = vadd.f32 %v5903_v50, %v5880_v8  ;;  %v14148_v50 = vld [vmem:[#allocation175_spill] sm:$0xff] }
0x1143   : > { %v5818_v35 = vpop.f32.mrb[168].mxu0 }
0x1144   : > { %v5819_v48 = vadd.f32 %v5818_v35, %v14116_v55  ;;  %v5820_v13 = vpop.f32.mrb[169].mxu0 }
0x1145   : > { %v5821_v60 = vadd.f32 %v5820_v13, %v14117_v0 }
0x1146   : > { %v5849_v19 = vadd.f32 %v5819_v48, %v14134_v25 }
0x1147   : > { %v5850_v3 = vadd.f32 %v5821_v60, %v14135_v30  ;;  %v5824_v56 = vpop.f32.mrb[170].mxu0 }
0x1148   : > { %v5865_v6 = vmul.f32 %v5849_v19, %v14136_v32  ;;  %v5825_v41 = vadd.f32 %v5824_v56, %v14116_v55  ;;  %v5826_v4 = vpop.f32.mrb[171].mxu0 }
0x1149   : > { %v5866_v45 = vmul.f32 %v5850_v3, %v14136_v32  ;;  %v5827_v39 = vadd.f32 %v5826_v4, %v14117_v0 }
0x114a   : > { %v5881_v53 = vadd.f32 %v5865_v6, %v14137_v63  ;;  %v5851_v1 = vadd.f32 %v5825_v41, %v14138_v46 }
0x114b   : > { %v5882_v22 = vadd.f32 %v5866_v45, %v14137_v63  ;;  %v5852_v12 = vadd.f32 %v5827_v39, %v14139_v42  ;;  %v5830_v10 = vpop.f32.mrb[172].mxu0  ;;  %v5950_v63 = vld [vmem:[%s12667_s15] sm:$0x1] }
0x114c   : > { %v5892_v52 = vadd.f32 %v5891_v16, %v5881_v53  ;;  %v5867_v33 = vmul.f32 %v5851_v1, %v14140_v40  ;;  %v5831_v34 = vadd.f32 %v5830_v10, %v14116_v55  ;;  %v5832_v7 = vpop.f32.mrb[173].mxu0 }
0x114d   : > { %v5905_v51 = vadd.f32 %v5904_v61, %v5882_v22  ;;  %v5868_v14 = vmul.f32 %v5852_v12, %v14140_v40  ;;  %v5833_v28 = vadd.f32 %v5832_v7, %v14117_v0 }
0x114e   : > { %v5883_v20 = vadd.f32 %v5867_v33, %v14141_v24  ;;  %v5853_v62 = vadd.f32 %v5831_v34, %v14142_v21 }
0x114f   : > { %v5884_v49 = vadd.f32 %v5868_v14, %v14141_v24  ;;  %v5854_v23 = vadd.f32 %v5833_v28, %v14143_v31  ;;  %v5836_v5 = vpop.f32.mrb[174].mxu0 }
0x1150   : > { %v5893_v44 = vadd.f32 %v5892_v52, %v5883_v20  ;;  %v5869_v58 = vmul.f32 %v5853_v62, %v14144_v37  ;;  %v5837_v27 = vadd.f32 %v5836_v5, %v14116_v55  ;;  %v5838_v18 = vpop.f32.mrb[175].mxu0 }
0x1151   : > { %v5906_v17 = vadd.f32 %v5905_v51, %v5884_v49  ;;  %v5870_v57 = vmul.f32 %v5854_v23, %v14144_v37  ;;  %v5839_v43 = vadd.f32 %v5838_v18, %v14117_v0 }
0x1152   : > { %v5885_v15 = vadd.f32 %v5869_v58, %v14145_v2  ;;  %v5855_v36 = vadd.f32 %v5837_v27, %v14146_v9 }
0x1153   : > { %v5886_v59 = vadd.f32 %v5870_v57, %v14145_v2  ;;  %v5856_v38 = vadd.f32 %v5839_v43, %v14147_v54 }
0x1154   : > { %v5894_v47 = vadd.f32 %v5893_v44, %v5885_v15  ;;  %v5871_v11 = vmul.f32 %v5855_v36, %v14148_v50 }
0x1155   : > { %v5907_v29 = vadd.f32 %v5906_v17, %v5886_v59  ;;  %v5872_v55 = vmul.f32 %v5856_v38, %v14148_v50 }
0x1156   : > { %v5887_v8 = vadd.f32 %v5871_v11, %v14149_v26 }
0x1157   : > { %v5888_v16 = vadd.f32 %v5872_v55, %v14149_v26 }
0x1158   : > { %v5895_v61 = vadd.f32 %v5894_v47, %v5887_v8 }
0x1159   : > { %v5908_v0 = vadd.f32 %v5907_v29, %v5888_v16 }
0x115a   : > { %v5896_v35 = vrot.slane %v5895_v61, 4 }
0x115b   : > { %v5909_v48 = vrot.slane %v5908_v0, 4 }
0x115c   : > { %v5897_v13 = vadd.f32 %v5896_v35, %v5895_v61 }
0x115d   : > { %v5910_v60 = vadd.f32 %v5909_v48, %v5908_v0 }
0x115e   : > { %v5898_v25 = vrot.slane %v5897_v13, 2 }
0x115f   : > { %v5911_v19 = vrot.slane %v5910_v60, 2 }
0x1160   : > { %v5899_v30 = vadd.f32 %v5898_v25, %v5897_v13 }
0x1161   : > { %v5912_v3 = vadd.f32 %v5911_v19, %v5910_v60 }
0x1162   : > { %v5900_v56 = vrot.slane %v5899_v30, 1 }
0x1163   : > { %v5913_v32 = vrot.slane %v5912_v3, 1 }
0x1164   : > { %v5901_v6 = vadd.f32 %v5900_v56, %v5899_v30 }
0x1165   : > { %v5914_v41 = vadd.f32 %v5913_v32, %v5912_v3 }
0x1166   : > { %v5916_v45 = vmul.f32 0.015625, %v5901_v6 }
0x1167   : > { %v5917_v4 = vmul.f32 0.015625, %v5914_v41 }
0x1169   : > { %6015 = vmatprep.mubr.f32.mxu1 %v5917_v4 }
0x116a   : > { %6016 = vmatmul.mubr.f32.vlgmr.msra.gmra.mrb[224].mxu1 %v5916_v45 }
0x123d   : > { %v6196_v39 = vpop.f32.mrb[224].mxu1 }
0x123e   : > { %v6197_v53 = vpop.f32.mrb[225].mxu1 }
0x123f   : > { %v6198_v46 = vadd.f32 %v6197_v53, %v6196_v39 }
0x1241   : > { %v6018_v1 = vadd.f32 %v6198_v46, %v5950_v63 }
0x1243   : > { %6021 = vst [vmem:[%s513_s23] sm:$0x1] %v6018_v1 }
0x1244   : > { %7744 = shalt.err (!%p7741_p3)
}
0x1245   : > { %s7745_s16 = scalar_lea.hbm %s12610_s21, 16  ;;  %s7749_s27 = scalar_lea.hbm %s14151_s19, 32 }
0x1246   : > { %p7746_p4 = scmp.ne.s32.totalorder %s12610_s21, %s7745_s16  ;;  %p7750_p9 = scmp.lt.u32.totalorder %s12610_s21, %s14151_s19 }
0x1247   : > { %p7751_p10 = scmp.lt.u32.totalorder %s7749_s27, %s7745_s16  ;;  %p7753_p12 = scmp.lt.u32.totalorder %s7745_s16, %s12610_s21 }
0x1248   : > { %p7747_p7 = pnand %p7746_p4, %p7922_p5 }
0x1249   : > { %p7752_p11 = por %p7751_p10, %p7750_p9 }
0x124a   : > { %p7748_p8 = pneg %p7747_p7 }
0x124b   : > { %p7754_p13 = por %p7753_p12, %p7752_p11 }
0x124d   : > { %p7755_p0 = pnand %p7754_p13, %p7748_p8 }
0x124f   : > { %7758 = shalt.err (!%p7755_p0)
}
0x1250   : > { %7383 = dma.vmem_to_hbm [thread:$0]  (%p7922_p5), %s12612_s30, 16, %s12610_s21, %s6023_s29  }
0x1251 PF: > { %s14152_s26 = sld [smem:[#allocation7_spill]]  ;;  %s14153_s25 = sld [smem:[#allocation5_spill]] }
0x1257   : > { %p7389_p1 = scmp.ge.s32.totalorder %s14152_s26, 2  ;;  %s6047_s20 = sand.u32 1, %s14153_s25  }
0x1258   : > { %s6048_s28 = scalar_lea.sflag [#allocation3], %s6047_s20 }
0x1259   : > { %p7386_p2 = pnand %p7389_p1, %p7926_p6 }
0x125b   : > { %7776 = dma.done.wait (!%p7386_p2), %s6048_s28, 16  }
0x125c   : > { %7778 = vsyncadd (!%p7386_p2), %s6048_s28, 4294967280  ;;  %s14155_s24 = sld [smem:[#allocation8_spill]]  ;;  %s14156_s16 = sld [smem:[#allocation6_spill]] }
0x125d   : > { %s14157_s23 = sld [smem:[#allocation9_spill]]  ;;  %s14158_s21 = smov %s7785_s22 }
0x1262   : > { %p26_p3 = scmp.ge.s32.totalorder %s14155_s24, 4   ;;  %s14159_s22 = smov %s14156_s16 }
0x1264   :  { %28 = sbr.rel (!%p26_p3) target bundleno = 6 (0x6), region = 119 }
0x126b   :  { %6052 = vsyncpa [#allocation3], 1 }
0x126c   :  { %6054 = vsyncpa [#allocation3 + $0x1], 1 }

</bundles_post_ra>
